<compile_context>
chip_gen: v6e
topology: v6e:2x2x1
jax: 0.10.0
libtpu: 0.0.40
codegen_flags: <defaults>
</compile_context>

<pallas_src>
import functools

import jax
import jax.numpy as jnp
from jax.experimental import pallas as pl
from jax.experimental.pallas import tpu as pltpu

_VMEM_LIMIT = 48 * 1024 * 1024  # fits v5e/v6e/v7x scoped VMEM comfortably
_TP_MAX = 1024                  # max rows (H*W pixels) per matmul tile


def _round_up(x, m):
    return ((x + m - 1) // m) * m


def _choose_tile(P, K, C, budget=20 << 20):
    """Pick a power-of-two row tile that divides P and fits the VMEM budget."""
    tp = min(_TP_MAX, P)
    # double-buffered: patches bf16 + y f32 + out bf16 per row, plus bf16 weight x2
    while tp > 8 and 2 * tp * (2 * K + 4 * C + 2 * C) + 4 * K * C > budget:
        tp //= 2
    while P % tp:
        tp //= 2
    return max(tp, 1)


# ----------------------------------------------------------------------------
# Pallas kernels
# ----------------------------------------------------------------------------
def _apply_act(y, act):
    if act == "leaky_relu":
        return jnp.where(y > 0, y, 0.2 * y)
    if act == "relu":
        return jnp.maximum(y, 0.0)
    if act == "tanh":
        return jnp.tanh(y)
    return y


def _matmul_moments_kernel(p_ref, w_ref, b_ref, y_ref, sum_ref, sq_ref,
                           sum_sc, sq_sc):
    """Pass A: y = patches @ W + b  (f32); accumulate per-channel sum / sumsq."""
    g = pl.program_id(1)
    t = pl.program_id(2)

    @pl.when((g == 0) & (t == 0))
    def _():
        sum_sc[...] = jnp.zeros_like(sum_sc)
        sq_sc[...] = jnp.zeros_like(sq_sc)

    y = jnp.dot(p_ref[0, 0], w_ref[0],
                preferred_element_type=jnp.float32) + b_ref[...]
    sum_sc[...] += jnp.sum(y, axis=0, keepdims=True)
    sq_sc[...] += jnp.sum(y * y, axis=0, keepdims=True)
    y_ref[0, 0] = y.astype(y_ref.dtype)

    @pl.when((g == pl.num_programs(1) - 1) & (t == pl.num_programs(2) - 1))
    def _():
        sum_ref[0] = sum_sc[...]
        sq_ref[0] = sq_sc[...]


def _make_matmul_act_kernel(act):
    """Single-pass layer (no InstanceNorm): y = act(patches @ W + b)."""
    def kernel(p_ref, w_ref, b_ref, o_ref):
        y = jnp.dot(p_ref[0, 0], w_ref[0],
                    preferred_element_type=jnp.float32) + b_ref[...]
        o_ref[0, 0] = _apply_act(y, act).astype(o_ref.dtype)
    return kernel


def _make_norm_act_kernel(act):
    """Pass B: out = act((y - mean) * inv_std)."""
    def kernel(y_ref, mean_ref, inv_ref, o_ref):
        y = (y_ref[0, 0] - mean_ref[0]) * inv_ref[0]
        o_ref[0, 0] = _apply_act(y, act).astype(o_ref.dtype)
    return kernel


# ----------------------------------------------------------------------------
# Fused layer wrapper:  patches (N,G,P,Kp) @ W (G,Kp,Cp) + b -> norm -> act
# ----------------------------------------------------------------------------
def fused_conv_layer(patches, w, b, *, apply_norm, act,
                     out_dtype=jnp.bfloat16, eps=1e-5):
    N, G, P, Kp = patches.shape
    Cp = w.shape[-1]
    TP = _choose_tile(P, Kp, Cp)
    PT = P // TP
    grid = (N, G, PT)

    p_spec = pl.BlockSpec((1, 1, TP, Kp), lambda n, g, t: (n, g, t, 0))
    w_spec = pl.BlockSpec((1, Kp, Cp), lambda n, g, t: (g, 0, 0))
    b_spec = pl.BlockSpec((1, Cp), lambda n, g, t: (0, 0))
    o_spec = pl.BlockSpec((1, 1, TP, Cp), lambda n, g, t: (n, g, t, 0))
    stat_spec = pl.BlockSpec((1, 1, Cp), lambda n, g, t: (n, 0, 0))

    if not apply_norm:
        return pl.pallas_call(
            _make_matmul_act_kernel(act),
            out_shape=jax.ShapeDtypeStruct((N, G, P, Cp), out_dtype),
            grid=grid,
            in_specs=[p_spec, w_spec, b_spec],
            out_specs=o_spec,
            compiler_params=pltpu.CompilerParams(
                dimension_semantics=("parallel", "parallel", "parallel"),
                vmem_limit_bytes=_VMEM_LIMIT),
        )(patches, w, b)

    # ---- Pass A: matmul + bias + per-sample/channel moments -----------------
    y, s1, s2 = pl.pallas_call(
        _matmul_moments_kernel,
        out_shape=(jax.ShapeDtypeStruct((N, G, P, Cp), jnp.float32),
                   jax.ShapeDtypeStruct((N, 1, Cp), jnp.float32),
                   jax.ShapeDtypeStruct((N, 1, Cp), jnp.float32)),
        grid=grid,
        in_specs=[p_spec, w_spec, b_spec],
        out_specs=(o_spec, stat_spec, stat_spec),
        scratch_shapes=[pltpu.VMEM((1, Cp), jnp.float32),
                        pltpu.VMEM((1, Cp), jnp.float32)],
        compiler_params=pltpu.CompilerParams(
            dimension_semantics=("parallel", "arbitrary", "arbitrary"),
            vmem_limit_bytes=_VMEM_LIMIT),
    )(patches, w, b)

    # tiny moment -> mean / inv_std math (f32, plain JAX)
    cnt = jnp.float32(G * P)
    mean = s1 / cnt                                        # (N, 1, Cp)
    var = jnp.maximum(s2 / cnt - mean * mean, 0.0)
    inv = jax.lax.rsqrt(var + eps)

    # ---- Pass B: normalize + activation --------------------------------------
    return pl.pallas_call(
        _make_norm_act_kernel(act),
        out_shape=jax.ShapeDtypeStruct((N, G, P, Cp), out_dtype),
        grid=grid,
        in_specs=[o_spec, stat_spec, stat_spec],
        out_specs=o_spec,
        compiler_params=pltpu.CompilerParams(
            dimension_semantics=("parallel", "parallel", "parallel"),
            vmem_limit_bytes=_VMEM_LIMIT),
    )(y, mean, inv)


# ----------------------------------------------------------------------------
# Patch extraction (plain-JAX glue, bf16)
# ----------------------------------------------------------------------------
# TODO(synk): patch extraction could be moved in-kernel (halo DMA + 16 tap
# matmuls) to remove the im2col HBM round trip entirely.
def _conv_patches(x):
    """Conv2d(4,2,1): x (N,H,W,C) -> (N, 1, Ho*Wo, 16*C), Ho, Wo."""
    N, H, W, C = x.shape
    Ho, Wo = H // 2, W // 2
    xp = jnp.pad(x, ((0, 0), (1, 1), (1, 1), (0, 0)))
    cols = []
    for kh in range(4):
        for kw in range(4):
            cols.append(xp[:, kh:kh + 2 * Ho:2, kw:kw + 2 * Wo:2, :])
    p = jnp.stack(cols, axis=3).reshape(N, Ho * Wo, 16 * C)
    return p[:, None], Ho, Wo


def _parity_offsets(a):
    return (-1, 0) if a == 0 else (0, 1)


def _parity_ktaps(a):
    # (input offset, kernel index) pairs for ConvTranspose2d(4,2,1) output parity a
    return ((-1, 3), (0, 1)) if a == 0 else ((0, 2), (1, 0))


def _convT_parity_patches(x):
    """ConvTranspose2d(4,2,1) as 4 parity sub-convs: x (N,H,W,C) -> (N,4,H*W,4*C)."""
    N, H, W, C = x.shape
    xp = jnp.pad(x, ((0, 0), (1, 1), (1, 1), (0, 0)))
    groups = []
    for a in range(2):
        for b in range(2):
            taps = []
            for dy in _parity_offsets(a):
                for dx in _parity_offsets(b):
                    taps.append(xp[:, 1 + dy:1 + dy + H, 1 + dx:1 + dx + W, :])
            groups.append(jnp.stack(taps, axis=3).reshape(N, H * W, 4 * C))
    return jnp.stack(groups, axis=1), H, W


def _interleave_parity(y, N, H, W, C):
    """y (N, 4, H*W, C) with parity p=2a+b -> (N, 2H, 2W, C)."""
    y = y.reshape(N, 2, 2, H, W, C)
    y = jnp.transpose(y, (0, 3, 1, 4, 2, 5))
    return y.reshape(N, 2 * H, 2 * W, C)


def _pad_last(x, to):
    pad = to - x.shape[-1]
    if pad == 0:
        return x
    return jnp.pad(x, ((0, 0),) * (x.ndim - 1) + ((0, pad),))


# ----------------------------------------------------------------------------
# Weight packing (lane-dense: K, C padded to multiples of 128)
# ----------------------------------------------------------------------------
def _pack_conv_weight(w, b):
    """PyTorch Conv2d weight (Cout,Cin,4,4) -> ((1,Kp,Cp) bf16, (1,Cp) f32)."""
    Cout, Cin, kh, kw = w.shape
    m = jnp.transpose(w, (2, 3, 1, 0)).reshape(kh * kw * Cin, Cout)
    K, C = m.shape
    Kp, Cp = _round_up(K, 128), _round_up(C, 128)
    m = jnp.pad(m, ((0, Kp - K), (0, Cp - C))).astype(jnp.bfloat16)[None]
    bb = jnp.pad(b, (0, Cp - C)).astype(jnp.float32)[None]
    return m, bb


def _pack_convT_weight(w, b):
    """PyTorch ConvTranspose2d weight (Cin,Cout,4,4) -> ((4,Kp,Cp) bf16, (1,Cp) f32)."""
    Cin, Cout, _, _ = w.shape
    mats = []
    for a in range(2):
        for bb_ in range(2):
            taps = []
            for (_, ky) in _parity_ktaps(a):
                for (_, kx) in _parity_ktaps(bb_):
                    taps.append(w[:, :, ky, kx])           # (Cin, Cout)
            mats.append(jnp.concatenate(taps, axis=0))     # (4*Cin, Cout)
    m = jnp.stack(mats, axis=0)                            # (4, 4*Cin, Cout)
    K, C = m.shape[1], m.shape[2]
    Kp, Cp = _round_up(K, 128), _round_up(C, 128)
    m = jnp.pad(m, ((0, 0), (0, Kp - K), (0, Cp - C))).astype(jnp.bfloat16)
    bbias = jnp.pad(b, (0, Cp - C)).astype(jnp.float32)[None]
    return m, bbias


# ----------------------------------------------------------------------------
# Parameter init (deterministic, synthetic — no checkpoint load)
# ----------------------------------------------------------------------------
def init_params(key, filt=8):
    down_ch = [(3, filt, False), (filt, filt * 2, True), (filt * 2, filt * 4, True),
               (filt * 4, filt * 8, True), (filt * 8, filt * 8, True),
               (filt * 8, filt * 8, True)]
    up_ch = [(filt * 8, filt * 8), (filt * 16, filt * 8), (filt * 16, filt * 4),
             (filt * 8, filt * 2), (filt * 4, filt)]

    params = {"down": [], "down_norm": [], "up": [], "last": None}
    for (cin, cout, norm) in down_ch:
        key, k1, k2 = jax.random.split(key, 3)
        w = 0.05 * jax.random.normal(k1, (cout, cin, 4, 4), jnp.float32)
        b = 0.05 * jax.random.normal(k2, (cout,), jnp.float32)
        params["down"].append(_pack_conv_weight(w, b) + (cout,))
        params["down_norm"].append(norm)
    for (cin, cout) in up_ch:
        key, k1, k2 = jax.random.split(key, 3)
        w = 0.05 * jax.random.normal(k1, (cin, cout, 4, 4), jnp.float32)
        b = 0.05 * jax.random.normal(k2, (cout,), jnp.float32)
        params["up"].append(_pack_convT_weight(w, b) + (cout,))
    key, k1, k2 = jax.random.split(key, 3)
    w = 0.05 * jax.random.normal(k1, (filt * 2, 3, 4, 4), jnp.float32)
    b = 0.05 * jax.random.normal(k2, (3,), jnp.float32)
    params["last"] = _pack_convT_weight(w, b) + (3,)
    return params


# ----------------------------------------------------------------------------
# Forward pass (NCHW in / NCHW out, NHWC + bf16 internally)
# ----------------------------------------------------------------------------
def forward(params, x_nchw):
    x = jnp.transpose(x_nchw, (0, 2, 3, 1)).astype(jnp.bfloat16)   # NHWC bf16
    N = x.shape[0]

    # Downsample: Conv2d(4,2,1) + [InstanceNorm] + LeakyReLU(0.2)
    skips = []
    for (w, b, c_true), apply_norm in zip(params["down"], params["down_norm"]):
        p, Ho, Wo = _conv_patches(x)
        p = _pad_last(p, w.shape[1])
        y = fused_conv_layer(p, w, b, apply_norm=apply_norm, act="leaky_relu")
        x = y[:, 0, :, :c_true].reshape(N, Ho, Wo, c_true)
        skips.append(x)

    # Upsample: ConvTranspose2d(4,2,1) + InstanceNorm + ReLU [+ Dropout2d] + concat
    skips = list(reversed(skips[:-1]))
    for (w, b, c_true), s in zip(params["up"], skips):
        p, H, W = _convT_parity_patches(x)
        p = _pad_last(p, w.shape[1])
        y = fused_conv_layer(p, w, b, apply_norm=True, act="relu")
        x = _interleave_parity(y[..., :c_true], N, H, W, c_true)
        # TODO(synk): Dropout2d(0.5) on the first two upsamples is identity in
        # eval mode; training-mode stochastic channel dropout is not reproduced.
        # TODO(synk): concat still does a full HBM rewrite; could be folded into
        # the up-conv output BlockSpec (channel-offset write) in a future pass.
        x = jnp.concatenate([x, s], axis=-1)

    # Last: ConvTranspose2d(2*filter, 3, 4, 2, 1) + Tanh
    w, b, c_true = params["last"]
    p, H, W = _convT_parity_patches(x)
    p = _pad_last(p, w.shape[1])
    y = fused_conv_layer(p, w, b, apply_norm=False, act="tanh",
                         out_dtype=jnp.float32)
    x = _interleave_parity(y[..., :c_true], N, H, W, c_true)
    return jnp.transpose(x, (0, 3, 1, 2)).astype(jnp.float32)      # NCHW f32


if __name__ == "__main__":
    key = jax.random.PRNGKey(0)
    k_param, k_input = jax.random.split(key)

    FILT = 8                     # small `filter` for test (module default is 64)
    N, C, H, W = 2, 3, 64, 64    # 6 stride-2 downsamples need spatial >= 64

    params = init_params(k_param, filt=FILT)
    x = jax.random.normal(k_input, (N, C, H, W), jnp.float32)

    fwd = jax.jit(functools.partial(forward, params))
    out = fwd(x)
    jax.block_until_ready(out)

    assert out.shape == (N, 3, H, W), out.shape
    assert out.dtype == jnp.float32
    assert bool(jnp.all(jnp.isfinite(out)))
    print("KERNEL_OK")
</pallas_src>

<mosaic_0001>
module attributes {stable_mosaic.version = 11 : i64} {
  func.func @kernel(%arg0: i32, %arg1: i32, %arg2: i32, %arg3: memref<1x1x1024x128xbf16, #tpu.memory_space<vmem>>, %arg4: memref<1x128x128xbf16, #tpu.memory_space<vmem>>, %arg5: memref<1x128xf32, #tpu.memory_space<vmem>>, %arg6: memref<1x1x1024x128xbf16, #tpu.memory_space<vmem>>) attributes {dimension_semantics = [#tpu.dimension_semantics<parallel>, #tpu.dimension_semantics<parallel>, #tpu.dimension_semantics<parallel>], iteration_bounds = array<i64: 2, 1, 1>, scalar_prefetch = 0 : i64, scratch_operands = 0 : i64, tpu.core_type = #tpu.core_type<tc>, window_params = [{transform_indices = @transform_0, window_bounds = array<i64: 1, 1, 1024, 128>}, {transform_indices = @transform_1, window_bounds = array<i64: 1, 128, 128>}, {pipeline_mode = #tpu.pipeline_mode<synchronous>, transform_indices = @transform_2, window_bounds = array<i64: 1, 128>}, {transform_indices = @transform_3, window_bounds = array<i64: 1, 1, 1024, 128>}]} {
    %c0 = arith.constant 0 : index
    %c0_0 = arith.constant 0 : index
    %c0_1 = arith.constant 0 : index
    %c0_2 = arith.constant 0 : index
    %0 = vector.load %arg3[%c0, %c0_0, %c0_1, %c0_2] : memref<1x1x1024x128xbf16, #tpu.memory_space<vmem>>, vector<1x1x1024x128xbf16>
    %1 = vector.shape_cast %0 : vector<1x1x1024x128xbf16> to vector<1024x128xbf16>
    %c0_3 = arith.constant 0 : index
    %c0_4 = arith.constant 0 : index
    %c0_5 = arith.constant 0 : index
    %2 = vector.load %arg4[%c0_3, %c0_4, %c0_5] : memref<1x128x128xbf16, #tpu.memory_space<vmem>>, vector<1x128x128xbf16>
    %3 = vector.shape_cast %2 : vector<1x128x128xbf16> to vector<128x128xbf16>
    %cst = arith.constant dense<0.000000e+00> : vector<1024x128xf32>
    %4 = tpu.matmul %1, %3, %cst {dimension_numbers = #tpu.dot_dimension_numbers<[1], [0], [0], [1], [0, 0, 1, 1], [], []>} : vector<1024x128xbf16>, vector<128x128xbf16>, vector<1024x128xf32> -> vector<1024x128xf32>
    %c0_6 = arith.constant 0 : index
    %c0_7 = arith.constant 0 : index
    %5 = vector.load %arg5[%c0_6, %c0_7] : memref<1x128xf32, #tpu.memory_space<vmem>>, vector<1x128xf32>
    %6 = vector.broadcast %5 : vector<1x128xf32> to vector<1024x128xf32>
    %7 = arith.addf %4, %6 : vector<1024x128xf32>
    %cst_8 = arith.constant 0.000000e+00 : f32
    %8 = vector.broadcast %cst_8 : f32 to vector<1024x128xf32>
    %9 = arith.cmpf ogt, %7, %8 : vector<1024x128xf32>
    %cst_9 = arith.constant 2.000000e-01 : f32
    %10 = vector.broadcast %cst_9 : f32 to vector<1024x128xf32>
    %11 = arith.mulf %10, %7 : vector<1024x128xf32>
    %12 = arith.select %9, %7, %11 : vector<1024x128xi1>, vector<1024x128xf32>
    %13 = arith.truncf %12 : vector<1024x128xf32> to vector<1024x128xbf16>
    %c0_10 = arith.constant 0 : index
    %c0_11 = arith.constant 0 : index
    %c0_12 = arith.constant 0 : index
    %c0_13 = arith.constant 0 : index
    %14 = vector.load %arg6[%c0_10, %c0_11, %c0_12, %c0_13] : memref<1x1x1024x128xbf16, #tpu.memory_space<vmem>>, vector<1x1x1024x128xbf16>
    %15 = vector.shape_cast %14 : vector<1x1x1024x128xbf16> to vector<1024x128xbf16>
    %16 = vector.shape_cast %13 : vector<1024x128xbf16> to vector<1x1x1024x128xbf16>
    tpu.vector_store %arg6[%c0_10, %c0_11, %c0_12, %c0_13], %16 {strides = array<i32>} : memref<1x1x1024x128xbf16, #tpu.memory_space<vmem>>, vector<1x1x1024x128xbf16>,
    return
  }
  func.func @transform_0(%arg0: i32, %arg1: i32, %arg2: i32) -> (i32, i32, i32, i32) {
    %c0_i32 = arith.constant 0 : i32
    %c0_i32_0 = arith.constant 0 : i32
    return %arg0, %arg1, %arg2, %c0_i32 : i32, i32, i32, i32
  }
  func.func @transform_1(%arg0: i32, %arg1: i32, %arg2: i32) -> (i32, i32, i32) {
    %c0_i32 = arith.constant 0 : i32
    %c0_i32_0 = arith.constant 0 : i32
    %c0_i32_1 = arith.constant 0 : i32
    return %arg1, %c0_i32, %c0_i32_0 : i32, i32, i32
  }
  func.func @transform_2(%arg0: i32, %arg1: i32, %arg2: i32) -> (i32, i32) {
    %c0_i32 = arith.constant 0 : i32
    %c0_i32_0 = arith.constant 0 : i32
    %c0_i32_1 = arith.constant 0 : i32
    return %c0_i32, %c0_i32_0 : i32, i32
  }
  func.func @transform_3(%arg0: i32, %arg1: i32, %arg2: i32) -> (i32, i32, i32, i32) {
    %c0_i32 = arith.constant 0 : i32
    %c0_i32_0 = arith.constant 0 : i32
    return %arg0, %arg1, %arg2, %c0_i32 : i32, i32, i32, i32
  }
}

module attributes {stable_mosaic.version = 11 : i64} {
  func.func @_matmul_moments_kernel(%arg0: i32, %arg1: i32, %arg2: i32, %arg3: memref<1x1x256x128xbf16, #tpu.memory_space<vmem>>, %arg4: memref<1x128x128xbf16, #tpu.memory_space<vmem>>, %arg5: memref<1x128xf32, #tpu.memory_space<vmem>>, %arg6: memref<1x1x256x128xf32, #tpu.memory_space<vmem>>, %arg7: memref<1x1x128xf32, #tpu.memory_space<vmem>>, %arg8: memref<1x1x128xf32, #tpu.memory_space<vmem>>, %arg9: memref<1x128xf32, #tpu.memory_space<vmem>>, %arg10: memref<1x128xf32, #tpu.memory_space<vmem>>) attributes {dimension_semantics = [#tpu.dimension_semantics<parallel>, #tpu.dimension_semantics<arbitrary>, #tpu.dimension_semantics<arbitrary>], iteration_bounds = array<i64: 2, 1, 1>, scalar_prefetch = 0 : i64, scratch_operands = 2 : i64, tpu.core_type = #tpu.core_type<tc>, window_params = [{transform_indices = @transform_0, window_bounds = array<i64: 1, 1, 256, 128>}, {transform_indices = @transform_1, window_bounds = array<i64: 1, 128, 128>}, {pipeline_mode = #tpu.pipeline_mode<synchronous>, transform_indices = @transform_2, window_bounds = array<i64: 1, 128>}, {transform_indices = @transform_3, window_bounds = array<i64: 1, 1, 256, 128>}, {transform_indices = @transform_4, window_bounds = array<i64: 1, 1, 128>}, {transform_indices = @transform_5, window_bounds = array<i64: 1, 1, 128>}]} {
    %c0_i32 = arith.constant 0 : i32
    %0 = arith.cmpi eq, %arg1, %c0_i32 : i32
    %c0_i32_0 = arith.constant 0 : i32
    %1 = arith.cmpi eq, %arg2, %c0_i32_0 : i32
    %2 = arith.andi %0, %1 : i1
    %3 = arith.extui %2 : i1 to i32
    %c0_i32_1 = arith.constant 0 : i32
    %4 = arith.cmpi ne, %3, %c0_i32_1 : i32
    scf.if %4 {
      %cst_27 = arith.constant 0.000000e+00 : f32
      %32 = vector.broadcast %cst_27 : f32 to vector<1x128xf32>
      %c0_28 = arith.constant 0 : index
      %c0_29 = arith.constant 0 : index
      %33 = vector.load %arg9[%c0_28, %c0_29] : memref<1x128xf32, #tpu.memory_space<vmem>>, vector<1x128xf32>
      tpu.vector_store %arg9[%c0_28, %c0_29], %32 {strides = array<i32>} : memref<1x128xf32, #tpu.memory_space<vmem>>, vector<1x128xf32>,
      %cst_30 = arith.constant 0.000000e+00 : f32
      %34 = vector.broadcast %cst_30 : f32 to vector<1x128xf32>
      %c0_31 = arith.constant 0 : index
      %c0_32 = arith.constant 0 : index
      %35 = vector.load %arg10[%c0_31, %c0_32] : memref<1x128xf32, #tpu.memory_space<vmem>>, vector<1x128xf32>
      tpu.vector_store %arg10[%c0_31, %c0_32], %34 {strides = array<i32>} : memref<1x128xf32, #tpu.memory_space<vmem>>, vector<1x128xf32>,
    } else {
    }
    %c0 = arith.constant 0 : index
    %c0_2 = arith.constant 0 : index
    %c0_3 = arith.constant 0 : index
    %c0_4 = arith.constant 0 : index
    %5 = vector.load %arg3[%c0, %c0_2, %c0_3, %c0_4] : memref<1x1x256x128xbf16, #tpu.memory_space<vmem>>, vector<1x1x256x128xbf16>
    %6 = vector.shape_cast %5 : vector<1x1x256x128xbf16> to vector<256x128xbf16>
    %c0_5 = arith.constant 0 : index
    %c0_6 = arith.constant 0 : index
    %c0_7 = arith.constant 0 : index
    %7 = vector.load %arg4[%c0_5, %c0_6, %c0_7] : memref<1x128x128xbf16, #tpu.memory_space<vmem>>, vector<1x128x128xbf16>
    %8 = vector.shape_cast %7 : vector<1x128x128xbf16> to vector<128x128xbf16>
    %cst = arith.constant dense<0.000000e+00> : vector<256x128xf32>
    %9 = tpu.matmul %6, %8, %cst {dimension_numbers = #tpu.dot_dimension_numbers<[1], [0], [0], [1], [0, 0, 1, 1], [], []>} : vector<256x128xbf16>, vector<128x128xbf16>, vector<256x128xf32> -> vector<256x128xf32>
    %c0_8 = arith.constant 0 : index
    %c0_9 = arith.constant 0 : index
    %10 = vector.load %arg5[%c0_8, %c0_9] : memref<1x128xf32, #tpu.memory_space<vmem>>, vector<1x128xf32>
    %11 = vector.broadcast %10 : vector<1x128xf32> to vector<256x128xf32>
    %12 = arith.addf %9, %11 : vector<256x128xf32>
    %c0_10 = arith.constant 0 : index
    %c0_11 = arith.constant 0 : index
    %13 = vector.load %arg9[%c0_10, %c0_11] : memref<1x128xf32, #tpu.memory_space<vmem>>, vector<1x128xf32>
    %cst_12 = arith.constant dense<0.000000e+00> : vector<128xf32>
    %14 = vector.multi_reduction <add>, %12, %cst_12 [0] : vector<256x128xf32> to vector<128xf32>
    %15 = vector.shape_cast %14 : vector<128xf32> to vector<1x128xf32>
    %16 = arith.addf %13, %15 : vector<1x128xf32>
    %c0_13 = arith.constant 0 : index
    %c0_14 = arith.constant 0 : index
    %17 = vector.load %arg9[%c0_13, %c0_14] : memref<1x128xf32, #tpu.memory_space<vmem>>, vector<1x128xf32>
    tpu.vector_store %arg9[%c0_13, %c0_14], %16 {strides = array<i32>} : memref<1x128xf32, #tpu.memory_space<vmem>>, vector<1x128xf32>,
    %c0_15 = arith.constant 0 : index
    %c0_16 = arith.constant 0 : index
    %18 = vector.load %arg10[%c0_15, %c0_16] : memref<1x128xf32, #tpu.memory_space<vmem>>, vector<1x128xf32>
    %19 = arith.mulf %12, %12 : vector<256x128xf32>
    %cst_17 = arith.constant dense<0.000000e+00> : vector<128xf32>
    %20 = vector.multi_reduction <add>, %19, %cst_17 [0] : vector<256x128xf32> to vector<128xf32>
    %21 = vector.shape_cast %20 : vector<128xf32> to vector<1x128xf32>
    %22 = arith.addf %18, %21 : vector<1x128xf32>
    %c0_18 = arith.constant 0 : index
    %c0_19 = arith.constant 0 : index
    %23 = vector.load %arg10[%c0_18, %c0_19] : memref<1x128xf32, #tpu.memory_space<vmem>>, vector<1x128xf32>
    tpu.vector_store %arg10[%c0_18, %c0_19], %22 {strides = array<i32>} : memref<1x128xf32, #tpu.memory_space<vmem>>, vector<1x128xf32>,
    %c0_20 = arith.constant 0 : index
    %c0_21 = arith.constant 0 : index
    %c0_22 = arith.constant 0 : index
    %c0_23 = arith.constant 0 : index
    %24 = vector.load %arg6[%c0_20, %c0_21, %c0_22, %c0_23] : memref<1x1x256x128xf32, #tpu.memory_space<vmem>>, vector<1x1x256x128xf32>
    %25 = vector.shape_cast %24 : vector<1x1x256x128xf32> to vector<256x128xf32>
    %26 = vector.shape_cast %12 : vector<256x128xf32> to vector<1x1x256x128xf32>
    tpu.vector_store %arg6[%c0_20, %c0_21, %c0_22, %c0_23], %26 {strides = array<i32>} : memref<1x1x256x128xf32, #tpu.memory_space<vmem>>, vector<1x1x256x128xf32>,
    %c0_i32_24 = arith.constant 0 : i32
    %27 = arith.cmpi eq, %arg1, %c0_i32_24 : i32
    %c0_i32_25 = arith.constant 0 : i32
    %28 = arith.cmpi eq, %arg2, %c0_i32_25 : i32
    %29 = arith.andi %27, %28 : i1
    %30 = arith.extui %29 : i1 to i32
    %c0_i32_26 = arith.constant 0 : i32
    %31 = arith.cmpi ne, %30, %c0_i32_26 : i32
    scf.if %31 {
      %c0_27 = arith.constant 0 : index
      %c0_28 = arith.constant 0 : index
      %32 = vector.load %arg9[%c0_27, %c0_28] : memref<1x128xf32, #tpu.memory_space<vmem>>, vector<1x128xf32>
      %c0_29 = arith.constant 0 : index
      %c0_30 = arith.constant 0 : index
      %c0_31 = arith.constant 0 : index
      %33 = vector.load %arg7[%c0_29, %c0_30, %c0_31] : memref<1x1x128xf32, #tpu.memory_space<vmem>>, vector<1x1x128xf32>
      %34 = vector.shape_cast %33 : vector<1x1x128xf32> to vector<1x128xf32>
      %35 = vector.shape_cast %32 : vector<1x128xf32> to vector<1x1x128xf32>
      tpu.vector_store %arg7[%c0_29, %c0_30, %c0_31], %35 {strides = array<i32>} : memref<1x1x128xf32, #tpu.memory_space<vmem>>, vector<1x1x128xf32>,
      %c0_32 = arith.constant 0 : index
      %c0_33 = arith.constant 0 : index
      %36 = vector.load %arg10[%c0_32, %c0_33] : memref<1x128xf32, #tpu.memory_space<vmem>>, vector<1x128xf32>
      %c0_34 = arith.constant 0 : index
      %c0_35 = arith.constant 0 : index
      %c0_36 = arith.constant 0 : index
      %37 = vector.load %arg8[%c0_34, %c0_35, %c0_36] : memref<1x1x128xf32, #tpu.memory_space<vmem>>, vector<1x1x128xf32>
      %38 = vector.shape_cast %37 : vector<1x1x128xf32> to vector<1x128xf32>
      %39 = vector.shape_cast %36 : vector<1x128xf32> to vector<1x1x128xf32>
      tpu.vector_store %arg8[%c0_34, %c0_35, %c0_36], %39 {strides = array<i32>} : memref<1x1x128xf32, #tpu.memory_space<vmem>>, vector<1x1x128xf32>,
    } else {
    }
    return
  }
  func.func @transform_0(%arg0: i32, %arg1: i32, %arg2: i32) -> (i32, i32, i32, i32) {
    %c0_i32 = arith.constant 0 : i32
    %c0_i32_0 = arith.constant 0 : i32
    return %arg0, %arg1, %arg2, %c0_i32 : i32, i32, i32, i32
  }
  func.func @transform_1(%arg0: i32, %arg1: i32, %arg2: i32) -> (i32, i32, i32) {
    %c0_i32 = arith.constant 0 : i32
    %c0_i32_0 = arith.constant 0 : i32
    %c0_i32_1 = arith.constant 0 : i32
    return %arg1, %c0_i32, %c0_i32_0 : i32, i32, i32
  }
  func.func @transform_2(%arg0: i32, %arg1: i32, %arg2: i32) -> (i32, i32) {
    %c0_i32 = arith.constant 0 : i32
    %c0_i32_0 = arith.constant 0 : i32
    %c0_i32_1 = arith.constant 0 : i32
    return %c0_i32, %c0_i32_0 : i32, i32
  }
  func.func @transform_3(%arg0: i32, %arg1: i32, %arg2: i32) -> (i32, i32, i32, i32) {
    %c0_i32 = arith.constant 0 : i32
    %c0_i32_0 = arith.constant 0 : i32
    return %arg0, %arg1, %arg2, %c0_i32 : i32, i32, i32, i32
  }
  func.func @transform_4(%arg0: i32, %arg1: i32, %arg2: i32) -> (i32, i32, i32) {
    %c0_i32 = arith.constant 0 : i32
    %c0_i32_0 = arith.constant 0 : i32
    %c0_i32_1 = arith.constant 0 : i32
    return %arg0, %c0_i32, %c0_i32_0 : i32, i32, i32
  }
  func.func @transform_5(%arg0: i32, %arg1: i32, %arg2: i32) -> (i32, i32, i32) {
    %c0_i32 = arith.constant 0 : i32
    %c0_i32_0 = arith.constant 0 : i32
    %c0_i32_1 = arith.constant 0 : i32
    return %arg0, %c0_i32, %c0_i32_0 : i32, i32, i32
  }
}

module attributes {stable_mosaic.version = 11 : i64} {
  func.func @kernel(%arg0: i32, %arg1: i32, %arg2: i32, %arg3: memref<1x1x256x128xf32, #tpu.memory_space<vmem>>, %arg4: memref<1x1x128xf32, #tpu.memory_space<vmem>>, %arg5: memref<1x1x128xf32, #tpu.memory_space<vmem>>, %arg6: memref<1x1x256x128xbf16, #tpu.memory_space<vmem>>) attributes {dimension_semantics = [#tpu.dimension_semantics<parallel>, #tpu.dimension_semantics<parallel>, #tpu.dimension_semantics<parallel>], iteration_bounds = array<i64: 2, 1, 1>, scalar_prefetch = 0 : i64, scratch_operands = 0 : i64, tpu.core_type = #tpu.core_type<tc>, window_params = [{transform_indices = @transform_0, window_bounds = array<i64: 1, 1, 256, 128>}, {transform_indices = @transform_1, window_bounds = array<i64: 1, 1, 128>}, {transform_indices = @transform_2, window_bounds = array<i64: 1, 1, 128>}, {transform_indices = @transform_3, window_bounds = array<i64: 1, 1, 256, 128>}]} {
    %c0 = arith.constant 0 : index
    %c0_0 = arith.constant 0 : index
    %c0_1 = arith.constant 0 : index
    %c0_2 = arith.constant 0 : index
    %0 = vector.load %arg3[%c0, %c0_0, %c0_1, %c0_2] : memref<1x1x256x128xf32, #tpu.memory_space<vmem>>, vector<1x1x256x128xf32>
    %1 = vector.shape_cast %0 : vector<1x1x256x128xf32> to vector<256x128xf32>
    %c0_3 = arith.constant 0 : index
    %c0_4 = arith.constant 0 : index
    %c0_5 = arith.constant 0 : index
    %2 = vector.load %arg4[%c0_3, %c0_4, %c0_5] : memref<1x1x128xf32, #tpu.memory_space<vmem>>, vector<1x1x128xf32>
    %3 = vector.shape_cast %2 : vector<1x1x128xf32> to vector<1x128xf32>
    %4 = vector.broadcast %3 : vector<1x128xf32> to vector<256x128xf32>
    %5 = arith.subf %1, %4 : vector<256x128xf32>
    %c0_6 = arith.constant 0 : index
    %c0_7 = arith.constant 0 : index
    %c0_8 = arith.constant 0 : index
    %6 = vector.load %arg5[%c0_6, %c0_7, %c0_8] : memref<1x1x128xf32, #tpu.memory_space<vmem>>, vector<1x1x128xf32>
    %7 = vector.shape_cast %6 : vector<1x1x128xf32> to vector<1x128xf32>
    %8 = vector.broadcast %7 : vector<1x128xf32> to vector<256x128xf32>
    %9 = arith.mulf %5, %8 : vector<256x128xf32>
    %cst = arith.constant 0.000000e+00 : f32
    %10 = vector.broadcast %cst : f32 to vector<256x128xf32>
    %11 = arith.cmpf ogt, %9, %10 : vector<256x128xf32>
    %cst_9 = arith.constant 2.000000e-01 : f32
    %12 = vector.broadcast %cst_9 : f32 to vector<256x128xf32>
    %13 = arith.mulf %12, %9 : vector<256x128xf32>
    %14 = arith.select %11, %9, %13 : vector<256x128xi1>, vector<256x128xf32>
    %15 = arith.truncf %14 : vector<256x128xf32> to vector<256x128xbf16>
    %c0_10 = arith.constant 0 : index
    %c0_11 = arith.constant 0 : index
    %c0_12 = arith.constant 0 : index
    %c0_13 = arith.constant 0 : index
    %16 = vector.load %arg6[%c0_10, %c0_11, %c0_12, %c0_13] : memref<1x1x256x128xbf16, #tpu.memory_space<vmem>>, vector<1x1x256x128xbf16>
    %17 = vector.shape_cast %16 : vector<1x1x256x128xbf16> to vector<256x128xbf16>
    %18 = vector.shape_cast %15 : vector<256x128xbf16> to vector<1x1x256x128xbf16>
    tpu.vector_store %arg6[%c0_10, %c0_11, %c0_12, %c0_13], %18 {strides = array<i32>} : memref<1x1x256x128xbf16, #tpu.memory_space<vmem>>, vector<1x1x256x128xbf16>,
    return
  }
  func.func @transform_0(%arg0: i32, %arg1: i32, %arg2: i32) -> (i32, i32, i32, i32) {
    %c0_i32 = arith.constant 0 : i32
    %c0_i32_0 = arith.constant 0 : i32
    return %arg0, %arg1, %arg2, %c0_i32 : i32, i32, i32, i32
  }
  func.func @transform_1(%arg0: i32, %arg1: i32, %arg2: i32) -> (i32, i32, i32) {
    %c0_i32 = arith.constant 0 : i32
    %c0_i32_0 = arith.constant 0 : i32
    %c0_i32_1 = arith.constant 0 : i32
    return %arg0, %c0_i32, %c0_i32_0 : i32, i32, i32
  }
  func.func @transform_2(%arg0: i32, %arg1: i32, %arg2: i32) -> (i32, i32, i32) {
    %c0_i32 = arith.constant 0 : i32
    %c0_i32_0 = arith.constant 0 : i32
    %c0_i32_1 = arith.constant 0 : i32
    return %arg0, %c0_i32, %c0_i32_0 : i32, i32, i32
  }
  func.func @transform_3(%arg0: i32, %arg1: i32, %arg2: i32) -> (i32, i32, i32, i32) {
    %c0_i32 = arith.constant 0 : i32
    %c0_i32_0 = arith.constant 0 : i32
    return %arg0, %arg1, %arg2, %c0_i32 : i32, i32, i32, i32
  }
}

module attributes {stable_mosaic.version = 11 : i64} {
  func.func @_matmul_moments_kernel(%arg0: i32, %arg1: i32, %arg2: i32, %arg3: memref<1x1x64x256xbf16, #tpu.memory_space<vmem>>, %arg4: memref<1x256x128xbf16, #tpu.memory_space<vmem>>, %arg5: memref<1x128xf32, #tpu.memory_space<vmem>>, %arg6: memref<1x1x64x128xf32, #tpu.memory_space<vmem>>, %arg7: memref<1x1x128xf32, #tpu.memory_space<vmem>>, %arg8: memref<1x1x128xf32, #tpu.memory_space<vmem>>, %arg9: memref<1x128xf32, #tpu.memory_space<vmem>>, %arg10: memref<1x128xf32, #tpu.memory_space<vmem>>) attributes {dimension_semantics = [#tpu.dimension_semantics<parallel>, #tpu.dimension_semantics<arbitrary>, #tpu.dimension_semantics<arbitrary>], iteration_bounds = array<i64: 2, 1, 1>, scalar_prefetch = 0 : i64, scratch_operands = 2 : i64, tpu.core_type = #tpu.core_type<tc>, window_params = [{transform_indices = @transform_0, window_bounds = array<i64: 1, 1, 64, 256>}, {transform_indices = @transform_1, window_bounds = array<i64: 1, 256, 128>}, {pipeline_mode = #tpu.pipeline_mode<synchronous>, transform_indices = @transform_2, window_bounds = array<i64: 1, 128>}, {transform_indices = @transform_3, window_bounds = array<i64: 1, 1, 64, 128>}, {transform_indices = @transform_4, window_bounds = array<i64: 1, 1, 128>}, {transform_indices = @transform_5, window_bounds = array<i64: 1, 1, 128>}]} {
    %c0_i32 = arith.constant 0 : i32
    %0 = arith.cmpi eq, %arg1, %c0_i32 : i32
    %c0_i32_0 = arith.constant 0 : i32
    %1 = arith.cmpi eq, %arg2, %c0_i32_0 : i32
    %2 = arith.andi %0, %1 : i1
    %3 = arith.extui %2 : i1 to i32
    %c0_i32_1 = arith.constant 0 : i32
    %4 = arith.cmpi ne, %3, %c0_i32_1 : i32
    scf.if %4 {
      %cst_27 = arith.constant 0.000000e+00 : f32
      %32 = vector.broadcast %cst_27 : f32 to vector<1x128xf32>
      %c0_28 = arith.constant 0 : index
      %c0_29 = arith.constant 0 : index
      %33 = vector.load %arg9[%c0_28, %c0_29] : memref<1x128xf32, #tpu.memory_space<vmem>>, vector<1x128xf32>
      tpu.vector_store %arg9[%c0_28, %c0_29], %32 {strides = array<i32>} : memref<1x128xf32, #tpu.memory_space<vmem>>, vector<1x128xf32>,
      %cst_30 = arith.constant 0.000000e+00 : f32
      %34 = vector.broadcast %cst_30 : f32 to vector<1x128xf32>
      %c0_31 = arith.constant 0 : index
      %c0_32 = arith.constant 0 : index
      %35 = vector.load %arg10[%c0_31, %c0_32] : memref<1x128xf32, #tpu.memory_space<vmem>>, vector<1x128xf32>
      tpu.vector_store %arg10[%c0_31, %c0_32], %34 {strides = array<i32>} : memref<1x128xf32, #tpu.memory_space<vmem>>, vector<1x128xf32>,
    } else {
    }
    %c0 = arith.constant 0 : index
    %c0_2 = arith.constant 0 : index
    %c0_3 = arith.constant 0 : index
    %c0_4 = arith.constant 0 : index
    %5 = vector.load %arg3[%c0, %c0_2, %c0_3, %c0_4] : memref<1x1x64x256xbf16, #tpu.memory_space<vmem>>, vector<1x1x64x256xbf16>
    %6 = vector.shape_cast %5 : vector<1x1x64x256xbf16> to vector<64x256xbf16>
    %c0_5 = arith.constant 0 : index
    %c0_6 = arith.constant 0 : index
    %c0_7 = arith.constant 0 : index
    %7 = vector.load %arg4[%c0_5, %c0_6, %c0_7] : memref<1x256x128xbf16, #tpu.memory_space<vmem>>, vector<1x256x128xbf16>
    %8 = vector.shape_cast %7 : vector<1x256x128xbf16> to vector<256x128xbf16>
    %cst = arith.constant dense<0.000000e+00> : vector<64x128xf32>
    %9 = tpu.matmul %6, %8, %cst {dimension_numbers = #tpu.dot_dimension_numbers<[1], [0], [0], [1], [0, 0, 1, 1], [], []>} : vector<64x256xbf16>, vector<256x128xbf16>, vector<64x128xf32> -> vector<64x128xf32>
    %c0_8 = arith.constant 0 : index
    %c0_9 = arith.constant 0 : index
    %10 = vector.load %arg5[%c0_8, %c0_9] : memref<1x128xf32, #tpu.memory_space<vmem>>, vector<1x128xf32>
    %11 = vector.broadcast %10 : vector<1x128xf32> to vector<64x128xf32>
    %12 = arith.addf %9, %11 : vector<64x128xf32>
    %c0_10 = arith.constant 0 : index
    %c0_11 = arith.constant 0 : index
    %13 = vector.load %arg9[%c0_10, %c0_11] : memref<1x128xf32, #tpu.memory_space<vmem>>, vector<1x128xf32>
    %cst_12 = arith.constant dense<0.000000e+00> : vector<128xf32>
    %14 = vector.multi_reduction <add>, %12, %cst_12 [0] : vector<64x128xf32> to vector<128xf32>
    %15 = vector.shape_cast %14 : vector<128xf32> to vector<1x128xf32>
    %16 = arith.addf %13, %15 : vector<1x128xf32>
    %c0_13 = arith.constant 0 : index
    %c0_14 = arith.constant 0 : index
    %17 = vector.load %arg9[%c0_13, %c0_14] : memref<1x128xf32, #tpu.memory_space<vmem>>, vector<1x128xf32>
    tpu.vector_store %arg9[%c0_13, %c0_14], %16 {strides = array<i32>} : memref<1x128xf32, #tpu.memory_space<vmem>>, vector<1x128xf32>,
    %c0_15 = arith.constant 0 : index
    %c0_16 = arith.constant 0 : index
    %18 = vector.load %arg10[%c0_15, %c0_16] : memref<1x128xf32, #tpu.memory_space<vmem>>, vector<1x128xf32>
    %19 = arith.mulf %12, %12 : vector<64x128xf32>
    %cst_17 = arith.constant dense<0.000000e+00> : vector<128xf32>
    %20 = vector.multi_reduction <add>, %19, %cst_17 [0] : vector<64x128xf32> to vector<128xf32>
    %21 = vector.shape_cast %20 : vector<128xf32> to vector<1x128xf32>
    %22 = arith.addf %18, %21 : vector<1x128xf32>
    %c0_18 = arith.constant 0 : index
    %c0_19 = arith.constant 0 : index
    %23 = vector.load %arg10[%c0_18, %c0_19] : memref<1x128xf32, #tpu.memory_space<vmem>>, vector<1x128xf32>
    tpu.vector_store %arg10[%c0_18, %c0_19], %22 {strides = array<i32>} : memref<1x128xf32, #tpu.memory_space<vmem>>, vector<1x128xf32>,
    %c0_20 = arith.constant 0 : index
    %c0_21 = arith.constant 0 : index
    %c0_22 = arith.constant 0 : index
    %c0_23 = arith.constant 0 : index
    %24 = vector.load %arg6[%c0_20, %c0_21, %c0_22, %c0_23] : memref<1x1x64x128xf32, #tpu.memory_space<vmem>>, vector<1x1x64x128xf32>
    %25 = vector.shape_cast %24 : vector<1x1x64x128xf32> to vector<64x128xf32>
    %26 = vector.shape_cast %12 : vector<64x128xf32> to vector<1x1x64x128xf32>
    tpu.vector_store %arg6[%c0_20, %c0_21, %c0_22, %c0_23], %26 {strides = array<i32>} : memref<1x1x64x128xf32, #tpu.memory_space<vmem>>, vector<1x1x64x128xf32>,
    %c0_i32_24 = arith.constant 0 : i32
    %27 = arith.cmpi eq, %arg1, %c0_i32_24 : i32
    %c0_i32_25 = arith.constant 0 : i32
    %28 = arith.cmpi eq, %arg2, %c0_i32_25 : i32
    %29 = arith.andi %27, %28 : i1
    %30 = arith.extui %29 : i1 to i32
    %c0_i32_26 = arith.constant 0 : i32
    %31 = arith.cmpi ne, %30, %c0_i32_26 : i32
    scf.if %31 {
      %c0_27 = arith.constant 0 : index
      %c0_28 = arith.constant 0 : index
      %32 = vector.load %arg9[%c0_27, %c0_28] : memref<1x128xf32, #tpu.memory_space<vmem>>, vector<1x128xf32>
      %c0_29 = arith.constant 0 : index
      %c0_30 = arith.constant 0 : index
      %c0_31 = arith.constant 0 : index
      %33 = vector.load %arg7[%c0_29, %c0_30, %c0_31] : memref<1x1x128xf32, #tpu.memory_space<vmem>>, vector<1x1x128xf32>
      %34 = vector.shape_cast %33 : vector<1x1x128xf32> to vector<1x128xf32>
      %35 = vector.shape_cast %32 : vector<1x128xf32> to vector<1x1x128xf32>
      tpu.vector_store %arg7[%c0_29, %c0_30, %c0_31], %35 {strides = array<i32>} : memref<1x1x128xf32, #tpu.memory_space<vmem>>, vector<1x1x128xf32>,
      %c0_32 = arith.constant 0 : index
      %c0_33 = arith.constant 0 : index
      %36 = vector.load %arg10[%c0_32, %c0_33] : memref<1x128xf32, #tpu.memory_space<vmem>>, vector<1x128xf32>
      %c0_34 = arith.constant 0 : index
      %c0_35 = arith.constant 0 : index
      %c0_36 = arith.constant 0 : index
      %37 = vector.load %arg8[%c0_34, %c0_35, %c0_36] : memref<1x1x128xf32, #tpu.memory_space<vmem>>, vector<1x1x128xf32>
      %38 = vector.shape_cast %37 : vector<1x1x128xf32> to vector<1x128xf32>
      %39 = vector.shape_cast %36 : vector<1x128xf32> to vector<1x1x128xf32>
      tpu.vector_store %arg8[%c0_34, %c0_35, %c0_36], %39 {strides = array<i32>} : memref<1x1x128xf32, #tpu.memory_space<vmem>>, vector<1x1x128xf32>,
    } else {
    }
    return
  }
  func.func @transform_0(%arg0: i32, %arg1: i32, %arg2: i32) -> (i32, i32, i32, i32) {
    %c0_i32 = arith.constant 0 : i32
    %c0_i32_0 = arith.constant 0 : i32
    return %arg0, %arg1, %arg2, %c0_i32 : i32, i32, i32, i32
  }
  func.func @transform_1(%arg0: i32, %arg1: i32, %arg2: i32) -> (i32, i32, i32) {
    %c0_i32 = arith.constant 0 : i32
    %c0_i32_0 = arith.constant 0 : i32
    %c0_i32_1 = arith.constant 0 : i32
    return %arg1, %c0_i32, %c0_i32_0 : i32, i32, i32
  }
  func.func @transform_2(%arg0: i32, %arg1: i32, %arg2: i32) -> (i32, i32) {
    %c0_i32 = arith.constant 0 : i32
    %c0_i32_0 = arith.constant 0 : i32
    %c0_i32_1 = arith.constant 0 : i32
    return %c0_i32, %c0_i32_0 : i32, i32
  }
  func.func @transform_3(%arg0: i32, %arg1: i32, %arg2: i32) -> (i32, i32, i32, i32) {
    %c0_i32 = arith.constant 0 : i32
    %c0_i32_0 = arith.constant 0 : i32
    return %arg0, %arg1, %arg2, %c0_i32 : i32, i32, i32, i32
  }
  func.func @transform_4(%arg0: i32, %arg1: i32, %arg2: i32) -> (i32, i32, i32) {
    %c0_i32 = arith.constant 0 : i32
    %c0_i32_0 = arith.constant 0 : i32
    %c0_i32_1 = arith.constant 0 : i32
    return %arg0, %c0_i32, %c0_i32_0 : i32, i32, i32
  }
  func.func @transform_5(%arg0: i32, %arg1: i32, %arg2: i32) -> (i32, i32, i32) {
    %c0_i32 = arith.constant 0 : i32
    %c0_i32_0 = arith.constant 0 : i32
    %c0_i32_1 = arith.constant 0 : i32
    return %arg0, %c0_i32, %c0_i32_0 : i32, i32, i32
  }
}

module attributes {stable_mosaic.version = 11 : i64} {
  func.func @kernel(%arg0: i32, %arg1: i32, %arg2: i32, %arg3: memref<1x1x64x128xf32, #tpu.memory_space<vmem>>, %arg4: memref<1x1x128xf32, #tpu.memory_space<vmem>>, %arg5: memref<1x1x128xf32, #tpu.memory_space<vmem>>, %arg6: memref<1x1x64x128xbf16, #tpu.memory_space<vmem>>) attributes {dimension_semantics = [#tpu.dimension_semantics<parallel>, #tpu.dimension_semantics<parallel>, #tpu.dimension_semantics<parallel>], iteration_bounds = array<i64: 2, 1, 1>, scalar_prefetch = 0 : i64, scratch_operands = 0 : i64, tpu.core_type = #tpu.core_type<tc>, window_params = [{transform_indices = @transform_0, window_bounds = array<i64: 1, 1, 64, 128>}, {transform_indices = @transform_1, window_bounds = array<i64: 1, 1, 128>}, {transform_indices = @transform_2, window_bounds = array<i64: 1, 1, 128>}, {transform_indices = @transform_3, window_bounds = array<i64: 1, 1, 64, 128>}]} {
    %c0 = arith.constant 0 : index
    %c0_0 = arith.constant 0 : index
    %c0_1 = arith.constant 0 : index
    %c0_2 = arith.constant 0 : index
    %0 = vector.load %arg3[%c0, %c0_0, %c0_1, %c0_2] : memref<1x1x64x128xf32, #tpu.memory_space<vmem>>, vector<1x1x64x128xf32>
    %1 = vector.shape_cast %0 : vector<1x1x64x128xf32> to vector<64x128xf32>
    %c0_3 = arith.constant 0 : index
    %c0_4 = arith.constant 0 : index
    %c0_5 = arith.constant 0 : index
    %2 = vector.load %arg4[%c0_3, %c0_4, %c0_5] : memref<1x1x128xf32, #tpu.memory_space<vmem>>, vector<1x1x128xf32>
    %3 = vector.shape_cast %2 : vector<1x1x128xf32> to vector<1x128xf32>
    %4 = vector.broadcast %3 : vector<1x128xf32> to vector<64x128xf32>
    %5 = arith.subf %1, %4 : vector<64x128xf32>
    %c0_6 = arith.constant 0 : index
    %c0_7 = arith.constant 0 : index
    %c0_8 = arith.constant 0 : index
    %6 = vector.load %arg5[%c0_6, %c0_7, %c0_8] : memref<1x1x128xf32, #tpu.memory_space<vmem>>, vector<1x1x128xf32>
    %7 = vector.shape_cast %6 : vector<1x1x128xf32> to vector<1x128xf32>
    %8 = vector.broadcast %7 : vector<1x128xf32> to vector<64x128xf32>
    %9 = arith.mulf %5, %8 : vector<64x128xf32>
    %cst = arith.constant 0.000000e+00 : f32
    %10 = vector.broadcast %cst : f32 to vector<64x128xf32>
    %11 = arith.cmpf ogt, %9, %10 : vector<64x128xf32>
    %cst_9 = arith.constant 2.000000e-01 : f32
    %12 = vector.broadcast %cst_9 : f32 to vector<64x128xf32>
    %13 = arith.mulf %12, %9 : vector<64x128xf32>
    %14 = arith.select %11, %9, %13 : vector<64x128xi1>, vector<64x128xf32>
    %15 = arith.truncf %14 : vector<64x128xf32> to vector<64x128xbf16>
    %c0_10 = arith.constant 0 : index
    %c0_11 = arith.constant 0 : index
    %c0_12 = arith.constant 0 : index
    %c0_13 = arith.constant 0 : index
    %16 = vector.load %arg6[%c0_10, %c0_11, %c0_12, %c0_13] : memref<1x1x64x128xbf16, #tpu.memory_space<vmem>>, vector<1x1x64x128xbf16>
    %17 = vector.shape_cast %16 : vector<1x1x64x128xbf16> to vector<64x128xbf16>
    %18 = vector.shape_cast %15 : vector<64x128xbf16> to vector<1x1x64x128xbf16>
    tpu.vector_store %arg6[%c0_10, %c0_11, %c0_12, %c0_13], %18 {strides = array<i32>} : memref<1x1x64x128xbf16, #tpu.memory_space<vmem>>, vector<1x1x64x128xbf16>,
    return
  }
  func.func @transform_0(%arg0: i32, %arg1: i32, %arg2: i32) -> (i32, i32, i32, i32) {
    %c0_i32 = arith.constant 0 : i32
    %c0_i32_0 = arith.constant 0 : i32
    return %arg0, %arg1, %arg2, %c0_i32 : i32, i32, i32, i32
  }
  func.func @transform_1(%arg0: i32, %arg1: i32, %arg2: i32) -> (i32, i32, i32) {
    %c0_i32 = arith.constant 0 : i32
    %c0_i32_0 = arith.constant 0 : i32
    %c0_i32_1 = arith.constant 0 : i32
    return %arg0, %c0_i32, %c0_i32_0 : i32, i32, i32
  }
  func.func @transform_2(%arg0: i32, %arg1: i32, %arg2: i32) -> (i32, i32, i32) {
    %c0_i32 = arith.constant 0 : i32
    %c0_i32_0 = arith.constant 0 : i32
    %c0_i32_1 = arith.constant 0 : i32
    return %arg0, %c0_i32, %c0_i32_0 : i32, i32, i32
  }
  func.func @transform_3(%arg0: i32, %arg1: i32, %arg2: i32) -> (i32, i32, i32, i32) {
    %c0_i32 = arith.constant 0 : i32
    %c0_i32_0 = arith.constant 0 : i32
    return %arg0, %arg1, %arg2, %c0_i32 : i32, i32, i32, i32
  }
}

module attributes {stable_mosaic.version = 11 : i64} {
  func.func @_matmul_moments_kernel(%arg0: i32, %arg1: i32, %arg2: i32, %arg3: memref<1x1x16x512xbf16, #tpu.memory_space<vmem>>, %arg4: memref<1x512x128xbf16, #tpu.memory_space<vmem>>, %arg5: memref<1x128xf32, #tpu.memory_space<vmem>>, %arg6: memref<1x1x16x128xf32, #tpu.memory_space<vmem>>, %arg7: memref<1x1x128xf32, #tpu.memory_space<vmem>>, %arg8: memref<1x1x128xf32, #tpu.memory_space<vmem>>, %arg9: memref<1x128xf32, #tpu.memory_space<vmem>>, %arg10: memref<1x128xf32, #tpu.memory_space<vmem>>) attributes {dimension_semantics = [#tpu.dimension_semantics<parallel>, #tpu.dimension_semantics<arbitrary>, #tpu.dimension_semantics<arbitrary>], iteration_bounds = array<i64: 2, 1, 1>, scalar_prefetch = 0 : i64, scratch_operands = 2 : i64, tpu.core_type = #tpu.core_type<tc>, window_params = [{transform_indices = @transform_0, window_bounds = array<i64: 1, 1, 16, 512>}, {transform_indices = @transform_1, window_bounds = array<i64: 1, 512, 128>}, {pipeline_mode = #tpu.pipeline_mode<synchronous>, transform_indices = @transform_2, window_bounds = array<i64: 1, 128>}, {transform_indices = @transform_3, window_bounds = array<i64: 1, 1, 16, 128>}, {transform_indices = @transform_4, window_bounds = array<i64: 1, 1, 128>}, {transform_indices = @transform_5, window_bounds = array<i64: 1, 1, 128>}]} {
    %c0_i32 = arith.constant 0 : i32
    %0 = arith.cmpi eq, %arg1, %c0_i32 : i32
    %c0_i32_0 = arith.constant 0 : i32
    %1 = arith.cmpi eq, %arg2, %c0_i32_0 : i32
    %2 = arith.andi %0, %1 : i1
    %3 = arith.extui %2 : i1 to i32
    %c0_i32_1 = arith.constant 0 : i32
    %4 = arith.cmpi ne, %3, %c0_i32_1 : i32
    scf.if %4 {
      %cst_27 = arith.constant 0.000000e+00 : f32
      %32 = vector.broadcast %cst_27 : f32 to vector<1x128xf32>
      %c0_28 = arith.constant 0 : index
      %c0_29 = arith.constant 0 : index
      %33 = vector.load %arg9[%c0_28, %c0_29] : memref<1x128xf32, #tpu.memory_space<vmem>>, vector<1x128xf32>
      tpu.vector_store %arg9[%c0_28, %c0_29], %32 {strides = array<i32>} : memref<1x128xf32, #tpu.memory_space<vmem>>, vector<1x128xf32>,
      %cst_30 = arith.constant 0.000000e+00 : f32
      %34 = vector.broadcast %cst_30 : f32 to vector<1x128xf32>
      %c0_31 = arith.constant 0 : index
      %c0_32 = arith.constant 0 : index
      %35 = vector.load %arg10[%c0_31, %c0_32] : memref<1x128xf32, #tpu.memory_space<vmem>>, vector<1x128xf32>
      tpu.vector_store %arg10[%c0_31, %c0_32], %34 {strides = array<i32>} : memref<1x128xf32, #tpu.memory_space<vmem>>, vector<1x128xf32>,
    } else {
    }
    %c0 = arith.constant 0 : index
    %c0_2 = arith.constant 0 : index
    %c0_3 = arith.constant 0 : index
    %c0_4 = arith.constant 0 : index
    %5 = vector.load %arg3[%c0, %c0_2, %c0_3, %c0_4] : memref<1x1x16x512xbf16, #tpu.memory_space<vmem>>, vector<1x1x16x512xbf16>
    %6 = vector.shape_cast %5 : vector<1x1x16x512xbf16> to vector<16x512xbf16>
    %c0_5 = arith.constant 0 : index
    %c0_6 = arith.constant 0 : index
    %c0_7 = arith.constant 0 : index
    %7 = vector.load %arg4[%c0_5, %c0_6, %c0_7] : memref<1x512x128xbf16, #tpu.memory_space<vmem>>, vector<1x512x128xbf16>
    %8 = vector.shape_cast %7 : vector<1x512x128xbf16> to vector<512x128xbf16>
    %cst = arith.constant dense<0.000000e+00> : vector<16x128xf32>
    %9 = tpu.matmul %6, %8, %cst {dimension_numbers = #tpu.dot_dimension_numbers<[1], [0], [0], [1], [0, 0, 1, 1], [], []>} : vector<16x512xbf16>, vector<512x128xbf16>, vector<16x128xf32> -> vector<16x128xf32>
    %c0_8 = arith.constant 0 : index
    %c0_9 = arith.constant 0 : index
    %10 = vector.load %arg5[%c0_8, %c0_9] : memref<1x128xf32, #tpu.memory_space<vmem>>, vector<1x128xf32>
    %11 = vector.broadcast %10 : vector<1x128xf32> to vector<16x128xf32>
    %12 = arith.addf %9, %11 : vector<16x128xf32>
    %c0_10 = arith.constant 0 : index
    %c0_11 = arith.constant 0 : index
    %13 = vector.load %arg9[%c0_10, %c0_11] : memref<1x128xf32, #tpu.memory_space<vmem>>, vector<1x128xf32>
    %cst_12 = arith.constant dense<0.000000e+00> : vector<128xf32>
    %14 = vector.multi_reduction <add>, %12, %cst_12 [0] : vector<16x128xf32> to vector<128xf32>
    %15 = vector.shape_cast %14 : vector<128xf32> to vector<1x128xf32>
    %16 = arith.addf %13, %15 : vector<1x128xf32>
    %c0_13 = arith.constant 0 : index
    %c0_14 = arith.constant 0 : index
    %17 = vector.load %arg9[%c0_13, %c0_14] : memref<1x128xf32, #tpu.memory_space<vmem>>, vector<1x128xf32>
    tpu.vector_store %arg9[%c0_13, %c0_14], %16 {strides = array<i32>} : memref<1x128xf32, #tpu.memory_space<vmem>>, vector<1x128xf32>,
    %c0_15 = arith.constant 0 : index
    %c0_16 = arith.constant 0 : index
    %18 = vector.load %arg10[%c0_15, %c0_16] : memref<1x128xf32, #tpu.memory_space<vmem>>, vector<1x128xf32>
    %19 = arith.mulf %12, %12 : vector<16x128xf32>
    %cst_17 = arith.constant dense<0.000000e+00> : vector<128xf32>
    %20 = vector.multi_reduction <add>, %19, %cst_17 [0] : vector<16x128xf32> to vector<128xf32>
    %21 = vector.shape_cast %20 : vector<128xf32> to vector<1x128xf32>
    %22 = arith.addf %18, %21 : vector<1x128xf32>
    %c0_18 = arith.constant 0 : index
    %c0_19 = arith.constant 0 : index
    %23 = vector.load %arg10[%c0_18, %c0_19] : memref<1x128xf32, #tpu.memory_space<vmem>>, vector<1x128xf32>
    tpu.vector_store %arg10[%c0_18, %c0_19], %22 {strides = array<i32>} : memref<1x128xf32, #tpu.memory_space<vmem>>, vector<1x128xf32>,
    %c0_20 = arith.constant 0 : index
    %c0_21 = arith.constant 0 : index
    %c0_22 = arith.constant 0 : index
    %c0_23 = arith.constant 0 : index
    %24 = vector.load %arg6[%c0_20, %c0_21, %c0_22, %c0_23] : memref<1x1x16x128xf32, #tpu.memory_space<vmem>>, vector<1x1x16x128xf32>
    %25 = vector.shape_cast %24 : vector<1x1x16x128xf32> to vector<16x128xf32>
    %26 = vector.shape_cast %12 : vector<16x128xf32> to vector<1x1x16x128xf32>
    tpu.vector_store %arg6[%c0_20, %c0_21, %c0_22, %c0_23], %26 {strides = array<i32>} : memref<1x1x16x128xf32, #tpu.memory_space<vmem>>, vector<1x1x16x128xf32>,
    %c0_i32_24 = arith.constant 0 : i32
    %27 = arith.cmpi eq, %arg1, %c0_i32_24 : i32
    %c0_i32_25 = arith.constant 0 : i32
    %28 = arith.cmpi eq, %arg2, %c0_i32_25 : i32
    %29 = arith.andi %27, %28 : i1
    %30 = arith.extui %29 : i1 to i32
    %c0_i32_26 = arith.constant 0 : i32
    %31 = arith.cmpi ne, %30, %c0_i32_26 : i32
    scf.if %31 {
      %c0_27 = arith.constant 0 : index
      %c0_28 = arith.constant 0 : index
      %32 = vector.load %arg9[%c0_27, %c0_28] : memref<1x128xf32, #tpu.memory_space<vmem>>, vector<1x128xf32>
      %c0_29 = arith.constant 0 : index
      %c0_30 = arith.constant 0 : index
      %c0_31 = arith.constant 0 : index
      %33 = vector.load %arg7[%c0_29, %c0_30, %c0_31] : memref<1x1x128xf32, #tpu.memory_space<vmem>>, vector<1x1x128xf32>
      %34 = vector.shape_cast %33 : vector<1x1x128xf32> to vector<1x128xf32>
      %35 = vector.shape_cast %32 : vector<1x128xf32> to vector<1x1x128xf32>
      tpu.vector_store %arg7[%c0_29, %c0_30, %c0_31], %35 {strides = array<i32>} : memref<1x1x128xf32, #tpu.memory_space<vmem>>, vector<1x1x128xf32>,
      %c0_32 = arith.constant 0 : index
      %c0_33 = arith.constant 0 : index
      %36 = vector.load %arg10[%c0_32, %c0_33] : memref<1x128xf32, #tpu.memory_space<vmem>>, vector<1x128xf32>
      %c0_34 = arith.constant 0 : index
      %c0_35 = arith.constant 0 : index
      %c0_36 = arith.constant 0 : index
      %37 = vector.load %arg8[%c0_34, %c0_35, %c0_36] : memref<1x1x128xf32, #tpu.memory_space<vmem>>, vector<1x1x128xf32>
      %38 = vector.shape_cast %37 : vector<1x1x128xf32> to vector<1x128xf32>
      %39 = vector.shape_cast %36 : vector<1x128xf32> to vector<1x1x128xf32>
      tpu.vector_store %arg8[%c0_34, %c0_35, %c0_36], %39 {strides = array<i32>} : memref<1x1x128xf32, #tpu.memory_space<vmem>>, vector<1x1x128xf32>,
    } else {
    }
    return
  }
  func.func @transform_0(%arg0: i32, %arg1: i32, %arg2: i32) -> (i32, i32, i32, i32) {
    %c0_i32 = arith.constant 0 : i32
    %c0_i32_0 = arith.constant 0 : i32
    return %arg0, %arg1, %arg2, %c0_i32 : i32, i32, i32, i32
  }
  func.func @transform_1(%arg0: i32, %arg1: i32, %arg2: i32) -> (i32, i32, i32) {
    %c0_i32 = arith.constant 0 : i32
    %c0_i32_0 = arith.constant 0 : i32
    %c0_i32_1 = arith.constant 0 : i32
    return %arg1, %c0_i32, %c0_i32_0 : i32, i32, i32
  }
  func.func @transform_2(%arg0: i32, %arg1: i32, %arg2: i32) -> (i32, i32) {
    %c0_i32 = arith.constant 0 : i32
    %c0_i32_0 = arith.constant 0 : i32
    %c0_i32_1 = arith.constant 0 : i32
    return %c0_i32, %c0_i32_0 : i32, i32
  }
  func.func @transform_3(%arg0: i32, %arg1: i32, %arg2: i32) -> (i32, i32, i32, i32) {
    %c0_i32 = arith.constant 0 : i32
    %c0_i32_0 = arith.constant 0 : i32
    return %arg0, %arg1, %arg2, %c0_i32 : i32, i32, i32, i32
  }
  func.func @transform_4(%arg0: i32, %arg1: i32, %arg2: i32) -> (i32, i32, i32) {
    %c0_i32 = arith.constant 0 : i32
    %c0_i32_0 = arith.constant 0 : i32
    %c0_i32_1 = arith.constant 0 : i32
    return %arg0, %c0_i32, %c0_i32_0 : i32, i32, i32
  }
  func.func @transform_5(%arg0: i32, %arg1: i32, %arg2: i32) -> (i32, i32, i32) {
    %c0_i32 = arith.constant 0 : i32
    %c0_i32_0 = arith.constant 0 : i32
    %c0_i32_1 = arith.constant 0 : i32
    return %arg0, %c0_i32, %c0_i32_0 : i32, i32, i32
  }
}

module attributes {stable_mosaic.version = 11 : i64} {
  func.func @kernel(%arg0: i32, %arg1: i32, %arg2: i32, %arg3: memref<1x1x16x128xf32, #tpu.memory_space<vmem>>, %arg4: memref<1x1x128xf32, #tpu.memory_space<vmem>>, %arg5: memref<1x1x128xf32, #tpu.memory_space<vmem>>, %arg6: memref<1x1x16x128xbf16, #tpu.memory_space<vmem>>) attributes {dimension_semantics = [#tpu.dimension_semantics<parallel>, #tpu.dimension_semantics<parallel>, #tpu.dimension_semantics<parallel>], iteration_bounds = array<i64: 2, 1, 1>, scalar_prefetch = 0 : i64, scratch_operands = 0 : i64, tpu.core_type = #tpu.core_type<tc>, window_params = [{transform_indices = @transform_0, window_bounds = array<i64: 1, 1, 16, 128>}, {transform_indices = @transform_1, window_bounds = array<i64: 1, 1, 128>}, {transform_indices = @transform_2, window_bounds = array<i64: 1, 1, 128>}, {transform_indices = @transform_3, window_bounds = array<i64: 1, 1, 16, 128>}]} {
    %c0 = arith.constant 0 : index
    %c0_0 = arith.constant 0 : index
    %c0_1 = arith.constant 0 : index
    %c0_2 = arith.constant 0 : index
    %0 = vector.load %arg3[%c0, %c0_0, %c0_1, %c0_2] : memref<1x1x16x128xf32, #tpu.memory_space<vmem>>, vector<1x1x16x128xf32>
    %1 = vector.shape_cast %0 : vector<1x1x16x128xf32> to vector<16x128xf32>
    %c0_3 = arith.constant 0 : index
    %c0_4 = arith.constant 0 : index
    %c0_5 = arith.constant 0 : index
    %2 = vector.load %arg4[%c0_3, %c0_4, %c0_5] : memref<1x1x128xf32, #tpu.memory_space<vmem>>, vector<1x1x128xf32>
    %3 = vector.shape_cast %2 : vector<1x1x128xf32> to vector<1x128xf32>
    %4 = vector.broadcast %3 : vector<1x128xf32> to vector<16x128xf32>
    %5 = arith.subf %1, %4 : vector<16x128xf32>
    %c0_6 = arith.constant 0 : index
    %c0_7 = arith.constant 0 : index
    %c0_8 = arith.constant 0 : index
    %6 = vector.load %arg5[%c0_6, %c0_7, %c0_8] : memref<1x1x128xf32, #tpu.memory_space<vmem>>, vector<1x1x128xf32>
    %7 = vector.shape_cast %6 : vector<1x1x128xf32> to vector<1x128xf32>
    %8 = vector.broadcast %7 : vector<1x128xf32> to vector<16x128xf32>
    %9 = arith.mulf %5, %8 : vector<16x128xf32>
    %cst = arith.constant 0.000000e+00 : f32
    %10 = vector.broadcast %cst : f32 to vector<16x128xf32>
    %11 = arith.cmpf ogt, %9, %10 : vector<16x128xf32>
    %cst_9 = arith.constant 2.000000e-01 : f32
    %12 = vector.broadcast %cst_9 : f32 to vector<16x128xf32>
    %13 = arith.mulf %12, %9 : vector<16x128xf32>
    %14 = arith.select %11, %9, %13 : vector<16x128xi1>, vector<16x128xf32>
    %15 = arith.truncf %14 : vector<16x128xf32> to vector<16x128xbf16>
    %c0_10 = arith.constant 0 : index
    %c0_11 = arith.constant 0 : index
    %c0_12 = arith.constant 0 : index
    %c0_13 = arith.constant 0 : index
    %16 = vector.load %arg6[%c0_10, %c0_11, %c0_12, %c0_13] : memref<1x1x16x128xbf16, #tpu.memory_space<vmem>>, vector<1x1x16x128xbf16>
    %17 = vector.shape_cast %16 : vector<1x1x16x128xbf16> to vector<16x128xbf16>
    %18 = vector.shape_cast %15 : vector<16x128xbf16> to vector<1x1x16x128xbf16>
    tpu.vector_store %arg6[%c0_10, %c0_11, %c0_12, %c0_13], %18 {strides = array<i32>} : memref<1x1x16x128xbf16, #tpu.memory_space<vmem>>, vector<1x1x16x128xbf16>,
    return
  }
  func.func @transform_0(%arg0: i32, %arg1: i32, %arg2: i32) -> (i32, i32, i32, i32) {
    %c0_i32 = arith.constant 0 : i32
    %c0_i32_0 = arith.constant 0 : i32
    return %arg0, %arg1, %arg2, %c0_i32 : i32, i32, i32, i32
  }
  func.func @transform_1(%arg0: i32, %arg1: i32, %arg2: i32) -> (i32, i32, i32) {
    %c0_i32 = arith.constant 0 : i32
    %c0_i32_0 = arith.constant 0 : i32
    %c0_i32_1 = arith.constant 0 : i32
    return %arg0, %c0_i32, %c0_i32_0 : i32, i32, i32
  }
  func.func @transform_2(%arg0: i32, %arg1: i32, %arg2: i32) -> (i32, i32, i32) {
    %c0_i32 = arith.constant 0 : i32
    %c0_i32_0 = arith.constant 0 : i32
    %c0_i32_1 = arith.constant 0 : i32
    return %arg0, %c0_i32, %c0_i32_0 : i32, i32, i32
  }
  func.func @transform_3(%arg0: i32, %arg1: i32, %arg2: i32) -> (i32, i32, i32, i32) {
    %c0_i32 = arith.constant 0 : i32
    %c0_i32_0 = arith.constant 0 : i32
    return %arg0, %arg1, %arg2, %c0_i32 : i32, i32, i32, i32
  }
}

module attributes {stable_mosaic.version = 11 : i64} {
  func.func @kernel(%arg0: i32, %arg1: i32, %arg2: i32, %arg3: memref<1x1x4x128xf32, #tpu.memory_space<vmem>>, %arg4: memref<1x1x128xf32, #tpu.memory_space<vmem>>, %arg5: memref<1x1x128xf32, #tpu.memory_space<vmem>>, %arg6: memref<1x1x4x128xbf16, #tpu.memory_space<vmem>>) attributes {dimension_semantics = [#tpu.dimension_semantics<parallel>, #tpu.dimension_semantics<parallel>, #tpu.dimension_semantics<parallel>], iteration_bounds = array<i64: 2, 1, 1>, scalar_prefetch = 0 : i64, scratch_operands = 0 : i64, tpu.core_type = #tpu.core_type<tc>, window_params = [{transform_indices = @transform_0, window_bounds = array<i64: 1, 1, 4, 128>}, {transform_indices = @transform_1, window_bounds = array<i64: 1, 1, 128>}, {transform_indices = @transform_2, window_bounds = array<i64: 1, 1, 128>}, {transform_indices = @transform_3, window_bounds = array<i64: 1, 1, 4, 128>}]} {
    %c0 = arith.constant 0 : index
    %c0_0 = arith.constant 0 : index
    %c0_1 = arith.constant 0 : index
    %c0_2 = arith.constant 0 : index
    %0 = vector.load %arg3[%c0, %c0_0, %c0_1, %c0_2] : memref<1x1x4x128xf32, #tpu.memory_space<vmem>>, vector<1x1x4x128xf32>
    %1 = vector.shape_cast %0 : vector<1x1x4x128xf32> to vector<4x128xf32>
    %c0_3 = arith.constant 0 : index
    %c0_4 = arith.constant 0 : index
    %c0_5 = arith.constant 0 : index
    %2 = vector.load %arg4[%c0_3, %c0_4, %c0_5] : memref<1x1x128xf32, #tpu.memory_space<vmem>>, vector<1x1x128xf32>
    %3 = vector.shape_cast %2 : vector<1x1x128xf32> to vector<1x128xf32>
    %4 = vector.broadcast %3 : vector<1x128xf32> to vector<4x128xf32>
    %5 = arith.subf %1, %4 : vector<4x128xf32>
    %c0_6 = arith.constant 0 : index
    %c0_7 = arith.constant 0 : index
    %c0_8 = arith.constant 0 : index
    %6 = vector.load %arg5[%c0_6, %c0_7, %c0_8] : memref<1x1x128xf32, #tpu.memory_space<vmem>>, vector<1x1x128xf32>
    %7 = vector.shape_cast %6 : vector<1x1x128xf32> to vector<1x128xf32>
    %8 = vector.broadcast %7 : vector<1x128xf32> to vector<4x128xf32>
    %9 = arith.mulf %5, %8 : vector<4x128xf32>
    %cst = arith.constant 0.000000e+00 : f32
    %10 = vector.broadcast %cst : f32 to vector<4x128xf32>
    %11 = arith.cmpf ogt, %9, %10 : vector<4x128xf32>
    %cst_9 = arith.constant 2.000000e-01 : f32
    %12 = vector.broadcast %cst_9 : f32 to vector<4x128xf32>
    %13 = arith.mulf %12, %9 : vector<4x128xf32>
    %14 = arith.select %11, %9, %13 : vector<4x128xi1>, vector<4x128xf32>
    %15 = arith.truncf %14 : vector<4x128xf32> to vector<4x128xbf16>
    %c0_10 = arith.constant 0 : index
    %c0_11 = arith.constant 0 : index
    %c0_12 = arith.constant 0 : index
    %c0_13 = arith.constant 0 : index
    %16 = vector.load %arg6[%c0_10, %c0_11, %c0_12, %c0_13] : memref<1x1x4x128xbf16, #tpu.memory_space<vmem>>, vector<1x1x4x128xbf16>
    %17 = vector.shape_cast %16 : vector<1x1x4x128xbf16> to vector<4x128xbf16>
    %18 = vector.shape_cast %15 : vector<4x128xbf16> to vector<1x1x4x128xbf16>
    tpu.vector_store %arg6[%c0_10, %c0_11, %c0_12, %c0_13], %18 {strides = array<i32>} : memref<1x1x4x128xbf16, #tpu.memory_space<vmem>>, vector<1x1x4x128xbf16>,
    return
  }
  func.func @transform_0(%arg0: i32, %arg1: i32, %arg2: i32) -> (i32, i32, i32, i32) {
    %c0_i32 = arith.constant 0 : i32
    %c0_i32_0 = arith.constant 0 : i32
    return %arg0, %arg1, %arg2, %c0_i32 : i32, i32, i32, i32
  }
  func.func @transform_1(%arg0: i32, %arg1: i32, %arg2: i32) -> (i32, i32, i32) {
    %c0_i32 = arith.constant 0 : i32
    %c0_i32_0 = arith.constant 0 : i32
    %c0_i32_1 = arith.constant 0 : i32
    return %arg0, %c0_i32, %c0_i32_0 : i32, i32, i32
  }
  func.func @transform_2(%arg0: i32, %arg1: i32, %arg2: i32) -> (i32, i32, i32) {
    %c0_i32 = arith.constant 0 : i32
    %c0_i32_0 = arith.constant 0 : i32
    %c0_i32_1 = arith.constant 0 : i32
    return %arg0, %c0_i32, %c0_i32_0 : i32, i32, i32
  }
  func.func @transform_3(%arg0: i32, %arg1: i32, %arg2: i32) -> (i32, i32, i32, i32) {
    %c0_i32 = arith.constant 0 : i32
    %c0_i32_0 = arith.constant 0 : i32
    return %arg0, %arg1, %arg2, %c0_i32 : i32, i32, i32, i32
  }
}

module attributes {stable_mosaic.version = 11 : i64} {
  func.func @_matmul_moments_kernel(%arg0: i32, %arg1: i32, %arg2: i32, %arg3: memref<1x1x1x1024xbf16, #tpu.memory_space<vmem>>, %arg4: memref<1x1024x128xbf16, #tpu.memory_space<vmem>>, %arg5: memref<1x128xf32, #tpu.memory_space<vmem>>, %arg6: memref<1x1x1x128xf32, #tpu.memory_space<vmem>>, %arg7: memref<1x1x128xf32, #tpu.memory_space<vmem>>, %arg8: memref<1x1x128xf32, #tpu.memory_space<vmem>>, %arg9: memref<1x128xf32, #tpu.memory_space<vmem>>, %arg10: memref<1x128xf32, #tpu.memory_space<vmem>>) attributes {dimension_semantics = [#tpu.dimension_semantics<parallel>, #tpu.dimension_semantics<arbitrary>, #tpu.dimension_semantics<arbitrary>], iteration_bounds = array<i64: 2, 1, 1>, scalar_prefetch = 0 : i64, scratch_operands = 2 : i64, tpu.core_type = #tpu.core_type<tc>, window_params = [{transform_indices = @transform_0, window_bounds = array<i64: 1, 1, 1, 1024>}, {transform_indices = @transform_1, window_bounds = array<i64: 1, 1024, 128>}, {pipeline_mode = #tpu.pipeline_mode<synchronous>, transform_indices = @transform_2, window_bounds = array<i64: 1, 128>}, {transform_indices = @transform_3, window_bounds = array<i64: 1, 1, 1, 128>}, {transform_indices = @transform_4, window_bounds = array<i64: 1, 1, 128>}, {transform_indices = @transform_5, window_bounds = array<i64: 1, 1, 128>}]} {
    %c0_i32 = arith.constant 0 : i32
    %0 = arith.cmpi eq, %arg1, %c0_i32 : i32
    %c0_i32_0 = arith.constant 0 : i32
    %1 = arith.cmpi eq, %arg2, %c0_i32_0 : i32
    %2 = arith.andi %0, %1 : i1
    %3 = arith.extui %2 : i1 to i32
    %c0_i32_1 = arith.constant 0 : i32
    %4 = arith.cmpi ne, %3, %c0_i32_1 : i32
    scf.if %4 {
      %cst_27 = arith.constant 0.000000e+00 : f32
      %31 = vector.broadcast %cst_27 : f32 to vector<1x128xf32>
      %c0_28 = arith.constant 0 : index
      %c0_29 = arith.constant 0 : index
      %32 = vector.load %arg9[%c0_28, %c0_29] : memref<1x128xf32, #tpu.memory_space<vmem>>, vector<1x128xf32>
      tpu.vector_store %arg9[%c0_28, %c0_29], %31 {strides = array<i32>} : memref<1x128xf32, #tpu.memory_space<vmem>>, vector<1x128xf32>,
      %cst_30 = arith.constant 0.000000e+00 : f32
      %33 = vector.broadcast %cst_30 : f32 to vector<1x128xf32>
      %c0_31 = arith.constant 0 : index
      %c0_32 = arith.constant 0 : index
      %34 = vector.load %arg10[%c0_31, %c0_32] : memref<1x128xf32, #tpu.memory_space<vmem>>, vector<1x128xf32>
      tpu.vector_store %arg10[%c0_31, %c0_32], %33 {strides = array<i32>} : memref<1x128xf32, #tpu.memory_space<vmem>>, vector<1x128xf32>,
    } else {
    }
    %c0 = arith.constant 0 : index
    %c0_2 = arith.constant 0 : index
    %c0_3 = arith.constant 0 : index
    %c0_4 = arith.constant 0 : index
    %5 = vector.load %arg3[%c0, %c0_2, %c0_3, %c0_4] : memref<1x1x1x1024xbf16, #tpu.memory_space<vmem>>, vector<1x1x1x1024xbf16>
    %6 = vector.shape_cast %5 : vector<1x1x1x1024xbf16> to vector<1x1024xbf16>
    %c0_5 = arith.constant 0 : index
    %c0_6 = arith.constant 0 : index
    %c0_7 = arith.constant 0 : index
    %7 = vector.load %arg4[%c0_5, %c0_6, %c0_7] : memref<1x1024x128xbf16, #tpu.memory_space<vmem>>, vector<1x1024x128xbf16>
    %8 = vector.shape_cast %7 : vector<1x1024x128xbf16> to vector<1024x128xbf16>
    %cst = arith.constant dense<0.000000e+00> : vector<1x128xf32>
    %9 = tpu.matmul %6, %8, %cst {dimension_numbers = #tpu.dot_dimension_numbers<[1], [0], [0], [1], [0, 0, 1, 1], [], []>} : vector<1x1024xbf16>, vector<1024x128xbf16>, vector<1x128xf32> -> vector<1x128xf32>
    %c0_8 = arith.constant 0 : index
    %c0_9 = arith.constant 0 : index
    %10 = vector.load %arg5[%c0_8, %c0_9] : memref<1x128xf32, #tpu.memory_space<vmem>>, vector<1x128xf32>
    %11 = arith.addf %9, %10 : vector<1x128xf32>
    %c0_10 = arith.constant 0 : index
    %c0_11 = arith.constant 0 : index
    %12 = vector.load %arg9[%c0_10, %c0_11] : memref<1x128xf32, #tpu.memory_space<vmem>>, vector<1x128xf32>
    %cst_12 = arith.constant dense<0.000000e+00> : vector<128xf32>
    %13 = vector.multi_reduction <add>, %11, %cst_12 [0] : vector<1x128xf32> to vector<128xf32>
    %14 = vector.shape_cast %13 : vector<128xf32> to vector<1x128xf32>
    %15 = arith.addf %12, %14 : vector<1x128xf32>
    %c0_13 = arith.constant 0 : index
    %c0_14 = arith.constant 0 : index
    %16 = vector.load %arg9[%c0_13, %c0_14] : memref<1x128xf32, #tpu.memory_space<vmem>>, vector<1x128xf32>
    tpu.vector_store %arg9[%c0_13, %c0_14], %15 {strides = array<i32>} : memref<1x128xf32, #tpu.memory_space<vmem>>, vector<1x128xf32>,
    %c0_15 = arith.constant 0 : index
    %c0_16 = arith.constant 0 : index
    %17 = vector.load %arg10[%c0_15, %c0_16] : memref<1x128xf32, #tpu.memory_space<vmem>>, vector<1x128xf32>
    %18 = arith.mulf %11, %11 : vector<1x128xf32>
    %cst_17 = arith.constant dense<0.000000e+00> : vector<128xf32>
    %19 = vector.multi_reduction <add>, %18, %cst_17 [0] : vector<1x128xf32> to vector<128xf32>
    %20 = vector.shape_cast %19 : vector<128xf32> to vector<1x128xf32>
    %21 = arith.addf %17, %20 : vector<1x128xf32>
    %c0_18 = arith.constant 0 : index
    %c0_19 = arith.constant 0 : index
    %22 = vector.load %arg10[%c0_18, %c0_19] : memref<1x128xf32, #tpu.memory_space<vmem>>, vector<1x128xf32>
    tpu.vector_store %arg10[%c0_18, %c0_19], %21 {strides = array<i32>} : memref<1x128xf32, #tpu.memory_space<vmem>>, vector<1x128xf32>,
    %c0_20 = arith.constant 0 : index
    %c0_21 = arith.constant 0 : index
    %c0_22 = arith.constant 0 : index
    %c0_23 = arith.constant 0 : index
    %23 = vector.load %arg6[%c0_20, %c0_21, %c0_22, %c0_23] : memref<1x1x1x128xf32, #tpu.memory_space<vmem>>, vector<1x1x1x128xf32>
    %24 = vector.shape_cast %23 : vector<1x1x1x128xf32> to vector<1x128xf32>
    %25 = vector.shape_cast %11 : vector<1x128xf32> to vector<1x1x1x128xf32>
    tpu.vector_store %arg6[%c0_20, %c0_21, %c0_22, %c0_23], %25 {strides = array<i32>} : memref<1x1x1x128xf32, #tpu.memory_space<vmem>>, vector<1x1x1x128xf32>,
    %c0_i32_24 = arith.constant 0 : i32
    %26 = arith.cmpi eq, %arg1, %c0_i32_24 : i32
    %c0_i32_25 = arith.constant 0 : i32
    %27 = arith.cmpi eq, %arg2, %c0_i32_25 : i32
    %28 = arith.andi %26, %27 : i1
    %29 = arith.extui %28 : i1 to i32
    %c0_i32_26 = arith.constant 0 : i32
    %30 = arith.cmpi ne, %29, %c0_i32_26 : i32
    scf.if %30 {
      %c0_27 = arith.constant 0 : index
      %c0_28 = arith.constant 0 : index
      %31 = vector.load %arg9[%c0_27, %c0_28] : memref<1x128xf32, #tpu.memory_space<vmem>>, vector<1x128xf32>
      %c0_29 = arith.constant 0 : index
      %c0_30 = arith.constant 0 : index
      %c0_31 = arith.constant 0 : index
      %32 = vector.load %arg7[%c0_29, %c0_30, %c0_31] : memref<1x1x128xf32, #tpu.memory_space<vmem>>, vector<1x1x128xf32>
      %33 = vector.shape_cast %32 : vector<1x1x128xf32> to vector<1x128xf32>
      %34 = vector.shape_cast %31 : vector<1x128xf32> to vector<1x1x128xf32>
      tpu.vector_store %arg7[%c0_29, %c0_30, %c0_31], %34 {strides = array<i32>} : memref<1x1x128xf32, #tpu.memory_space<vmem>>, vector<1x1x128xf32>,
      %c0_32 = arith.constant 0 : index
      %c0_33 = arith.constant 0 : index
      %35 = vector.load %arg10[%c0_32, %c0_33] : memref<1x128xf32, #tpu.memory_space<vmem>>, vector<1x128xf32>
      %c0_34 = arith.constant 0 : index
      %c0_35 = arith.constant 0 : index
      %c0_36 = arith.constant 0 : index
      %36 = vector.load %arg8[%c0_34, %c0_35, %c0_36] : memref<1x1x128xf32, #tpu.memory_space<vmem>>, vector<1x1x128xf32>
      %37 = vector.shape_cast %36 : vector<1x1x128xf32> to vector<1x128xf32>
      %38 = vector.shape_cast %35 : vector<1x128xf32> to vector<1x1x128xf32>
      tpu.vector_store %arg8[%c0_34, %c0_35, %c0_36], %38 {strides = array<i32>} : memref<1x1x128xf32, #tpu.memory_space<vmem>>, vector<1x1x128xf32>,
    } else {
    }
    return
  }
  func.func @transform_0(%arg0: i32, %arg1: i32, %arg2: i32) -> (i32, i32, i32, i32) {
    %c0_i32 = arith.constant 0 : i32
    %c0_i32_0 = arith.constant 0 : i32
    return %arg0, %arg1, %arg2, %c0_i32 : i32, i32, i32, i32
  }
  func.func @transform_1(%arg0: i32, %arg1: i32, %arg2: i32) -> (i32, i32, i32) {
    %c0_i32 = arith.constant 0 : i32
    %c0_i32_0 = arith.constant 0 : i32
    %c0_i32_1 = arith.constant 0 : i32
    return %arg1, %c0_i32, %c0_i32_0 : i32, i32, i32
  }
  func.func @transform_2(%arg0: i32, %arg1: i32, %arg2: i32) -> (i32, i32) {
    %c0_i32 = arith.constant 0 : i32
    %c0_i32_0 = arith.constant 0 : i32
    %c0_i32_1 = arith.constant 0 : i32
    return %c0_i32, %c0_i32_0 : i32, i32
  }
  func.func @transform_3(%arg0: i32, %arg1: i32, %arg2: i32) -> (i32, i32, i32, i32) {
    %c0_i32 = arith.constant 0 : i32
    %c0_i32_0 = arith.constant 0 : i32
    return %arg0, %arg1, %arg2, %c0_i32 : i32, i32, i32, i32
  }
  func.func @transform_4(%arg0: i32, %arg1: i32, %arg2: i32) -> (i32, i32, i32) {
    %c0_i32 = arith.constant 0 : i32
    %c0_i32_0 = arith.constant 0 : i32
    %c0_i32_1 = arith.constant 0 : i32
    return %arg0, %c0_i32, %c0_i32_0 : i32, i32, i32
  }
  func.func @transform_5(%arg0: i32, %arg1: i32, %arg2: i32) -> (i32, i32, i32) {
    %c0_i32 = arith.constant 0 : i32
    %c0_i32_0 = arith.constant 0 : i32
    %c0_i32_1 = arith.constant 0 : i32
    return %arg0, %c0_i32, %c0_i32_0 : i32, i32, i32
  }
}

module attributes {stable_mosaic.version = 11 : i64} {
  func.func @_matmul_moments_kernel(%arg0: i32, %arg1: i32, %arg2: i32, %arg3: memref<1x1x4x1024xbf16, #tpu.memory_space<vmem>>, %arg4: memref<1x1024x128xbf16, #tpu.memory_space<vmem>>, %arg5: memref<1x128xf32, #tpu.memory_space<vmem>>, %arg6: memref<1x1x4x128xf32, #tpu.memory_space<vmem>>, %arg7: memref<1x1x128xf32, #tpu.memory_space<vmem>>, %arg8: memref<1x1x128xf32, #tpu.memory_space<vmem>>, %arg9: memref<1x128xf32, #tpu.memory_space<vmem>>, %arg10: memref<1x128xf32, #tpu.memory_space<vmem>>) attributes {dimension_semantics = [#tpu.dimension_semantics<parallel>, #tpu.dimension_semantics<arbitrary>, #tpu.dimension_semantics<arbitrary>], iteration_bounds = array<i64: 2, 1, 1>, scalar_prefetch = 0 : i64, scratch_operands = 2 : i64, tpu.core_type = #tpu.core_type<tc>, window_params = [{transform_indices = @transform_0, window_bounds = array<i64: 1, 1, 4, 1024>}, {transform_indices = @transform_1, window_bounds = array<i64: 1, 1024, 128>}, {pipeline_mode = #tpu.pipeline_mode<synchronous>, transform_indices = @transform_2, window_bounds = array<i64: 1, 128>}, {transform_indices = @transform_3, window_bounds = array<i64: 1, 1, 4, 128>}, {transform_indices = @transform_4, window_bounds = array<i64: 1, 1, 128>}, {transform_indices = @transform_5, window_bounds = array<i64: 1, 1, 128>}]} {
    %c0_i32 = arith.constant 0 : i32
    %0 = arith.cmpi eq, %arg1, %c0_i32 : i32
    %c0_i32_0 = arith.constant 0 : i32
    %1 = arith.cmpi eq, %arg2, %c0_i32_0 : i32
    %2 = arith.andi %0, %1 : i1
    %3 = arith.extui %2 : i1 to i32
    %c0_i32_1 = arith.constant 0 : i32
    %4 = arith.cmpi ne, %3, %c0_i32_1 : i32
    scf.if %4 {
      %cst_27 = arith.constant 0.000000e+00 : f32
      %32 = vector.broadcast %cst_27 : f32 to vector<1x128xf32>
      %c0_28 = arith.constant 0 : index
      %c0_29 = arith.constant 0 : index
      %33 = vector.load %arg9[%c0_28, %c0_29] : memref<1x128xf32, #tpu.memory_space<vmem>>, vector<1x128xf32>
      tpu.vector_store %arg9[%c0_28, %c0_29], %32 {strides = array<i32>} : memref<1x128xf32, #tpu.memory_space<vmem>>, vector<1x128xf32>,
      %cst_30 = arith.constant 0.000000e+00 : f32
      %34 = vector.broadcast %cst_30 : f32 to vector<1x128xf32>
      %c0_31 = arith.constant 0 : index
      %c0_32 = arith.constant 0 : index
      %35 = vector.load %arg10[%c0_31, %c0_32] : memref<1x128xf32, #tpu.memory_space<vmem>>, vector<1x128xf32>
      tpu.vector_store %arg10[%c0_31, %c0_32], %34 {strides = array<i32>} : memref<1x128xf32, #tpu.memory_space<vmem>>, vector<1x128xf32>,
    } else {
    }
    %c0 = arith.constant 0 : index
    %c0_2 = arith.constant 0 : index
    %c0_3 = arith.constant 0 : index
    %c0_4 = arith.constant 0 : index
    %5 = vector.load %arg3[%c0, %c0_2, %c0_3, %c0_4] : memref<1x1x4x1024xbf16, #tpu.memory_space<vmem>>, vector<1x1x4x1024xbf16>
    %6 = vector.shape_cast %5 : vector<1x1x4x1024xbf16> to vector<4x1024xbf16>
    %c0_5 = arith.constant 0 : index
    %c0_6 = arith.constant 0 : index
    %c0_7 = arith.constant 0 : index
    %7 = vector.load %arg4[%c0_5, %c0_6, %c0_7] : memref<1x1024x128xbf16, #tpu.memory_space<vmem>>, vector<1x1024x128xbf16>
    %8 = vector.shape_cast %7 : vector<1x1024x128xbf16> to vector<1024x128xbf16>
    %cst = arith.constant dense<0.000000e+00> : vector<4x128xf32>
    %9 = tpu.matmul %6, %8, %cst {dimension_numbers = #tpu.dot_dimension_numbers<[1], [0], [0], [1], [0, 0, 1, 1], [], []>} : vector<4x1024xbf16>, vector<1024x128xbf16>, vector<4x128xf32> -> vector<4x128xf32>
    %c0_8 = arith.constant 0 : index
    %c0_9 = arith.constant 0 : index
    %10 = vector.load %arg5[%c0_8, %c0_9] : memref<1x128xf32, #tpu.memory_space<vmem>>, vector<1x128xf32>
    %11 = vector.broadcast %10 : vector<1x128xf32> to vector<4x128xf32>
    %12 = arith.addf %9, %11 : vector<4x128xf32>
    %c0_10 = arith.constant 0 : index
    %c0_11 = arith.constant 0 : index
    %13 = vector.load %arg9[%c0_10, %c0_11] : memref<1x128xf32, #tpu.memory_space<vmem>>, vector<1x128xf32>
    %cst_12 = arith.constant dense<0.000000e+00> : vector<128xf32>
    %14 = vector.multi_reduction <add>, %12, %cst_12 [0] : vector<4x128xf32> to vector<128xf32>
    %15 = vector.shape_cast %14 : vector<128xf32> to vector<1x128xf32>
    %16 = arith.addf %13, %15 : vector<1x128xf32>
    %c0_13 = arith.constant 0 : index
    %c0_14 = arith.constant 0 : index
    %17 = vector.load %arg9[%c0_13, %c0_14] : memref<1x128xf32, #tpu.memory_space<vmem>>, vector<1x128xf32>
    tpu.vector_store %arg9[%c0_13, %c0_14], %16 {strides = array<i32>} : memref<1x128xf32, #tpu.memory_space<vmem>>, vector<1x128xf32>,
    %c0_15 = arith.constant 0 : index
    %c0_16 = arith.constant 0 : index
    %18 = vector.load %arg10[%c0_15, %c0_16] : memref<1x128xf32, #tpu.memory_space<vmem>>, vector<1x128xf32>
    %19 = arith.mulf %12, %12 : vector<4x128xf32>
    %cst_17 = arith.constant dense<0.000000e+00> : vector<128xf32>
    %20 = vector.multi_reduction <add>, %19, %cst_17 [0] : vector<4x128xf32> to vector<128xf32>
    %21 = vector.shape_cast %20 : vector<128xf32> to vector<1x128xf32>
    %22 = arith.addf %18, %21 : vector<1x128xf32>
    %c0_18 = arith.constant 0 : index
    %c0_19 = arith.constant 0 : index
    %23 = vector.load %arg10[%c0_18, %c0_19] : memref<1x128xf32, #tpu.memory_space<vmem>>, vector<1x128xf32>
    tpu.vector_store %arg10[%c0_18, %c0_19], %22 {strides = array<i32>} : memref<1x128xf32, #tpu.memory_space<vmem>>, vector<1x128xf32>,
    %c0_20 = arith.constant 0 : index
    %c0_21 = arith.constant 0 : index
    %c0_22 = arith.constant 0 : index
    %c0_23 = arith.constant 0 : index
    %24 = vector.load %arg6[%c0_20, %c0_21, %c0_22, %c0_23] : memref<1x1x4x128xf32, #tpu.memory_space<vmem>>, vector<1x1x4x128xf32>
    %25 = vector.shape_cast %24 : vector<1x1x4x128xf32> to vector<4x128xf32>
    %26 = vector.shape_cast %12 : vector<4x128xf32> to vector<1x1x4x128xf32>
    tpu.vector_store %arg6[%c0_20, %c0_21, %c0_22, %c0_23], %26 {strides = array<i32>} : memref<1x1x4x128xf32, #tpu.memory_space<vmem>>, vector<1x1x4x128xf32>,
    %c0_i32_24 = arith.constant 0 : i32
    %27 = arith.cmpi eq, %arg1, %c0_i32_24 : i32
    %c0_i32_25 = arith.constant 0 : i32
    %28 = arith.cmpi eq, %arg2, %c0_i32_25 : i32
    %29 = arith.andi %27, %28 : i1
    %30 = arith.extui %29 : i1 to i32
    %c0_i32_26 = arith.constant 0 : i32
    %31 = arith.cmpi ne, %30, %c0_i32_26 : i32
    scf.if %31 {
      %c0_27 = arith.constant 0 : index
      %c0_28 = arith.constant 0 : index
      %32 = vector.load %arg9[%c0_27, %c0_28] : memref<1x128xf32, #tpu.memory_space<vmem>>, vector<1x128xf32>
      %c0_29 = arith.constant 0 : index
      %c0_30 = arith.constant 0 : index
      %c0_31 = arith.constant 0 : index
      %33 = vector.load %arg7[%c0_29, %c0_30, %c0_31] : memref<1x1x128xf32, #tpu.memory_space<vmem>>, vector<1x1x128xf32>
      %34 = vector.shape_cast %33 : vector<1x1x128xf32> to vector<1x128xf32>
      %35 = vector.shape_cast %32 : vector<1x128xf32> to vector<1x1x128xf32>
      tpu.vector_store %arg7[%c0_29, %c0_30, %c0_31], %35 {strides = array<i32>} : memref<1x1x128xf32, #tpu.memory_space<vmem>>, vector<1x1x128xf32>,
      %c0_32 = arith.constant 0 : index
      %c0_33 = arith.constant 0 : index
      %36 = vector.load %arg10[%c0_32, %c0_33] : memref<1x128xf32, #tpu.memory_space<vmem>>, vector<1x128xf32>
      %c0_34 = arith.constant 0 : index
      %c0_35 = arith.constant 0 : index
      %c0_36 = arith.constant 0 : index
      %37 = vector.load %arg8[%c0_34, %c0_35, %c0_36] : memref<1x1x128xf32, #tpu.memory_space<vmem>>, vector<1x1x128xf32>
      %38 = vector.shape_cast %37 : vector<1x1x128xf32> to vector<1x128xf32>
      %39 = vector.shape_cast %36 : vector<1x128xf32> to vector<1x1x128xf32>
      tpu.vector_store %arg8[%c0_34, %c0_35, %c0_36], %39 {strides = array<i32>} : memref<1x1x128xf32, #tpu.memory_space<vmem>>, vector<1x1x128xf32>,
    } else {
    }
    return
  }
  func.func @transform_0(%arg0: i32, %arg1: i32, %arg2: i32) -> (i32, i32, i32, i32) {
    %c0_i32 = arith.constant 0 : i32
    %c0_i32_0 = arith.constant 0 : i32
    return %arg0, %arg1, %arg2, %c0_i32 : i32, i32, i32, i32
  }
  func.func @transform_1(%arg0: i32, %arg1: i32, %arg2: i32) -> (i32, i32, i32) {
    %c0_i32 = arith.constant 0 : i32
    %c0_i32_0 = arith.constant 0 : i32
    %c0_i32_1 = arith.constant 0 : i32
    return %arg1, %c0_i32, %c0_i32_0 : i32, i32, i32
  }
  func.func @transform_2(%arg0: i32, %arg1: i32, %arg2: i32) -> (i32, i32) {
    %c0_i32 = arith.constant 0 : i32
    %c0_i32_0 = arith.constant 0 : i32
    %c0_i32_1 = arith.constant 0 : i32
    return %c0_i32, %c0_i32_0 : i32, i32
  }
  func.func @transform_3(%arg0: i32, %arg1: i32, %arg2: i32) -> (i32, i32, i32, i32) {
    %c0_i32 = arith.constant 0 : i32
    %c0_i32_0 = arith.constant 0 : i32
    return %arg0, %arg1, %arg2, %c0_i32 : i32, i32, i32, i32
  }
  func.func @transform_4(%arg0: i32, %arg1: i32, %arg2: i32) -> (i32, i32, i32) {
    %c0_i32 = arith.constant 0 : i32
    %c0_i32_0 = arith.constant 0 : i32
    %c0_i32_1 = arith.constant 0 : i32
    return %arg0, %c0_i32, %c0_i32_0 : i32, i32, i32
  }
  func.func @transform_5(%arg0: i32, %arg1: i32, %arg2: i32) -> (i32, i32, i32) {
    %c0_i32 = arith.constant 0 : i32
    %c0_i32_0 = arith.constant 0 : i32
    %c0_i32_1 = arith.constant 0 : i32
    return %arg0, %c0_i32, %c0_i32_0 : i32, i32, i32
  }
}

module attributes {stable_mosaic.version = 11 : i64} {
  func.func @kernel(%arg0: i32, %arg1: i32, %arg2: i32, %arg3: memref<1x1x1x128xf32, #tpu.memory_space<vmem>>, %arg4: memref<1x1x128xf32, #tpu.memory_space<vmem>>, %arg5: memref<1x1x128xf32, #tpu.memory_space<vmem>>, %arg6: memref<1x1x1x128xbf16, #tpu.memory_space<vmem>>) attributes {dimension_semantics = [#tpu.dimension_semantics<parallel>, #tpu.dimension_semantics<parallel>, #tpu.dimension_semantics<parallel>], iteration_bounds = array<i64: 2, 1, 1>, scalar_prefetch = 0 : i64, scratch_operands = 0 : i64, tpu.core_type = #tpu.core_type<tc>, window_params = [{transform_indices = @transform_0, window_bounds = array<i64: 1, 1, 1, 128>}, {transform_indices = @transform_1, window_bounds = array<i64: 1, 1, 128>}, {transform_indices = @transform_2, window_bounds = array<i64: 1, 1, 128>}, {transform_indices = @transform_3, window_bounds = array<i64: 1, 1, 1, 128>}]} {
    %c0 = arith.constant 0 : index
    %c0_0 = arith.constant 0 : index
    %c0_1 = arith.constant 0 : index
    %c0_2 = arith.constant 0 : index
    %0 = vector.load %arg3[%c0, %c0_0, %c0_1, %c0_2] : memref<1x1x1x128xf32, #tpu.memory_space<vmem>>, vector<1x1x1x128xf32>
    %1 = vector.shape_cast %0 : vector<1x1x1x128xf32> to vector<1x128xf32>
    %c0_3 = arith.constant 0 : index
    %c0_4 = arith.constant 0 : index
    %c0_5 = arith.constant 0 : index
    %2 = vector.load %arg4[%c0_3, %c0_4, %c0_5] : memref<1x1x128xf32, #tpu.memory_space<vmem>>, vector<1x1x128xf32>
    %3 = vector.shape_cast %2 : vector<1x1x128xf32> to vector<1x128xf32>
    %4 = arith.subf %1, %3 : vector<1x128xf32>
    %c0_6 = arith.constant 0 : index
    %c0_7 = arith.constant 0 : index
    %c0_8 = arith.constant 0 : index
    %5 = vector.load %arg5[%c0_6, %c0_7, %c0_8] : memref<1x1x128xf32, #tpu.memory_space<vmem>>, vector<1x1x128xf32>
    %6 = vector.shape_cast %5 : vector<1x1x128xf32> to vector<1x128xf32>
    %7 = arith.mulf %4, %6 : vector<1x128xf32>
    %cst = arith.constant 0.000000e+00 : f32
    %8 = vector.broadcast %cst : f32 to vector<1x128xf32>
    %9 = arith.cmpf ogt, %7, %8 : vector<1x128xf32>
    %cst_9 = arith.constant 2.000000e-01 : f32
    %10 = vector.broadcast %cst_9 : f32 to vector<1x128xf32>
    %11 = arith.mulf %10, %7 : vector<1x128xf32>
    %12 = arith.select %9, %7, %11 : vector<1x128xi1>, vector<1x128xf32>
    %13 = arith.truncf %12 : vector<1x128xf32> to vector<1x128xbf16>
    %c0_10 = arith.constant 0 : index
    %c0_11 = arith.constant 0 : index
    %c0_12 = arith.constant 0 : index
    %c0_13 = arith.constant 0 : index
    %14 = vector.load %arg6[%c0_10, %c0_11, %c0_12, %c0_13] : memref<1x1x1x128xbf16, #tpu.memory_space<vmem>>, vector<1x1x1x128xbf16>
    %15 = vector.shape_cast %14 : vector<1x1x1x128xbf16> to vector<1x128xbf16>
    %16 = vector.shape_cast %13 : vector<1x128xbf16> to vector<1x1x1x128xbf16>
    tpu.vector_store %arg6[%c0_10, %c0_11, %c0_12, %c0_13], %16 {strides = array<i32>} : memref<1x1x1x128xbf16, #tpu.memory_space<vmem>>, vector<1x1x1x128xbf16>,
    return
  }
  func.func @transform_0(%arg0: i32, %arg1: i32, %arg2: i32) -> (i32, i32, i32, i32) {
    %c0_i32 = arith.constant 0 : i32
    %c0_i32_0 = arith.constant 0 : i32
    return %arg0, %arg1, %arg2, %c0_i32 : i32, i32, i32, i32
  }
  func.func @transform_1(%arg0: i32, %arg1: i32, %arg2: i32) -> (i32, i32, i32) {
    %c0_i32 = arith.constant 0 : i32
    %c0_i32_0 = arith.constant 0 : i32
    %c0_i32_1 = arith.constant 0 : i32
    return %arg0, %c0_i32, %c0_i32_0 : i32, i32, i32
  }
  func.func @transform_2(%arg0: i32, %arg1: i32, %arg2: i32) -> (i32, i32, i32) {
    %c0_i32 = arith.constant 0 : i32
    %c0_i32_0 = arith.constant 0 : i32
    %c0_i32_1 = arith.constant 0 : i32
    return %arg0, %c0_i32, %c0_i32_0 : i32, i32, i32
  }
  func.func @transform_3(%arg0: i32, %arg1: i32, %arg2: i32) -> (i32, i32, i32, i32) {
    %c0_i32 = arith.constant 0 : i32
    %c0_i32_0 = arith.constant 0 : i32
    return %arg0, %arg1, %arg2, %c0_i32 : i32, i32, i32, i32
  }
}

module attributes {stable_mosaic.version = 11 : i64} {
  func.func @kernel(%arg0: i32, %arg1: i32, %arg2: i32, %arg3: memref<1x1x1x128xf32, #tpu.memory_space<vmem>>, %arg4: memref<1x1x128xf32, #tpu.memory_space<vmem>>, %arg5: memref<1x1x128xf32, #tpu.memory_space<vmem>>, %arg6: memref<1x1x1x128xbf16, #tpu.memory_space<vmem>>) attributes {dimension_semantics = [#tpu.dimension_semantics<parallel>, #tpu.dimension_semantics<parallel>, #tpu.dimension_semantics<parallel>], iteration_bounds = array<i64: 2, 4, 1>, scalar_prefetch = 0 : i64, scratch_operands = 0 : i64, tpu.core_type = #tpu.core_type<tc>, window_params = [{transform_indices = @transform_0, window_bounds = array<i64: 1, 1, 1, 128>}, {transform_indices = @transform_1, window_bounds = array<i64: 1, 1, 128>}, {transform_indices = @transform_2, window_bounds = array<i64: 1, 1, 128>}, {transform_indices = @transform_3, window_bounds = array<i64: 1, 1, 1, 128>}]} {
    %c0 = arith.constant 0 : index
    %c0_0 = arith.constant 0 : index
    %c0_1 = arith.constant 0 : index
    %c0_2 = arith.constant 0 : index
    %0 = vector.load %arg3[%c0, %c0_0, %c0_1, %c0_2] : memref<1x1x1x128xf32, #tpu.memory_space<vmem>>, vector<1x1x1x128xf32>
    %1 = vector.shape_cast %0 : vector<1x1x1x128xf32> to vector<1x128xf32>
    %c0_3 = arith.constant 0 : index
    %c0_4 = arith.constant 0 : index
    %c0_5 = arith.constant 0 : index
    %2 = vector.load %arg4[%c0_3, %c0_4, %c0_5] : memref<1x1x128xf32, #tpu.memory_space<vmem>>, vector<1x1x128xf32>
    %3 = vector.shape_cast %2 : vector<1x1x128xf32> to vector<1x128xf32>
    %4 = arith.subf %1, %3 : vector<1x128xf32>
    %c0_6 = arith.constant 0 : index
    %c0_7 = arith.constant 0 : index
    %c0_8 = arith.constant 0 : index
    %5 = vector.load %arg5[%c0_6, %c0_7, %c0_8] : memref<1x1x128xf32, #tpu.memory_space<vmem>>, vector<1x1x128xf32>
    %6 = vector.shape_cast %5 : vector<1x1x128xf32> to vector<1x128xf32>
    %7 = arith.mulf %4, %6 : vector<1x128xf32>
    %cst = arith.constant 0.000000e+00 : f32
    %8 = vector.broadcast %cst : f32 to vector<1x128xf32>
    %9 = arith.maximumf %7, %8 : vector<1x128xf32>
    %10 = arith.truncf %9 : vector<1x128xf32> to vector<1x128xbf16>
    %c0_9 = arith.constant 0 : index
    %c0_10 = arith.constant 0 : index
    %c0_11 = arith.constant 0 : index
    %c0_12 = arith.constant 0 : index
    %11 = vector.load %arg6[%c0_9, %c0_10, %c0_11, %c0_12] : memref<1x1x1x128xbf16, #tpu.memory_space<vmem>>, vector<1x1x1x128xbf16>
    %12 = vector.shape_cast %11 : vector<1x1x1x128xbf16> to vector<1x128xbf16>
    %13 = vector.shape_cast %10 : vector<1x128xbf16> to vector<1x1x1x128xbf16>
    tpu.vector_store %arg6[%c0_9, %c0_10, %c0_11, %c0_12], %13 {strides = array<i32>} : memref<1x1x1x128xbf16, #tpu.memory_space<vmem>>, vector<1x1x1x128xbf16>,
    return
  }
  func.func @transform_0(%arg0: i32, %arg1: i32, %arg2: i32) -> (i32, i32, i32, i32) {
    %c0_i32 = arith.constant 0 : i32
    %c0_i32_0 = arith.constant 0 : i32
    return %arg0, %arg1, %arg2, %c0_i32 : i32, i32, i32, i32
  }
  func.func @transform_1(%arg0: i32, %arg1: i32, %arg2: i32) -> (i32, i32, i32) {
    %c0_i32 = arith.constant 0 : i32
    %c0_i32_0 = arith.constant 0 : i32
    %c0_i32_1 = arith.constant 0 : i32
    return %arg0, %c0_i32, %c0_i32_0 : i32, i32, i32
  }
  func.func @transform_2(%arg0: i32, %arg1: i32, %arg2: i32) -> (i32, i32, i32) {
    %c0_i32 = arith.constant 0 : i32
    %c0_i32_0 = arith.constant 0 : i32
    %c0_i32_1 = arith.constant 0 : i32
    return %arg0, %c0_i32, %c0_i32_0 : i32, i32, i32
  }
  func.func @transform_3(%arg0: i32, %arg1: i32, %arg2: i32) -> (i32, i32, i32, i32) {
    %c0_i32 = arith.constant 0 : i32
    %c0_i32_0 = arith.constant 0 : i32
    return %arg0, %arg1, %arg2, %c0_i32 : i32, i32, i32, i32
  }
}

module attributes {stable_mosaic.version = 11 : i64} {
  func.func @_matmul_moments_kernel(%arg0: i32, %arg1: i32, %arg2: i32, %arg3: memref<1x1x1x256xbf16, #tpu.memory_space<vmem>>, %arg4: memref<1x256x128xbf16, #tpu.memory_space<vmem>>, %arg5: memref<1x128xf32, #tpu.memory_space<vmem>>, %arg6: memref<1x1x1x128xf32, #tpu.memory_space<vmem>>, %arg7: memref<1x1x128xf32, #tpu.memory_space<vmem>>, %arg8: memref<1x1x128xf32, #tpu.memory_space<vmem>>, %arg9: memref<1x128xf32, #tpu.memory_space<vmem>>, %arg10: memref<1x128xf32, #tpu.memory_space<vmem>>) attributes {dimension_semantics = [#tpu.dimension_semantics<parallel>, #tpu.dimension_semantics<arbitrary>, #tpu.dimension_semantics<arbitrary>], iteration_bounds = array<i64: 2, 4, 1>, scalar_prefetch = 0 : i64, scratch_operands = 2 : i64, tpu.core_type = #tpu.core_type<tc>, window_params = [{transform_indices = @transform_0, window_bounds = array<i64: 1, 1, 1, 256>}, {transform_indices = @transform_1, window_bounds = array<i64: 1, 256, 128>}, {pipeline_mode = #tpu.pipeline_mode<synchronous>, transform_indices = @transform_2, window_bounds = array<i64: 1, 128>}, {transform_indices = @transform_3, window_bounds = array<i64: 1, 1, 1, 128>}, {transform_indices = @transform_4, window_bounds = array<i64: 1, 1, 128>}, {transform_indices = @transform_5, window_bounds = array<i64: 1, 1, 128>}]} {
    %c0_i32 = arith.constant 0 : i32
    %0 = arith.cmpi eq, %arg1, %c0_i32 : i32
    %c0_i32_0 = arith.constant 0 : i32
    %1 = arith.cmpi eq, %arg2, %c0_i32_0 : i32
    %2 = arith.andi %0, %1 : i1
    %3 = arith.extui %2 : i1 to i32
    %c0_i32_1 = arith.constant 0 : i32
    %4 = arith.cmpi ne, %3, %c0_i32_1 : i32
    scf.if %4 {
      %cst_26 = arith.constant 0.000000e+00 : f32
      %31 = vector.broadcast %cst_26 : f32 to vector<1x128xf32>
      %c0_27 = arith.constant 0 : index
      %c0_28 = arith.constant 0 : index
      %32 = vector.load %arg9[%c0_27, %c0_28] : memref<1x128xf32, #tpu.memory_space<vmem>>, vector<1x128xf32>
      tpu.vector_store %arg9[%c0_27, %c0_28], %31 {strides = array<i32>} : memref<1x128xf32, #tpu.memory_space<vmem>>, vector<1x128xf32>,
      %cst_29 = arith.constant 0.000000e+00 : f32
      %33 = vector.broadcast %cst_29 : f32 to vector<1x128xf32>
      %c0_30 = arith.constant 0 : index
      %c0_31 = arith.constant 0 : index
      %34 = vector.load %arg10[%c0_30, %c0_31] : memref<1x128xf32, #tpu.memory_space<vmem>>, vector<1x128xf32>
      tpu.vector_store %arg10[%c0_30, %c0_31], %33 {strides = array<i32>} : memref<1x128xf32, #tpu.memory_space<vmem>>, vector<1x128xf32>,
    } else {
    }
    %c0 = arith.constant 0 : index
    %c0_2 = arith.constant 0 : index
    %c0_3 = arith.constant 0 : index
    %c0_4 = arith.constant 0 : index
    %5 = vector.load %arg3[%c0, %c0_2, %c0_3, %c0_4] : memref<1x1x1x256xbf16, #tpu.memory_space<vmem>>, vector<1x1x1x256xbf16>
    %6 = vector.shape_cast %5 : vector<1x1x1x256xbf16> to vector<1x256xbf16>
    %c0_5 = arith.constant 0 : index
    %c0_6 = arith.constant 0 : index
    %c0_7 = arith.constant 0 : index
    %7 = vector.load %arg4[%c0_5, %c0_6, %c0_7] : memref<1x256x128xbf16, #tpu.memory_space<vmem>>, vector<1x256x128xbf16>
    %8 = vector.shape_cast %7 : vector<1x256x128xbf16> to vector<256x128xbf16>
    %cst = arith.constant dense<0.000000e+00> : vector<1x128xf32>
    %9 = tpu.matmul %6, %8, %cst {dimension_numbers = #tpu.dot_dimension_numbers<[1], [0], [0], [1], [0, 0, 1, 1], [], []>} : vector<1x256xbf16>, vector<256x128xbf16>, vector<1x128xf32> -> vector<1x128xf32>
    %c0_8 = arith.constant 0 : index
    %c0_9 = arith.constant 0 : index
    %10 = vector.load %arg5[%c0_8, %c0_9] : memref<1x128xf32, #tpu.memory_space<vmem>>, vector<1x128xf32>
    %11 = arith.addf %9, %10 : vector<1x128xf32>
    %c0_10 = arith.constant 0 : index
    %c0_11 = arith.constant 0 : index
    %12 = vector.load %arg9[%c0_10, %c0_11] : memref<1x128xf32, #tpu.memory_space<vmem>>, vector<1x128xf32>
    %cst_12 = arith.constant dense<0.000000e+00> : vector<128xf32>
    %13 = vector.multi_reduction <add>, %11, %cst_12 [0] : vector<1x128xf32> to vector<128xf32>
    %14 = vector.shape_cast %13 : vector<128xf32> to vector<1x128xf32>
    %15 = arith.addf %12, %14 : vector<1x128xf32>
    %c0_13 = arith.constant 0 : index
    %c0_14 = arith.constant 0 : index
    %16 = vector.load %arg9[%c0_13, %c0_14] : memref<1x128xf32, #tpu.memory_space<vmem>>, vector<1x128xf32>
    tpu.vector_store %arg9[%c0_13, %c0_14], %15 {strides = array<i32>} : memref<1x128xf32, #tpu.memory_space<vmem>>, vector<1x128xf32>,
    %c0_15 = arith.constant 0 : index
    %c0_16 = arith.constant 0 : index
    %17 = vector.load %arg10[%c0_15, %c0_16] : memref<1x128xf32, #tpu.memory_space<vmem>>, vector<1x128xf32>
    %18 = arith.mulf %11, %11 : vector<1x128xf32>
    %cst_17 = arith.constant dense<0.000000e+00> : vector<128xf32>
    %19 = vector.multi_reduction <add>, %18, %cst_17 [0] : vector<1x128xf32> to vector<128xf32>
    %20 = vector.shape_cast %19 : vector<128xf32> to vector<1x128xf32>
    %21 = arith.addf %17, %20 : vector<1x128xf32>
    %c0_18 = arith.constant 0 : index
    %c0_19 = arith.constant 0 : index
    %22 = vector.load %arg10[%c0_18, %c0_19] : memref<1x128xf32, #tpu.memory_space<vmem>>, vector<1x128xf32>
    tpu.vector_store %arg10[%c0_18, %c0_19], %21 {strides = array<i32>} : memref<1x128xf32, #tpu.memory_space<vmem>>, vector<1x128xf32>,
    %c0_20 = arith.constant 0 : index
    %c0_21 = arith.constant 0 : index
    %c0_22 = arith.constant 0 : index
    %c0_23 = arith.constant 0 : index
    %23 = vector.load %arg6[%c0_20, %c0_21, %c0_22, %c0_23] : memref<1x1x1x128xf32, #tpu.memory_space<vmem>>, vector<1x1x1x128xf32>
    %24 = vector.shape_cast %23 : vector<1x1x1x128xf32> to vector<1x128xf32>
    %25 = vector.shape_cast %11 : vector<1x128xf32> to vector<1x1x1x128xf32>
    tpu.vector_store %arg6[%c0_20, %c0_21, %c0_22, %c0_23], %25 {strides = array<i32>} : memref<1x1x1x128xf32, #tpu.memory_space<vmem>>, vector<1x1x1x128xf32>,
    %c3_i32 = arith.constant 3 : i32
    %26 = arith.cmpi eq, %arg1, %c3_i32 : i32
    %c0_i32_24 = arith.constant 0 : i32
    %27 = arith.cmpi eq, %arg2, %c0_i32_24 : i32
    %28 = arith.andi %26, %27 : i1
    %29 = arith.extui %28 : i1 to i32
    %c0_i32_25 = arith.constant 0 : i32
    %30 = arith.cmpi ne, %29, %c0_i32_25 : i32
    scf.if %30 {
      %c0_26 = arith.constant 0 : index
      %c0_27 = arith.constant 0 : index
      %31 = vector.load %arg9[%c0_26, %c0_27] : memref<1x128xf32, #tpu.memory_space<vmem>>, vector<1x128xf32>
      %c0_28 = arith.constant 0 : index
      %c0_29 = arith.constant 0 : index
      %c0_30 = arith.constant 0 : index
      %32 = vector.load %arg7[%c0_28, %c0_29, %c0_30] : memref<1x1x128xf32, #tpu.memory_space<vmem>>, vector<1x1x128xf32>
      %33 = vector.shape_cast %32 : vector<1x1x128xf32> to vector<1x128xf32>
      %34 = vector.shape_cast %31 : vector<1x128xf32> to vector<1x1x128xf32>
      tpu.vector_store %arg7[%c0_28, %c0_29, %c0_30], %34 {strides = array<i32>} : memref<1x1x128xf32, #tpu.memory_space<vmem>>, vector<1x1x128xf32>,
      %c0_31 = arith.constant 0 : index
      %c0_32 = arith.constant 0 : index
      %35 = vector.load %arg10[%c0_31, %c0_32] : memref<1x128xf32, #tpu.memory_space<vmem>>, vector<1x128xf32>
      %c0_33 = arith.constant 0 : index
      %c0_34 = arith.constant 0 : index
      %c0_35 = arith.constant 0 : index
      %36 = vector.load %arg8[%c0_33, %c0_34, %c0_35] : memref<1x1x128xf32, #tpu.memory_space<vmem>>, vector<1x1x128xf32>
      %37 = vector.shape_cast %36 : vector<1x1x128xf32> to vector<1x128xf32>
      %38 = vector.shape_cast %35 : vector<1x128xf32> to vector<1x1x128xf32>
      tpu.vector_store %arg8[%c0_33, %c0_34, %c0_35], %38 {strides = array<i32>} : memref<1x1x128xf32, #tpu.memory_space<vmem>>, vector<1x1x128xf32>,
    } else {
    }
    return
  }
  func.func @transform_0(%arg0: i32, %arg1: i32, %arg2: i32) -> (i32, i32, i32, i32) {
    %c0_i32 = arith.constant 0 : i32
    %c0_i32_0 = arith.constant 0 : i32
    return %arg0, %arg1, %arg2, %c0_i32 : i32, i32, i32, i32
  }
  func.func @transform_1(%arg0: i32, %arg1: i32, %arg2: i32) -> (i32, i32, i32) {
    %c0_i32 = arith.constant 0 : i32
    %c0_i32_0 = arith.constant 0 : i32
    %c0_i32_1 = arith.constant 0 : i32
    return %arg1, %c0_i32, %c0_i32_0 : i32, i32, i32
  }
  func.func @transform_2(%arg0: i32, %arg1: i32, %arg2: i32) -> (i32, i32) {
    %c0_i32 = arith.constant 0 : i32
    %c0_i32_0 = arith.constant 0 : i32
    %c0_i32_1 = arith.constant 0 : i32
    return %c0_i32, %c0_i32_0 : i32, i32
  }
  func.func @transform_3(%arg0: i32, %arg1: i32, %arg2: i32) -> (i32, i32, i32, i32) {
    %c0_i32 = arith.constant 0 : i32
    %c0_i32_0 = arith.constant 0 : i32
    return %arg0, %arg1, %arg2, %c0_i32 : i32, i32, i32, i32
  }
  func.func @transform_4(%arg0: i32, %arg1: i32, %arg2: i32) -> (i32, i32, i32) {
    %c0_i32 = arith.constant 0 : i32
    %c0_i32_0 = arith.constant 0 : i32
    %c0_i32_1 = arith.constant 0 : i32
    return %arg0, %c0_i32, %c0_i32_0 : i32, i32, i32
  }
  func.func @transform_5(%arg0: i32, %arg1: i32, %arg2: i32) -> (i32, i32, i32) {
    %c0_i32 = arith.constant 0 : i32
    %c0_i32_0 = arith.constant 0 : i32
    %c0_i32_1 = arith.constant 0 : i32
    return %arg0, %c0_i32, %c0_i32_0 : i32, i32, i32
  }
}

module attributes {stable_mosaic.version = 11 : i64} {
  func.func @_matmul_moments_kernel(%arg0: i32, %arg1: i32, %arg2: i32, %arg3: memref<1x1x4x512xbf16, #tpu.memory_space<vmem>>, %arg4: memref<1x512x128xbf16, #tpu.memory_space<vmem>>, %arg5: memref<1x128xf32, #tpu.memory_space<vmem>>, %arg6: memref<1x1x4x128xf32, #tpu.memory_space<vmem>>, %arg7: memref<1x1x128xf32, #tpu.memory_space<vmem>>, %arg8: memref<1x1x128xf32, #tpu.memory_space<vmem>>, %arg9: memref<1x128xf32, #tpu.memory_space<vmem>>, %arg10: memref<1x128xf32, #tpu.memory_space<vmem>>) attributes {dimension_semantics = [#tpu.dimension_semantics<parallel>, #tpu.dimension_semantics<arbitrary>, #tpu.dimension_semantics<arbitrary>], iteration_bounds = array<i64: 2, 4, 1>, scalar_prefetch = 0 : i64, scratch_operands = 2 : i64, tpu.core_type = #tpu.core_type<tc>, window_params = [{transform_indices = @transform_0, window_bounds = array<i64: 1, 1, 4, 512>}, {transform_indices = @transform_1, window_bounds = array<i64: 1, 512, 128>}, {pipeline_mode = #tpu.pipeline_mode<synchronous>, transform_indices = @transform_2, window_bounds = array<i64: 1, 128>}, {transform_indices = @transform_3, window_bounds = array<i64: 1, 1, 4, 128>}, {transform_indices = @transform_4, window_bounds = array<i64: 1, 1, 128>}, {transform_indices = @transform_5, window_bounds = array<i64: 1, 1, 128>}]} {
    %c0_i32 = arith.constant 0 : i32
    %0 = arith.cmpi eq, %arg1, %c0_i32 : i32
    %c0_i32_0 = arith.constant 0 : i32
    %1 = arith.cmpi eq, %arg2, %c0_i32_0 : i32
    %2 = arith.andi %0, %1 : i1
    %3 = arith.extui %2 : i1 to i32
    %c0_i32_1 = arith.constant 0 : i32
    %4 = arith.cmpi ne, %3, %c0_i32_1 : i32
    scf.if %4 {
      %cst_26 = arith.constant 0.000000e+00 : f32
      %32 = vector.broadcast %cst_26 : f32 to vector<1x128xf32>
      %c0_27 = arith.constant 0 : index
      %c0_28 = arith.constant 0 : index
      %33 = vector.load %arg9[%c0_27, %c0_28] : memref<1x128xf32, #tpu.memory_space<vmem>>, vector<1x128xf32>
      tpu.vector_store %arg9[%c0_27, %c0_28], %32 {strides = array<i32>} : memref<1x128xf32, #tpu.memory_space<vmem>>, vector<1x128xf32>,
      %cst_29 = arith.constant 0.000000e+00 : f32
      %34 = vector.broadcast %cst_29 : f32 to vector<1x128xf32>
      %c0_30 = arith.constant 0 : index
      %c0_31 = arith.constant 0 : index
      %35 = vector.load %arg10[%c0_30, %c0_31] : memref<1x128xf32, #tpu.memory_space<vmem>>, vector<1x128xf32>
      tpu.vector_store %arg10[%c0_30, %c0_31], %34 {strides = array<i32>} : memref<1x128xf32, #tpu.memory_space<vmem>>, vector<1x128xf32>,
    } else {
    }
    %c0 = arith.constant 0 : index
    %c0_2 = arith.constant 0 : index
    %c0_3 = arith.constant 0 : index
    %c0_4 = arith.constant 0 : index
    %5 = vector.load %arg3[%c0, %c0_2, %c0_3, %c0_4] : memref<1x1x4x512xbf16, #tpu.memory_space<vmem>>, vector<1x1x4x512xbf16>
    %6 = vector.shape_cast %5 : vector<1x1x4x512xbf16> to vector<4x512xbf16>
    %c0_5 = arith.constant 0 : index
    %c0_6 = arith.constant 0 : index
    %c0_7 = arith.constant 0 : index
    %7 = vector.load %arg4[%c0_5, %c0_6, %c0_7] : memref<1x512x128xbf16, #tpu.memory_space<vmem>>, vector<1x512x128xbf16>
    %8 = vector.shape_cast %7 : vector<1x512x128xbf16> to vector<512x128xbf16>
    %cst = arith.constant dense<0.000000e+00> : vector<4x128xf32>
    %9 = tpu.matmul %6, %8, %cst {dimension_numbers = #tpu.dot_dimension_numbers<[1], [0], [0], [1], [0, 0, 1, 1], [], []>} : vector<4x512xbf16>, vector<512x128xbf16>, vector<4x128xf32> -> vector<4x128xf32>
    %c0_8 = arith.constant 0 : index
    %c0_9 = arith.constant 0 : index
    %10 = vector.load %arg5[%c0_8, %c0_9] : memref<1x128xf32, #tpu.memory_space<vmem>>, vector<1x128xf32>
    %11 = vector.broadcast %10 : vector<1x128xf32> to vector<4x128xf32>
    %12 = arith.addf %9, %11 : vector<4x128xf32>
    %c0_10 = arith.constant 0 : index
    %c0_11 = arith.constant 0 : index
    %13 = vector.load %arg9[%c0_10, %c0_11] : memref<1x128xf32, #tpu.memory_space<vmem>>, vector<1x128xf32>
    %cst_12 = arith.constant dense<0.000000e+00> : vector<128xf32>
    %14 = vector.multi_reduction <add>, %12, %cst_12 [0] : vector<4x128xf32> to vector<128xf32>
    %15 = vector.shape_cast %14 : vector<128xf32> to vector<1x128xf32>
    %16 = arith.addf %13, %15 : vector<1x128xf32>
    %c0_13 = arith.constant 0 : index
    %c0_14 = arith.constant 0 : index
    %17 = vector.load %arg9[%c0_13, %c0_14] : memref<1x128xf32, #tpu.memory_space<vmem>>, vector<1x128xf32>
    tpu.vector_store %arg9[%c0_13, %c0_14], %16 {strides = array<i32>} : memref<1x128xf32, #tpu.memory_space<vmem>>, vector<1x128xf32>,
    %c0_15 = arith.constant 0 : index
    %c0_16 = arith.constant 0 : index
    %18 = vector.load %arg10[%c0_15, %c0_16] : memref<1x128xf32, #tpu.memory_space<vmem>>, vector<1x128xf32>
    %19 = arith.mulf %12, %12 : vector<4x128xf32>
    %cst_17 = arith.constant dense<0.000000e+00> : vector<128xf32>
    %20 = vector.multi_reduction <add>, %19, %cst_17 [0] : vector<4x128xf32> to vector<128xf32>
    %21 = vector.shape_cast %20 : vector<128xf32> to vector<1x128xf32>
    %22 = arith.addf %18, %21 : vector<1x128xf32>
    %c0_18 = arith.constant 0 : index
    %c0_19 = arith.constant 0 : index
    %23 = vector.load %arg10[%c0_18, %c0_19] : memref<1x128xf32, #tpu.memory_space<vmem>>, vector<1x128xf32>
    tpu.vector_store %arg10[%c0_18, %c0_19], %22 {strides = array<i32>} : memref<1x128xf32, #tpu.memory_space<vmem>>, vector<1x128xf32>,
    %c0_20 = arith.constant 0 : index
    %c0_21 = arith.constant 0 : index
    %c0_22 = arith.constant 0 : index
    %c0_23 = arith.constant 0 : index
    %24 = vector.load %arg6[%c0_20, %c0_21, %c0_22, %c0_23] : memref<1x1x4x128xf32, #tpu.memory_space<vmem>>, vector<1x1x4x128xf32>
    %25 = vector.shape_cast %24 : vector<1x1x4x128xf32> to vector<4x128xf32>
    %26 = vector.shape_cast %12 : vector<4x128xf32> to vector<1x1x4x128xf32>
    tpu.vector_store %arg6[%c0_20, %c0_21, %c0_22, %c0_23], %26 {strides = array<i32>} : memref<1x1x4x128xf32, #tpu.memory_space<vmem>>, vector<1x1x4x128xf32>,
    %c3_i32 = arith.constant 3 : i32
    %27 = arith.cmpi eq, %arg1, %c3_i32 : i32
    %c0_i32_24 = arith.constant 0 : i32
    %28 = arith.cmpi eq, %arg2, %c0_i32_24 : i32
    %29 = arith.andi %27, %28 : i1
    %30 = arith.extui %29 : i1 to i32
    %c0_i32_25 = arith.constant 0 : i32
    %31 = arith.cmpi ne, %30, %c0_i32_25 : i32
    scf.if %31 {
      %c0_26 = arith.constant 0 : index
      %c0_27 = arith.constant 0 : index
      %32 = vector.load %arg9[%c0_26, %c0_27] : memref<1x128xf32, #tpu.memory_space<vmem>>, vector<1x128xf32>
      %c0_28 = arith.constant 0 : index
      %c0_29 = arith.constant 0 : index
      %c0_30 = arith.constant 0 : index
      %33 = vector.load %arg7[%c0_28, %c0_29, %c0_30] : memref<1x1x128xf32, #tpu.memory_space<vmem>>, vector<1x1x128xf32>
      %34 = vector.shape_cast %33 : vector<1x1x128xf32> to vector<1x128xf32>
      %35 = vector.shape_cast %32 : vector<1x128xf32> to vector<1x1x128xf32>
      tpu.vector_store %arg7[%c0_28, %c0_29, %c0_30], %35 {strides = array<i32>} : memref<1x1x128xf32, #tpu.memory_space<vmem>>, vector<1x1x128xf32>,
      %c0_31 = arith.constant 0 : index
      %c0_32 = arith.constant 0 : index
      %36 = vector.load %arg10[%c0_31, %c0_32] : memref<1x128xf32, #tpu.memory_space<vmem>>, vector<1x128xf32>
      %c0_33 = arith.constant 0 : index
      %c0_34 = arith.constant 0 : index
      %c0_35 = arith.constant 0 : index
      %37 = vector.load %arg8[%c0_33, %c0_34, %c0_35] : memref<1x1x128xf32, #tpu.memory_space<vmem>>, vector<1x1x128xf32>
      %38 = vector.shape_cast %37 : vector<1x1x128xf32> to vector<1x128xf32>
      %39 = vector.shape_cast %36 : vector<1x128xf32> to vector<1x1x128xf32>
      tpu.vector_store %arg8[%c0_33, %c0_34, %c0_35], %39 {strides = array<i32>} : memref<1x1x128xf32, #tpu.memory_space<vmem>>, vector<1x1x128xf32>,
    } else {
    }
    return
  }
  func.func @transform_0(%arg0: i32, %arg1: i32, %arg2: i32) -> (i32, i32, i32, i32) {
    %c0_i32 = arith.constant 0 : i32
    %c0_i32_0 = arith.constant 0 : i32
    return %arg0, %arg1, %arg2, %c0_i32 : i32, i32, i32, i32
  }
  func.func @transform_1(%arg0: i32, %arg1: i32, %arg2: i32) -> (i32, i32, i32) {
    %c0_i32 = arith.constant 0 : i32
    %c0_i32_0 = arith.constant 0 : i32
    %c0_i32_1 = arith.constant 0 : i32
    return %arg1, %c0_i32, %c0_i32_0 : i32, i32, i32
  }
  func.func @transform_2(%arg0: i32, %arg1: i32, %arg2: i32) -> (i32, i32) {
    %c0_i32 = arith.constant 0 : i32
    %c0_i32_0 = arith.constant 0 : i32
    %c0_i32_1 = arith.constant 0 : i32
    return %c0_i32, %c0_i32_0 : i32, i32
  }
  func.func @transform_3(%arg0: i32, %arg1: i32, %arg2: i32) -> (i32, i32, i32, i32) {
    %c0_i32 = arith.constant 0 : i32
    %c0_i32_0 = arith.constant 0 : i32
    return %arg0, %arg1, %arg2, %c0_i32 : i32, i32, i32, i32
  }
  func.func @transform_4(%arg0: i32, %arg1: i32, %arg2: i32) -> (i32, i32, i32) {
    %c0_i32 = arith.constant 0 : i32
    %c0_i32_0 = arith.constant 0 : i32
    %c0_i32_1 = arith.constant 0 : i32
    return %arg0, %c0_i32, %c0_i32_0 : i32, i32, i32
  }
  func.func @transform_5(%arg0: i32, %arg1: i32, %arg2: i32) -> (i32, i32, i32) {
    %c0_i32 = arith.constant 0 : i32
    %c0_i32_0 = arith.constant 0 : i32
    %c0_i32_1 = arith.constant 0 : i32
    return %arg0, %c0_i32, %c0_i32_0 : i32, i32, i32
  }
}

module attributes {stable_mosaic.version = 11 : i64} {
  func.func @kernel(%arg0: i32, %arg1: i32, %arg2: i32, %arg3: memref<1x1x4x128xf32, #tpu.memory_space<vmem>>, %arg4: memref<1x1x128xf32, #tpu.memory_space<vmem>>, %arg5: memref<1x1x128xf32, #tpu.memory_space<vmem>>, %arg6: memref<1x1x4x128xbf16, #tpu.memory_space<vmem>>) attributes {dimension_semantics = [#tpu.dimension_semantics<parallel>, #tpu.dimension_semantics<parallel>, #tpu.dimension_semantics<parallel>], iteration_bounds = array<i64: 2, 4, 1>, scalar_prefetch = 0 : i64, scratch_operands = 0 : i64, tpu.core_type = #tpu.core_type<tc>, window_params = [{transform_indices = @transform_0, window_bounds = array<i64: 1, 1, 4, 128>}, {transform_indices = @transform_1, window_bounds = array<i64: 1, 1, 128>}, {transform_indices = @transform_2, window_bounds = array<i64: 1, 1, 128>}, {transform_indices = @transform_3, window_bounds = array<i64: 1, 1, 4, 128>}]} {
    %c0 = arith.constant 0 : index
    %c0_0 = arith.constant 0 : index
    %c0_1 = arith.constant 0 : index
    %c0_2 = arith.constant 0 : index
    %0 = vector.load %arg3[%c0, %c0_0, %c0_1, %c0_2] : memref<1x1x4x128xf32, #tpu.memory_space<vmem>>, vector<1x1x4x128xf32>
    %1 = vector.shape_cast %0 : vector<1x1x4x128xf32> to vector<4x128xf32>
    %c0_3 = arith.constant 0 : index
    %c0_4 = arith.constant 0 : index
    %c0_5 = arith.constant 0 : index
    %2 = vector.load %arg4[%c0_3, %c0_4, %c0_5] : memref<1x1x128xf32, #tpu.memory_space<vmem>>, vector<1x1x128xf32>
    %3 = vector.shape_cast %2 : vector<1x1x128xf32> to vector<1x128xf32>
    %4 = vector.broadcast %3 : vector<1x128xf32> to vector<4x128xf32>
    %5 = arith.subf %1, %4 : vector<4x128xf32>
    %c0_6 = arith.constant 0 : index
    %c0_7 = arith.constant 0 : index
    %c0_8 = arith.constant 0 : index
    %6 = vector.load %arg5[%c0_6, %c0_7, %c0_8] : memref<1x1x128xf32, #tpu.memory_space<vmem>>, vector<1x1x128xf32>
    %7 = vector.shape_cast %6 : vector<1x1x128xf32> to vector<1x128xf32>
    %8 = vector.broadcast %7 : vector<1x128xf32> to vector<4x128xf32>
    %9 = arith.mulf %5, %8 : vector<4x128xf32>
    %cst = arith.constant 0.000000e+00 : f32
    %10 = vector.broadcast %cst : f32 to vector<4x128xf32>
    %11 = arith.maximumf %9, %10 : vector<4x128xf32>
    %12 = arith.truncf %11 : vector<4x128xf32> to vector<4x128xbf16>
    %c0_9 = arith.constant 0 : index
    %c0_10 = arith.constant 0 : index
    %c0_11 = arith.constant 0 : index
    %c0_12 = arith.constant 0 : index
    %13 = vector.load %arg6[%c0_9, %c0_10, %c0_11, %c0_12] : memref<1x1x4x128xbf16, #tpu.memory_space<vmem>>, vector<1x1x4x128xbf16>
    %14 = vector.shape_cast %13 : vector<1x1x4x128xbf16> to vector<4x128xbf16>
    %15 = vector.shape_cast %12 : vector<4x128xbf16> to vector<1x1x4x128xbf16>
    tpu.vector_store %arg6[%c0_9, %c0_10, %c0_11, %c0_12], %15 {strides = array<i32>} : memref<1x1x4x128xbf16, #tpu.memory_space<vmem>>, vector<1x1x4x128xbf16>,
    return
  }
  func.func @transform_0(%arg0: i32, %arg1: i32, %arg2: i32) -> (i32, i32, i32, i32) {
    %c0_i32 = arith.constant 0 : i32
    %c0_i32_0 = arith.constant 0 : i32
    return %arg0, %arg1, %arg2, %c0_i32 : i32, i32, i32, i32
  }
  func.func @transform_1(%arg0: i32, %arg1: i32, %arg2: i32) -> (i32, i32, i32) {
    %c0_i32 = arith.constant 0 : i32
    %c0_i32_0 = arith.constant 0 : i32
    %c0_i32_1 = arith.constant 0 : i32
    return %arg0, %c0_i32, %c0_i32_0 : i32, i32, i32
  }
  func.func @transform_2(%arg0: i32, %arg1: i32, %arg2: i32) -> (i32, i32, i32) {
    %c0_i32 = arith.constant 0 : i32
    %c0_i32_0 = arith.constant 0 : i32
    %c0_i32_1 = arith.constant 0 : i32
    return %arg0, %c0_i32, %c0_i32_0 : i32, i32, i32
  }
  func.func @transform_3(%arg0: i32, %arg1: i32, %arg2: i32) -> (i32, i32, i32, i32) {
    %c0_i32 = arith.constant 0 : i32
    %c0_i32_0 = arith.constant 0 : i32
    return %arg0, %arg1, %arg2, %c0_i32 : i32, i32, i32, i32
  }
}

module attributes {stable_mosaic.version = 11 : i64} {
  func.func @kernel(%arg0: i32, %arg1: i32, %arg2: i32, %arg3: memref<1x1x16x128xf32, #tpu.memory_space<vmem>>, %arg4: memref<1x1x128xf32, #tpu.memory_space<vmem>>, %arg5: memref<1x1x128xf32, #tpu.memory_space<vmem>>, %arg6: memref<1x1x16x128xbf16, #tpu.memory_space<vmem>>) attributes {dimension_semantics = [#tpu.dimension_semantics<parallel>, #tpu.dimension_semantics<parallel>, #tpu.dimension_semantics<parallel>], iteration_bounds = array<i64: 2, 4, 1>, scalar_prefetch = 0 : i64, scratch_operands = 0 : i64, tpu.core_type = #tpu.core_type<tc>, window_params = [{transform_indices = @transform_0, window_bounds = array<i64: 1, 1, 16, 128>}, {transform_indices = @transform_1, window_bounds = array<i64: 1, 1, 128>}, {transform_indices = @transform_2, window_bounds = array<i64: 1, 1, 128>}, {transform_indices = @transform_3, window_bounds = array<i64: 1, 1, 16, 128>}]} {
    %c0 = arith.constant 0 : index
    %c0_0 = arith.constant 0 : index
    %c0_1 = arith.constant 0 : index
    %c0_2 = arith.constant 0 : index
    %0 = vector.load %arg3[%c0, %c0_0, %c0_1, %c0_2] : memref<1x1x16x128xf32, #tpu.memory_space<vmem>>, vector<1x1x16x128xf32>
    %1 = vector.shape_cast %0 : vector<1x1x16x128xf32> to vector<16x128xf32>
    %c0_3 = arith.constant 0 : index
    %c0_4 = arith.constant 0 : index
    %c0_5 = arith.constant 0 : index
    %2 = vector.load %arg4[%c0_3, %c0_4, %c0_5] : memref<1x1x128xf32, #tpu.memory_space<vmem>>, vector<1x1x128xf32>
    %3 = vector.shape_cast %2 : vector<1x1x128xf32> to vector<1x128xf32>
    %4 = vector.broadcast %3 : vector<1x128xf32> to vector<16x128xf32>
    %5 = arith.subf %1, %4 : vector<16x128xf32>
    %c0_6 = arith.constant 0 : index
    %c0_7 = arith.constant 0 : index
    %c0_8 = arith.constant 0 : index
    %6 = vector.load %arg5[%c0_6, %c0_7, %c0_8] : memref<1x1x128xf32, #tpu.memory_space<vmem>>, vector<1x1x128xf32>
    %7 = vector.shape_cast %6 : vector<1x1x128xf32> to vector<1x128xf32>
    %8 = vector.broadcast %7 : vector<1x128xf32> to vector<16x128xf32>
    %9 = arith.mulf %5, %8 : vector<16x128xf32>
    %cst = arith.constant 0.000000e+00 : f32
    %10 = vector.broadcast %cst : f32 to vector<16x128xf32>
    %11 = arith.maximumf %9, %10 : vector<16x128xf32>
    %12 = arith.truncf %11 : vector<16x128xf32> to vector<16x128xbf16>
    %c0_9 = arith.constant 0 : index
    %c0_10 = arith.constant 0 : index
    %c0_11 = arith.constant 0 : index
    %c0_12 = arith.constant 0 : index
    %13 = vector.load %arg6[%c0_9, %c0_10, %c0_11, %c0_12] : memref<1x1x16x128xbf16, #tpu.memory_space<vmem>>, vector<1x1x16x128xbf16>
    %14 = vector.shape_cast %13 : vector<1x1x16x128xbf16> to vector<16x128xbf16>
    %15 = vector.shape_cast %12 : vector<16x128xbf16> to vector<1x1x16x128xbf16>
    tpu.vector_store %arg6[%c0_9, %c0_10, %c0_11, %c0_12], %15 {strides = array<i32>} : memref<1x1x16x128xbf16, #tpu.memory_space<vmem>>, vector<1x1x16x128xbf16>,
    return
  }
  func.func @transform_0(%arg0: i32, %arg1: i32, %arg2: i32) -> (i32, i32, i32, i32) {
    %c0_i32 = arith.constant 0 : i32
    %c0_i32_0 = arith.constant 0 : i32
    return %arg0, %arg1, %arg2, %c0_i32 : i32, i32, i32, i32
  }
  func.func @transform_1(%arg0: i32, %arg1: i32, %arg2: i32) -> (i32, i32, i32) {
    %c0_i32 = arith.constant 0 : i32
    %c0_i32_0 = arith.constant 0 : i32
    %c0_i32_1 = arith.constant 0 : i32
    return %arg0, %c0_i32, %c0_i32_0 : i32, i32, i32
  }
  func.func @transform_2(%arg0: i32, %arg1: i32, %arg2: i32) -> (i32, i32, i32) {
    %c0_i32 = arith.constant 0 : i32
    %c0_i32_0 = arith.constant 0 : i32
    %c0_i32_1 = arith.constant 0 : i32
    return %arg0, %c0_i32, %c0_i32_0 : i32, i32, i32
  }
  func.func @transform_3(%arg0: i32, %arg1: i32, %arg2: i32) -> (i32, i32, i32, i32) {
    %c0_i32 = arith.constant 0 : i32
    %c0_i32_0 = arith.constant 0 : i32
    return %arg0, %arg1, %arg2, %c0_i32 : i32, i32, i32, i32
  }
}

module attributes {stable_mosaic.version = 11 : i64} {
  func.func @_matmul_moments_kernel(%arg0: i32, %arg1: i32, %arg2: i32, %arg3: memref<1x1x16x512xbf16, #tpu.memory_space<vmem>>, %arg4: memref<1x512x128xbf16, #tpu.memory_space<vmem>>, %arg5: memref<1x128xf32, #tpu.memory_space<vmem>>, %arg6: memref<1x1x16x128xf32, #tpu.memory_space<vmem>>, %arg7: memref<1x1x128xf32, #tpu.memory_space<vmem>>, %arg8: memref<1x1x128xf32, #tpu.memory_space<vmem>>, %arg9: memref<1x128xf32, #tpu.memory_space<vmem>>, %arg10: memref<1x128xf32, #tpu.memory_space<vmem>>) attributes {dimension_semantics = [#tpu.dimension_semantics<parallel>, #tpu.dimension_semantics<arbitrary>, #tpu.dimension_semantics<arbitrary>], iteration_bounds = array<i64: 2, 4, 1>, scalar_prefetch = 0 : i64, scratch_operands = 2 : i64, tpu.core_type = #tpu.core_type<tc>, window_params = [{transform_indices = @transform_0, window_bounds = array<i64: 1, 1, 16, 512>}, {transform_indices = @transform_1, window_bounds = array<i64: 1, 512, 128>}, {pipeline_mode = #tpu.pipeline_mode<synchronous>, transform_indices = @transform_2, window_bounds = array<i64: 1, 128>}, {transform_indices = @transform_3, window_bounds = array<i64: 1, 1, 16, 128>}, {transform_indices = @transform_4, window_bounds = array<i64: 1, 1, 128>}, {transform_indices = @transform_5, window_bounds = array<i64: 1, 1, 128>}]} {
    %c0_i32 = arith.constant 0 : i32
    %0 = arith.cmpi eq, %arg1, %c0_i32 : i32
    %c0_i32_0 = arith.constant 0 : i32
    %1 = arith.cmpi eq, %arg2, %c0_i32_0 : i32
    %2 = arith.andi %0, %1 : i1
    %3 = arith.extui %2 : i1 to i32
    %c0_i32_1 = arith.constant 0 : i32
    %4 = arith.cmpi ne, %3, %c0_i32_1 : i32
    scf.if %4 {
      %cst_26 = arith.constant 0.000000e+00 : f32
      %32 = vector.broadcast %cst_26 : f32 to vector<1x128xf32>
      %c0_27 = arith.constant 0 : index
      %c0_28 = arith.constant 0 : index
      %33 = vector.load %arg9[%c0_27, %c0_28] : memref<1x128xf32, #tpu.memory_space<vmem>>, vector<1x128xf32>
      tpu.vector_store %arg9[%c0_27, %c0_28], %32 {strides = array<i32>} : memref<1x128xf32, #tpu.memory_space<vmem>>, vector<1x128xf32>,
      %cst_29 = arith.constant 0.000000e+00 : f32
      %34 = vector.broadcast %cst_29 : f32 to vector<1x128xf32>
      %c0_30 = arith.constant 0 : index
      %c0_31 = arith.constant 0 : index
      %35 = vector.load %arg10[%c0_30, %c0_31] : memref<1x128xf32, #tpu.memory_space<vmem>>, vector<1x128xf32>
      tpu.vector_store %arg10[%c0_30, %c0_31], %34 {strides = array<i32>} : memref<1x128xf32, #tpu.memory_space<vmem>>, vector<1x128xf32>,
    } else {
    }
    %c0 = arith.constant 0 : index
    %c0_2 = arith.constant 0 : index
    %c0_3 = arith.constant 0 : index
    %c0_4 = arith.constant 0 : index
    %5 = vector.load %arg3[%c0, %c0_2, %c0_3, %c0_4] : memref<1x1x16x512xbf16, #tpu.memory_space<vmem>>, vector<1x1x16x512xbf16>
    %6 = vector.shape_cast %5 : vector<1x1x16x512xbf16> to vector<16x512xbf16>
    %c0_5 = arith.constant 0 : index
    %c0_6 = arith.constant 0 : index
    %c0_7 = arith.constant 0 : index
    %7 = vector.load %arg4[%c0_5, %c0_6, %c0_7] : memref<1x512x128xbf16, #tpu.memory_space<vmem>>, vector<1x512x128xbf16>
    %8 = vector.shape_cast %7 : vector<1x512x128xbf16> to vector<512x128xbf16>
    %cst = arith.constant dense<0.000000e+00> : vector<16x128xf32>
    %9 = tpu.matmul %6, %8, %cst {dimension_numbers = #tpu.dot_dimension_numbers<[1], [0], [0], [1], [0, 0, 1, 1], [], []>} : vector<16x512xbf16>, vector<512x128xbf16>, vector<16x128xf32> -> vector<16x128xf32>
    %c0_8 = arith.constant 0 : index
    %c0_9 = arith.constant 0 : index
    %10 = vector.load %arg5[%c0_8, %c0_9] : memref<1x128xf32, #tpu.memory_space<vmem>>, vector<1x128xf32>
    %11 = vector.broadcast %10 : vector<1x128xf32> to vector<16x128xf32>
    %12 = arith.addf %9, %11 : vector<16x128xf32>
    %c0_10 = arith.constant 0 : index
    %c0_11 = arith.constant 0 : index
    %13 = vector.load %arg9[%c0_10, %c0_11] : memref<1x128xf32, #tpu.memory_space<vmem>>, vector<1x128xf32>
    %cst_12 = arith.constant dense<0.000000e+00> : vector<128xf32>
    %14 = vector.multi_reduction <add>, %12, %cst_12 [0] : vector<16x128xf32> to vector<128xf32>
    %15 = vector.shape_cast %14 : vector<128xf32> to vector<1x128xf32>
    %16 = arith.addf %13, %15 : vector<1x128xf32>
    %c0_13 = arith.constant 0 : index
    %c0_14 = arith.constant 0 : index
    %17 = vector.load %arg9[%c0_13, %c0_14] : memref<1x128xf32, #tpu.memory_space<vmem>>, vector<1x128xf32>
    tpu.vector_store %arg9[%c0_13, %c0_14], %16 {strides = array<i32>} : memref<1x128xf32, #tpu.memory_space<vmem>>, vector<1x128xf32>,
    %c0_15 = arith.constant 0 : index
    %c0_16 = arith.constant 0 : index
    %18 = vector.load %arg10[%c0_15, %c0_16] : memref<1x128xf32, #tpu.memory_space<vmem>>, vector<1x128xf32>
    %19 = arith.mulf %12, %12 : vector<16x128xf32>
    %cst_17 = arith.constant dense<0.000000e+00> : vector<128xf32>
    %20 = vector.multi_reduction <add>, %19, %cst_17 [0] : vector<16x128xf32> to vector<128xf32>
    %21 = vector.shape_cast %20 : vector<128xf32> to vector<1x128xf32>
    %22 = arith.addf %18, %21 : vector<1x128xf32>
    %c0_18 = arith.constant 0 : index
    %c0_19 = arith.constant 0 : index
    %23 = vector.load %arg10[%c0_18, %c0_19] : memref<1x128xf32, #tpu.memory_space<vmem>>, vector<1x128xf32>
    tpu.vector_store %arg10[%c0_18, %c0_19], %22 {strides = array<i32>} : memref<1x128xf32, #tpu.memory_space<vmem>>, vector<1x128xf32>,
    %c0_20 = arith.constant 0 : index
    %c0_21 = arith.constant 0 : index
    %c0_22 = arith.constant 0 : index
    %c0_23 = arith.constant 0 : index
    %24 = vector.load %arg6[%c0_20, %c0_21, %c0_22, %c0_23] : memref<1x1x16x128xf32, #tpu.memory_space<vmem>>, vector<1x1x16x128xf32>
    %25 = vector.shape_cast %24 : vector<1x1x16x128xf32> to vector<16x128xf32>
    %26 = vector.shape_cast %12 : vector<16x128xf32> to vector<1x1x16x128xf32>
    tpu.vector_store %arg6[%c0_20, %c0_21, %c0_22, %c0_23], %26 {strides = array<i32>} : memref<1x1x16x128xf32, #tpu.memory_space<vmem>>, vector<1x1x16x128xf32>,
    %c3_i32 = arith.constant 3 : i32
    %27 = arith.cmpi eq, %arg1, %c3_i32 : i32
    %c0_i32_24 = arith.constant 0 : i32
    %28 = arith.cmpi eq, %arg2, %c0_i32_24 : i32
    %29 = arith.andi %27, %28 : i1
    %30 = arith.extui %29 : i1 to i32
    %c0_i32_25 = arith.constant 0 : i32
    %31 = arith.cmpi ne, %30, %c0_i32_25 : i32
    scf.if %31 {
      %c0_26 = arith.constant 0 : index
      %c0_27 = arith.constant 0 : index
      %32 = vector.load %arg9[%c0_26, %c0_27] : memref<1x128xf32, #tpu.memory_space<vmem>>, vector<1x128xf32>
      %c0_28 = arith.constant 0 : index
      %c0_29 = arith.constant 0 : index
      %c0_30 = arith.constant 0 : index
      %33 = vector.load %arg7[%c0_28, %c0_29, %c0_30] : memref<1x1x128xf32, #tpu.memory_space<vmem>>, vector<1x1x128xf32>
      %34 = vector.shape_cast %33 : vector<1x1x128xf32> to vector<1x128xf32>
      %35 = vector.shape_cast %32 : vector<1x128xf32> to vector<1x1x128xf32>
      tpu.vector_store %arg7[%c0_28, %c0_29, %c0_30], %35 {strides = array<i32>} : memref<1x1x128xf32, #tpu.memory_space<vmem>>, vector<1x1x128xf32>,
      %c0_31 = arith.constant 0 : index
      %c0_32 = arith.constant 0 : index
      %36 = vector.load %arg10[%c0_31, %c0_32] : memref<1x128xf32, #tpu.memory_space<vmem>>, vector<1x128xf32>
      %c0_33 = arith.constant 0 : index
      %c0_34 = arith.constant 0 : index
      %c0_35 = arith.constant 0 : index
      %37 = vector.load %arg8[%c0_33, %c0_34, %c0_35] : memref<1x1x128xf32, #tpu.memory_space<vmem>>, vector<1x1x128xf32>
      %38 = vector.shape_cast %37 : vector<1x1x128xf32> to vector<1x128xf32>
      %39 = vector.shape_cast %36 : vector<1x128xf32> to vector<1x1x128xf32>
      tpu.vector_store %arg8[%c0_33, %c0_34, %c0_35], %39 {strides = array<i32>} : memref<1x1x128xf32, #tpu.memory_space<vmem>>, vector<1x1x128xf32>,
    } else {
    }
    return
  }
  func.func @transform_0(%arg0: i32, %arg1: i32, %arg2: i32) -> (i32, i32, i32, i32) {
    %c0_i32 = arith.constant 0 : i32
    %c0_i32_0 = arith.constant 0 : i32
    return %arg0, %arg1, %arg2, %c0_i32 : i32, i32, i32, i32
  }
  func.func @transform_1(%arg0: i32, %arg1: i32, %arg2: i32) -> (i32, i32, i32) {
    %c0_i32 = arith.constant 0 : i32
    %c0_i32_0 = arith.constant 0 : i32
    %c0_i32_1 = arith.constant 0 : i32
    return %arg1, %c0_i32, %c0_i32_0 : i32, i32, i32
  }
  func.func @transform_2(%arg0: i32, %arg1: i32, %arg2: i32) -> (i32, i32) {
    %c0_i32 = arith.constant 0 : i32
    %c0_i32_0 = arith.constant 0 : i32
    %c0_i32_1 = arith.constant 0 : i32
    return %c0_i32, %c0_i32_0 : i32, i32
  }
  func.func @transform_3(%arg0: i32, %arg1: i32, %arg2: i32) -> (i32, i32, i32, i32) {
    %c0_i32 = arith.constant 0 : i32
    %c0_i32_0 = arith.constant 0 : i32
    return %arg0, %arg1, %arg2, %c0_i32 : i32, i32, i32, i32
  }
  func.func @transform_4(%arg0: i32, %arg1: i32, %arg2: i32) -> (i32, i32, i32) {
    %c0_i32 = arith.constant 0 : i32
    %c0_i32_0 = arith.constant 0 : i32
    %c0_i32_1 = arith.constant 0 : i32
    return %arg0, %c0_i32, %c0_i32_0 : i32, i32, i32
  }
  func.func @transform_5(%arg0: i32, %arg1: i32, %arg2: i32) -> (i32, i32, i32) {
    %c0_i32 = arith.constant 0 : i32
    %c0_i32_0 = arith.constant 0 : i32
    %c0_i32_1 = arith.constant 0 : i32
    return %arg0, %c0_i32, %c0_i32_0 : i32, i32, i32
  }
}

module attributes {stable_mosaic.version = 11 : i64} {
  func.func @_matmul_moments_kernel(%arg0: i32, %arg1: i32, %arg2: i32, %arg3: memref<1x1x64x256xbf16, #tpu.memory_space<vmem>>, %arg4: memref<1x256x128xbf16, #tpu.memory_space<vmem>>, %arg5: memref<1x128xf32, #tpu.memory_space<vmem>>, %arg6: memref<1x1x64x128xf32, #tpu.memory_space<vmem>>, %arg7: memref<1x1x128xf32, #tpu.memory_space<vmem>>, %arg8: memref<1x1x128xf32, #tpu.memory_space<vmem>>, %arg9: memref<1x128xf32, #tpu.memory_space<vmem>>, %arg10: memref<1x128xf32, #tpu.memory_space<vmem>>) attributes {dimension_semantics = [#tpu.dimension_semantics<parallel>, #tpu.dimension_semantics<arbitrary>, #tpu.dimension_semantics<arbitrary>], iteration_bounds = array<i64: 2, 4, 1>, scalar_prefetch = 0 : i64, scratch_operands = 2 : i64, tpu.core_type = #tpu.core_type<tc>, window_params = [{transform_indices = @transform_0, window_bounds = array<i64: 1, 1, 64, 256>}, {transform_indices = @transform_1, window_bounds = array<i64: 1, 256, 128>}, {pipeline_mode = #tpu.pipeline_mode<synchronous>, transform_indices = @transform_2, window_bounds = array<i64: 1, 128>}, {transform_indices = @transform_3, window_bounds = array<i64: 1, 1, 64, 128>}, {transform_indices = @transform_4, window_bounds = array<i64: 1, 1, 128>}, {transform_indices = @transform_5, window_bounds = array<i64: 1, 1, 128>}]} {
    %c0_i32 = arith.constant 0 : i32
    %0 = arith.cmpi eq, %arg1, %c0_i32 : i32
    %c0_i32_0 = arith.constant 0 : i32
    %1 = arith.cmpi eq, %arg2, %c0_i32_0 : i32
    %2 = arith.andi %0, %1 : i1
    %3 = arith.extui %2 : i1 to i32
    %c0_i32_1 = arith.constant 0 : i32
    %4 = arith.cmpi ne, %3, %c0_i32_1 : i32
    scf.if %4 {
      %cst_26 = arith.constant 0.000000e+00 : f32
      %32 = vector.broadcast %cst_26 : f32 to vector<1x128xf32>
      %c0_27 = arith.constant 0 : index
      %c0_28 = arith.constant 0 : index
      %33 = vector.load %arg9[%c0_27, %c0_28] : memref<1x128xf32, #tpu.memory_space<vmem>>, vector<1x128xf32>
      tpu.vector_store %arg9[%c0_27, %c0_28], %32 {strides = array<i32>} : memref<1x128xf32, #tpu.memory_space<vmem>>, vector<1x128xf32>,
      %cst_29 = arith.constant 0.000000e+00 : f32
      %34 = vector.broadcast %cst_29 : f32 to vector<1x128xf32>
      %c0_30 = arith.constant 0 : index
      %c0_31 = arith.constant 0 : index
      %35 = vector.load %arg10[%c0_30, %c0_31] : memref<1x128xf32, #tpu.memory_space<vmem>>, vector<1x128xf32>
      tpu.vector_store %arg10[%c0_30, %c0_31], %34 {strides = array<i32>} : memref<1x128xf32, #tpu.memory_space<vmem>>, vector<1x128xf32>,
    } else {
    }
    %c0 = arith.constant 0 : index
    %c0_2 = arith.constant 0 : index
    %c0_3 = arith.constant 0 : index
    %c0_4 = arith.constant 0 : index
    %5 = vector.load %arg3[%c0, %c0_2, %c0_3, %c0_4] : memref<1x1x64x256xbf16, #tpu.memory_space<vmem>>, vector<1x1x64x256xbf16>
    %6 = vector.shape_cast %5 : vector<1x1x64x256xbf16> to vector<64x256xbf16>
    %c0_5 = arith.constant 0 : index
    %c0_6 = arith.constant 0 : index
    %c0_7 = arith.constant 0 : index
    %7 = vector.load %arg4[%c0_5, %c0_6, %c0_7] : memref<1x256x128xbf16, #tpu.memory_space<vmem>>, vector<1x256x128xbf16>
    %8 = vector.shape_cast %7 : vector<1x256x128xbf16> to vector<256x128xbf16>
    %cst = arith.constant dense<0.000000e+00> : vector<64x128xf32>
    %9 = tpu.matmul %6, %8, %cst {dimension_numbers = #tpu.dot_dimension_numbers<[1], [0], [0], [1], [0, 0, 1, 1], [], []>} : vector<64x256xbf16>, vector<256x128xbf16>, vector<64x128xf32> -> vector<64x128xf32>
    %c0_8 = arith.constant 0 : index
    %c0_9 = arith.constant 0 : index
    %10 = vector.load %arg5[%c0_8, %c0_9] : memref<1x128xf32, #tpu.memory_space<vmem>>, vector<1x128xf32>
    %11 = vector.broadcast %10 : vector<1x128xf32> to vector<64x128xf32>
    %12 = arith.addf %9, %11 : vector<64x128xf32>
    %c0_10 = arith.constant 0 : index
    %c0_11 = arith.constant 0 : index
    %13 = vector.load %arg9[%c0_10, %c0_11] : memref<1x128xf32, #tpu.memory_space<vmem>>, vector<1x128xf32>
    %cst_12 = arith.constant dense<0.000000e+00> : vector<128xf32>
    %14 = vector.multi_reduction <add>, %12, %cst_12 [0] : vector<64x128xf32> to vector<128xf32>
    %15 = vector.shape_cast %14 : vector<128xf32> to vector<1x128xf32>
    %16 = arith.addf %13, %15 : vector<1x128xf32>
    %c0_13 = arith.constant 0 : index
    %c0_14 = arith.constant 0 : index
    %17 = vector.load %arg9[%c0_13, %c0_14] : memref<1x128xf32, #tpu.memory_space<vmem>>, vector<1x128xf32>
    tpu.vector_store %arg9[%c0_13, %c0_14], %16 {strides = array<i32>} : memref<1x128xf32, #tpu.memory_space<vmem>>, vector<1x128xf32>,
    %c0_15 = arith.constant 0 : index
    %c0_16 = arith.constant 0 : index
    %18 = vector.load %arg10[%c0_15, %c0_16] : memref<1x128xf32, #tpu.memory_space<vmem>>, vector<1x128xf32>
    %19 = arith.mulf %12, %12 : vector<64x128xf32>
    %cst_17 = arith.constant dense<0.000000e+00> : vector<128xf32>
    %20 = vector.multi_reduction <add>, %19, %cst_17 [0] : vector<64x128xf32> to vector<128xf32>
    %21 = vector.shape_cast %20 : vector<128xf32> to vector<1x128xf32>
    %22 = arith.addf %18, %21 : vector<1x128xf32>
    %c0_18 = arith.constant 0 : index
    %c0_19 = arith.constant 0 : index
    %23 = vector.load %arg10[%c0_18, %c0_19] : memref<1x128xf32, #tpu.memory_space<vmem>>, vector<1x128xf32>
    tpu.vector_store %arg10[%c0_18, %c0_19], %22 {strides = array<i32>} : memref<1x128xf32, #tpu.memory_space<vmem>>, vector<1x128xf32>,
    %c0_20 = arith.constant 0 : index
    %c0_21 = arith.constant 0 : index
    %c0_22 = arith.constant 0 : index
    %c0_23 = arith.constant 0 : index
    %24 = vector.load %arg6[%c0_20, %c0_21, %c0_22, %c0_23] : memref<1x1x64x128xf32, #tpu.memory_space<vmem>>, vector<1x1x64x128xf32>
    %25 = vector.shape_cast %24 : vector<1x1x64x128xf32> to vector<64x128xf32>
    %26 = vector.shape_cast %12 : vector<64x128xf32> to vector<1x1x64x128xf32>
    tpu.vector_store %arg6[%c0_20, %c0_21, %c0_22, %c0_23], %26 {strides = array<i32>} : memref<1x1x64x128xf32, #tpu.memory_space<vmem>>, vector<1x1x64x128xf32>,
    %c3_i32 = arith.constant 3 : i32
    %27 = arith.cmpi eq, %arg1, %c3_i32 : i32
    %c0_i32_24 = arith.constant 0 : i32
    %28 = arith.cmpi eq, %arg2, %c0_i32_24 : i32
    %29 = arith.andi %27, %28 : i1
    %30 = arith.extui %29 : i1 to i32
    %c0_i32_25 = arith.constant 0 : i32
    %31 = arith.cmpi ne, %30, %c0_i32_25 : i32
    scf.if %31 {
      %c0_26 = arith.constant 0 : index
      %c0_27 = arith.constant 0 : index
      %32 = vector.load %arg9[%c0_26, %c0_27] : memref<1x128xf32, #tpu.memory_space<vmem>>, vector<1x128xf32>
      %c0_28 = arith.constant 0 : index
      %c0_29 = arith.constant 0 : index
      %c0_30 = arith.constant 0 : index
      %33 = vector.load %arg7[%c0_28, %c0_29, %c0_30] : memref<1x1x128xf32, #tpu.memory_space<vmem>>, vector<1x1x128xf32>
      %34 = vector.shape_cast %33 : vector<1x1x128xf32> to vector<1x128xf32>
      %35 = vector.shape_cast %32 : vector<1x128xf32> to vector<1x1x128xf32>
      tpu.vector_store %arg7[%c0_28, %c0_29, %c0_30], %35 {strides = array<i32>} : memref<1x1x128xf32, #tpu.memory_space<vmem>>, vector<1x1x128xf32>,
      %c0_31 = arith.constant 0 : index
      %c0_32 = arith.constant 0 : index
      %36 = vector.load %arg10[%c0_31, %c0_32] : memref<1x128xf32, #tpu.memory_space<vmem>>, vector<1x128xf32>
      %c0_33 = arith.constant 0 : index
      %c0_34 = arith.constant 0 : index
      %c0_35 = arith.constant 0 : index
      %37 = vector.load %arg8[%c0_33, %c0_34, %c0_35] : memref<1x1x128xf32, #tpu.memory_space<vmem>>, vector<1x1x128xf32>
      %38 = vector.shape_cast %37 : vector<1x1x128xf32> to vector<1x128xf32>
      %39 = vector.shape_cast %36 : vector<1x128xf32> to vector<1x1x128xf32>
      tpu.vector_store %arg8[%c0_33, %c0_34, %c0_35], %39 {strides = array<i32>} : memref<1x1x128xf32, #tpu.memory_space<vmem>>, vector<1x1x128xf32>,
    } else {
    }
    return
  }
  func.func @transform_0(%arg0: i32, %arg1: i32, %arg2: i32) -> (i32, i32, i32, i32) {
    %c0_i32 = arith.constant 0 : i32
    %c0_i32_0 = arith.constant 0 : i32
    return %arg0, %arg1, %arg2, %c0_i32 : i32, i32, i32, i32
  }
  func.func @transform_1(%arg0: i32, %arg1: i32, %arg2: i32) -> (i32, i32, i32) {
    %c0_i32 = arith.constant 0 : i32
    %c0_i32_0 = arith.constant 0 : i32
    %c0_i32_1 = arith.constant 0 : i32
    return %arg1, %c0_i32, %c0_i32_0 : i32, i32, i32
  }
  func.func @transform_2(%arg0: i32, %arg1: i32, %arg2: i32) -> (i32, i32) {
    %c0_i32 = arith.constant 0 : i32
    %c0_i32_0 = arith.constant 0 : i32
    %c0_i32_1 = arith.constant 0 : i32
    return %c0_i32, %c0_i32_0 : i32, i32
  }
  func.func @transform_3(%arg0: i32, %arg1: i32, %arg2: i32) -> (i32, i32, i32, i32) {
    %c0_i32 = arith.constant 0 : i32
    %c0_i32_0 = arith.constant 0 : i32
    return %arg0, %arg1, %arg2, %c0_i32 : i32, i32, i32, i32
  }
  func.func @transform_4(%arg0: i32, %arg1: i32, %arg2: i32) -> (i32, i32, i32) {
    %c0_i32 = arith.constant 0 : i32
    %c0_i32_0 = arith.constant 0 : i32
    %c0_i32_1 = arith.constant 0 : i32
    return %arg0, %c0_i32, %c0_i32_0 : i32, i32, i32
  }
  func.func @transform_5(%arg0: i32, %arg1: i32, %arg2: i32) -> (i32, i32, i32) {
    %c0_i32 = arith.constant 0 : i32
    %c0_i32_0 = arith.constant 0 : i32
    %c0_i32_1 = arith.constant 0 : i32
    return %arg0, %c0_i32, %c0_i32_0 : i32, i32, i32
  }
}

module attributes {stable_mosaic.version = 11 : i64} {
  func.func @kernel(%arg0: i32, %arg1: i32, %arg2: i32, %arg3: memref<1x1x64x128xf32, #tpu.memory_space<vmem>>, %arg4: memref<1x1x128xf32, #tpu.memory_space<vmem>>, %arg5: memref<1x1x128xf32, #tpu.memory_space<vmem>>, %arg6: memref<1x1x64x128xbf16, #tpu.memory_space<vmem>>) attributes {dimension_semantics = [#tpu.dimension_semantics<parallel>, #tpu.dimension_semantics<parallel>, #tpu.dimension_semantics<parallel>], iteration_bounds = array<i64: 2, 4, 1>, scalar_prefetch = 0 : i64, scratch_operands = 0 : i64, tpu.core_type = #tpu.core_type<tc>, window_params = [{transform_indices = @transform_0, window_bounds = array<i64: 1, 1, 64, 128>}, {transform_indices = @transform_1, window_bounds = array<i64: 1, 1, 128>}, {transform_indices = @transform_2, window_bounds = array<i64: 1, 1, 128>}, {transform_indices = @transform_3, window_bounds = array<i64: 1, 1, 64, 128>}]} {
    %c0 = arith.constant 0 : index
    %c0_0 = arith.constant 0 : index
    %c0_1 = arith.constant 0 : index
    %c0_2 = arith.constant 0 : index
    %0 = vector.load %arg3[%c0, %c0_0, %c0_1, %c0_2] : memref<1x1x64x128xf32, #tpu.memory_space<vmem>>, vector<1x1x64x128xf32>
    %1 = vector.shape_cast %0 : vector<1x1x64x128xf32> to vector<64x128xf32>
    %c0_3 = arith.constant 0 : index
    %c0_4 = arith.constant 0 : index
    %c0_5 = arith.constant 0 : index
    %2 = vector.load %arg4[%c0_3, %c0_4, %c0_5] : memref<1x1x128xf32, #tpu.memory_space<vmem>>, vector<1x1x128xf32>
    %3 = vector.shape_cast %2 : vector<1x1x128xf32> to vector<1x128xf32>
    %4 = vector.broadcast %3 : vector<1x128xf32> to vector<64x128xf32>
    %5 = arith.subf %1, %4 : vector<64x128xf32>
    %c0_6 = arith.constant 0 : index
    %c0_7 = arith.constant 0 : index
    %c0_8 = arith.constant 0 : index
    %6 = vector.load %arg5[%c0_6, %c0_7, %c0_8] : memref<1x1x128xf32, #tpu.memory_space<vmem>>, vector<1x1x128xf32>
    %7 = vector.shape_cast %6 : vector<1x1x128xf32> to vector<1x128xf32>
    %8 = vector.broadcast %7 : vector<1x128xf32> to vector<64x128xf32>
    %9 = arith.mulf %5, %8 : vector<64x128xf32>
    %cst = arith.constant 0.000000e+00 : f32
    %10 = vector.broadcast %cst : f32 to vector<64x128xf32>
    %11 = arith.maximumf %9, %10 : vector<64x128xf32>
    %12 = arith.truncf %11 : vector<64x128xf32> to vector<64x128xbf16>
    %c0_9 = arith.constant 0 : index
    %c0_10 = arith.constant 0 : index
    %c0_11 = arith.constant 0 : index
    %c0_12 = arith.constant 0 : index
    %13 = vector.load %arg6[%c0_9, %c0_10, %c0_11, %c0_12] : memref<1x1x64x128xbf16, #tpu.memory_space<vmem>>, vector<1x1x64x128xbf16>
    %14 = vector.shape_cast %13 : vector<1x1x64x128xbf16> to vector<64x128xbf16>
    %15 = vector.shape_cast %12 : vector<64x128xbf16> to vector<1x1x64x128xbf16>
    tpu.vector_store %arg6[%c0_9, %c0_10, %c0_11, %c0_12], %15 {strides = array<i32>} : memref<1x1x64x128xbf16, #tpu.memory_space<vmem>>, vector<1x1x64x128xbf16>,
    return
  }
  func.func @transform_0(%arg0: i32, %arg1: i32, %arg2: i32) -> (i32, i32, i32, i32) {
    %c0_i32 = arith.constant 0 : i32
    %c0_i32_0 = arith.constant 0 : i32
    return %arg0, %arg1, %arg2, %c0_i32 : i32, i32, i32, i32
  }
  func.func @transform_1(%arg0: i32, %arg1: i32, %arg2: i32) -> (i32, i32, i32) {
    %c0_i32 = arith.constant 0 : i32
    %c0_i32_0 = arith.constant 0 : i32
    %c0_i32_1 = arith.constant 0 : i32
    return %arg0, %c0_i32, %c0_i32_0 : i32, i32, i32
  }
  func.func @transform_2(%arg0: i32, %arg1: i32, %arg2: i32) -> (i32, i32, i32) {
    %c0_i32 = arith.constant 0 : i32
    %c0_i32_0 = arith.constant 0 : i32
    %c0_i32_1 = arith.constant 0 : i32
    return %arg0, %c0_i32, %c0_i32_0 : i32, i32, i32
  }
  func.func @transform_3(%arg0: i32, %arg1: i32, %arg2: i32) -> (i32, i32, i32, i32) {
    %c0_i32 = arith.constant 0 : i32
    %c0_i32_0 = arith.constant 0 : i32
    return %arg0, %arg1, %arg2, %c0_i32 : i32, i32, i32, i32
  }
}

module attributes {stable_mosaic.version = 11 : i64} {
  func.func @_matmul_moments_kernel(%arg0: i32, %arg1: i32, %arg2: i32, %arg3: memref<1x1x256x128xbf16, #tpu.memory_space<vmem>>, %arg4: memref<1x128x128xbf16, #tpu.memory_space<vmem>>, %arg5: memref<1x128xf32, #tpu.memory_space<vmem>>, %arg6: memref<1x1x256x128xf32, #tpu.memory_space<vmem>>, %arg7: memref<1x1x128xf32, #tpu.memory_space<vmem>>, %arg8: memref<1x1x128xf32, #tpu.memory_space<vmem>>, %arg9: memref<1x128xf32, #tpu.memory_space<vmem>>, %arg10: memref<1x128xf32, #tpu.memory_space<vmem>>) attributes {dimension_semantics = [#tpu.dimension_semantics<parallel>, #tpu.dimension_semantics<arbitrary>, #tpu.dimension_semantics<arbitrary>], iteration_bounds = array<i64: 2, 4, 1>, scalar_prefetch = 0 : i64, scratch_operands = 2 : i64, tpu.core_type = #tpu.core_type<tc>, window_params = [{transform_indices = @transform_0, window_bounds = array<i64: 1, 1, 256, 128>}, {transform_indices = @transform_1, window_bounds = array<i64: 1, 128, 128>}, {pipeline_mode = #tpu.pipeline_mode<synchronous>, transform_indices = @transform_2, window_bounds = array<i64: 1, 128>}, {transform_indices = @transform_3, window_bounds = array<i64: 1, 1, 256, 128>}, {transform_indices = @transform_4, window_bounds = array<i64: 1, 1, 128>}, {transform_indices = @transform_5, window_bounds = array<i64: 1, 1, 128>}]} {
    %c0_i32 = arith.constant 0 : i32
    %0 = arith.cmpi eq, %arg1, %c0_i32 : i32
    %c0_i32_0 = arith.constant 0 : i32
    %1 = arith.cmpi eq, %arg2, %c0_i32_0 : i32
    %2 = arith.andi %0, %1 : i1
    %3 = arith.extui %2 : i1 to i32
    %c0_i32_1 = arith.constant 0 : i32
    %4 = arith.cmpi ne, %3, %c0_i32_1 : i32
    scf.if %4 {
      %cst_26 = arith.constant 0.000000e+00 : f32
      %32 = vector.broadcast %cst_26 : f32 to vector<1x128xf32>
      %c0_27 = arith.constant 0 : index
      %c0_28 = arith.constant 0 : index
      %33 = vector.load %arg9[%c0_27, %c0_28] : memref<1x128xf32, #tpu.memory_space<vmem>>, vector<1x128xf32>
      tpu.vector_store %arg9[%c0_27, %c0_28], %32 {strides = array<i32>} : memref<1x128xf32, #tpu.memory_space<vmem>>, vector<1x128xf32>,
      %cst_29 = arith.constant 0.000000e+00 : f32
      %34 = vector.broadcast %cst_29 : f32 to vector<1x128xf32>
      %c0_30 = arith.constant 0 : index
      %c0_31 = arith.constant 0 : index
      %35 = vector.load %arg10[%c0_30, %c0_31] : memref<1x128xf32, #tpu.memory_space<vmem>>, vector<1x128xf32>
      tpu.vector_store %arg10[%c0_30, %c0_31], %34 {strides = array<i32>} : memref<1x128xf32, #tpu.memory_space<vmem>>, vector<1x128xf32>,
    } else {
    }
    %c0 = arith.constant 0 : index
    %c0_2 = arith.constant 0 : index
    %c0_3 = arith.constant 0 : index
    %c0_4 = arith.constant 0 : index
    %5 = vector.load %arg3[%c0, %c0_2, %c0_3, %c0_4] : memref<1x1x256x128xbf16, #tpu.memory_space<vmem>>, vector<1x1x256x128xbf16>
    %6 = vector.shape_cast %5 : vector<1x1x256x128xbf16> to vector<256x128xbf16>
    %c0_5 = arith.constant 0 : index
    %c0_6 = arith.constant 0 : index
    %c0_7 = arith.constant 0 : index
    %7 = vector.load %arg4[%c0_5, %c0_6, %c0_7] : memref<1x128x128xbf16, #tpu.memory_space<vmem>>, vector<1x128x128xbf16>
    %8 = vector.shape_cast %7 : vector<1x128x128xbf16> to vector<128x128xbf16>
    %cst = arith.constant dense<0.000000e+00> : vector<256x128xf32>
    %9 = tpu.matmul %6, %8, %cst {dimension_numbers = #tpu.dot_dimension_numbers<[1], [0], [0], [1], [0, 0, 1, 1], [], []>} : vector<256x128xbf16>, vector<128x128xbf16>, vector<256x128xf32> -> vector<256x128xf32>
    %c0_8 = arith.constant 0 : index
    %c0_9 = arith.constant 0 : index
    %10 = vector.load %arg5[%c0_8, %c0_9] : memref<1x128xf32, #tpu.memory_space<vmem>>, vector<1x128xf32>
    %11 = vector.broadcast %10 : vector<1x128xf32> to vector<256x128xf32>
    %12 = arith.addf %9, %11 : vector<256x128xf32>
    %c0_10 = arith.constant 0 : index
    %c0_11 = arith.constant 0 : index
    %13 = vector.load %arg9[%c0_10, %c0_11] : memref<1x128xf32, #tpu.memory_space<vmem>>, vector<1x128xf32>
    %cst_12 = arith.constant dense<0.000000e+00> : vector<128xf32>
    %14 = vector.multi_reduction <add>, %12, %cst_12 [0] : vector<256x128xf32> to vector<128xf32>
    %15 = vector.shape_cast %14 : vector<128xf32> to vector<1x128xf32>
    %16 = arith.addf %13, %15 : vector<1x128xf32>
    %c0_13 = arith.constant 0 : index
    %c0_14 = arith.constant 0 : index
    %17 = vector.load %arg9[%c0_13, %c0_14] : memref<1x128xf32, #tpu.memory_space<vmem>>, vector<1x128xf32>
    tpu.vector_store %arg9[%c0_13, %c0_14], %16 {strides = array<i32>} : memref<1x128xf32, #tpu.memory_space<vmem>>, vector<1x128xf32>,
    %c0_15 = arith.constant 0 : index
    %c0_16 = arith.constant 0 : index
    %18 = vector.load %arg10[%c0_15, %c0_16] : memref<1x128xf32, #tpu.memory_space<vmem>>, vector<1x128xf32>
    %19 = arith.mulf %12, %12 : vector<256x128xf32>
    %cst_17 = arith.constant dense<0.000000e+00> : vector<128xf32>
    %20 = vector.multi_reduction <add>, %19, %cst_17 [0] : vector<256x128xf32> to vector<128xf32>
    %21 = vector.shape_cast %20 : vector<128xf32> to vector<1x128xf32>
    %22 = arith.addf %18, %21 : vector<1x128xf32>
    %c0_18 = arith.constant 0 : index
    %c0_19 = arith.constant 0 : index
    %23 = vector.load %arg10[%c0_18, %c0_19] : memref<1x128xf32, #tpu.memory_space<vmem>>, vector<1x128xf32>
    tpu.vector_store %arg10[%c0_18, %c0_19], %22 {strides = array<i32>} : memref<1x128xf32, #tpu.memory_space<vmem>>, vector<1x128xf32>,
    %c0_20 = arith.constant 0 : index
    %c0_21 = arith.constant 0 : index
    %c0_22 = arith.constant 0 : index
    %c0_23 = arith.constant 0 : index
    %24 = vector.load %arg6[%c0_20, %c0_21, %c0_22, %c0_23] : memref<1x1x256x128xf32, #tpu.memory_space<vmem>>, vector<1x1x256x128xf32>
    %25 = vector.shape_cast %24 : vector<1x1x256x128xf32> to vector<256x128xf32>
    %26 = vector.shape_cast %12 : vector<256x128xf32> to vector<1x1x256x128xf32>
    tpu.vector_store %arg6[%c0_20, %c0_21, %c0_22, %c0_23], %26 {strides = array<i32>} : memref<1x1x256x128xf32, #tpu.memory_space<vmem>>, vector<1x1x256x128xf32>,
    %c3_i32 = arith.constant 3 : i32
    %27 = arith.cmpi eq, %arg1, %c3_i32 : i32
    %c0_i32_24 = arith.constant 0 : i32
    %28 = arith.cmpi eq, %arg2, %c0_i32_24 : i32
    %29 = arith.andi %27, %28 : i1
    %30 = arith.extui %29 : i1 to i32
    %c0_i32_25 = arith.constant 0 : i32
    %31 = arith.cmpi ne, %30, %c0_i32_25 : i32
    scf.if %31 {
      %c0_26 = arith.constant 0 : index
      %c0_27 = arith.constant 0 : index
      %32 = vector.load %arg9[%c0_26, %c0_27] : memref<1x128xf32, #tpu.memory_space<vmem>>, vector<1x128xf32>
      %c0_28 = arith.constant 0 : index
      %c0_29 = arith.constant 0 : index
      %c0_30 = arith.constant 0 : index
      %33 = vector.load %arg7[%c0_28, %c0_29, %c0_30] : memref<1x1x128xf32, #tpu.memory_space<vmem>>, vector<1x1x128xf32>
      %34 = vector.shape_cast %33 : vector<1x1x128xf32> to vector<1x128xf32>
      %35 = vector.shape_cast %32 : vector<1x128xf32> to vector<1x1x128xf32>
      tpu.vector_store %arg7[%c0_28, %c0_29, %c0_30], %35 {strides = array<i32>} : memref<1x1x128xf32, #tpu.memory_space<vmem>>, vector<1x1x128xf32>,
      %c0_31 = arith.constant 0 : index
      %c0_32 = arith.constant 0 : index
      %36 = vector.load %arg10[%c0_31, %c0_32] : memref<1x128xf32, #tpu.memory_space<vmem>>, vector<1x128xf32>
      %c0_33 = arith.constant 0 : index
      %c0_34 = arith.constant 0 : index
      %c0_35 = arith.constant 0 : index
      %37 = vector.load %arg8[%c0_33, %c0_34, %c0_35] : memref<1x1x128xf32, #tpu.memory_space<vmem>>, vector<1x1x128xf32>
      %38 = vector.shape_cast %37 : vector<1x1x128xf32> to vector<1x128xf32>
      %39 = vector.shape_cast %36 : vector<1x128xf32> to vector<1x1x128xf32>
      tpu.vector_store %arg8[%c0_33, %c0_34, %c0_35], %39 {strides = array<i32>} : memref<1x1x128xf32, #tpu.memory_space<vmem>>, vector<1x1x128xf32>,
    } else {
    }
    return
  }
  func.func @transform_0(%arg0: i32, %arg1: i32, %arg2: i32) -> (i32, i32, i32, i32) {
    %c0_i32 = arith.constant 0 : i32
    %c0_i32_0 = arith.constant 0 : i32
    return %arg0, %arg1, %arg2, %c0_i32 : i32, i32, i32, i32
  }
  func.func @transform_1(%arg0: i32, %arg1: i32, %arg2: i32) -> (i32, i32, i32) {
    %c0_i32 = arith.constant 0 : i32
    %c0_i32_0 = arith.constant 0 : i32
    %c0_i32_1 = arith.constant 0 : i32
    return %arg1, %c0_i32, %c0_i32_0 : i32, i32, i32
  }
  func.func @transform_2(%arg0: i32, %arg1: i32, %arg2: i32) -> (i32, i32) {
    %c0_i32 = arith.constant 0 : i32
    %c0_i32_0 = arith.constant 0 : i32
    %c0_i32_1 = arith.constant 0 : i32
    return %c0_i32, %c0_i32_0 : i32, i32
  }
  func.func @transform_3(%arg0: i32, %arg1: i32, %arg2: i32) -> (i32, i32, i32, i32) {
    %c0_i32 = arith.constant 0 : i32
    %c0_i32_0 = arith.constant 0 : i32
    return %arg0, %arg1, %arg2, %c0_i32 : i32, i32, i32, i32
  }
  func.func @transform_4(%arg0: i32, %arg1: i32, %arg2: i32) -> (i32, i32, i32) {
    %c0_i32 = arith.constant 0 : i32
    %c0_i32_0 = arith.constant 0 : i32
    %c0_i32_1 = arith.constant 0 : i32
    return %arg0, %c0_i32, %c0_i32_0 : i32, i32, i32
  }
  func.func @transform_5(%arg0: i32, %arg1: i32, %arg2: i32) -> (i32, i32, i32) {
    %c0_i32 = arith.constant 0 : i32
    %c0_i32_0 = arith.constant 0 : i32
    %c0_i32_1 = arith.constant 0 : i32
    return %arg0, %c0_i32, %c0_i32_0 : i32, i32, i32
  }
}

module attributes {stable_mosaic.version = 11 : i64} {
  func.func @kernel(%arg0: i32, %arg1: i32, %arg2: i32, %arg3: memref<1x1x256x128xf32, #tpu.memory_space<vmem>>, %arg4: memref<1x1x128xf32, #tpu.memory_space<vmem>>, %arg5: memref<1x1x128xf32, #tpu.memory_space<vmem>>, %arg6: memref<1x1x256x128xbf16, #tpu.memory_space<vmem>>) attributes {dimension_semantics = [#tpu.dimension_semantics<parallel>, #tpu.dimension_semantics<parallel>, #tpu.dimension_semantics<parallel>], iteration_bounds = array<i64: 2, 4, 1>, scalar_prefetch = 0 : i64, scratch_operands = 0 : i64, tpu.core_type = #tpu.core_type<tc>, window_params = [{transform_indices = @transform_0, window_bounds = array<i64: 1, 1, 256, 128>}, {transform_indices = @transform_1, window_bounds = array<i64: 1, 1, 128>}, {transform_indices = @transform_2, window_bounds = array<i64: 1, 1, 128>}, {transform_indices = @transform_3, window_bounds = array<i64: 1, 1, 256, 128>}]} {
    %c0 = arith.constant 0 : index
    %c0_0 = arith.constant 0 : index
    %c0_1 = arith.constant 0 : index
    %c0_2 = arith.constant 0 : index
    %0 = vector.load %arg3[%c0, %c0_0, %c0_1, %c0_2] : memref<1x1x256x128xf32, #tpu.memory_space<vmem>>, vector<1x1x256x128xf32>
    %1 = vector.shape_cast %0 : vector<1x1x256x128xf32> to vector<256x128xf32>
    %c0_3 = arith.constant 0 : index
    %c0_4 = arith.constant 0 : index
    %c0_5 = arith.constant 0 : index
    %2 = vector.load %arg4[%c0_3, %c0_4, %c0_5] : memref<1x1x128xf32, #tpu.memory_space<vmem>>, vector<1x1x128xf32>
    %3 = vector.shape_cast %2 : vector<1x1x128xf32> to vector<1x128xf32>
    %4 = vector.broadcast %3 : vector<1x128xf32> to vector<256x128xf32>
    %5 = arith.subf %1, %4 : vector<256x128xf32>
    %c0_6 = arith.constant 0 : index
    %c0_7 = arith.constant 0 : index
    %c0_8 = arith.constant 0 : index
    %6 = vector.load %arg5[%c0_6, %c0_7, %c0_8] : memref<1x1x128xf32, #tpu.memory_space<vmem>>, vector<1x1x128xf32>
    %7 = vector.shape_cast %6 : vector<1x1x128xf32> to vector<1x128xf32>
    %8 = vector.broadcast %7 : vector<1x128xf32> to vector<256x128xf32>
    %9 = arith.mulf %5, %8 : vector<256x128xf32>
    %cst = arith.constant 0.000000e+00 : f32
    %10 = vector.broadcast %cst : f32 to vector<256x128xf32>
    %11 = arith.maximumf %9, %10 : vector<256x128xf32>
    %12 = arith.truncf %11 : vector<256x128xf32> to vector<256x128xbf16>
    %c0_9 = arith.constant 0 : index
    %c0_10 = arith.constant 0 : index
    %c0_11 = arith.constant 0 : index
    %c0_12 = arith.constant 0 : index
    %13 = vector.load %arg6[%c0_9, %c0_10, %c0_11, %c0_12] : memref<1x1x256x128xbf16, #tpu.memory_space<vmem>>, vector<1x1x256x128xbf16>
    %14 = vector.shape_cast %13 : vector<1x1x256x128xbf16> to vector<256x128xbf16>
    %15 = vector.shape_cast %12 : vector<256x128xbf16> to vector<1x1x256x128xbf16>
    tpu.vector_store %arg6[%c0_9, %c0_10, %c0_11, %c0_12], %15 {strides = array<i32>} : memref<1x1x256x128xbf16, #tpu.memory_space<vmem>>, vector<1x1x256x128xbf16>,
    return
  }
  func.func @transform_0(%arg0: i32, %arg1: i32, %arg2: i32) -> (i32, i32, i32, i32) {
    %c0_i32 = arith.constant 0 : i32
    %c0_i32_0 = arith.constant 0 : i32
    return %arg0, %arg1, %arg2, %c0_i32 : i32, i32, i32, i32
  }
  func.func @transform_1(%arg0: i32, %arg1: i32, %arg2: i32) -> (i32, i32, i32) {
    %c0_i32 = arith.constant 0 : i32
    %c0_i32_0 = arith.constant 0 : i32
    %c0_i32_1 = arith.constant 0 : i32
    return %arg0, %c0_i32, %c0_i32_0 : i32, i32, i32
  }
  func.func @transform_2(%arg0: i32, %arg1: i32, %arg2: i32) -> (i32, i32, i32) {
    %c0_i32 = arith.constant 0 : i32
    %c0_i32_0 = arith.constant 0 : i32
    %c0_i32_1 = arith.constant 0 : i32
    return %arg0, %c0_i32, %c0_i32_0 : i32, i32, i32
  }
  func.func @transform_3(%arg0: i32, %arg1: i32, %arg2: i32) -> (i32, i32, i32, i32) {
    %c0_i32 = arith.constant 0 : i32
    %c0_i32_0 = arith.constant 0 : i32
    return %arg0, %arg1, %arg2, %c0_i32 : i32, i32, i32, i32
  }
}

module attributes {stable_mosaic.version = 11 : i64} {
  func.func @kernel(%arg0: i32, %arg1: i32, %arg2: i32, %arg3: memref<1x1x1024x128xbf16, #tpu.memory_space<vmem>>, %arg4: memref<1x128x128xbf16, #tpu.memory_space<vmem>>, %arg5: memref<1x128xf32, #tpu.memory_space<vmem>>, %arg6: memref<1x1x1024x128xf32, #tpu.memory_space<vmem>>) attributes {dimension_semantics = [#tpu.dimension_semantics<parallel>, #tpu.dimension_semantics<parallel>, #tpu.dimension_semantics<parallel>], iteration_bounds = array<i64: 2, 4, 1>, scalar_prefetch = 0 : i64, scratch_operands = 0 : i64, tpu.core_type = #tpu.core_type<tc>, window_params = [{transform_indices = @transform_0, window_bounds = array<i64: 1, 1, 1024, 128>}, {transform_indices = @transform_1, window_bounds = array<i64: 1, 128, 128>}, {pipeline_mode = #tpu.pipeline_mode<synchronous>, transform_indices = @transform_2, window_bounds = array<i64: 1, 128>}, {transform_indices = @transform_3, window_bounds = array<i64: 1, 1, 1024, 128>}]} {
    %c0 = arith.constant 0 : index
    %c0_0 = arith.constant 0 : index
    %c0_1 = arith.constant 0 : index
    %c0_2 = arith.constant 0 : index
    %0 = vector.load %arg3[%c0, %c0_0, %c0_1, %c0_2] : memref<1x1x1024x128xbf16, #tpu.memory_space<vmem>>, vector<1x1x1024x128xbf16>
    %1 = vector.shape_cast %0 : vector<1x1x1024x128xbf16> to vector<1024x128xbf16>
    %c0_3 = arith.constant 0 : index
    %c0_4 = arith.constant 0 : index
    %c0_5 = arith.constant 0 : index
    %2 = vector.load %arg4[%c0_3, %c0_4, %c0_5] : memref<1x128x128xbf16, #tpu.memory_space<vmem>>, vector<1x128x128xbf16>
    %3 = vector.shape_cast %2 : vector<1x128x128xbf16> to vector<128x128xbf16>
    %cst = arith.constant dense<0.000000e+00> : vector<1024x128xf32>
    %4 = tpu.matmul %1, %3, %cst {dimension_numbers = #tpu.dot_dimension_numbers<[1], [0], [0], [1], [0, 0, 1, 1], [], []>} : vector<1024x128xbf16>, vector<128x128xbf16>, vector<1024x128xf32> -> vector<1024x128xf32>
    %c0_6 = arith.constant 0 : index
    %c0_7 = arith.constant 0 : index
    %5 = vector.load %arg5[%c0_6, %c0_7] : memref<1x128xf32, #tpu.memory_space<vmem>>, vector<1x128xf32>
    %6 = vector.broadcast %5 : vector<1x128xf32> to vector<1024x128xf32>
    %7 = arith.addf %4, %6 : vector<1024x128xf32>
    %8 = math.tanh %7 : vector<1024x128xf32>
    %c0_8 = arith.constant 0 : index
    %c0_9 = arith.constant 0 : index
    %c0_10 = arith.constant 0 : index
    %c0_11 = arith.constant 0 : index
    %9 = vector.load %arg6[%c0_8, %c0_9, %c0_10, %c0_11] : memref<1x1x1024x128xf32, #tpu.memory_space<vmem>>, vector<1x1x1024x128xf32>
    %10 = vector.shape_cast %9 : vector<1x1x1024x128xf32> to vector<1024x128xf32>
    %11 = vector.shape_cast %8 : vector<1024x128xf32> to vector<1x1x1024x128xf32>
    tpu.vector_store %arg6[%c0_8, %c0_9, %c0_10, %c0_11], %11 {strides = array<i32>} : memref<1x1x1024x128xf32, #tpu.memory_space<vmem>>, vector<1x1x1024x128xf32>,
    return
  }
  func.func @transform_0(%arg0: i32, %arg1: i32, %arg2: i32) -> (i32, i32, i32, i32) {
    %c0_i32 = arith.constant 0 : i32
    %c0_i32_0 = arith.constant 0 : i32
    return %arg0, %arg1, %arg2, %c0_i32 : i32, i32, i32, i32
  }
  func.func @transform_1(%arg0: i32, %arg1: i32, %arg2: i32) -> (i32, i32, i32) {
    %c0_i32 = arith.constant 0 : i32
    %c0_i32_0 = arith.constant 0 : i32
    %c0_i32_1 = arith.constant 0 : i32
    return %arg1, %c0_i32, %c0_i32_0 : i32, i32, i32
  }
  func.func @transform_2(%arg0: i32, %arg1: i32, %arg2: i32) -> (i32, i32) {
    %c0_i32 = arith.constant 0 : i32
    %c0_i32_0 = arith.constant 0 : i32
    %c0_i32_1 = arith.constant 0 : i32
    return %c0_i32, %c0_i32_0 : i32, i32
  }
  func.func @transform_3(%arg0: i32, %arg1: i32, %arg2: i32) -> (i32, i32, i32, i32) {
    %c0_i32 = arith.constant 0 : i32
    %c0_i32_0 = arith.constant 0 : i32
    return %arg0, %arg1, %arg2, %c0_i32 : i32, i32, i32, i32
  }
}

</mosaic_0001>

<bundles_post_ra>
// kernel: forward.22
= control target key start
LH: loop header
LB: loop body
LE: loop exit
PB: predicated region body
PF: predicated region fallthrough
CT: control target
= control target key end

     0   :  { %s3640_s12 = smov 0   ;;  %s3642_s13 = smov 0   ;;  %s4072_s0 = inlined_call_operand.vmem [shape: bf16[2,1,1024,128], index: 0, kind: input, shape index: {}]   ;;  %s4073_s1 = inlined_call_operand.vmem [shape: bf16[1,128,128], index: 1, kind: input, shape index: {}]   ;;  %s4074_s2 = inlined_call_operand.vmem [shape: f32[1,128], index: 2, kind: input, shape index: {}]   ;;  %s4075_s3 = inlined_call_operand.vmem [shape: bf16[2,1,1024,128], index: 3, kind: output, shape index: {}]  }
   0x1   :  { %s3644_s14 = smov 0  }
   0x2 LB: > { %s32_s15 = sadd.s32 1, %s3614_s13  ;;  %p2546_p0 = scmp.ge.s32.totalorder %s3618_s14, 1  ;;  %s3618_s14 = sphi %s3644_s14, %s13_s14   ;;  %s3614_s13 = sphi %s3642_s13, %s4077_s13   ;;  %s3610_s12 = sphi %s3640_s12, %s4076_s12  }
   0x3   : > { %p34_p1 = scmp.ge.s32.totalorder %s32_s15, 2  ;;  %p183_p2 = scmp.lt.s32.totalorder %s3618_s14, 3 }
   0x5   : > { %s4079_s15 = smov (%p34_p1, %s32_s15), 0  ;;  %p184_p3 = pnand %p2546_p0, %p183_p2 }
   0x6   : > { %p229_p4 = scmp.lt.s32.totalorder (!%p184_p3), %s3610_s12, 1 }
   0x7   : > { %187 = sbr.rel (%p184_p3) target bundleno = 389 (0x185), region = 32 }
   0xc   : > { %v3523_v0 = vld [vmem:[%s4073_s1 + $0x38] sm:$0xff]   ;;  %v3524_v1 = vld [vmem:[%s4073_s1 + $0x30] sm:$0xff]   ;;  %s4081_s12 = smov (!%p229_p4, %s3610_s12), 1  ;;  %v3525_v2 = vld [vmem:[%s4073_s1 + $0x28] sm:$0xff]  }
   0xd   : > { %3339 = vmatprep.subr.bf16.mxu0 %v3523_v0  ;;  %3483 = vmatprep.subr.bf16.mxu1 %v3523_v0  ;;  %s2754_s22 = sshll.u32 %s4081_s12, 9  ;;  %v3526_v3 = vld [vmem:[%s4073_s1 + $0x20] sm:$0xff]   ;;  %v3527_v6 = vld [vmem:[%s4073_s1 + $0x18] sm:$0xff]   ;;  %v3528_v7 = vld [vmem:[%s4073_s1 + $0x10] sm:$0xff]  }
   0xe   : > { %3340 = vmatpush3.bf16.msra.mxu0 %v3523_v0  ;;  %3491 = vmatpush3.bf16.msra.mxu1 %v3523_v0  ;;  %s3675_s25 = scalar_lea.vmem %s4072_s0, %s2754_s22  ;;  %v3529_v8 = vld [vmem:[%s4073_s1 + $0x8] sm:$0xff]   ;;  %v3530_v9 = vld [vmem:[%s4073_s1] sm:$0xff]   ;;  %s3774_s17 = scalar_lea.vmem %s4075_s3, %s2754_s22 }
   0xf   : > { %3341 = vmatprep.subr.bf16.mxu0 %v3524_v1  ;;  %3484 = vmatprep.subr.bf16.mxu1 %v3524_v1  ;;  %v3531_v4 = vld [vmem:[%s3675_s25] sm:$0xff]   ;;  %v3533_v10 = vld [vmem:[%s3675_s25 + $0x8] sm:$0xff]   ;;  %v3535_v12 = vld [vmem:[%s3675_s25 + $0x10] sm:$0xff]  }
  0x10   : > { %v3532_v5 = vld [vmem:[%s3675_s25 + $0x100] sm:$0xff]   ;;  %3355 = vmatprep.mubr.bf16.mxu0 %v3531_v4  ;;  %v3534_v11 = vld [vmem:[%s3675_s25 + $0x108] sm:$0xff]   ;;  %v3536_v13 = vld [vmem:[%s3675_s25 + $0x110] sm:$0xff]  }
  0x11   : > { %3419 = vmatprep.mubr.bf16.mxu1 %v3532_v5  ;;  %v3537_v14 = vld [vmem:[%s3675_s25 + $0x18] sm:$0xff]   ;;  %v3539_v16 = vld [vmem:[%s3675_s25 + $0x20] sm:$0xff]   ;;  %v3541_v18 = vld [vmem:[%s3675_s25 + $0x28] sm:$0xff]  }
  0x12   : > { %3342 = vmatpush3.bf16.msra.mxu0 %v3524_v1  ;;  %3492 = vmatpush3.bf16.msra.mxu1 %v3524_v1  ;;  %v3538_v15 = vld [vmem:[%s3675_s25 + $0x118] sm:$0xff]   ;;  %v3540_v17 = vld [vmem:[%s3675_s25 + $0x120] sm:$0xff]   ;;  %v3542_v19 = vld [vmem:[%s3675_s25 + $0x128] sm:$0xff]  }
  0x13   : > { %3343 = vmatprep.subr.bf16.mxu0 %v3525_v2  ;;  %3485 = vmatprep.subr.bf16.mxu1 %v3525_v2  ;;  %v3543_v20 = vld [vmem:[%s3675_s25 + $0x30] sm:$0xff]   ;;  %v3545_v22 = vld [vmem:[%s3675_s25 + $0x38] sm:$0xff]   ;;  %v3547_v24 = vld [vmem:[%s3675_s25 + $0x40] sm:$0xff]  }
  0x14   : > { %v3544_v21 = vld [vmem:[%s3675_s25 + $0x130] sm:$0xff]   ;;  %v3546_v23 = vld [vmem:[%s3675_s25 + $0x138] sm:$0xff]   ;;  %v3548_v25 = vld [vmem:[%s3675_s25 + $0x140] sm:$0xff]  }
  0x15   : > { %v3549_v26 = vld [vmem:[%s3675_s25 + $0x48] sm:$0xff]   ;;  %v3551_v28 = vld [vmem:[%s3675_s25 + $0x50] sm:$0xff]   ;;  %v3553_v30 = vld [vmem:[%s3675_s25 + $0x58] sm:$0xff]  }
  0x16   : > { %3344 = vmatpush3.bf16.msra.mxu0 %v3525_v2  ;;  %3493 = vmatpush3.bf16.msra.mxu1 %v3525_v2  ;;  %v3550_v27 = vld [vmem:[%s3675_s25 + $0x148] sm:$0xff]   ;;  %v3552_v29 = vld [vmem:[%s3675_s25 + $0x150] sm:$0xff]   ;;  %v3554_v31 = vld [vmem:[%s3675_s25 + $0x158] sm:$0xff]  }
  0x17   : > { %3345 = vmatprep.subr.bf16.mxu0 %v3526_v3  ;;  %3486 = vmatprep.subr.bf16.mxu1 %v3526_v3  ;;  %v3555_v32 = vld [vmem:[%s3675_s25 + $0x60] sm:$0xff]   ;;  %v3557_v34 = vld [vmem:[%s3675_s25 + $0x68] sm:$0xff]   ;;  %v3559_v36 = vld [vmem:[%s3675_s25 + $0x70] sm:$0xff]  }
  0x18   : > { %v3556_v33 = vld [vmem:[%s3675_s25 + $0x160] sm:$0xff]   ;;  %v3558_v35 = vld [vmem:[%s3675_s25 + $0x168] sm:$0xff]   ;;  %v3560_v37 = vld [vmem:[%s3675_s25 + $0x170] sm:$0xff]  }
  0x19   : > { %v3561_v38 = vld [vmem:[%s3675_s25 + $0x78] sm:$0xff]   ;;  %v3563_v40 = vld [vmem:[%s3675_s25 + $0x80] sm:$0xff]   ;;  %v3565_v42 = vld [vmem:[%s3675_s25 + $0x88] sm:$0xff]  }
  0x1a   : > { %3346 = vmatpush3.bf16.msra.mxu0 %v3526_v3  ;;  %3494 = vmatpush3.bf16.msra.mxu1 %v3526_v3  ;;  %v3562_v39 = vld [vmem:[%s3675_s25 + $0x178] sm:$0xff]   ;;  %v3564_v41 = vld [vmem:[%s3675_s25 + $0x180] sm:$0xff]   ;;  %v3566_v43 = vld [vmem:[%s3675_s25 + $0x188] sm:$0xff]  }
  0x1b   : > { %3347 = vmatprep.subr.bf16.mxu0 %v3527_v6  ;;  %3487 = vmatprep.subr.bf16.mxu1 %v3527_v6  ;;  %v3567_v44 = vld [vmem:[%s3675_s25 + $0x90] sm:$0xff]   ;;  %v3569_v46 = vld [vmem:[%s3675_s25 + $0x98] sm:$0xff]   ;;  %v3571_v48 = vld [vmem:[%s3675_s25 + $0xa0] sm:$0xff]  }
  0x1c   : > { %v3568_v45 = vld [vmem:[%s3675_s25 + $0x190] sm:$0xff]   ;;  %v3570_v47 = vld [vmem:[%s3675_s25 + $0x198] sm:$0xff]   ;;  %v3572_v49 = vld [vmem:[%s3675_s25 + $0x1a0] sm:$0xff]  }
  0x1d   : > { %v3573_v50 = vld [vmem:[%s3675_s25 + $0xa8] sm:$0xff]   ;;  %v3575_v52 = vld [vmem:[%s3675_s25 + $0xb0] sm:$0xff]   ;;  %v3577_v54 = vld [vmem:[%s3675_s25 + $0xb8] sm:$0xff]  }
  0x1e   : > { %3348 = vmatpush3.bf16.msra.mxu0 %v3527_v6  ;;  %3495 = vmatpush3.bf16.msra.mxu1 %v3527_v6  ;;  %v3574_v51 = vld [vmem:[%s3675_s25 + $0x1a8] sm:$0xff]   ;;  %v3576_v53 = vld [vmem:[%s3675_s25 + $0x1b0] sm:$0xff]   ;;  %v3578_v55 = vld [vmem:[%s3675_s25 + $0x1b8] sm:$0xff]  }
  0x1f   : > { %3349 = vmatprep.subr.bf16.mxu0 %v3528_v7  ;;  %3488 = vmatprep.subr.bf16.mxu1 %v3528_v7  ;;  %v3579_v56 = vld [vmem:[%s3675_s25 + $0xc0] sm:$0xff]   ;;  %v3581_v58 = vld [vmem:[%s3675_s25 + $0xc8] sm:$0xff]   ;;  %v3583_v60 = vld [vmem:[%s3675_s25 + $0xd0] sm:$0xff]  }
  0x20   : > { %v3580_v57 = vld [vmem:[%s3675_s25 + $0x1c0] sm:$0xff]   ;;  %v3582_v59 = vld [vmem:[%s3675_s25 + $0x1c8] sm:$0xff]   ;;  %v3584_v61 = vld [vmem:[%s3675_s25 + $0x1d0] sm:$0xff]  }
  0x21   : > { %v3585_v62 = vld [vmem:[%s3675_s25 + $0xd8] sm:$0xff]   ;;  %v3587_v0 = vld [vmem:[%s3675_s25 + $0xe0] sm:$0xff]   ;;  %v3589_v2 = vld [vmem:[%s3675_s25 + $0xe8] sm:$0xff]  }
  0x22   : > { %3350 = vmatpush3.bf16.msra.mxu0 %v3528_v7  ;;  %3496 = vmatpush3.bf16.msra.mxu1 %v3528_v7  ;;  %v3586_v63 = vld [vmem:[%s3675_s25 + $0x1d8] sm:$0xff]   ;;  %v3588_v1 = vld [vmem:[%s3675_s25 + $0x1e0] sm:$0xff]   ;;  %v3590_v3 = vld [vmem:[%s3675_s25 + $0x1e8] sm:$0xff]  }
  0x23   : > { %3351 = vmatprep.subr.bf16.mxu0 %v3529_v8  ;;  %3489 = vmatprep.subr.bf16.mxu1 %v3529_v8  ;;  %v3591_v4 = vld [vmem:[%s3675_s25 + $0xf0] sm:$0xff]   ;;  %v3593_v6 = vld [vmem:[%s3675_s25 + $0xf8] sm:$0xff]  }
  0x24   : > { %v3592_v5 = vld [vmem:[%s3675_s25 + $0x1f0] sm:$0xff]   ;;  %v3594_v7 = vld [vmem:[%s3675_s25 + $0x1f8] sm:$0xff]  }
  0x26   : > { %3352 = vmatpush3.bf16.msra.mxu0 %v3529_v8  ;;  %3497 = vmatpush3.bf16.msra.mxu1 %v3529_v8  ;;  %v3759_v8 = vld [vmem:[%s4074_s2] ss:$0 sm:$0xff] }
  0x27   : > { %3353 = vmatprep.subr.bf16.mxu0 %v3530_v9  ;;  %3490 = vmatprep.subr.bf16.mxu1 %v3530_v9 }
  0x2a   : > { %3354 = vmatpush3.bf16.msra.mxu0 %v3530_v9  ;;  %3498 = vmatpush3.bf16.msra.mxu1 %v3530_v9 }
  0x2d   : > { %3356 = vmatmul.mubr.bf16.vlgmr.msra.gmra.mxu0 %v3533_v10  ;;  %3420 = vmatmul.mubr.bf16.vlgmr.msra.gmra.mxu1 %v3534_v11 }
  0x2e   : > { %3359 = vmatprep.mubr.bf16.mxu0 %v3535_v12  ;;  %3423 = vmatprep.mubr.bf16.mxu1 %v3536_v13 }
  0x35   : > { %3360 = vmatmul.mubr.bf16.gmra.mxu0 %v3537_v14  ;;  %3424 = vmatmul.mubr.bf16.gmra.mxu1 %v3538_v15 }
  0x36   : > { %3363 = vmatprep.mubr.bf16.mxu0 %v3539_v16  ;;  %3427 = vmatprep.mubr.bf16.mxu1 %v3540_v17 }
  0x3d   : > { %3364 = vmatmul.mubr.bf16.gmra.mxu0 %v3541_v18  ;;  %3428 = vmatmul.mubr.bf16.gmra.mxu1 %v3542_v19 }
  0x3e   : > { %3367 = vmatprep.mubr.bf16.mxu0 %v3543_v20  ;;  %3431 = vmatprep.mubr.bf16.mxu1 %v3544_v21 }
  0x45   : > { %3368 = vmatmul.mubr.bf16.gmra.mxu0 %v3545_v22  ;;  %3432 = vmatmul.mubr.bf16.gmra.mxu1 %v3546_v23 }
  0x46   : > { %3371 = vmatprep.mubr.bf16.mxu0 %v3547_v24  ;;  %3435 = vmatprep.mubr.bf16.mxu1 %v3548_v25 }
  0x4d   : > { %3372 = vmatmul.mubr.bf16.gmra.mxu0 %v3549_v26  ;;  %3436 = vmatmul.mubr.bf16.gmra.mxu1 %v3550_v27 }
  0x4e   : > { %3375 = vmatprep.mubr.bf16.mxu0 %v3551_v28  ;;  %3439 = vmatprep.mubr.bf16.mxu1 %v3552_v29 }
  0x55   : > { %3376 = vmatmul.mubr.bf16.gmra.mxu0 %v3553_v30  ;;  %3440 = vmatmul.mubr.bf16.gmra.mxu1 %v3554_v31 }
  0x56   : > { %3379 = vmatprep.mubr.bf16.mxu0 %v3555_v32  ;;  %3443 = vmatprep.mubr.bf16.mxu1 %v3556_v33 }
  0x5d   : > { %3380 = vmatmul.mubr.bf16.gmra.mxu0 %v3557_v34  ;;  %3444 = vmatmul.mubr.bf16.gmra.mxu1 %v3558_v35 }
  0x5e   : > { %3383 = vmatprep.mubr.bf16.mxu0 %v3559_v36  ;;  %3447 = vmatprep.mubr.bf16.mxu1 %v3560_v37 }
  0x65   : > { %3384 = vmatmul.mubr.bf16.gmra.mxu0 %v3561_v38  ;;  %3448 = vmatmul.mubr.bf16.gmra.mxu1 %v3562_v39 }
  0x66   : > { %3387 = vmatprep.mubr.bf16.mxu0 %v3563_v40  ;;  %3451 = vmatprep.mubr.bf16.mxu1 %v3564_v41 }
  0x6d   : > { %3388 = vmatmul.mubr.bf16.gmra.mxu0 %v3565_v42  ;;  %3452 = vmatmul.mubr.bf16.gmra.mxu1 %v3566_v43 }
  0x6e   : > { %3391 = vmatprep.mubr.bf16.mxu0 %v3567_v44  ;;  %3455 = vmatprep.mubr.bf16.mxu1 %v3568_v45 }
  0x75   : > { %3392 = vmatmul.mubr.bf16.gmra.mxu0 %v3569_v46  ;;  %3456 = vmatmul.mubr.bf16.gmra.mxu1 %v3570_v47 }
  0x76   : > { %3395 = vmatprep.mubr.bf16.mxu0 %v3571_v48  ;;  %3459 = vmatprep.mubr.bf16.mxu1 %v3572_v49 }
  0x7d   : > { %3396 = vmatmul.mubr.bf16.gmra.mxu0 %v3573_v50  ;;  %3460 = vmatmul.mubr.bf16.gmra.mxu1 %v3574_v51 }
  0x7e   : > { %3399 = vmatprep.mubr.bf16.mxu0 %v3575_v52  ;;  %3463 = vmatprep.mubr.bf16.mxu1 %v3576_v53 }
  0x85   : > { %3400 = vmatmul.mubr.bf16.gmra.mxu0 %v3577_v54  ;;  %3464 = vmatmul.mubr.bf16.gmra.mxu1 %v3578_v55 }
  0x86   : > { %3403 = vmatprep.mubr.bf16.mxu0 %v3579_v56  ;;  %3467 = vmatprep.mubr.bf16.mxu1 %v3580_v57 }
  0x8d   : > { %3404 = vmatmul.mubr.bf16.gmra.mxu0 %v3581_v58  ;;  %3468 = vmatmul.mubr.bf16.gmra.mxu1 %v3582_v59 }
  0x8e   : > { %3407 = vmatprep.mubr.bf16.mxu0 %v3583_v60  ;;  %3471 = vmatprep.mubr.bf16.mxu1 %v3584_v61 }
  0x95   : > { %3408 = vmatmul.mubr.bf16.gmra.mxu0 %v3585_v62  ;;  %3472 = vmatmul.mubr.bf16.gmra.mxu1 %v3586_v63 }
  0x96   : > { %3411 = vmatprep.mubr.bf16.mxu0 %v3587_v0  ;;  %3475 = vmatprep.mubr.bf16.mxu1 %v3588_v1 }
  0x9d   : > { %3412 = vmatmul.mubr.bf16.gmra.mxu0 %v3589_v2  ;;  %3476 = vmatmul.mubr.bf16.gmra.mxu1 %v3590_v3 }
  0x9e   : > { %3415 = vmatprep.mubr.bf16.mxu0 %v3591_v4  ;;  %3479 = vmatprep.mubr.bf16.mxu1 %v3592_v5 }
  0xa5   : > { %3416 = vmatmul.mubr.bf16.gmra.mxu0 %v3593_v6  ;;  %3480 = vmatmul.mubr.bf16.gmra.mxu1 %v3594_v7 }
  0xed   : > { %v3357_v9 = vpop.f32.mrf.mxu0  ;;  %v3421_v10 = vpop.f32.mrf.mxu1 }
  0xee   : > { %v888_v11 = vadd.f32 %v3357_v9, %v3759_v8  ;;  %v1144_v12 = vadd.f32 %v3421_v10, %v3759_v8 }
  0xef   : > { %v879_v13 = vpop.f32.mrf.mxu0  ;;  %v1135_v14 = vpop.f32.mrf.mxu1 }
  0xf0   : > { %vm1392_vm0 = vcmp.gt.f32.partialorder %v888_v11, 0.0  ;;  %v1520_v15 = vmul.f32 0.2, %v888_v11  ;;  %vm1456_vm1 = vcmp.gt.f32.partialorder %v1144_v12, 0.0  ;;  %v1584_v16 = vmul.f32 0.2, %v1144_v12 }
  0xf1   : > { %v880_v17 = vadd.f32 %v3759_v8, %v879_v13  ;;  %v1136_v18 = vadd.f32 %v3759_v8, %v1135_v14  ;;  %v3358_v19 = vpop.f32.mrf.mxu0  ;;  %v3422_v20 = vpop.f32.mrf.mxu1 }
  0xf2   : > { %v1648_v21 = vsel %vm1392_vm0, %v888_v11, %v1520_v15  ;;  %v891_v22 = vadd.f32 %v3358_v19, %v3759_v8  ;;  %v1147_v23 = vadd.f32 %v3422_v20, %v3759_v8  ;;  %v1712_v24 = vsel %vm1456_vm1, %v1144_v12, %v1584_v16 }
  0xf3   : > { %vm1390_vm2 = vcmp.gt.f32.partialorder %v880_v17, 0.0  ;;  %v1518_v25 = vmul.f32 0.2, %v880_v17  ;;  %vm1454_vm3 = vcmp.gt.f32.partialorder %v1136_v18, 0.0  ;;  %v882_v26 = vpop.f32.mrf.mxu0  ;;  %v1138_v27 = vpop.f32.mrf.mxu1  ;;  %v1582_v31 = vmul.f32 0.2, %v1136_v18 }
  0xf4   : > { %vm1393_vm4 = vcmp.gt.f32.partialorder %v891_v22, 0.0  ;;  %v1521_v28 = vmul.f32 0.2, %v891_v22  ;;  %vm1457_vm5 = vcmp.gt.f32.partialorder %v1147_v23, 0.0  ;;  %v1585_v29 = vmul.f32 0.2, %v1147_v23 }
  0xf5   : > { %v1646_v30 = vsel %vm1390_vm2, %v880_v17, %v1518_v25  ;;  %v883_v32 = vadd.f32 %v3759_v8, %v882_v26  ;;  %v1139_v33 = vadd.f32 %v3759_v8, %v1138_v27  ;;  %v3361_v34 = vpop.f32.mrf.mxu0  ;;  %v3425_v35 = vpop.f32.mrf.mxu1  ;;  %v1710_v47 = vsel %vm1454_vm3, %v1136_v18, %v1582_v31 }
  0xf6   : > { %v1649_v36 = vsel %vm1393_vm4, %v891_v22, %v1521_v28  ;;  %v1713_v37 = vsel %vm1457_vm5, %v1147_v23, %v1585_v29  ;;  %v904_v38 = vadd.f32 %v3361_v34, %v3759_v8  ;;  %v1160_v39 = vadd.f32 %v3425_v35, %v3759_v8 }
  0xf7   : > { %v2892_v40 = vpack.c.bf16 %v1649_v36, %v1648_v21  ;;  %v3052_v41 = vpack.c.bf16 %v1713_v37, %v1712_v24  ;;  %vm1391_vm6 = vcmp.gt.f32.partialorder %v883_v32, 0.0  ;;  %v1519_v42 = vmul.f32 0.2, %v883_v32  ;;  %v895_v43 = vpop.f32.mrf.mxu0  ;;  %v1151_v44 = vpop.f32.mrf.mxu1 }
  0xf8   : > { %vm1455_vm7 = vcmp.gt.f32.partialorder %v1139_v33, 0.0  ;;  %v1583_v45 = vmul.f32 0.2, %v1139_v33  ;;  %vm1396_vm8 = vcmp.gt.f32.partialorder %v904_v38, 0.0  ;;  %v1524_v46 = vmul.f32 0.2, %v904_v38 }
  0xf9   : > { %3204 = vst [vmem:[%s3774_s17 + $0x8] sm:$0xff] %v2892_v40   ;;  %3236 = vst [vmem:[%s3774_s17 + $0x108] sm:$0xff] %v3052_v41   ;;  %v1647_v48 = vsel %vm1391_vm6, %v883_v32, %v1519_v42  ;;  %v1588_v49 = vmul.f32 0.2, %v1160_v39  ;;  %v896_v50 = vadd.f32 %v3759_v8, %v895_v43  ;;  %v3362_v51 = vpop.f32.mrf.mxu0  ;;  %v3426_v52 = vpop.f32.mrf.mxu1  ;;  %vm1460_vm9 = vcmp.gt.f32.partialorder %v1160_v39, 0.0 }
  0xfa   : > { %v2887_v53 = vpack.c.bf16 %v1647_v48, %v1646_v30  ;;  %v1711_v54 = vsel %vm1455_vm7, %v1139_v33, %v1583_v45  ;;  %v1152_v55 = vadd.f32 %v3759_v8, %v1151_v44  ;;  %v1652_v57 = vsel %vm1396_vm8, %v904_v38, %v1524_v46 }
  0xfb   : > { %v3047_v56 = vpack.c.bf16 %v1711_v54, %v1710_v47  ;;  %vm1394_vm10 = vcmp.gt.f32.partialorder %v896_v50, 0.0  ;;  %v1522_v58 = vmul.f32 0.2, %v896_v50  ;;  %v898_v59 = vpop.f32.mrf.mxu0  ;;  %v1154_v60 = vpop.f32.mrf.mxu1  ;;  %v907_v62 = vadd.f32 %v3362_v51, %v3759_v8 }
  0xfc   : > { %2888 = vst [vmem:[%s3774_s17] sm:$0xff] %v2887_v53   ;;  %vm1458_vm11 = vcmp.gt.f32.partialorder %v1152_v55, 0.0  ;;  %v1586_v61 = vmul.f32 0.2, %v1152_v55  ;;  %v1163_v63 = vadd.f32 %v3426_v52, %v3759_v8  ;;  %v1716_v0 = vsel %vm1460_vm9, %v1160_v39, %v1588_v49 }
  0xfd   : > { %3235 = vst [vmem:[%s3774_s17 + $0x100] sm:$0xff] %v3047_v56   ;;  %v1650_v1 = vsel %vm1394_vm10, %v896_v50, %v1522_v58  ;;  %v899_v2 = vadd.f32 %v3759_v8, %v898_v59  ;;  %v1155_v3 = vadd.f32 %v3759_v8, %v1154_v60  ;;  %v3365_v4 = vpop.f32.mrf.mxu0  ;;  %v3429_v5 = vpop.f32.mrf.mxu1  ;;  %vm1397_vm12 = vcmp.gt.f32.partialorder %v907_v62, 0.0 }
  0xfe   : > { %v1714_v6 = vsel %vm1458_vm11, %v1152_v55, %v1586_v61  ;;  %v1525_v7 = vmul.f32 0.2, %v907_v62  ;;  %vm1461_vm13 = vcmp.gt.f32.partialorder %v1163_v63, 0.0  ;;  %v1589_v9 = vmul.f32 0.2, %v1163_v63 }
  0xff   : > { %vm1395_vm14 = vcmp.gt.f32.partialorder %v899_v2, 0.0  ;;  %v1523_v10 = vmul.f32 0.2, %v899_v2  ;;  %vm1459_vm15 = vcmp.gt.f32.partialorder %v1155_v3, 0.0  ;;  %v911_v11 = vpop.f32.mrf.mxu0  ;;  %v1167_v12 = vpop.f32.mrf.mxu1  ;;  %v1587_v14 = vmul.f32 0.2, %v1155_v3 }
 0x100   : > { %v1653_v13 = vsel %vm1397_vm12, %v907_v62, %v1525_v7  ;;  %v920_v15 = vadd.f32 %v3365_v4, %v3759_v8  ;;  %v1176_v16 = vadd.f32 %v3429_v5, %v3759_v8  ;;  %v1717_v18 = vsel %vm1461_vm13, %v1163_v63, %v1589_v9 }
 0x101   : > { %v2902_v17 = vpack.c.bf16 %v1653_v13, %v1652_v57  ;;  %v1651_v19 = vsel %vm1395_vm14, %v899_v2, %v1523_v10  ;;  %v912_v20 = vadd.f32 %v3759_v8, %v911_v11  ;;  %v3366_v21 = vpop.f32.mrf.mxu0  ;;  %v3430_v22 = vpop.f32.mrf.mxu1  ;;  %v3062_v23 = vpack.c.bf16 %v1717_v18, %v1716_v0 }
 0x102   : > { %v2897_v24 = vpack.c.bf16 %v1651_v19, %v1650_v1  ;;  %v1715_v25 = vsel %vm1459_vm15, %v1155_v3, %v1587_v14  ;;  %vm1400_vm0 = vcmp.gt.f32.partialorder %v920_v15, 0.0  ;;  %v1528_v27 = vmul.f32 0.2, %v920_v15 }
 0x103   : > { %3206 = vst [vmem:[%s3774_s17 + $0x18] sm:$0xff] %v2902_v17   ;;  %v3057_v26 = vpack.c.bf16 %v1715_v25, %v1714_v6  ;;  %vm1464_vm1 = vcmp.gt.f32.partialorder %v1176_v16, 0.0  ;;  %v1592_v28 = vmul.f32 0.2, %v1176_v16  ;;  %v914_v29 = vpop.f32.mrf.mxu0  ;;  %v1170_v30 = vpop.f32.mrf.mxu1  ;;  %3238 = vst [vmem:[%s3774_s17 + $0x118] sm:$0xff] %v3062_v23   ;;  %vm1398_vm2 = vcmp.gt.f32.partialorder %v912_v20, 0.0 }
 0x104   : > { %3205 = vst [vmem:[%s3774_s17 + $0x10] sm:$0xff] %v2897_v24   ;;  %v1526_v31 = vmul.f32 0.2, %v912_v20  ;;  %v1168_v32 = vadd.f32 %v3759_v8, %v1167_v12  ;;  %v923_v33 = vadd.f32 %v3366_v21, %v3759_v8  ;;  %v1656_v34 = vsel %vm1400_vm0, %v920_v15, %v1528_v27 }
 0x105   : > { %3237 = vst [vmem:[%s3774_s17 + $0x110] sm:$0xff] %v3057_v26   ;;  %v1720_v35 = vsel %vm1464_vm1, %v1176_v16, %v1592_v28  ;;  %v1179_v36 = vadd.f32 %v3430_v22, %v3759_v8  ;;  %v915_v37 = vadd.f32 %v3759_v8, %v914_v29  ;;  %v3369_v38 = vpop.f32.mrf.mxu0  ;;  %v3433_v39 = vpop.f32.mrf.mxu1  ;;  %v1171_v48 = vadd.f32 %v3759_v8, %v1170_v30 }
 0x106   : > { %v1654_v40 = vsel %vm1398_vm2, %v912_v20, %v1526_v31  ;;  %vm1462_vm3 = vcmp.gt.f32.partialorder %v1168_v32, 0.0  ;;  %v1590_v41 = vmul.f32 0.2, %v1168_v32  ;;  %vm1401_vm4 = vcmp.gt.f32.partialorder %v923_v33, 0.0 }
 0x107   : > { %v1529_v42 = vmul.f32 0.2, %v923_v33  ;;  %vm1465_vm5 = vcmp.gt.f32.partialorder %v1179_v36, 0.0  ;;  %v1593_v43 = vmul.f32 0.2, %v1179_v36  ;;  %vm1399_vm6 = vcmp.gt.f32.partialorder %v915_v37, 0.0  ;;  %v927_v44 = vpop.f32.mrf.mxu0  ;;  %v1183_v45 = vpop.f32.mrf.mxu1 }
 0x108   : > { %v1718_v46 = vsel %vm1462_vm3, %v1168_v32, %v1590_v41  ;;  %v1527_v47 = vmul.f32 0.2, %v915_v37  ;;  %v936_v49 = vadd.f32 %v3369_v38, %v3759_v8  ;;  %v1192_v52 = vadd.f32 %v3433_v39, %v3759_v8 }
 0x109   : > { %v1657_v50 = vsel %vm1401_vm4, %v923_v33, %v1529_v42  ;;  %v1721_v51 = vsel %vm1465_vm5, %v1179_v36, %v1593_v43  ;;  %v928_v53 = vadd.f32 %v3759_v8, %v927_v44  ;;  %v3370_v54 = vpop.f32.mrf.mxu0  ;;  %v3434_v55 = vpop.f32.mrf.mxu1  ;;  %vm1463_vm7 = vcmp.gt.f32.partialorder %v1171_v48, 0.0 }
 0x10a   : > { %v2912_v56 = vpack.c.bf16 %v1657_v50, %v1656_v34  ;;  %v3072_v57 = vpack.c.bf16 %v1721_v51, %v1720_v35  ;;  %v1655_v58 = vsel %vm1399_vm6, %v915_v37, %v1527_v47  ;;  %v1591_v60 = vmul.f32 0.2, %v1171_v48 }
 0x10b   : > { %v2907_v59 = vpack.c.bf16 %v1655_v58, %v1654_v40  ;;  %vm1404_vm8 = vcmp.gt.f32.partialorder %v936_v49, 0.0  ;;  %v1532_v61 = vmul.f32 0.2, %v936_v49  ;;  %v930_v62 = vpop.f32.mrf.mxu0  ;;  %v1186_v63 = vpop.f32.mrf.mxu1  ;;  %vm1468_vm9 = vcmp.gt.f32.partialorder %v1192_v52, 0.0 }
 0x10c   : > { %3208 = vst [vmem:[%s3774_s17 + $0x28] sm:$0xff] %v2912_v56   ;;  %3240 = vst [vmem:[%s3774_s17 + $0x128] sm:$0xff] %v3072_v57   ;;  %v1596_v0 = vmul.f32 0.2, %v1192_v52  ;;  %vm1402_vm10 = vcmp.gt.f32.partialorder %v928_v53, 0.0  ;;  %v1719_v2 = vsel %vm1463_vm7, %v1171_v48, %v1591_v60  ;;  %v1184_v4 = vadd.f32 %v3759_v8, %v1183_v45 }
 0x10d   : > { %v1530_v1 = vmul.f32 0.2, %v928_v53  ;;  %3207 = vst [vmem:[%s3774_s17 + $0x20] sm:$0xff] %v2907_v59   ;;  %v1660_v3 = vsel %vm1404_vm8, %v936_v49, %v1532_v61  ;;  %v939_v5 = vadd.f32 %v3370_v54, %v3759_v8  ;;  %v3373_v6 = vpop.f32.mrf.mxu0  ;;  %v3437_v7 = vpop.f32.mrf.mxu1  ;;  %v3067_v9 = vpack.c.bf16 %v1719_v2, %v1718_v46 }
 0x10e   : > { %v1724_v10 = vsel %vm1468_vm9, %v1192_v52, %v1596_v0  ;;  %v1195_v12 = vadd.f32 %v3434_v55, %v3759_v8  ;;  %vm1466_vm11 = vcmp.gt.f32.partialorder %v1184_v4, 0.0  ;;  %v1594_v13 = vmul.f32 0.2, %v1184_v4 }
 0x10f   : > { %v1658_v11 = vsel %vm1402_vm10, %v928_v53, %v1530_v1  ;;  %vm1405_vm12 = vcmp.gt.f32.partialorder %v939_v5, 0.0  ;;  %v1533_v14 = vmul.f32 0.2, %v939_v5  ;;  %v943_v15 = vpop.f32.mrf.mxu0  ;;  %v1199_v16 = vpop.f32.mrf.mxu1  ;;  %3239 = vst [vmem:[%s3774_s17 + $0x120] sm:$0xff] %v3067_v9   ;;  %v931_v18 = vadd.f32 %v3759_v8, %v930_v62 }
 0x110   : > { %vm1469_vm13 = vcmp.gt.f32.partialorder %v1195_v12, 0.0  ;;  %v1597_v17 = vmul.f32 0.2, %v1195_v12  ;;  %v1187_v19 = vadd.f32 %v3759_v8, %v1186_v63  ;;  %v1722_v20 = vsel %vm1466_vm11, %v1184_v4, %v1594_v13 }
 0x111   : > { %v1661_v21 = vsel %vm1405_vm12, %v939_v5, %v1533_v14  ;;  %v952_v22 = vadd.f32 %v3373_v6, %v3759_v8  ;;  %v1208_v23 = vadd.f32 %v3437_v7, %v3759_v8  ;;  %v3374_v24 = vpop.f32.mrf.mxu0  ;;  %v3438_v25 = vpop.f32.mrf.mxu1  ;;  %vm1403_vm14 = vcmp.gt.f32.partialorder %v931_v18, 0.0 }
 0x112   : > { %v2922_v26 = vpack.c.bf16 %v1661_v21, %v1660_v3  ;;  %v1725_v27 = vsel %vm1469_vm13, %v1195_v12, %v1597_v17  ;;  %v1531_v28 = vmul.f32 0.2, %v931_v18  ;;  %vm1467_vm15 = vcmp.gt.f32.partialorder %v1187_v19, 0.0 }
 0x113   : > { %v3082_v29 = vpack.c.bf16 %v1725_v27, %v1724_v10  ;;  %v1595_v30 = vmul.f32 0.2, %v1187_v19  ;;  %vm1408_vm0 = vcmp.gt.f32.partialorder %v952_v22, 0.0  ;;  %v946_v31 = vpop.f32.mrf.mxu0  ;;  %v1202_v32 = vpop.f32.mrf.mxu1  ;;  %v1536_v34 = vmul.f32 0.2, %v952_v22 }
 0x114   : > { %3210 = vst [vmem:[%s3774_s17 + $0x38] sm:$0xff] %v2922_v26   ;;  %v1659_v33 = vsel %vm1403_vm14, %v931_v18, %v1531_v28  ;;  %vm1472_vm1 = vcmp.gt.f32.partialorder %v1208_v23, 0.0  ;;  %v1600_v35 = vmul.f32 0.2, %v1208_v23  ;;  %v944_v38 = vadd.f32 %v3759_v8, %v943_v15 }
 0x115   : > { %3242 = vst [vmem:[%s3774_s17 + $0x138] sm:$0xff] %v3082_v29   ;;  %v2917_v36 = vpack.c.bf16 %v1659_v33, %v1658_v11  ;;  %v1723_v37 = vsel %vm1467_vm15, %v1187_v19, %v1595_v30  ;;  %v1200_v39 = vadd.f32 %v3759_v8, %v1199_v16  ;;  %v3377_v40 = vpop.f32.mrf.mxu0  ;;  %v3441_v41 = vpop.f32.mrf.mxu1  ;;  %v1664_v43 = vsel %vm1408_vm0, %v952_v22, %v1536_v34 }
 0x116   : > { %v3077_v42 = vpack.c.bf16 %v1723_v37, %v1722_v20  ;;  %v1728_v44 = vsel %vm1472_vm1, %v1208_v23, %v1600_v35  ;;  %v955_v45 = vadd.f32 %v3374_v24, %v3759_v8  ;;  %vm1406_vm2 = vcmp.gt.f32.partialorder %v944_v38, 0.0 }
 0x117   : > { %3209 = vst [vmem:[%s3774_s17 + $0x30] sm:$0xff] %v2917_v36   ;;  %v1534_v46 = vmul.f32 0.2, %v944_v38  ;;  %vm1470_vm3 = vcmp.gt.f32.partialorder %v1200_v39, 0.0  ;;  %v1598_v47 = vmul.f32 0.2, %v1200_v39  ;;  %v959_v48 = vpop.f32.mrf.mxu0  ;;  %v1215_v49 = vpop.f32.mrf.mxu1  ;;  %v1211_v51 = vadd.f32 %v3438_v25, %v3759_v8 }
 0x118   : > { %3241 = vst [vmem:[%s3774_s17 + $0x130] sm:$0xff] %v3077_v42   ;;  %vm1409_vm4 = vcmp.gt.f32.partialorder %v955_v45, 0.0  ;;  %v1537_v50 = vmul.f32 0.2, %v955_v45  ;;  %v947_v52 = vadd.f32 %v3759_v8, %v946_v31  ;;  %v1203_v55 = vadd.f32 %v3759_v8, %v1202_v32 }
 0x119   : > { %v1662_v53 = vsel %vm1406_vm2, %v944_v38, %v1534_v46  ;;  %v1726_v54 = vsel %vm1470_vm3, %v1200_v39, %v1598_v47  ;;  %v968_v56 = vadd.f32 %v3377_v40, %v3759_v8  ;;  %v3378_v57 = vpop.f32.mrf.mxu0  ;;  %v3442_v58 = vpop.f32.mrf.mxu1  ;;  %vm1473_vm5 = vcmp.gt.f32.partialorder %v1211_v51, 0.0 }
 0x11a   : > { %v1665_v59 = vsel %vm1409_vm4, %v955_v45, %v1537_v50  ;;  %v1601_v60 = vmul.f32 0.2, %v1211_v51  ;;  %vm1407_vm6 = vcmp.gt.f32.partialorder %v947_v52, 0.0  ;;  %v1535_v62 = vmul.f32 0.2, %v947_v52 }
 0x11b   : > { %v2932_v61 = vpack.c.bf16 %v1665_v59, %v1664_v43  ;;  %vm1471_vm7 = vcmp.gt.f32.partialorder %v1203_v55, 0.0  ;;  %v1599_v63 = vmul.f32 0.2, %v1203_v55  ;;  %v962_v0 = vpop.f32.mrf.mxu0  ;;  %v1218_v1 = vpop.f32.mrf.mxu1  ;;  %vm1412_vm8 = vcmp.gt.f32.partialorder %v968_v56, 0.0 }
 0x11c   : > { %v1729_v2 = vsel %vm1473_vm5, %v1211_v51, %v1601_v60  ;;  %v1540_v3 = vmul.f32 0.2, %v968_v56  ;;  %v1224_v4 = vadd.f32 %v3441_v41, %v3759_v8  ;;  %v1663_v6 = vsel %vm1407_vm6, %v947_v52, %v1535_v62 }
 0x11d   : > { %3212 = vst [vmem:[%s3774_s17 + $0x48] sm:$0xff] %v2932_v61   ;;  %v3092_v5 = vpack.c.bf16 %v1729_v2, %v1728_v44  ;;  %v1727_v7 = vsel %vm1471_vm7, %v1203_v55, %v1599_v63  ;;  %v960_v9 = vadd.f32 %v3759_v8, %v959_v48  ;;  %v3381_v10 = vpop.f32.mrf.mxu0  ;;  %v3445_v11 = vpop.f32.mrf.mxu1  ;;  %v2927_v12 = vpack.c.bf16 %v1663_v6, %v1662_v53 }
 0x11e   : > { %v3087_v13 = vpack.c.bf16 %v1727_v7, %v1726_v54  ;;  %v1668_v14 = vsel %vm1412_vm8, %v968_v56, %v1540_v3  ;;  %vm1476_vm9 = vcmp.gt.f32.partialorder %v1224_v4, 0.0  ;;  %v1604_v15 = vmul.f32 0.2, %v1224_v4 }
 0x11f   : > { %3244 = vst [vmem:[%s3774_s17 + $0x148] sm:$0xff] %v3092_v5   ;;  %vm1410_vm10 = vcmp.gt.f32.partialorder %v960_v9, 0.0  ;;  %v1538_v16 = vmul.f32 0.2, %v960_v9  ;;  %v1216_v17 = vadd.f32 %v3759_v8, %v1215_v49  ;;  %v975_v18 = vpop.f32.mrf.mxu0  ;;  %v1231_v19 = vpop.f32.mrf.mxu1  ;;  %3211 = vst [vmem:[%s3774_s17 + $0x40] sm:$0xff] %v2927_v12   ;;  %v971_v20 = vadd.f32 %v3378_v57, %v3759_v8 }
 0x120   : > { %3243 = vst [vmem:[%s3774_s17 + $0x140] sm:$0xff] %v3087_v13   ;;  %v1227_v21 = vadd.f32 %v3442_v58, %v3759_v8  ;;  %v963_v22 = vadd.f32 %v3759_v8, %v962_v0  ;;  %v1219_v23 = vadd.f32 %v3759_v8, %v1218_v1  ;;  %v1732_v24 = vsel %vm1476_vm9, %v1224_v4, %v1604_v15 }
 0x121   : > { %v1666_v25 = vsel %vm1410_vm10, %v960_v9, %v1538_v16  ;;  %vm1474_vm11 = vcmp.gt.f32.partialorder %v1216_v17, 0.0  ;;  %v1602_v26 = vmul.f32 0.2, %v1216_v17  ;;  %v3382_v27 = vpop.f32.mrf.mxu0  ;;  %v3446_v28 = vpop.f32.mrf.mxu1  ;;  %vm1413_vm12 = vcmp.gt.f32.partialorder %v971_v20, 0.0 }
 0x122   : > { %v1541_v29 = vmul.f32 0.2, %v971_v20  ;;  %vm1477_vm13 = vcmp.gt.f32.partialorder %v1227_v21, 0.0  ;;  %v1605_v30 = vmul.f32 0.2, %v1227_v21  ;;  %vm1411_vm14 = vcmp.gt.f32.partialorder %v963_v22, 0.0 }
 0x123   : > { %v1730_v31 = vsel %vm1474_vm11, %v1216_v17, %v1602_v26  ;;  %v1539_v32 = vmul.f32 0.2, %v963_v22  ;;  %vm1475_vm15 = vcmp.gt.f32.partialorder %v1219_v23, 0.0  ;;  %v978_v33 = vpop.f32.mrf.mxu0  ;;  %v1234_v34 = vpop.f32.mrf.mxu1  ;;  %v1603_v37 = vmul.f32 0.2, %v1219_v23 }
 0x124   : > { %v1669_v35 = vsel %vm1413_vm12, %v971_v20, %v1541_v29  ;;  %v1733_v36 = vsel %vm1477_vm13, %v1227_v21, %v1605_v30  ;;  %v984_v38 = vadd.f32 %v3381_v10, %v3759_v8  ;;  %v1240_v42 = vadd.f32 %v3445_v11, %v3759_v8 }
 0x125   : > { %v2942_v39 = vpack.c.bf16 %v1669_v35, %v1668_v14  ;;  %v3102_v40 = vpack.c.bf16 %v1733_v36, %v1732_v24  ;;  %v1667_v41 = vsel %vm1411_vm14, %v963_v22, %v1539_v32  ;;  %v3385_v43 = vpop.f32.mrf.mxu0  ;;  %v3449_v44 = vpop.f32.mrf.mxu1  ;;  %v1731_v46 = vsel %vm1475_vm15, %v1219_v23, %v1603_v37 }
 0x126   : > { %v2937_v45 = vpack.c.bf16 %v1667_v41, %v1666_v25  ;;  %vm1416_vm0 = vcmp.gt.f32.partialorder %v984_v38, 0.0  ;;  %v1544_v47 = vmul.f32 0.2, %v984_v38  ;;  %v3097_v48 = vpack.c.bf16 %v1731_v46, %v1730_v31 }
 0x127   : > { %3214 = vst [vmem:[%s3774_s17 + $0x58] sm:$0xff] %v2942_v39   ;;  %3246 = vst [vmem:[%s3774_s17 + $0x158] sm:$0xff] %v3102_v40   ;;  %vm1480_vm1 = vcmp.gt.f32.partialorder %v1240_v42, 0.0  ;;  %v1608_v49 = vmul.f32 0.2, %v1240_v42  ;;  %v976_v50 = vadd.f32 %v3759_v8, %v975_v18  ;;  %v991_v51 = vpop.f32.mrf.mxu0  ;;  %v1247_v52 = vpop.f32.mrf.mxu1  ;;  %v1232_v54 = vadd.f32 %v3759_v8, %v1231_v19 }
 0x128   : > { %3213 = vst [vmem:[%s3774_s17 + $0x50] sm:$0xff] %v2937_v45   ;;  %v1672_v53 = vsel %vm1416_vm0, %v984_v38, %v1544_v47  ;;  %v987_v55 = vadd.f32 %v3382_v27, %v3759_v8  ;;  %v1243_v56 = vadd.f32 %v3446_v28, %v3759_v8  ;;  %3245 = vst [vmem:[%s3774_s17 + $0x150] sm:$0xff] %v3097_v48  }
 0x129   : > { %v1736_v57 = vsel %vm1480_vm1, %v1240_v42, %v1608_v49  ;;  %vm1414_vm2 = vcmp.gt.f32.partialorder %v976_v50, 0.0  ;;  %v1542_v58 = vmul.f32 0.2, %v976_v50  ;;  %v979_v59 = vadd.f32 %v3759_v8, %v978_v33  ;;  %v3386_v60 = vpop.f32.mrf.mxu0  ;;  %v3450_v61 = vpop.f32.mrf.mxu1 }
 0x12a   : > { %vm1478_vm3 = vcmp.gt.f32.partialorder %v1232_v54, 0.0  ;;  %v1606_v62 = vmul.f32 0.2, %v1232_v54  ;;  %vm1417_vm4 = vcmp.gt.f32.partialorder %v987_v55, 0.0  ;;  %v1545_v63 = vmul.f32 0.2, %v987_v55 }
 0x12b   : > { %v1670_v0 = vsel %vm1414_vm2, %v976_v50, %v1542_v58  ;;  %vm1481_vm5 = vcmp.gt.f32.partialorder %v1243_v56, 0.0  ;;  %v1609_v1 = vmul.f32 0.2, %v1243_v56  ;;  %vm1415_vm6 = vcmp.gt.f32.partialorder %v979_v59, 0.0  ;;  %v994_v2 = vpop.f32.mrf.mxu0  ;;  %v1250_v3 = vpop.f32.mrf.mxu1 }
 0x12c   : > { %v1734_v4 = vsel %vm1478_vm3, %v1232_v54, %v1606_v62  ;;  %v1673_v5 = vsel %vm1417_vm4, %v987_v55, %v1545_v63  ;;  %v1543_v6 = vmul.f32 0.2, %v979_v59  ;;  %v1235_v7 = vadd.f32 %v3759_v8, %v1234_v34 }
 0x12d   : > { %v2952_v9 = vpack.c.bf16 %v1673_v5, %v1672_v53  ;;  %v1737_v10 = vsel %vm1481_vm5, %v1243_v56, %v1609_v1  ;;  %v1000_v11 = vadd.f32 %v3385_v43, %v3759_v8  ;;  %v1256_v12 = vadd.f32 %v3449_v44, %v3759_v8  ;;  %v3389_v13 = vpop.f32.mrf.mxu0  ;;  %v3453_v14 = vpop.f32.mrf.mxu1 }
 0x12e   : > { %v3112_v15 = vpack.c.bf16 %v1737_v10, %v1736_v57  ;;  %v1671_v16 = vsel %vm1415_vm6, %v979_v59, %v1543_v6  ;;  %vm1479_vm7 = vcmp.gt.f32.partialorder %v1235_v7, 0.0  ;;  %v1607_v17 = vmul.f32 0.2, %v1235_v7 }
 0x12f   : > { %3216 = vst [vmem:[%s3774_s17 + $0x68] sm:$0xff] %v2952_v9   ;;  %v2947_v18 = vpack.c.bf16 %v1671_v16, %v1670_v0  ;;  %vm1420_vm8 = vcmp.gt.f32.partialorder %v1000_v11, 0.0  ;;  %v1548_v19 = vmul.f32 0.2, %v1000_v11  ;;  %vm1484_vm9 = vcmp.gt.f32.partialorder %v1256_v12, 0.0  ;;  %v1007_v20 = vpop.f32.mrf.mxu0  ;;  %v1263_v21 = vpop.f32.mrf.mxu1 }
 0x130   : > { %3248 = vst [vmem:[%s3774_s17 + $0x168] sm:$0xff] %v3112_v15   ;;  %v1735_v22 = vsel %vm1479_vm7, %v1235_v7, %v1607_v17  ;;  %v1612_v23 = vmul.f32 0.2, %v1256_v12  ;;  %v992_v24 = vadd.f32 %v3759_v8, %v991_v51  ;;  %v1248_v25 = vadd.f32 %v3759_v8, %v1247_v52 }
 0x131   : > { %3215 = vst [vmem:[%s3774_s17 + $0x60] sm:$0xff] %v2947_v18   ;;  %v3107_v26 = vpack.c.bf16 %v1735_v22, %v1734_v4  ;;  %v1676_v27 = vsel %vm1420_vm8, %v1000_v11, %v1548_v19  ;;  %v1003_v28 = vadd.f32 %v3386_v60, %v3759_v8  ;;  %v1259_v29 = vadd.f32 %v3450_v61, %v3759_v8  ;;  %v3390_v30 = vpop.f32.mrf.mxu0  ;;  %v3454_v31 = vpop.f32.mrf.mxu1 }
 0x132   : > { %v1740_v32 = vsel %vm1484_vm9, %v1256_v12, %v1612_v23  ;;  %vm1418_vm10 = vcmp.gt.f32.partialorder %v992_v24, 0.0  ;;  %v1546_v33 = vmul.f32 0.2, %v992_v24  ;;  %vm1482_vm11 = vcmp.gt.f32.partialorder %v1248_v25, 0.0 }
 0x133   : > { %3247 = vst [vmem:[%s3774_s17 + $0x160] sm:$0xff] %v3107_v26   ;;  %v1610_v34 = vmul.f32 0.2, %v1248_v25  ;;  %vm1421_vm12 = vcmp.gt.f32.partialorder %v1003_v28, 0.0  ;;  %v1549_v35 = vmul.f32 0.2, %v1003_v28  ;;  %v1010_v36 = vpop.f32.mrf.mxu0  ;;  %v1266_v37 = vpop.f32.mrf.mxu1  ;;  %v995_v40 = vadd.f32 %v3759_v8, %v994_v2 }
 0x134   : > { %vm1485_vm13 = vcmp.gt.f32.partialorder %v1259_v29, 0.0  ;;  %v1674_v38 = vsel %vm1418_vm10, %v992_v24, %v1546_v33  ;;  %v1613_v39 = vmul.f32 0.2, %v1259_v29  ;;  %v1251_v41 = vadd.f32 %v3759_v8, %v1250_v3 }
 0x135   : > { %v1738_v42 = vsel %vm1482_vm11, %v1248_v25, %v1610_v34  ;;  %v1677_v43 = vsel %vm1421_vm12, %v1003_v28, %v1549_v35  ;;  %v1016_v44 = vadd.f32 %v3389_v13, %v3759_v8  ;;  %v1272_v45 = vadd.f32 %v3453_v14, %v3759_v8  ;;  %v3393_v46 = vpop.f32.mrf.mxu0  ;;  %v3457_v47 = vpop.f32.mrf.mxu1 }
 0x136   : > { %v2962_v48 = vpack.c.bf16 %v1677_v43, %v1676_v27  ;;  %v1741_v49 = vsel %vm1485_vm13, %v1259_v29, %v1613_v39  ;;  %vm1419_vm14 = vcmp.gt.f32.partialorder %v995_v40, 0.0  ;;  %v1547_v50 = vmul.f32 0.2, %v995_v40 }
 0x137   : > { %v3122_v51 = vpack.c.bf16 %v1741_v49, %v1740_v32  ;;  %vm1483_vm15 = vcmp.gt.f32.partialorder %v1251_v41, 0.0  ;;  %v1611_v52 = vmul.f32 0.2, %v1251_v41  ;;  %vm1424_vm0 = vcmp.gt.f32.partialorder %v1016_v44, 0.0  ;;  %v1023_v53 = vpop.f32.mrf.mxu0  ;;  %v3864_v54 = vpop.f32.mrf.mxu1 }
 0x138   : > { %3218 = vst [vmem:[%s3774_s17 + $0x78] sm:$0xff] %v2962_v48   ;;  %v1675_v55 = vsel %vm1419_vm14, %v995_v40, %v1547_v50  ;;  %v1552_v56 = vmul.f32 0.2, %v1016_v44  ;;  %vm1488_vm1 = vcmp.gt.f32.partialorder %v1272_v45, 0.0  ;;  %v1616_v57 = vmul.f32 0.2, %v1272_v45 }
 0x139   : > { %3250 = vst [vmem:[%s3774_s17 + $0x178] sm:$0xff] %v3122_v51   ;;  %v2957_v58 = vpack.c.bf16 %v1675_v55, %v1674_v38  ;;  %v1739_v59 = vsel %vm1483_vm15, %v1251_v41, %v1611_v52  ;;  %v1008_v60 = vadd.f32 %v3759_v8, %v1007_v20  ;;  %v1264_v61 = vadd.f32 %v3759_v8, %v1263_v21  ;;  %v3394_v62 = vpop.f32.mrf.mxu0  ;;  %v3458_v63 = vpop.f32.mrf.mxu1 }
 0x13a   : > { %v3117_v0 = vpack.c.bf16 %v1739_v59, %v1738_v42  ;;  %v1680_v1 = vsel %vm1424_vm0, %v1016_v44, %v1552_v56  ;;  %v1744_v2 = vsel %vm1488_vm1, %v1272_v45, %v1616_v57  ;;  %v1019_v3 = vadd.f32 %v3390_v30, %v3759_v8 }
 0x13b   : > { %3217 = vst [vmem:[%s3774_s17 + $0x70] sm:$0xff] %v2957_v58   ;;  %vm1422_vm2 = vcmp.gt.f32.partialorder %v1008_v60, 0.0  ;;  %v1550_v4 = vmul.f32 0.2, %v1008_v60  ;;  %vm1486_vm3 = vcmp.gt.f32.partialorder %v1264_v61, 0.0  ;;  %v1026_v6 = vpop.f32.mrf.mxu0  ;;  %v1282_v7 = vpop.f32.mrf.mxu1  ;;  %v1275_v10 = vadd.f32 %v3454_v31, %v3759_v8 }
 0x13c   : > { %v1614_v5 = vmul.f32 0.2, %v1264_v61  ;;  %3249 = vst [vmem:[%s3774_s17 + $0x170] sm:$0xff] %v3117_v0   ;;  %vm1425_vm4 = vcmp.gt.f32.partialorder %v1019_v3, 0.0  ;;  %v1553_v9 = vmul.f32 0.2, %v1019_v3  ;;  %v1011_v11 = vadd.f32 %v3759_v8, %v1010_v36 }
 0x13d   : > { %v1678_v12 = vsel %vm1422_vm2, %v1008_v60, %v1550_v4  ;;  %v1267_v14 = vadd.f32 %v3759_v8, %v1266_v37  ;;  %v1032_v15 = vadd.f32 %v3393_v46, %v3759_v8  ;;  %v3397_v16 = vpop.f32.mrf.mxu0  ;;  %v3878_v17 = vpop.f32.mrf.mxu1  ;;  %vm1489_vm5 = vcmp.gt.f32.partialorder %v1275_v10, 0.0 }
 0x13e   : > { %v1742_v13 = vsel %vm1486_vm3, %v1264_v61, %v1614_v5  ;;  %v1681_v18 = vsel %vm1425_vm4, %v1019_v3, %v1553_v9  ;;  %v1617_v19 = vmul.f32 0.2, %v1275_v10  ;;  %vm1423_vm6 = vcmp.gt.f32.partialorder %v1011_v11, 0.0 }
 0x13f   : > { %v2972_v20 = vpack.c.bf16 %v1681_v18, %v1680_v1  ;;  %v1551_v21 = vmul.f32 0.2, %v1011_v11  ;;  %vm1487_vm7 = vcmp.gt.f32.partialorder %v1267_v14, 0.0  ;;  %v1615_v22 = vmul.f32 0.2, %v1267_v14  ;;  %v3880_v23 = vpop.f32.mrf.mxu0  ;;  %v3882_v24 = vpop.f32.mrf.mxu1 }
 0x140   : > { %v1745_v25 = vsel %vm1489_vm5, %v1275_v10, %v1617_v19  ;;  %vm1428_vm8 = vcmp.gt.f32.partialorder %v1032_v15, 0.0  ;;  %v1556_v26 = vmul.f32 0.2, %v1032_v15  ;;  %v1288_v27 = vadd.f32 %v3457_v47, %v3759_v8  ;;  %v3930_v18 = vld [vmem:[%s4074_s2] ss:$0 sm:$0xff] }
 0x141   : > { %3220 = vst [vmem:[%s3774_s17 + $0x88] sm:$0xff] %v2972_v20   ;;  %v3132_v28 = vpack.c.bf16 %v1745_v25, %v1744_v2  ;;  %v1679_v29 = vsel %vm1423_vm6, %v1011_v11, %v1551_v21  ;;  %v1743_v30 = vsel %vm1487_vm7, %v1267_v14, %v1615_v22  ;;  %v1024_v31 = vadd.f32 %v3759_v8, %v1023_v53  ;;  %v3398_v32 = vpop.f32.mrf.mxu0  ;;  %v3462_v33 = vpop.f32.mrf.mxu1 }
 0x142   : > { %v2967_v34 = vpack.c.bf16 %v1679_v29, %v1678_v12  ;;  %v3127_v35 = vpack.c.bf16 %v1743_v30, %v1742_v13  ;;  %v1684_v36 = vsel %vm1428_vm8, %v1032_v15, %v1556_v26  ;;  %vm1492_vm9 = vcmp.gt.f32.partialorder %v1288_v27, 0.0 }
 0x143   : > { %3252 = vst [vmem:[%s3774_s17 + $0x188] sm:$0xff] %v3132_v28   ;;  %v1620_v37 = vmul.f32 0.2, %v1288_v27  ;;  %vm1426_vm10 = vcmp.gt.f32.partialorder %v1024_v31, 0.0  ;;  %v1554_v38 = vmul.f32 0.2, %v1024_v31  ;;  %v1280_v39 = vadd.f32 %v3759_v8, %v3864_v54  ;;  %v1042_v40 = vpop.f32.mrf.mxu0  ;;  %v3890_v41 = vpop.f32.mrf.mxu1 }
 0x144   : > { %3219 = vst [vmem:[%s3774_s17 + $0x80] sm:$0xff] %v2967_v34   ;;  %3251 = vst [vmem:[%s3774_s17 + $0x180] sm:$0xff] %v3127_v35   ;;  %v1035_v42 = vadd.f32 %v3394_v62, %v3759_v8  ;;  %v1291_v43 = vadd.f32 %v3458_v63, %v3759_v8  ;;  %v1027_v44 = vadd.f32 %v3759_v8, %v1026_v6 }
 0x145   : > { %v1283_v45 = vadd.f32 %v3759_v8, %v1282_v7  ;;  %v1748_v46 = vsel %vm1492_vm9, %v1288_v27, %v1620_v37  ;;  %v1682_v47 = vsel %vm1426_vm10, %v1024_v31, %v1554_v38  ;;  %vm1490_vm11 = vcmp.gt.f32.partialorder %v1280_v39, 0.0  ;;  %v3898_v49 = vpop.f32.mrf.mxu0  ;;  %v3900_v50 = vpop.f32.mrf.mxu1 }
 0x146   : > { %v1618_v48 = vmul.f32 0.2, %v1280_v39  ;;  %vm1429_vm12 = vcmp.gt.f32.partialorder %v1035_v42, 0.0  ;;  %v1557_v51 = vmul.f32 0.2, %v1035_v42  ;;  %vm1493_vm13 = vcmp.gt.f32.partialorder %v1291_v43, 0.0 }
 0x147   : > { %v1621_v52 = vmul.f32 0.2, %v1291_v43  ;;  %vm1427_vm14 = vcmp.gt.f32.partialorder %v1027_v44, 0.0  ;;  %v1555_v54 = vmul.f32 0.2, %v1027_v44  ;;  %vm1491_vm15 = vcmp.gt.f32.partialorder %v1283_v45, 0.0  ;;  %v3902_v55 = vpop.f32.mrf.mxu0  ;;  %v3904_v56 = vpop.f32.mrf.mxu1 }
 0x148   : > { %v1746_v53 = vsel %vm1490_vm11, %v1280_v39, %v1618_v48  ;;  %v1685_v57 = vsel %vm1429_vm12, %v1035_v42, %v1557_v51  ;;  %v1619_v59 = vmul.f32 0.2, %v1283_v45  ;;  %v1048_v60 = vadd.f32 %v3397_v16, %v3759_v8 }
 0x149   : > { %v1749_v58 = vsel %vm1493_vm13, %v1291_v43, %v1621_v52  ;;  %v2982_v61 = vpack.c.bf16 %v1685_v57, %v1684_v36  ;;  %v1683_v63 = vsel %vm1427_vm14, %v1027_v44, %v1555_v54  ;;  %v1304_v0 = vadd.f32 %v3878_v17, %v3759_v8  ;;  %v3909_v1 = vpop.f32.mrf.mxu0  ;;  %v3911_v2 = vpop.f32.mrf.mxu1 }
 0x14a   : > { %v3142_v62 = vpack.c.bf16 %v1749_v58, %v1748_v46  ;;  %v2977_v3 = vpack.c.bf16 %v1683_v63, %v1682_v47  ;;  %v1747_v4 = vsel %vm1491_vm15, %v1283_v45, %v1619_v59  ;;  %vm1432_vm0 = vcmp.gt.f32.partialorder %v1048_v60, 0.0 }
 0x14b   : > { %v1560_v5 = vmul.f32 0.2, %v1048_v60  ;;  %3222 = vst [vmem:[%s3774_s17 + $0x98] sm:$0xff] %v2982_v61   ;;  %v3137_v6 = vpack.c.bf16 %v1747_v4, %v1746_v53  ;;  %vm1496_vm1 = vcmp.gt.f32.partialorder %v1304_v0, 0.0  ;;  %v1624_v7 = vmul.f32 0.2, %v1304_v0  ;;  %v3917_v10 = vpop.f32.mrf.mxu0  ;;  %v3919_v11 = vpop.f32.mrf.mxu1 }
 0x14c   : > { %3254 = vst [vmem:[%s3774_s17 + $0x198] sm:$0xff] %v3142_v62   ;;  %v1040_v9 = vadd.f32 %v3759_v8, %v3880_v23  ;;  %3221 = vst [vmem:[%s3774_s17 + $0x90] sm:$0xff] %v2977_v3   ;;  %v1296_v13 = vadd.f32 %v3759_v8, %v3882_v24  ;;  %v1051_v14 = vadd.f32 %v3398_v32, %v3759_v8 }
 0x14d   : > { %v1688_v12 = vsel %vm1432_vm0, %v1048_v60, %v1560_v5  ;;  %v1307_v15 = vadd.f32 %v3462_v33, %v3759_v8  ;;  %3253 = vst [vmem:[%s3774_s17 + $0x190] sm:$0xff] %v3137_v6   ;;  %v1752_v16 = vsel %vm1496_vm1, %v1304_v0, %v1624_v7  ;;  %v1043_v19 = vadd.f32 %v3930_v18, %v1042_v40  ;;  %v3933_v20 = vpop.f32.mrf.mxu0  ;;  %v3469_v21 = vpop.f32.mrf.mxu1 }
 0x14e   : > { %vm1430_vm2 = vcmp.gt.f32.partialorder %v1040_v9, 0.0  ;;  %v1558_v17 = vmul.f32 0.2, %v1040_v9  ;;  %vm1494_vm3 = vcmp.gt.f32.partialorder %v1296_v13, 0.0  ;;  %v1622_v22 = vmul.f32 0.2, %v1296_v13 }
 0x14f   : > { %vm1433_vm4 = vcmp.gt.f32.partialorder %v1051_v14, 0.0  ;;  %v1561_v23 = vmul.f32 0.2, %v1051_v14  ;;  %vm1497_vm5 = vcmp.gt.f32.partialorder %v1307_v15, 0.0  ;;  %v1625_v8 = vmul.f32 0.2, %v1307_v15  ;;  %v3935_v25 = vpop.f32.mrf.mxu0  ;;  %v3937_v26 = vpop.f32.mrf.mxu1 }
 0x150   : > { %v1686_v24 = vsel %vm1430_vm2, %v1040_v9, %v1558_v17  ;;  %vm1431_vm6 = vcmp.gt.f32.partialorder %v1043_v19, 0.0  ;;  %v1750_v27 = vsel %vm1494_vm3, %v1296_v13, %v1622_v22  ;;  %v1559_v29 = vmul.f32 0.2, %v1043_v19 }
 0x151   : > { %v1689_v28 = vsel %vm1433_vm4, %v1051_v14, %v1561_v23  ;;  %v1299_v30 = vadd.f32 %v3930_v18, %v3890_v41  ;;  %v1753_v32 = vsel %vm1497_vm5, %v1307_v15, %v1625_v8  ;;  %v1064_v33 = vadd.f32 %v3930_v18, %v3898_v49  ;;  %v3945_v35 = vpop.f32.mrf.mxu0  ;;  %v3947_v36 = vpop.f32.mrf.mxu1 }
 0x152   : > { %v2992_v31 = vpack.c.bf16 %v1689_v28, %v1688_v12  ;;  %v1320_v34 = vadd.f32 %v3930_v18, %v3900_v50  ;;  %v3152_v37 = vpack.c.bf16 %v1753_v32, %v1752_v16  ;;  %v1687_v38 = vsel %vm1431_vm6, %v1043_v19, %v1559_v29 }
 0x153   : > { %vm1495_vm7 = vcmp.gt.f32.partialorder %v1299_v30, 0.0  ;;  %v1623_v39 = vmul.f32 0.2, %v1299_v30  ;;  %v2987_v40 = vpack.c.bf16 %v1687_v38, %v1686_v24  ;;  %vm1436_vm8 = vcmp.gt.f32.partialorder %v1064_v33, 0.0  ;;  %v3950_v42 = vpop.f32.mrf.mxu0  ;;  %v3952_v43 = vpop.f32.mrf.mxu1 }
 0x154   : > { %3224 = vst [vmem:[%s3774_s17 + $0xa8] sm:$0xff] %v2992_v31   ;;  %v1564_v41 = vmul.f32 0.2, %v1064_v33  ;;  %vm1500_vm9 = vcmp.gt.f32.partialorder %v1320_v34, 0.0  ;;  %3256 = vst [vmem:[%s3774_s17 + $0x1a8] sm:$0xff] %v3152_v37   ;;  %v1056_v46 = vadd.f32 %v3930_v18, %v3902_v55  ;;  %v1312_v47 = vadd.f32 %v3930_v18, %v3904_v56 }
 0x155   : > { %v1751_v44 = vsel %vm1495_vm7, %v1299_v30, %v1623_v39  ;;  %v1628_v45 = vmul.f32 0.2, %v1320_v34  ;;  %3223 = vst [vmem:[%s3774_s17 + $0xa0] sm:$0xff] %v2987_v40   ;;  %v1067_v50 = vadd.f32 %v3930_v18, %v3909_v1  ;;  %v1323_v51 = vadd.f32 %v3930_v18, %v3911_v2  ;;  %v3409_v52 = vpop.f32.mrf.mxu0  ;;  %v3964_v53 = vpop.f32.mrf.mxu1 }
 0x156   : > { %v3147_v48 = vpack.c.bf16 %v1751_v44, %v1750_v27  ;;  %v1692_v49 = vsel %vm1436_vm8, %v1064_v33, %v1564_v41  ;;  %vm1434_vm10 = vcmp.gt.f32.partialorder %v1056_v46, 0.0  ;;  %v1562_v57 = vmul.f32 0.2, %v1056_v46 }
 0x157   : > { %v1756_v54 = vsel %vm1500_vm9, %v1320_v34, %v1628_v45  ;;  %vm1498_vm11 = vcmp.gt.f32.partialorder %v1312_v47, 0.0  ;;  %v1626_v55 = vmul.f32 0.2, %v1312_v47  ;;  %vm1437_vm12 = vcmp.gt.f32.partialorder %v1067_v50, 0.0  ;;  %v3967_v58 = vpop.f32.mrf.mxu0  ;;  %v3969_v59 = vpop.f32.mrf.mxu1 }
 0x158   : > { %3255 = vst [vmem:[%s3774_s17 + $0x1a0] sm:$0xff] %v3147_v48   ;;  %v1565_v56 = vmul.f32 0.2, %v1067_v50  ;;  %vm1501_vm13 = vcmp.gt.f32.partialorder %v1323_v51, 0.0  ;;  %v1690_v60 = vsel %vm1434_vm10, %v1056_v46, %v1562_v57  ;;  %v1629_v61 = vmul.f32 0.2, %v1323_v51 }
 0x159   : > { %v1059_v62 = vadd.f32 %v3930_v18, %v3917_v10  ;;  %v1315_v63 = vadd.f32 %v3930_v18, %v3919_v11  ;;  %v1754_v0 = vsel %vm1498_vm11, %v1312_v47, %v1626_v55  ;;  %v1080_v2 = vadd.f32 %v3930_v18, %v3933_v20  ;;  %v3978_v4 = vpop.f32.mrf.mxu0  ;;  %v3980_v5 = vpop.f32.mrf.mxu1 }
 0x15a   : > { %v1693_v1 = vsel %vm1437_vm12, %v1067_v50, %v1565_v56  ;;  %v1336_v3 = vadd.f32 %v3930_v18, %v3469_v21  ;;  %v1757_v7 = vsel %vm1501_vm13, %v1323_v51, %v1629_v61  ;;  %v1072_v20 = vadd.f32 %v3930_v18, %v3935_v25 }
 0x15b   : > { %v3002_v6 = vpack.c.bf16 %v1693_v1, %v1692_v49  ;;  %vm1435_vm14 = vcmp.gt.f32.partialorder %v1059_v62, 0.0  ;;  %v1563_v9 = vmul.f32 0.2, %v1059_v62  ;;  %v3162_v10 = vpack.c.bf16 %v1757_v7, %v1756_v54  ;;  %v3982_v12 = vpop.f32.mrf.mxu0  ;;  %v3984_v13 = vpop.f32.mrf.mxu1 }
 0x15c   : > { %vm1499_vm15 = vcmp.gt.f32.partialorder %v1315_v63, 0.0  ;;  %v1627_v11 = vmul.f32 0.2, %v1315_v63  ;;  %vm1440_vm0 = vcmp.gt.f32.partialorder %v1080_v2, 0.0  ;;  %v1568_v15 = vmul.f32 0.2, %v1080_v2 }
 0x15d   : > { %3226 = vst [vmem:[%s3774_s17 + $0xb8] sm:$0xff] %v3002_v6   ;;  %v1691_v14 = vsel %vm1435_vm14, %v1059_v62, %v1563_v9  ;;  %vm1504_vm1 = vcmp.gt.f32.partialorder %v1336_v3, 0.0  ;;  %v1632_v16 = vmul.f32 0.2, %v1336_v3  ;;  %3258 = vst [vmem:[%s3774_s17 + $0x1b8] sm:$0xff] %v3162_v10   ;;  %v1328_v21 = vadd.f32 %v3930_v18, %v3937_v26  ;;  %v3992_v22 = vpop.f32.mrf.mxu0  ;;  %v3994_v23 = vpop.f32.mrf.mxu1 }
 0x15e   : > { %v2997_v17 = vpack.c.bf16 %v1691_v14, %v1690_v60  ;;  %v1755_v19 = vsel %vm1499_vm15, %v1315_v63, %v1627_v11  ;;  %v1696_v8 = vsel %vm1440_vm0, %v1080_v2, %v1568_v15  ;;  %v1083_v28 = vadd.f32 %v3930_v18, %v3945_v35 }
 0x15f   : > { %v3157_v24 = vpack.c.bf16 %v1755_v19, %v1754_v0  ;;  %v1760_v27 = vsel %vm1504_vm1, %v1336_v3, %v1632_v16  ;;  %vm1438_vm2 = vcmp.gt.f32.partialorder %v1072_v20, 0.0  ;;  %v1566_v29 = vmul.f32 0.2, %v1072_v20  ;;  %v4008_v37 = vpop.f32.mrf.mxu0  ;;  %v4010_v38 = vpop.f32.mrf.mxu1 }
 0x160   : > { %3225 = vst [vmem:[%s3774_s17 + $0xb0] sm:$0xff] %v2997_v17   ;;  %vm1502_vm3 = vcmp.gt.f32.partialorder %v1328_v21, 0.0  ;;  %v1630_v30 = vmul.f32 0.2, %v1328_v21  ;;  %vm1441_vm4 = vcmp.gt.f32.partialorder %v1083_v28, 0.0  ;;  %v1339_v26 = vadd.f32 %v3930_v18, %v3947_v36 }
 0x161   : > { %3257 = vst [vmem:[%s3774_s17 + $0x1b0] sm:$0xff] %v3157_v24   ;;  %v1569_v25 = vmul.f32 0.2, %v1083_v28  ;;  %v1075_v31 = vadd.f32 %v3930_v18, %v3950_v42  ;;  %v1694_v32 = vsel %vm1438_vm2, %v1072_v20, %v1566_v29  ;;  %v1331_v34 = vadd.f32 %v3930_v18, %v3952_v43  ;;  %v3414_v50 = vpop.f32.mrf.mxu0  ;;  %v3478_v51 = vpop.f32.mrf.mxu1 }
 0x162   : > { %v1758_v33 = vsel %vm1502_vm3, %v1328_v21, %v1630_v30  ;;  %v1096_v35 = vadd.f32 %v3930_v18, %v3409_v52  ;;  %vm1505_vm5 = vcmp.gt.f32.partialorder %v1339_v26, 0.0  ;;  %v1633_v40 = vmul.f32 0.2, %v1339_v26 }
 0x163   : > { %v1697_v39 = vsel %vm1441_vm4, %v1083_v28, %v1569_v25  ;;  %vm1439_vm6 = vcmp.gt.f32.partialorder %v1075_v31, 0.0  ;;  %v1567_v41 = vmul.f32 0.2, %v1075_v31  ;;  %vm1503_vm7 = vcmp.gt.f32.partialorder %v1331_v34, 0.0  ;;  %v1106_v2 = vpop.f32.mrf.mxu0 }
 0x164   : > { %v3012_v36 = vpack.c.bf16 %v1697_v39, %v1696_v8  ;;  %v1631_v42 = vmul.f32 0.2, %v1331_v34  ;;  %v1761_v44 = vsel %vm1505_vm5, %v1339_v26, %v1633_v40  ;;  %vm1444_vm8 = vcmp.gt.f32.partialorder %v1096_v35, 0.0 }
 0x165   : > { %v1572_v45 = vmul.f32 0.2, %v1096_v35  ;;  %v1352_v43 = vadd.f32 %v3930_v18, %v3964_v53  ;;  %v3172_v46 = vpack.c.bf16 %v1761_v44, %v1760_v27  ;;  %v1695_v47 = vsel %vm1439_vm6, %v1075_v31, %v1567_v41  ;;  %v3417_v16 = vpop.f32.mrf.mxu0 }
 0x166   : > { %3228 = vst [vmem:[%s3774_s17 + $0xc8] sm:$0xff] %v3012_v36   ;;  %v1759_v48 = vsel %vm1503_vm7, %v1331_v34, %v1631_v42  ;;  %v1088_v49 = vadd.f32 %v3930_v18, %v3967_v58  ;;  %v3007_v52 = vpack.c.bf16 %v1695_v47, %v1694_v32  ;;  %v1344_v53 = vadd.f32 %v3930_v18, %v3969_v59  ;;  %v1362_v59 = vpop.f32.mrf.mxu1 }
 0x167   : > { %v3167_v54 = vpack.c.bf16 %v1759_v48, %v1758_v33  ;;  %v1700_v57 = vsel %vm1444_vm8, %v1096_v35, %v1572_v45  ;;  %vm1508_vm9 = vcmp.gt.f32.partialorder %v1352_v43, 0.0  ;;  %3260 = vst [vmem:[%s3774_s17 + $0x1c8] sm:$0xff] %v3172_v46   ;;  %v1636_v55 = vmul.f32 0.2, %v1352_v43  ;;  %v1119_v26 = vpop.f32.mrf.mxu0 }
 0x168   : > { %vm1442_vm10 = vcmp.gt.f32.partialorder %v1088_v49, 0.0  ;;  %v1570_v56 = vmul.f32 0.2, %v1088_v49  ;;  %3227 = vst [vmem:[%s3774_s17 + $0xc0] sm:$0xff] %v3007_v52   ;;  %v1099_v60 = vadd.f32 %v3930_v18, %v3978_v4  ;;  %v1355_v58 = vadd.f32 %v3930_v18, %v3980_v5  ;;  %v3481_v17 = vpop.f32.mrf.mxu1 }
 0x169   : > { %3259 = vst [vmem:[%s3774_s17 + $0x1c0] sm:$0xff] %v3167_v54   ;;  %v1091_v61 = vadd.f32 %v3930_v18, %v3982_v12  ;;  %v1347_v62 = vadd.f32 %v3930_v18, %v3984_v13  ;;  %v1764_v63 = vsel %vm1508_vm9, %v1352_v43, %v1636_v55  ;;  %vm1506_vm11 = vcmp.gt.f32.partialorder %v1344_v53, 0.0  ;;  %v3418_v45 = vpop.f32.mrf.mxu0 }
 0x16a   : > { %v1698_v0 = vsel %vm1442_vm10, %v1088_v49, %v1570_v56  ;;  %v1634_v1 = vmul.f32 0.2, %v1344_v53  ;;  %vm1445_vm12 = vcmp.gt.f32.partialorder %v1099_v60, 0.0  ;;  %v1573_v3 = vmul.f32 0.2, %v1099_v60  ;;  %v1375_v31 = vpop.f32.mrf.mxu1 }
 0x16b   : > { %vm1509_vm13 = vcmp.gt.f32.partialorder %v1355_v58, 0.0  ;;  %v1637_v6 = vmul.f32 0.2, %v1355_v58  ;;  %vm1443_vm14 = vcmp.gt.f32.partialorder %v1091_v61, 0.0  ;;  %v1571_v7 = vmul.f32 0.2, %v1091_v61 }
 0x16c   : > { %v1762_v4 = vsel %vm1506_vm11, %v1344_v53, %v1634_v1  ;;  %vm1507_vm15 = vcmp.gt.f32.partialorder %v1347_v62, 0.0  ;;  %v1701_v5 = vsel %vm1445_vm12, %v1099_v60, %v1573_v3  ;;  %v1635_v10 = vmul.f32 0.2, %v1347_v62  ;;  %v3482_v43 = vpop.f32.mrf.mxu1 }
 0x16d   : > { %v1765_v9 = vsel %vm1509_vm13, %v1355_v58, %v1637_v6  ;;  %v1112_v11 = vadd.f32 %v3930_v18, %v3992_v22  ;;  %v3022_v12 = vpack.c.bf16 %v1701_v5, %v1700_v57  ;;  %v1699_v14 = vsel %vm1443_vm14, %v1091_v61, %v1571_v7  ;;  %v1122_v58 = vpop.f32.mrf.mxu0 }
 0x16e   : > { %v3182_v13 = vpack.c.bf16 %v1765_v9, %v1764_v63  ;;  %v1368_v15 = vadd.f32 %v3930_v18, %v3994_v23  ;;  %v3017_v19 = vpack.c.bf16 %v1699_v14, %v1698_v0  ;;  %v1763_v20 = vsel %vm1507_vm15, %v1347_v62, %v1635_v10  ;;  %v1378_v61 = vpop.f32.mrf.mxu1 }
 0x16f   : > { %vm1448_vm0 = vcmp.gt.f32.partialorder %v1112_v11, 0.0  ;;  %v1576_v21 = vmul.f32 0.2, %v1112_v11  ;;  %3230 = vst [vmem:[%s3774_s17 + $0xd8] sm:$0xff] %v3022_v12   ;;  %v3177_v24 = vpack.c.bf16 %v1763_v20, %v1762_v4  ;;  %v1104_v22 = vadd.f32 %v3930_v18, %v4008_v37 }
 0x170   : > { %3262 = vst [vmem:[%s3774_s17 + $0x1d8] sm:$0xff] %v3182_v13   ;;  %vm1512_vm1 = vcmp.gt.f32.partialorder %v1368_v15, 0.0  ;;  %v1640_v8 = vmul.f32 0.2, %v1368_v15  ;;  %3229 = vst [vmem:[%s3774_s17 + $0xd0] sm:$0xff] %v3017_v19   ;;  %v1360_v27 = vadd.f32 %v3930_v18, %v4010_v38  ;;  %v1115_v23 = vadd.f32 %v3930_v18, %v3414_v50 }
 0x171   : > { %v1371_v28 = vadd.f32 %v3930_v18, %v3478_v51  ;;  %3261 = vst [vmem:[%s3774_s17 + $0x1d0] sm:$0xff] %v3177_v24   ;;  %v1704_v29 = vsel %vm1448_vm0, %v1112_v11, %v1576_v21  ;;  %vm1446_vm2 = vcmp.gt.f32.partialorder %v1104_v22, 0.0  ;;  %v1574_v30 = vmul.f32 0.2, %v1104_v22 }
 0x172   : > { %v1107_v25 = vadd.f32 %v3930_v18, %v1106_v2  ;;  %v1768_v32 = vsel %vm1512_vm1, %v1368_v15, %v1640_v8  ;;  %vm1510_vm3 = vcmp.gt.f32.partialorder %v1360_v27, 0.0  ;;  %vm1449_vm4 = vcmp.gt.f32.partialorder %v1115_v23, 0.0 }
 0x173   : > { %v1577_v33 = vmul.f32 0.2, %v1115_v23  ;;  %v1638_v34 = vmul.f32 0.2, %v1360_v27  ;;  %vm1513_vm5 = vcmp.gt.f32.partialorder %v1371_v28, 0.0  ;;  %v1702_v37 = vsel %vm1446_vm2, %v1104_v22, %v1574_v30 }
 0x174   : > { %v1641_v35 = vmul.f32 0.2, %v1371_v28  ;;  %vm1447_vm6 = vcmp.gt.f32.partialorder %v1107_v25, 0.0  ;;  %v1575_v39 = vmul.f32 0.2, %v1107_v25  ;;  %v1363_v40 = vadd.f32 %v3930_v18, %v1362_v59 }
 0x175   : > { %v1705_v38 = vsel %vm1449_vm4, %v1115_v23, %v1577_v33  ;;  %v1128_v42 = vadd.f32 %v3930_v18, %v3417_v16  ;;  %v1384_v44 = vadd.f32 %v3930_v18, %v3481_v17  ;;  %v1766_v49 = vsel %vm1510_vm3, %v1360_v27, %v1638_v34 }
 0x176   : > { %v3032_v36 = vpack.c.bf16 %v1705_v38, %v1704_v29  ;;  %v1769_v41 = vsel %vm1513_vm5, %v1371_v28, %v1641_v35  ;;  %v1703_v47 = vsel %vm1447_vm6, %v1107_v25, %v1575_v39  ;;  %vm1511_vm7 = vcmp.gt.f32.partialorder %v1363_v40, 0.0 }
 0x177   : > { %v3192_v46 = vpack.c.bf16 %v1769_v41, %v1768_v32  ;;  %v1639_v48 = vmul.f32 0.2, %v1363_v40  ;;  %v3027_v50 = vpack.c.bf16 %v1703_v47, %v1702_v37  ;;  %vm1452_vm8 = vcmp.gt.f32.partialorder %v1128_v42, 0.0 }
 0x178   : > { %3232 = vst [vmem:[%s3774_s17 + $0xe8] sm:$0xff] %v3032_v36   ;;  %v1580_v51 = vmul.f32 0.2, %v1128_v42  ;;  %vm1516_vm9 = vcmp.gt.f32.partialorder %v1384_v44, 0.0  ;;  %v1644_v54 = vmul.f32 0.2, %v1384_v44  ;;  %v1120_v57 = vadd.f32 %v3930_v18, %v1119_v26 }
 0x179   : > { %3264 = vst [vmem:[%s3774_s17 + $0x1e8] sm:$0xff] %v3192_v46   ;;  %v1767_v52 = vsel %vm1511_vm7, %v1363_v40, %v1639_v48  ;;  %3231 = vst [vmem:[%s3774_s17 + $0xe0] sm:$0xff] %v3027_v50   ;;  %v1376_v56 = vadd.f32 %v3930_v18, %v1375_v31  ;;  %v1131_v53 = vadd.f32 %v3930_v18, %v3418_v45 }
 0x17a   : > { %v3187_v55 = vpack.c.bf16 %v1767_v52, %v1766_v49  ;;  %v1387_v60 = vadd.f32 %v3930_v18, %v3482_v43  ;;  %v1708_v62 = vsel %vm1452_vm8, %v1128_v42, %v1580_v51  ;;  %v1772_v63 = vsel %vm1516_vm9, %v1384_v44, %v1644_v54 }
 0x17b   : > { %vm1453_vm10 = vcmp.gt.f32.partialorder %v1131_v53, 0.0  ;;  %v1581_v0 = vmul.f32 0.2, %v1131_v53  ;;  %v1578_v1 = vmul.f32 0.2, %v1120_v57  ;;  %v1123_v59 = vadd.f32 %v3930_v18, %v1122_v58 }
 0x17c   : > { %3263 = vst [vmem:[%s3774_s17 + $0x1e0] sm:$0xff] %v3187_v55   ;;  %vm1517_vm11 = vcmp.gt.f32.partialorder %v1387_v60, 0.0  ;;  %v1645_v2 = vmul.f32 0.2, %v1387_v60  ;;  %v1379_v3 = vadd.f32 %v3930_v18, %v1378_v61  ;;  %vm1450_vm12 = vcmp.gt.f32.partialorder %v1120_v57, 0.0 }
 0x17d   : > { %vm1514_vm13 = vcmp.gt.f32.partialorder %v1376_v56, 0.0  ;;  %v1642_v6 = vmul.f32 0.2, %v1376_v56  ;;  %v1709_v4 = vsel %vm1453_vm10, %v1131_v53, %v1581_v0  ;;  %vm1451_vm14 = vcmp.gt.f32.partialorder %v1123_v59, 0.0 }
 0x17e   : > { %v3042_v7 = vpack.c.bf16 %v1709_v4, %v1708_v62  ;;  %v1773_v5 = vsel %vm1517_vm11, %v1387_v60, %v1645_v2  ;;  %v1579_v9 = vmul.f32 0.2, %v1123_v59  ;;  %vm1515_vm15 = vcmp.gt.f32.partialorder %v1379_v3, 0.0 }
 0x17f   : > { %v3202_v10 = vpack.c.bf16 %v1773_v5, %v1772_v63  ;;  %v1643_v11 = vmul.f32 0.2, %v1379_v3  ;;  %v1706_v12 = vsel %vm1450_vm12, %v1120_v57, %v1578_v1  ;;  %v1770_v14 = vsel %vm1514_vm13, %v1376_v56, %v1642_v6 }
 0x180   : > { %3234 = vst [vmem:[%s3774_s17 + $0xf8] sm:$0xff] %v3042_v7   ;;  %v1707_v13 = vsel %vm1451_vm14, %v1123_v59, %v1579_v9 }
 0x181   : > { %3266 = vst [vmem:[%s3774_s17 + $0x1f8] sm:$0xff] %v3202_v10   ;;  %v3037_v18 = vpack.c.bf16 %v1707_v13, %v1706_v12  ;;  %v1771_v15 = vsel %vm1515_vm15, %v1379_v3, %v1643_v11 }
 0x182   : > { %v3197_v16 = vpack.c.bf16 %v1771_v15, %v1770_v14 }
 0x183   : > { %3233 = vst [vmem:[%s3774_s17 + $0xf0] sm:$0xff] %v3037_v18  }
 0x184   : > { %3265 = vst [vmem:[%s3774_s17 + $0x1f0] sm:$0xff] %v3197_v16  }
 0x185 PF: > { %s13_s14 = sadd.s32 1, %s3618_s14   ;;  %s4076_s12 = smov %s3614_s13 }
 0x186   : > { %p10_p5 = scmp.ge.s32.totalorder %s13_s14, 4   ;;  %s4077_s13 = smov %s4079_s15 }
 0x188   :  { %12 = sbr.rel (!%p10_p5) target bundleno = 2 (0x2), region = 65 }

// kernel: forward.23
= control target key start
LH: loop header
LB: loop body
LE: loop exit
PB: predicated region body
PF: predicated region fallthrough
CT: control target
= control target key end

     0   :  { %s1259_s18 = smov 0   ;;  %s1261_s19 = smov 0   ;;  %s1507_s0 = inlined_call_operand.vmem [shape: bf16[2,1,256,128], index: 0, kind: input, shape index: {}]   ;;  %s1508_s1 = inlined_call_operand.vmem [shape: bf16[1,128,128], index: 1, kind: input, shape index: {}]   ;;  %s1509_s2 = inlined_call_operand.vmem [shape: f32[1,128], index: 2, kind: input, shape index: {}]   ;;  %s1510_s3 = inlined_call_operand.vmem [shape: f32[2,1,256,128], index: 3, kind: output, shape index: {0}]   ;;  %s1511_s4 = inlined_call_operand.vmem [shape: f32[2,1,128], index: 4, kind: output, shape index: {1}]   ;;  %s1512_s5 = inlined_call_operand.vmem [shape: f32[2,1,128], index: 5, kind: output, shape index: {2}]  }
   0x1   :  { %s1263_s20 = smov 0  }
   0x2 LB: > { %s35_s21 = sadd.s32 1, %s1222_s19  ;;  %p1033_p0 = scmp.ge.s32.totalorder %s1226_s20, 1  ;;  %s1226_s20 = sphi %s1263_s20, %s16_s20   ;;  %s1222_s19 = sphi %s1261_s19, %s1514_s19   ;;  %s1218_s18 = sphi %s1259_s18, %s1513_s18  }
   0x3   : > { %p37_p1 = scmp.ge.s32.totalorder %s35_s21, 2  ;;  %p238_p2 = scmp.lt.s32.totalorder %s1226_s20, 3 }
   0x5   : > { %s1516_s21 = smov (%p37_p1, %s35_s21), 0  ;;  %p239_p3 = pnand %p1033_p0, %p238_p2 }
   0x6   : > { %p294_p4 = scmp.lt.s32.totalorder (!%p239_p3), %s1218_s18, 1 }
   0x7   : > { %242 = sbr.rel (%p239_p3) target bundleno = 333 (0x14d), region = 32 }
   0xc   : > { %v1180_v0 = vld [vmem:[%s1508_s1 + $0x38] sm:$0xff]   ;;  %v1181_v1 = vld [vmem:[%s1508_s1 + $0x30] sm:$0xff]   ;;  %s1518_s18 = smov (!%p294_p4, %s1218_s18), 1  ;;  %v1182_v2 = vld [vmem:[%s1508_s1 + $0x28] sm:$0xff]   ;;  %v1228_v24 = vmov 0.0  }
   0xd   : > { %1091 = vmatprep.subr.bf16.mxu0 %v1180_v0  ;;  %1139 = vmatprep.subr.bf16.mxu1 %v1180_v0  ;;  %s1065_s28 = sshll.u32 %s1518_s18, 7  ;;  %v1183_v3 = vld [vmem:[%s1508_s1 + $0x20] sm:$0xff]   ;;  %v1184_v5 = vld [vmem:[%s1508_s1 + $0x18] sm:$0xff]   ;;  %v1185_v6 = vld [vmem:[%s1508_s1 + $0x10] sm:$0xff]   ;;  %339 = vst [vmem:[#allocation2] sm:$0x1] %v1228_v24  ;;  %s328_s29 = scalar_lea.vmem %s1511_s4, %s1518_s18 }
   0xe   : > { %1092 = vmatpush3.bf16.msra.mxu0 %v1180_v0  ;;  %1147 = vmatpush3.bf16.msra.mxu1 %v1180_v0  ;;  %s1292_s6 = scalar_lea.vmem %s1507_s0, %s1065_s28  ;;  %v1186_v8 = vld [vmem:[%s1508_s1 + $0x8] sm:$0xff]   ;;  %v1187_v9 = vld [vmem:[%s1508_s1] sm:$0xff]   ;;  %340 = vst [vmem:[#allocation3] sm:$0x1] %v1228_v24  ;;  %s1066_s17 = sshll.u32 %s1518_s18, 8 }
   0xf   : > { %1093 = vmatprep.subr.bf16.mxu0 %v1181_v1  ;;  %1140 = vmatprep.subr.bf16.mxu1 %v1181_v1  ;;  %v1188_v4 = vld [vmem:[%s1292_s6] sm:$0xff]   ;;  %v1189_v10 = vld [vmem:[%s1292_s6 + $0x8] sm:$0xff]   ;;  %v1190_v12 = vld [vmem:[%s1292_s6 + $0x10] sm:$0xff]   ;;  %s1334_s26 = scalar_lea.vmem %s1510_s3, %s1066_s17  ;;  %s331_s7 = scalar_lea.vmem %s1512_s5, %s1518_s18 }
  0x10   : > { %1107 = vmatprep.mubr.bf16.mxu0 %v1188_v4  ;;  %v1196_v7 = vld [vmem:[%s1292_s6 + $0x40] sm:$0xff]   ;;  %v1197_v11 = vld [vmem:[%s1292_s6 + $0x48] sm:$0xff]   ;;  %v1198_v13 = vld [vmem:[%s1292_s6 + $0x50] sm:$0xff]  }
  0x11   : > { %1123 = vmatprep.mubr.bf16.mxu1 %v1196_v7  ;;  %v1191_v14 = vld [vmem:[%s1292_s6 + $0x18] sm:$0xff]   ;;  %v1192_v16 = vld [vmem:[%s1292_s6 + $0x20] sm:$0xff]   ;;  %v1193_v18 = vld [vmem:[%s1292_s6 + $0x28] sm:$0xff]  }
  0x12   : > { %1094 = vmatpush3.bf16.msra.mxu0 %v1181_v1  ;;  %1148 = vmatpush3.bf16.msra.mxu1 %v1181_v1  ;;  %v1199_v15 = vld [vmem:[%s1292_s6 + $0x58] sm:$0xff]   ;;  %v1200_v17 = vld [vmem:[%s1292_s6 + $0x60] sm:$0xff]   ;;  %v1201_v19 = vld [vmem:[%s1292_s6 + $0x68] sm:$0xff]  }
  0x13   : > { %1095 = vmatprep.subr.bf16.mxu0 %v1182_v2  ;;  %1141 = vmatprep.subr.bf16.mxu1 %v1182_v2  ;;  %v1194_v20 = vld [vmem:[%s1292_s6 + $0x30] sm:$0xff]   ;;  %v1195_v22 = vld [vmem:[%s1292_s6 + $0x38] sm:$0xff]   ;;  %v1329_v25 = vld [vmem:[%s1509_s2] ss:$0 sm:$0xff] }
  0x14   : > { %v1202_v21 = vld [vmem:[%s1292_s6 + $0x70] sm:$0xff]   ;;  %v1203_v23 = vld [vmem:[%s1292_s6 + $0x78] sm:$0xff]  }
  0x16   : > { %1096 = vmatpush3.bf16.msra.mxu0 %v1182_v2  ;;  %1149 = vmatpush3.bf16.msra.mxu1 %v1182_v2 }
  0x17   : > { %1097 = vmatprep.subr.bf16.mxu0 %v1183_v3  ;;  %1142 = vmatprep.subr.bf16.mxu1 %v1183_v3 }
  0x1a   : > { %1098 = vmatpush3.bf16.msra.mxu0 %v1183_v3  ;;  %1150 = vmatpush3.bf16.msra.mxu1 %v1183_v3 }
  0x1b   : > { %1099 = vmatprep.subr.bf16.mxu0 %v1184_v5  ;;  %1143 = vmatprep.subr.bf16.mxu1 %v1184_v5 }
  0x1e   : > { %1100 = vmatpush3.bf16.msra.mxu0 %v1184_v5  ;;  %1151 = vmatpush3.bf16.msra.mxu1 %v1184_v5 }
  0x1f   : > { %1101 = vmatprep.subr.bf16.mxu0 %v1185_v6  ;;  %1144 = vmatprep.subr.bf16.mxu1 %v1185_v6 }
  0x22   : > { %1102 = vmatpush3.bf16.msra.mxu0 %v1185_v6  ;;  %1152 = vmatpush3.bf16.msra.mxu1 %v1185_v6 }
  0x23   : > { %1103 = vmatprep.subr.bf16.mxu0 %v1186_v8  ;;  %1145 = vmatprep.subr.bf16.mxu1 %v1186_v8 }
  0x26   : > { %1104 = vmatpush3.bf16.msra.mxu0 %v1186_v8  ;;  %1153 = vmatpush3.bf16.msra.mxu1 %v1186_v8 }
  0x27   : > { %1105 = vmatprep.subr.bf16.mxu0 %v1187_v9  ;;  %1146 = vmatprep.subr.bf16.mxu1 %v1187_v9 }
  0x2a   : > { %1106 = vmatpush3.bf16.msra.mxu0 %v1187_v9  ;;  %1154 = vmatpush3.bf16.msra.mxu1 %v1187_v9 }
  0x2d   : > { %1108 = vmatmul.mubr.bf16.vlgmr.msra.gmra.mxu0 %v1189_v10  ;;  %1124 = vmatmul.mubr.bf16.vlgmr.msra.gmra.mxu1 %v1197_v11 }
  0x2e   : > { %1111 = vmatprep.mubr.bf16.mxu0 %v1190_v12  ;;  %1127 = vmatprep.mubr.bf16.mxu1 %v1198_v13 }
  0x35   : > { %1112 = vmatmul.mubr.bf16.gmra.mxu0 %v1191_v14  ;;  %1128 = vmatmul.mubr.bf16.gmra.mxu1 %v1199_v15 }
  0x36   : > { %1115 = vmatprep.mubr.bf16.mxu0 %v1192_v16  ;;  %1131 = vmatprep.mubr.bf16.mxu1 %v1200_v17 }
  0x3d   : > { %1116 = vmatmul.mubr.bf16.gmra.mxu0 %v1193_v18  ;;  %1132 = vmatmul.mubr.bf16.gmra.mxu1 %v1201_v19 }
  0x3e   : > { %1119 = vmatprep.mubr.bf16.mxu0 %v1194_v20  ;;  %1135 = vmatprep.mubr.bf16.mxu1 %v1202_v21 }
  0x45   : > { %1120 = vmatmul.mubr.bf16.gmra.mxu0 %v1195_v22  ;;  %1136 = vmatmul.mubr.bf16.gmra.mxu1 %v1203_v23 }
  0xed   : > { %v1109_v26 = vpop.f32.mrf.mxu0  ;;  %v1125_v27 = vpop.f32.mrf.mxu1 }
  0xee   : > { %v583_v28 = vadd.f32 %v1109_v26, %v1329_v25  ;;  %v1338_v29 = vadd.f32 %v1125_v27, %v1329_v25 }
  0xef   : > { %v574_v30 = vpop.f32.mrf.mxu0  ;;  %v638_v31 = vpop.f32.mrf.mxu1 }
  0xf0   : > { %815 = vst [vmem:[%s1334_s26 + $0x10] sm:$0xff] %v583_v28  ;;  %v575_v32 = vadd.f32 %v1329_v25, %v574_v30  ;;  %831 = vst [vmem:[%s1334_s26 + $0x90] sm:$0xff] %v1338_v29  ;;  %v1345_v33 = vadd.f32 %v1329_v25, %v638_v31  ;;  %v744_v51 = vmul.f32 %v583_v28, %v583_v28 }
  0xf1   : > { %v1110_v34 = vpop.f32.mrf.mxu0  ;;  %v1126_v35 = vpop.f32.mrf.mxu1 }
  0xf2   : > { %813 = vst [vmem:[%s1334_s26] sm:$0xff] %v575_v32  ;;  %v586_v36 = vadd.f32 %v1110_v34, %v1329_v25  ;;  %829 = vst [vmem:[%s1334_s26 + $0x80] sm:$0xff] %v1345_v33  ;;  %v1352_v37 = vadd.f32 %v1126_v35, %v1329_v25  ;;  %v742_v44 = vmul.f32 %v575_v32, %v575_v32 }
  0xf3   : > { %v577_v38 = vpop.f32.mrf.mxu0  ;;  %v641_v39 = vpop.f32.mrf.mxu1 }
  0xf4   : > { %816 = vst [vmem:[%s1334_s26 + $0x18] sm:$0xff] %v586_v36  ;;  %v578_v40 = vadd.f32 %v1329_v25, %v577_v38  ;;  %832 = vst [vmem:[%s1334_s26 + $0x98] sm:$0xff] %v1352_v37  ;;  %v1359_v41 = vadd.f32 %v1329_v25, %v641_v39  ;;  %v745_v58 = vmul.f32 %v586_v36, %v586_v36 }
  0xf5   : > { %v1113_v42 = vpop.f32.mrf.mxu0  ;;  %v1129_v43 = vpop.f32.mrf.mxu1 }
  0xf6   : > { %v702_v45 = vadd.f32 %v578_v40, %v575_v32  ;;  %v743_v46 = vmul.f32 %v578_v40, %v578_v40  ;;  %814 = vst [vmem:[%s1334_s26 + $0x8] sm:$0xff] %v578_v40  ;;  %v599_v47 = vadd.f32 %v1113_v42, %v1329_v25  ;;  %830 = vst [vmem:[%s1334_s26 + $0x88] sm:$0xff] %v1359_v41 }
  0xf7   : > { %v590_v48 = vpop.f32.mrf.mxu0  ;;  %v1366_v49 = vadd.f32 %v1129_v43, %v1329_v25  ;;  %v654_v50 = vpop.f32.mrf.mxu1 }
  0xf8   : > { %v703_v52 = vadd.f32 %v702_v45, %v583_v28  ;;  %v774_v53 = vadd.f32 %v743_v46, %v742_v44  ;;  %819 = vst [vmem:[%s1334_s26 + $0x30] sm:$0xff] %v599_v47  ;;  %v591_v54 = vadd.f32 %v1329_v25, %v590_v48  ;;  %v1373_v56 = vadd.f32 %v1329_v25, %v654_v50 }
  0xf9   : > { %v1114_v55 = vpop.f32.mrf.mxu0  ;;  %835 = vst [vmem:[%s1334_s26 + $0xb0] sm:$0xff] %v1366_v49  ;;  %v1130_v57 = vpop.f32.mrf.mxu1  ;;  %v748_v15 = vmul.f32 %v599_v47, %v599_v47 }
  0xfa   : > { %v775_v59 = vadd.f32 %v774_v53, %v744_v51  ;;  %v704_v60 = vadd.f32 %v703_v52, %v586_v36  ;;  %817 = vst [vmem:[%s1334_s26 + $0x20] sm:$0xff] %v591_v54  ;;  %v602_v61 = vadd.f32 %v1114_v55, %v1329_v25  ;;  %833 = vst [vmem:[%s1334_s26 + $0xa0] sm:$0xff] %v1373_v56 }
  0xfb   : > { %v593_v62 = vpop.f32.mrf.mxu0  ;;  %v1380_v63 = vadd.f32 %v1130_v57, %v1329_v25  ;;  %v657_v0 = vpop.f32.mrf.mxu1  ;;  %v746_v2 = vmul.f32 %v591_v54, %v591_v54 }
  0xfc   : > { %v705_v1 = vadd.f32 %v704_v60, %v591_v54  ;;  %v776_v3 = vadd.f32 %v775_v59, %v745_v58  ;;  %820 = vst [vmem:[%s1334_s26 + $0x38] sm:$0xff] %v602_v61  ;;  %v594_v4 = vadd.f32 %v1329_v25, %v593_v62  ;;  %v1387_v6 = vadd.f32 %v1329_v25, %v657_v0 }
  0xfd   : > { %v1117_v5 = vpop.f32.mrf.mxu0  ;;  %836 = vst [vmem:[%s1334_s26 + $0xb8] sm:$0xff] %v1380_v63  ;;  %v1133_v7 = vpop.f32.mrf.mxu1  ;;  %v749_v22 = vmul.f32 %v602_v61, %v602_v61 }
  0xfe   : > { %v777_v8 = vadd.f32 %v776_v3, %v746_v2  ;;  %v706_v9 = vadd.f32 %v705_v1, %v594_v4  ;;  %v747_v10 = vmul.f32 %v594_v4, %v594_v4  ;;  %818 = vst [vmem:[%s1334_s26 + $0x28] sm:$0xff] %v594_v4  ;;  %v615_v11 = vadd.f32 %v1117_v5, %v1329_v25 }
  0xff   : > { %v606_v12 = vpop.f32.mrf.mxu0  ;;  %834 = vst [vmem:[%s1334_s26 + $0xa8] sm:$0xff] %v1387_v6  ;;  %v1394_v13 = vadd.f32 %v1133_v7, %v1329_v25  ;;  %v670_v14 = vpop.f32.mrf.mxu1 }
 0x100   : > { %v707_v16 = vadd.f32 %v706_v9, %v599_v47  ;;  %v778_v17 = vadd.f32 %v777_v8, %v747_v10  ;;  %823 = vst [vmem:[%s1334_s26 + $0x50] sm:$0xff] %v615_v11  ;;  %v607_v18 = vadd.f32 %v1329_v25, %v606_v12  ;;  %v1401_v20 = vadd.f32 %v1329_v25, %v670_v14 }
 0x101   : > { %v1118_v19 = vpop.f32.mrf.mxu0  ;;  %839 = vst [vmem:[%s1334_s26 + $0xd0] sm:$0xff] %v1394_v13  ;;  %v1134_v21 = vpop.f32.mrf.mxu1  ;;  %v752_v48 = vmul.f32 %v615_v11, %v615_v11 }
 0x102   : > { %v779_v23 = vadd.f32 %v778_v17, %v748_v15  ;;  %v708_v24 = vadd.f32 %v707_v16, %v602_v61  ;;  %821 = vst [vmem:[%s1334_s26 + $0x40] sm:$0xff] %v607_v18  ;;  %v618_v26 = vadd.f32 %v1118_v19, %v1329_v25  ;;  %837 = vst [vmem:[%s1334_s26 + $0xc0] sm:$0xff] %v1401_v20 }
 0x103   : > { %v609_v27 = vpop.f32.mrf.mxu0  ;;  %v1408_v28 = vadd.f32 %v1134_v21, %v1329_v25  ;;  %v673_v30 = vpop.f32.mrf.mxu1  ;;  %v750_v32 = vmul.f32 %v607_v18, %v607_v18  ;;  %v758_v17 = vmul.f32 %v1345_v33, %v1345_v33 }
 0x104   : > { %v709_v31 = vadd.f32 %v708_v24, %v607_v18  ;;  %v780_v34 = vadd.f32 %v779_v23, %v749_v22  ;;  %824 = vst [vmem:[%s1334_s26 + $0x58] sm:$0xff] %v618_v26  ;;  %v610_v35 = vadd.f32 %v1329_v25, %v609_v27  ;;  %v1415_v38 = vadd.f32 %v1329_v25, %v673_v30 }
 0x105   : > { %v1121_v36 = vpop.f32.mrf.mxu0  ;;  %840 = vst [vmem:[%s1334_s26 + $0xd8] sm:$0xff] %v1408_v28  ;;  %v1137_v39 = vpop.f32.mrf.mxu1  ;;  %v753_v57 = vmul.f32 %v618_v26, %v618_v26  ;;  %v760_v23 = vmul.f32 %v1338_v29, %v1338_v29  ;;  %v761_v27 = vmul.f32 %v1352_v37, %v1352_v37 }
 0x106   : > { %v781_v40 = vadd.f32 %v780_v34, %v750_v32  ;;  %v710_v42 = vadd.f32 %v709_v31, %v610_v35  ;;  %v751_v43 = vmul.f32 %v610_v35, %v610_v35  ;;  %822 = vst [vmem:[%s1334_s26 + $0x48] sm:$0xff] %v610_v35  ;;  %v631_v44 = vadd.f32 %v1121_v36, %v1329_v25 }
 0x107   : > { %v622_v45 = vpop.f32.mrf.mxu0  ;;  %838 = vst [vmem:[%s1334_s26 + $0xc8] sm:$0xff] %v1415_v38  ;;  %v1422_v46 = vadd.f32 %v1137_v39, %v1329_v25  ;;  %v686_v47 = vpop.f32.mrf.mxu1  ;;  %v762_v32 = vmul.f32 %v1373_v56, %v1373_v56  ;;  %v763_v36 = vmul.f32 %v1387_v6, %v1387_v6 }
 0x108   : > { %v711_v50 = vadd.f32 %v710_v42, %v615_v11  ;;  %v782_v51 = vadd.f32 %v781_v40, %v751_v43  ;;  %827 = vst [vmem:[%s1334_s26 + $0x70] sm:$0xff] %v631_v44  ;;  %v623_v52 = vadd.f32 %v1329_v25, %v622_v45  ;;  %v1429_v54 = vadd.f32 %v1329_v25, %v686_v47 }
 0x109   : > { %v1122_v53 = vpop.f32.mrf.mxu0  ;;  %843 = vst [vmem:[%s1334_s26 + $0xf0] sm:$0xff] %v1422_v46  ;;  %v1138_v55 = vpop.f32.mrf.mxu1  ;;  %v756_v10 = vmul.f32 %v631_v44, %v631_v44 }
 0x10a   : > { %v783_v58 = vadd.f32 %v782_v51, %v752_v48  ;;  %v712_v59 = vadd.f32 %v711_v50, %v618_v26  ;;  %825 = vst [vmem:[%s1334_s26 + $0x60] sm:$0xff] %v623_v52  ;;  %v634_v60 = vadd.f32 %v1122_v53, %v1329_v25  ;;  %841 = vst [vmem:[%s1334_s26 + $0xe0] sm:$0xff] %v1429_v54 }
 0x10b   : > { %v625_v61 = vpop.f32.mrf.mxu0  ;;  %v1436_v62 = vadd.f32 %v1138_v55, %v1329_v25  ;;  %v689_v0 = vpop.f32.mrf.mxu1  ;;  %v754_v2 = vmul.f32 %v623_v52, %v623_v52  ;;  %v767_v48 = vmul.f32 %v1415_v38, %v1415_v38  ;;  %v770_v55 = vmul.f32 %v1429_v54, %v1429_v54 }
 0x10c   : > { %v713_v1 = vadd.f32 %v712_v59, %v623_v52  ;;  %v784_v3 = vadd.f32 %v783_v58, %v753_v57  ;;  %828 = vst [vmem:[%s1334_s26 + $0x78] sm:$0xff] %v634_v60  ;;  %v626_v4 = vadd.f32 %v1329_v25, %v625_v61  ;;  %v690_v5 = vadd.f32 %v1329_v25, %v689_v0 }
 0x10d   : > { %844 = vst [vmem:[%s1334_s26 + $0xf8] sm:$0xff] %v1436_v62  ;;  %v757_v14 = vmul.f32 %v634_v60, %v634_v60  ;;  %v759_v25 = vmul.f32 %v1359_v41, %v1359_v41  ;;  %v773_v0 = vmul.f32 %v1436_v62, %v1436_v62 }
 0x10e   : > { %v785_v7 = vadd.f32 %v784_v3, %v754_v2  ;;  %v714_v8 = vadd.f32 %v713_v1, %v626_v4  ;;  %v755_v9 = vmul.f32 %v626_v4, %v626_v4  ;;  %826 = vst [vmem:[%s1334_s26 + $0x68] sm:$0xff] %v626_v4  ;;  %842 = vst [vmem:[%s1334_s26 + $0xe8] sm:$0xff] %v690_v5 }
 0x10f   : > { %v771_v59 = vmul.f32 %v690_v5, %v690_v5 }
 0x110   : > { %v715_v11 = vadd.f32 %v714_v8, %v631_v44  ;;  %v786_v12 = vadd.f32 %v785_v7, %v755_v9  ;;  %v766_v44 = vmul.f32 %v1401_v20, %v1401_v20 }
 0x112   : > { %v787_v15 = vadd.f32 %v786_v12, %v756_v10  ;;  %v716_v16 = vadd.f32 %v715_v11, %v634_v60  ;;  %v772_v60 = vmul.f32 %v1422_v46, %v1422_v46 }
 0x114   : > { %v717_v18 = vadd.f32 %v716_v16, %v1345_v33  ;;  %v788_v19 = vadd.f32 %v787_v15, %v757_v14  ;;  %v741_v15 = vld [vmem:[#allocation3] sm:$0x1] }
 0x116   : > { %v718_v21 = vadd.f32 %v717_v18, %v1359_v41  ;;  %v789_v22 = vadd.f32 %v788_v19, %v758_v17 }
 0x118   : > { %v719_v24 = vadd.f32 %v718_v21, %v1338_v29  ;;  %v790_v26 = vadd.f32 %v789_v22, %v759_v25  ;;  %v764_v29 = vmul.f32 %v1366_v49, %v1366_v49 }
 0x11a   : > { %v791_v30 = vadd.f32 %v790_v26, %v760_v23  ;;  %v720_v31 = vadd.f32 %v719_v24, %v1352_v37  ;;  %v765_v37 = vmul.f32 %v1380_v63, %v1380_v63 }
 0x11c   : > { %v721_v33 = vadd.f32 %v720_v31, %v1373_v56  ;;  %v792_v34 = vadd.f32 %v791_v30, %v761_v27 }
 0x11e   : > { %v793_v41 = vadd.f32 %v792_v34, %v762_v32  ;;  %v722_v35 = vadd.f32 %v721_v33, %v1387_v6 }
 0x120   : > { %v723_v39 = vadd.f32 %v722_v35, %v1366_v49  ;;  %v794_v40 = vadd.f32 %v793_v41, %v763_v36  ;;  %v768_v49 = vmul.f32 %v1394_v13, %v1394_v13 }
 0x122   : > { %v795_v42 = vadd.f32 %v794_v40, %v764_v29  ;;  %v724_v43 = vadd.f32 %v723_v39, %v1380_v63  ;;  %v769_v63 = vmul.f32 %v1408_v28, %v1408_v28 }
 0x124   : > { %v725_v56 = vadd.f32 %v724_v43, %v1401_v20  ;;  %v796_v45 = vadd.f32 %v795_v42, %v765_v37 }
 0x126   : > { %v797_v47 = vadd.f32 %v796_v45, %v766_v44  ;;  %v726_v6 = vadd.f32 %v725_v56, %v1415_v38 }
 0x128   : > { %v727_v50 = vadd.f32 %v726_v6, %v1394_v13  ;;  %v798_v51 = vadd.f32 %v797_v47, %v767_v48 }
 0x12a   : > { %v799_v52 = vadd.f32 %v798_v51, %v768_v49  ;;  %v728_v53 = vadd.f32 %v727_v50, %v1408_v28 }
 0x12c   : > { %v729_v20 = vadd.f32 %v728_v53, %v1429_v54  ;;  %v800_v57 = vadd.f32 %v799_v52, %v769_v63 }
 0x12e   : > { %v801_v58 = vadd.f32 %v800_v57, %v770_v55  ;;  %v730_v38 = vadd.f32 %v729_v20, %v690_v5 }
 0x130   : > { %v731_v13 = vadd.f32 %v730_v38, %v1422_v46  ;;  %v802_v61 = vadd.f32 %v801_v58, %v771_v59  ;;  %v701_v46 = vld [vmem:[#allocation2] sm:$0x1] }
 0x132   : > { %v732_v28 = vadd.f32 %v731_v13, %v1436_v62  ;;  %v803_v1 = vadd.f32 %v802_v61, %v772_v60 }
 0x134   : > { %v733_v2 = vrot.slane %v732_v28, 4  ;;  %v804_v3 = vadd.f32 %v803_v1, %v773_v0 }
 0x136   : > { %v734_v4 = vadd.f32 %v733_v2, %v732_v28  ;;  %v805_v54 = vrot.slane %v804_v3, 4 }
 0x138   : > { %v735_v7 = vrot.slane %v734_v4, 2  ;;  %v806_v5 = vadd.f32 %v805_v54, %v804_v3 }
 0x13a   : > { %v736_v8 = vadd.f32 %v735_v7, %v734_v4  ;;  %v807_v9 = vrot.slane %v806_v5, 2 }
 0x13c   : > { %v737_v10 = vrot.slane %v736_v8, 1  ;;  %v808_v11 = vadd.f32 %v807_v9, %v806_v5 }
 0x13e   : > { %v738_v12 = vadd.f32 %v737_v10, %v736_v8  ;;  %v809_v14 = vrot.slane %v808_v11, 1 }
 0x140   : > { %v739_v16 = vadd.f32 %v738_v12, %v701_v46  ;;  %v810_v17 = vadd.f32 %v809_v14, %v808_v11 }
 0x142   : > { %740 = vst [vmem:[#allocation2] sm:$0x1] %v739_v16  ;;  %v811_v62 = vadd.f32 %v810_v17, %v741_v15 }
 0x144   : > { %812 = vst [vmem:[#allocation3] sm:$0x1] %v811_v62 }
 0x149   : > { %v847_v18 = vld [vmem:[#allocation2] sm:$0x1] }
 0x14a   : > { %848 = vst [vmem:[%s328_s29] sm:$0x1] %v847_v18 }
 0x14b   : > { %v849_v19 = vld [vmem:[#allocation3] sm:$0x1] }
 0x14c   : > { %850 = vst [vmem:[%s331_s7] sm:$0x1] %v849_v19 }
 0x14d PF: > { %s16_s20 = sadd.s32 1, %s1226_s20   ;;  %s1513_s18 = smov %s1222_s19 }
 0x14e   : > { %p13_p5 = scmp.ge.s32.totalorder %s16_s20, 4   ;;  %s1514_s19 = smov %s1516_s21 }
 0x150   :  { %15 = sbr.rel (!%p13_p5) target bundleno = 2 (0x2), region = 97 }

// kernel: forward.24
= control target key start
LH: loop header
LB: loop body
LE: loop exit
PB: predicated region body
PF: predicated region fallthrough
CT: control target
= control target key end

     0   :  { %s1007_s12 = smov 0   ;;  %s1009_s13 = smov 0   ;;  %s1172_s0 = inlined_call_operand.vmem [shape: f32[2,1,256,128], index: 0, kind: input, shape index: {}]   ;;  %s1173_s1 = inlined_call_operand.vmem [shape: f32[2,1,128], index: 1, kind: input, shape index: {}]   ;;  %s1174_s2 = inlined_call_operand.vmem [shape: f32[2,1,128], index: 2, kind: input, shape index: {}]   ;;  %s1175_s3 = inlined_call_operand.vmem [shape: bf16[2,1,256,128], index: 3, kind: output, shape index: {}]  }
   0x1   :  { %s1011_s14 = smov 0  }
   0x2 LB: > { %s32_s15 = sadd.s32 1, %s981_s13  ;;  %p769_p0 = scmp.ge.s32.totalorder %s985_s14, 1  ;;  %s985_s14 = sphi %s1011_s14, %s13_s14   ;;  %s981_s13 = sphi %s1009_s13, %s1177_s13   ;;  %s977_s12 = sphi %s1007_s12, %s1176_s12  }
   0x3   : > { %p34_p1 = scmp.ge.s32.totalorder %s32_s15, 2  ;;  %p189_p2 = scmp.lt.s32.totalorder %s985_s14, 3 }
   0x5   : > { %s1179_s15 = smov (%p34_p1, %s32_s15), 0  ;;  %p190_p3 = pnand %p769_p0, %p189_p2 }
   0x6   : > { %p236_p4 = scmp.lt.s32.totalorder (!%p190_p3), %s977_s12, 1 }
   0x7   : > { %193 = sbr.rel (%p190_p3) target bundleno = 66 (0x42), region = 32 }
   0xc   : > { %s1181_s12 = smov (!%p236_p4, %s977_s12), 1 }
   0xd   : > { %s810_s16 = sshll.u32 %s1181_s12, 8  ;;  %s251_s19 = scalar_lea.vmem %s1173_s1, %s1181_s12 }
   0xe   : > { %s1035_s22 = scalar_lea.vmem %s1172_s0, %s810_s16  ;;  %s254_s25 = scalar_lea.vmem %s1174_s2, %s1181_s12  ;;  %v1041_v0 = vld [vmem:[%s251_s19] ss:$0 sm:$0xff] }
   0xf   : > { %v269_v1 = vld [vmem:[%s1035_s22] sm:$0xff]  ;;  %v270_v2 = vld [vmem:[%s1035_s22 + $0x8] sm:$0xff]  ;;  %v271_v6 = vld [vmem:[%s1035_s22 + $0x10] sm:$0xff]  ;;  %s811_s26 = sshll.u32 %s1181_s12, 7 }
  0x10   : > { %v1045_v3 = vld [vmem:[%s254_s25] ss:$0 sm:$0xff]  ;;  %v308_v4 = vsub.f32 %v269_v1, %v1041_v0  ;;  %v309_v5 = vsub.f32 %v270_v2, %v1041_v0  ;;  %v272_v7 = vld [vmem:[%s1035_s22 + $0x18] sm:$0xff]  ;;  %v310_v9 = vsub.f32 %v271_v6, %v1041_v0  ;;  %v274_v11 = vld [vmem:[%s1035_s22 + $0x28] sm:$0xff]  ;;  %s1070_s29 = scalar_lea.vmem %s1175_s3, %s811_s26 }
  0x11   : > { %v273_v8 = vld [vmem:[%s1035_s22 + $0x20] sm:$0xff]  ;;  %v311_v10 = vsub.f32 %v272_v7, %v1041_v0  ;;  %v275_v13 = vld [vmem:[%s1035_s22 + $0x30] sm:$0xff]  ;;  %v276_v14 = vld [vmem:[%s1035_s22 + $0x38] sm:$0xff]  ;;  %v313_v17 = vsub.f32 %v274_v11, %v1041_v0 }
  0x12   : > { %v312_v12 = vsub.f32 %v273_v8, %v1041_v0  ;;  %v347_v15 = vmul.f32 %v1045_v3, %v308_v4  ;;  %v348_v16 = vmul.f32 %v1045_v3, %v309_v5  ;;  %v314_v18 = vsub.f32 %v275_v13, %v1041_v0  ;;  %v277_v30 = vld [vmem:[%s1035_s22 + $0x40] sm:$0xff]  ;;  %v278_v31 = vld [vmem:[%s1035_s22 + $0x48] sm:$0xff]  ;;  %v279_v36 = vld [vmem:[%s1035_s22 + $0x50] sm:$0xff] }
  0x13   : > { %v349_v19 = vmul.f32 %v1045_v3, %v310_v9  ;;  %v350_v20 = vmul.f32 %v1045_v3, %v311_v10  ;;  %v315_v22 = vsub.f32 %v276_v14, %v1041_v0  ;;  %v352_v29 = vmul.f32 %v1045_v3, %v313_v17  ;;  %v280_v44 = vld [vmem:[%s1035_s22 + $0x58] sm:$0xff]  ;;  %v281_v48 = vld [vmem:[%s1035_s22 + $0x60] sm:$0xff]  ;;  %v282_v56 = vld [vmem:[%s1035_s22 + $0x68] sm:$0xff] }
  0x14   : > { %v351_v21 = vmul.f32 %v1045_v3, %v312_v12  ;;  %vm379_vm0 = vcmp.gt.f32.partialorder %v347_v15, 0.0  ;;  %vm380_vm1 = vcmp.gt.f32.partialorder %v348_v16, 0.0  ;;  %v411_v23 = vmul.f32 0.2, %v347_v15  ;;  %v283_v63 = vld [vmem:[%s1035_s22 + $0x70] sm:$0xff]  ;;  %v284_v5 = vld [vmem:[%s1035_s22 + $0x78] sm:$0xff] }
  0x15   : > { %v412_v24 = vmul.f32 0.2, %v348_v16  ;;  %vm381_vm2 = vcmp.gt.f32.partialorder %v349_v19, 0.0  ;;  %vm382_vm3 = vcmp.gt.f32.partialorder %v350_v20, 0.0  ;;  %v413_v25 = vmul.f32 0.2, %v349_v19 }
  0x16   : > { %v414_v26 = vmul.f32 0.2, %v350_v20  ;;  %v443_v27 = vsel %vm379_vm0, %v347_v15, %v411_v23  ;;  %vm383_vm4 = vcmp.gt.f32.partialorder %v351_v21, 0.0  ;;  %v415_v35 = vmul.f32 0.2, %v351_v21  ;;  %v285_v13 = vld [vmem:[%s1035_s22 + $0x80] sm:$0xff] }
  0x17   : > { %v444_v28 = vsel %vm380_vm1, %v348_v16, %v412_v24  ;;  %v445_v33 = vsel %vm381_vm2, %v349_v19, %v413_v25  ;;  %vm384_vm5 = vcmp.gt.f32.partialorder %v352_v29, 0.0  ;;  %v416_v38 = vmul.f32 0.2, %v352_v29  ;;  %v286_v14 = vld [vmem:[%s1035_s22 + $0x88] sm:$0xff] }
  0x18   : > { %v847_v32 = vpack.c.bf16 %v444_v28, %v443_v27  ;;  %v446_v34 = vsel %vm382_vm3, %v350_v20, %v414_v26  ;;  %v353_v39 = vmul.f32 %v1045_v3, %v314_v18  ;;  %v447_v40 = vsel %vm383_vm4, %v351_v21, %v415_v35  ;;  %v287_v18 = vld [vmem:[%s1035_s22 + $0x90] sm:$0xff]  ;;  %v288_v26 = vld [vmem:[%s1035_s22 + $0x98] sm:$0xff] }
  0x19   : > { %v852_v37 = vpack.c.bf16 %v446_v34, %v445_v33  ;;  %v354_v41 = vmul.f32 %v1045_v3, %v315_v22  ;;  %v316_v42 = vsub.f32 %v277_v30, %v1041_v0  ;;  %v317_v43 = vsub.f32 %v278_v31, %v1041_v0  ;;  %v289_v30 = vld [vmem:[%s1035_s22 + $0xa0] sm:$0xff] }
  0x1a   : > { %848 = vst [vmem:[%s1070_s29] sm:$0xff] %v847_v32   ;;  %v448_v45 = vsel %vm384_vm5, %v352_v29, %v416_v38  ;;  %vm385_vm6 = vcmp.gt.f32.partialorder %v353_v39, 0.0  ;;  %v417_v46 = vmul.f32 0.2, %v353_v39  ;;  %v318_v47 = vsub.f32 %v279_v36, %v1041_v0  ;;  %v290_v38 = vld [vmem:[%s1035_s22 + $0xa8] sm:$0xff] }
  0x1b   : > { %924 = vst [vmem:[%s1070_s29 + $0x8] sm:$0xff] %v852_v37   ;;  %v857_v49 = vpack.c.bf16 %v448_v45, %v447_v40  ;;  %vm386_vm7 = vcmp.gt.f32.partialorder %v354_v41, 0.0  ;;  %v418_v50 = vmul.f32 0.2, %v354_v41  ;;  %v355_v51 = vmul.f32 %v1045_v3, %v316_v42  ;;  %v291_v45 = vld [vmem:[%s1035_s22 + $0xb0] sm:$0xff] }
  0x1c   : > { %v449_v52 = vsel %vm385_vm6, %v353_v39, %v417_v46  ;;  %v356_v53 = vmul.f32 %v1045_v3, %v317_v43  ;;  %v319_v54 = vsub.f32 %v280_v44, %v1041_v0  ;;  %v357_v55 = vmul.f32 %v1045_v3, %v318_v47 }
  0x1d   : > { %925 = vst [vmem:[%s1070_s29 + $0x10] sm:$0xff] %v857_v49   ;;  %v450_v57 = vsel %vm386_vm7, %v354_v41, %v418_v50  ;;  %vm387_vm8 = vcmp.gt.f32.partialorder %v355_v51, 0.0  ;;  %v419_v58 = vmul.f32 0.2, %v355_v51  ;;  %v320_v59 = vsub.f32 %v281_v48, %v1041_v0  ;;  %v292_v49 = vld [vmem:[%s1035_s22 + $0xb8] sm:$0xff] }
  0x1e   : > { %v862_v60 = vpack.c.bf16 %v450_v57, %v449_v52  ;;  %vm388_vm9 = vcmp.gt.f32.partialorder %v356_v53, 0.0  ;;  %v420_v61 = vmul.f32 0.2, %v356_v53  ;;  %v358_v62 = vmul.f32 %v1045_v3, %v319_v54  ;;  %v293_v57 = vld [vmem:[%s1035_s22 + $0xc0] sm:$0xff] }
  0x1f   : > { %v451_v1 = vsel %vm387_vm8, %v355_v51, %v419_v58  ;;  %vm389_vm10 = vcmp.gt.f32.partialorder %v357_v55, 0.0  ;;  %v421_v2 = vmul.f32 0.2, %v357_v55  ;;  %v321_v4 = vsub.f32 %v282_v56, %v1041_v0  ;;  %v294_v58 = vld [vmem:[%s1035_s22 + $0xc8] sm:$0xff] }
  0x20   : > { %926 = vst [vmem:[%s1070_s29 + $0x18] sm:$0xff] %v862_v60   ;;  %v452_v6 = vsel %vm388_vm9, %v356_v53, %v420_v61  ;;  %vm390_vm11 = vcmp.gt.f32.partialorder %v358_v62, 0.0  ;;  %v422_v7 = vmul.f32 0.2, %v358_v62  ;;  %v359_v8 = vmul.f32 %v1045_v3, %v320_v59 }
  0x21   : > { %v867_v9 = vpack.c.bf16 %v452_v6, %v451_v1  ;;  %v453_v10 = vsel %vm389_vm10, %v357_v55, %v421_v2  ;;  %v360_v11 = vmul.f32 %v1045_v3, %v321_v4  ;;  %v322_v12 = vsub.f32 %v283_v63, %v1041_v0 }
  0x22   : > { %v454_v15 = vsel %vm390_vm11, %v358_v62, %v422_v7  ;;  %vm391_vm12 = vcmp.gt.f32.partialorder %v359_v8, 0.0  ;;  %v423_v16 = vmul.f32 0.2, %v359_v8  ;;  %v323_v17 = vsub.f32 %v284_v5, %v1041_v0  ;;  %v295_v62 = vld [vmem:[%s1035_s22 + $0xd0] sm:$0xff] }
  0x23   : > { %927 = vst [vmem:[%s1070_s29 + $0x20] sm:$0xff] %v867_v9   ;;  %v872_v19 = vpack.c.bf16 %v454_v15, %v453_v10  ;;  %vm392_vm13 = vcmp.gt.f32.partialorder %v360_v11, 0.0  ;;  %v424_v20 = vmul.f32 0.2, %v360_v11  ;;  %v361_v21 = vmul.f32 %v1045_v3, %v322_v12  ;;  %v297_v12 = vld [vmem:[%s1035_s22 + $0xe0] sm:$0xff] }
  0x24   : > { %v455_v22 = vsel %vm391_vm12, %v359_v8, %v423_v16  ;;  %v362_v23 = vmul.f32 %v1045_v3, %v323_v17  ;;  %v324_v24 = vsub.f32 %v285_v13, %v1041_v0  ;;  %v325_v25 = vsub.f32 %v286_v14, %v1041_v0  ;;  %v296_v8 = vld [vmem:[%s1035_s22 + $0xd8] sm:$0xff] }
  0x25   : > { %928 = vst [vmem:[%s1070_s29 + $0x28] sm:$0xff] %v872_v19   ;;  %v456_v27 = vsel %vm392_vm13, %v360_v11, %v424_v20  ;;  %vm393_vm14 = vcmp.gt.f32.partialorder %v361_v21, 0.0  ;;  %v425_v28 = vmul.f32 0.2, %v361_v21  ;;  %v326_v29 = vsub.f32 %v287_v18, %v1041_v0  ;;  %v298_v20 = vld [vmem:[%s1035_s22 + $0xe8] sm:$0xff] }
  0x26   : > { %v877_v31 = vpack.c.bf16 %v456_v27, %v455_v22  ;;  %vm394_vm15 = vcmp.gt.f32.partialorder %v362_v23, 0.0  ;;  %v426_v32 = vmul.f32 0.2, %v362_v23  ;;  %v363_v33 = vmul.f32 %v1045_v3, %v324_v24  ;;  %v299_v27 = vld [vmem:[%s1035_s22 + $0xf0] sm:$0xff] }
  0x27   : > { %v457_v34 = vsel %vm393_vm14, %v361_v21, %v425_v28  ;;  %v364_v35 = vmul.f32 %v1045_v3, %v325_v25  ;;  %v327_v36 = vsub.f32 %v288_v26, %v1041_v0  ;;  %v365_v37 = vmul.f32 %v1045_v3, %v326_v29 }
  0x28   : > { %929 = vst [vmem:[%s1070_s29 + $0x30] sm:$0xff] %v877_v31   ;;  %v458_v39 = vsel %vm394_vm15, %v362_v23, %v426_v32  ;;  %vm395_vm0 = vcmp.gt.f32.partialorder %v363_v33, 0.0  ;;  %v427_v40 = vmul.f32 0.2, %v363_v33  ;;  %v328_v41 = vsub.f32 %v289_v30, %v1041_v0  ;;  %v300_v31 = vld [vmem:[%s1035_s22 + $0xf8] sm:$0xff] }
  0x29   : > { %v882_v42 = vpack.c.bf16 %v458_v39, %v457_v34  ;;  %vm396_vm1 = vcmp.gt.f32.partialorder %v364_v35, 0.0  ;;  %v428_v43 = vmul.f32 0.2, %v364_v35  ;;  %v366_v44 = vmul.f32 %v1045_v3, %v327_v36 }
  0x2a   : > { %v459_v46 = vsel %vm395_vm0, %v363_v33, %v427_v40  ;;  %vm397_vm2 = vcmp.gt.f32.partialorder %v365_v37, 0.0  ;;  %v429_v47 = vmul.f32 0.2, %v365_v37  ;;  %v329_v48 = vsub.f32 %v290_v38, %v1041_v0 }
  0x2b   : > { %930 = vst [vmem:[%s1070_s29 + $0x38] sm:$0xff] %v882_v42   ;;  %v460_v50 = vsel %vm396_vm1, %v364_v35, %v428_v43  ;;  %vm398_vm3 = vcmp.gt.f32.partialorder %v366_v44, 0.0  ;;  %v430_v51 = vmul.f32 0.2, %v366_v44  ;;  %v367_v52 = vmul.f32 %v1045_v3, %v328_v41 }
  0x2c   : > { %v887_v53 = vpack.c.bf16 %v460_v50, %v459_v46  ;;  %v461_v54 = vsel %vm397_vm2, %v365_v37, %v429_v47  ;;  %v368_v55 = vmul.f32 %v1045_v3, %v329_v48  ;;  %v330_v56 = vsub.f32 %v291_v45, %v1041_v0 }
  0x2d   : > { %v462_v59 = vsel %vm398_vm3, %v366_v44, %v430_v51  ;;  %vm399_vm4 = vcmp.gt.f32.partialorder %v367_v52, 0.0  ;;  %v431_v60 = vmul.f32 0.2, %v367_v52  ;;  %v331_v61 = vsub.f32 %v292_v49, %v1041_v0 }
  0x2e   : > { %931 = vst [vmem:[%s1070_s29 + $0x40] sm:$0xff] %v887_v53   ;;  %v892_v63 = vpack.c.bf16 %v462_v59, %v461_v54  ;;  %vm400_vm5 = vcmp.gt.f32.partialorder %v368_v55, 0.0  ;;  %v432_v1 = vmul.f32 0.2, %v368_v55  ;;  %v369_v2 = vmul.f32 %v1045_v3, %v330_v56 }
  0x2f   : > { %v463_v4 = vsel %vm399_vm4, %v367_v52, %v431_v60  ;;  %v370_v5 = vmul.f32 %v1045_v3, %v331_v61  ;;  %v332_v6 = vsub.f32 %v293_v57, %v1041_v0  ;;  %v333_v7 = vsub.f32 %v294_v58, %v1041_v0 }
  0x30   : > { %932 = vst [vmem:[%s1070_s29 + $0x48] sm:$0xff] %v892_v63   ;;  %v464_v9 = vsel %vm400_vm5, %v368_v55, %v432_v1  ;;  %vm401_vm6 = vcmp.gt.f32.partialorder %v369_v2, 0.0  ;;  %v433_v10 = vmul.f32 0.2, %v369_v2  ;;  %v334_v11 = vsub.f32 %v295_v62, %v1041_v0 }
  0x31   : > { %v897_v13 = vpack.c.bf16 %v464_v9, %v463_v4  ;;  %vm402_vm7 = vcmp.gt.f32.partialorder %v370_v5, 0.0  ;;  %v434_v14 = vmul.f32 0.2, %v370_v5  ;;  %v371_v15 = vmul.f32 %v1045_v3, %v332_v6 }
  0x32   : > { %v465_v16 = vsel %vm401_vm6, %v369_v2, %v433_v10  ;;  %v372_v17 = vmul.f32 %v1045_v3, %v333_v7  ;;  %v335_v18 = vsub.f32 %v296_v8, %v1041_v0  ;;  %v373_v19 = vmul.f32 %v1045_v3, %v334_v11 }
  0x33   : > { %933 = vst [vmem:[%s1070_s29 + $0x50] sm:$0xff] %v897_v13   ;;  %v466_v21 = vsel %vm402_vm7, %v370_v5, %v434_v14  ;;  %vm403_vm8 = vcmp.gt.f32.partialorder %v371_v15, 0.0  ;;  %v435_v22 = vmul.f32 0.2, %v371_v15  ;;  %v336_v23 = vsub.f32 %v297_v12, %v1041_v0 }
  0x34   : > { %v902_v24 = vpack.c.bf16 %v466_v21, %v465_v16  ;;  %vm404_vm9 = vcmp.gt.f32.partialorder %v372_v17, 0.0  ;;  %v436_v25 = vmul.f32 0.2, %v372_v17  ;;  %v374_v26 = vmul.f32 %v1045_v3, %v335_v18 }
  0x35   : > { %v467_v28 = vsel %vm403_vm8, %v371_v15, %v435_v22  ;;  %vm405_vm10 = vcmp.gt.f32.partialorder %v373_v19, 0.0  ;;  %v437_v29 = vmul.f32 0.2, %v373_v19  ;;  %v337_v30 = vsub.f32 %v298_v20, %v1041_v0 }
  0x36   : > { %934 = vst [vmem:[%s1070_s29 + $0x58] sm:$0xff] %v902_v24   ;;  %v468_v32 = vsel %vm404_vm9, %v372_v17, %v436_v25  ;;  %vm406_vm11 = vcmp.gt.f32.partialorder %v374_v26, 0.0  ;;  %v438_v33 = vmul.f32 0.2, %v374_v26  ;;  %v375_v34 = vmul.f32 %v1045_v3, %v336_v23 }
  0x37   : > { %v907_v35 = vpack.c.bf16 %v468_v32, %v467_v28  ;;  %v469_v36 = vsel %vm405_vm10, %v373_v19, %v437_v29  ;;  %v376_v37 = vmul.f32 %v1045_v3, %v337_v30  ;;  %v338_v38 = vsub.f32 %v299_v27, %v1041_v0 }
  0x38   : > { %v470_v39 = vsel %vm406_vm11, %v374_v26, %v438_v33  ;;  %vm407_vm12 = vcmp.gt.f32.partialorder %v375_v34, 0.0  ;;  %v439_v40 = vmul.f32 0.2, %v375_v34  ;;  %v339_v41 = vsub.f32 %v300_v31, %v1041_v0 }
  0x39   : > { %935 = vst [vmem:[%s1070_s29 + $0x60] sm:$0xff] %v907_v35   ;;  %v912_v42 = vpack.c.bf16 %v470_v39, %v469_v36  ;;  %vm408_vm13 = vcmp.gt.f32.partialorder %v376_v37, 0.0  ;;  %v440_v43 = vmul.f32 0.2, %v376_v37  ;;  %v377_v44 = vmul.f32 %v1045_v3, %v338_v38 }
  0x3a   : > { %v471_v45 = vsel %vm407_vm12, %v375_v34, %v439_v40  ;;  %v378_v46 = vmul.f32 %v1045_v3, %v339_v41 }
  0x3b   : > { %936 = vst [vmem:[%s1070_s29 + $0x68] sm:$0xff] %v912_v42   ;;  %v472_v47 = vsel %vm408_vm13, %v376_v37, %v440_v43  ;;  %vm409_vm14 = vcmp.gt.f32.partialorder %v377_v44, 0.0  ;;  %v441_v48 = vmul.f32 0.2, %v377_v44 }
  0x3c   : > { %v917_v49 = vpack.c.bf16 %v472_v47, %v471_v45  ;;  %vm410_vm15 = vcmp.gt.f32.partialorder %v378_v46, 0.0  ;;  %v442_v50 = vmul.f32 0.2, %v378_v46 }
  0x3d   : > { %v473_v51 = vsel %vm409_vm14, %v377_v44, %v441_v48 }
  0x3e   : > { %937 = vst [vmem:[%s1070_s29 + $0x70] sm:$0xff] %v917_v49   ;;  %v474_v0 = vsel %vm410_vm15, %v378_v46, %v442_v50 }
  0x3f   : > { %v922_v52 = vpack.c.bf16 %v474_v0, %v473_v51 }
  0x41   : > { %938 = vst [vmem:[%s1070_s29 + $0x78] sm:$0xff] %v922_v52  }
  0x42 PF: > { %s13_s14 = sadd.s32 1, %s985_s14   ;;  %s1176_s12 = smov %s981_s13 }
  0x43   : > { %p10_p5 = scmp.ge.s32.totalorder %s13_s14, 4   ;;  %s1177_s13 = smov %s1179_s15 }
  0x45   :  { %12 = sbr.rel (!%p10_p5) target bundleno = 2 (0x2), region = 68 }

// kernel: forward.25
= control target key start
LH: loop header
LB: loop body
LE: loop exit
PB: predicated region body
PF: predicated region fallthrough
CT: control target
= control target key end

     0   :  { %s1029_s18 = smov 0   ;;  %s1031_s19 = smov 0   ;;  %s1148_s0 = inlined_call_operand.vmem [shape: bf16[2,1,64,256], index: 0, kind: input, shape index: {}]   ;;  %s1149_s1 = inlined_call_operand.vmem [shape: bf16[1,256,128], index: 1, kind: input, shape index: {}]   ;;  %s1150_s2 = inlined_call_operand.vmem [shape: f32[1,128], index: 2, kind: input, shape index: {}]   ;;  %s1151_s3 = inlined_call_operand.vmem [shape: f32[2,1,64,128], index: 3, kind: output, shape index: {0}]   ;;  %s1152_s4 = inlined_call_operand.vmem [shape: f32[2,1,128], index: 4, kind: output, shape index: {1}]   ;;  %s1153_s5 = inlined_call_operand.vmem [shape: f32[2,1,128], index: 5, kind: output, shape index: {2}]  }
   0x1   :  { %s1033_s20 = smov 0  }
   0x2 LB: > { %s35_s21 = sadd.s32 1, %s992_s19  ;;  %p831_p0 = scmp.ge.s32.totalorder %s996_s20, 1  ;;  %s996_s20 = sphi %s1033_s20, %s16_s20   ;;  %s992_s19 = sphi %s1031_s19, %s1155_s19   ;;  %s988_s18 = sphi %s1029_s18, %s1154_s18  }
   0x3   : > { %p37_p1 = scmp.ge.s32.totalorder %s35_s21, 2  ;;  %p239_p2 = scmp.lt.s32.totalorder %s996_s20, 3 }
   0x5   : > { %s1157_s21 = smov (%p37_p1, %s35_s21), 0  ;;  %p240_p3 = pnand %p831_p0, %p239_p2 }
   0x6   : > { %p296_p4 = scmp.lt.s32.totalorder (!%p240_p3), %s988_s18, 1 }
   0x7   : > { %243 = sbr.rel (%p240_p3) target bundleno = 291 (0x123), region = 32 }
   0xc   : > { %v946_v0 = vld [vmem:[%s1149_s1 + $0x78] sm:$0xff]   ;;  %v948_v2 = vld [vmem:[%s1149_s1 + $0x70] sm:$0xff]   ;;  %v950_v4 = vld [vmem:[%s1149_s1 + $0x68] sm:$0xff]   ;;  %s1159_s18 = smov (!%p296_p4, %s988_s18), 1  ;;  %v998_v24 = vmov 0.0  }
   0xd   : > { %v947_v1 = vld [vmem:[%s1149_s1 + $0x38] sm:$0xff]   ;;  %865 = vmatprep.subr.bf16.mxu0 %v946_v0  ;;  %905 = vmatprep.subr.bf16.mxu1 %v946_v0  ;;  %v949_v3 = vld [vmem:[%s1149_s1 + $0x30] sm:$0xff]   ;;  %v951_v5 = vld [vmem:[%s1149_s1 + $0x28] sm:$0xff]   ;;  %s863_s13 = sshll.u32 %s1159_s18, 6  ;;  %342 = vst [vmem:[#allocation2] sm:$0x1] %v998_v24  ;;  %s331_s23 = scalar_lea.vmem %s1152_s4, %s1159_s18 }
   0xe   : > { %866 = vmatpush3.bf16.msra.mxu0 %v947_v1  ;;  %913 = vmatpush3.bf16.msra.mxu1 %v947_v1  ;;  %v952_v6 = vld [vmem:[%s1149_s1 + $0x60] sm:$0xff]   ;;  %v954_v8 = vld [vmem:[%s1149_s1 + $0x58] sm:$0xff]   ;;  %s1082_s22 = scalar_lea.vmem %s1148_s0, %s863_s13  ;;  %v956_v10 = vld [vmem:[%s1149_s1 + $0x50] sm:$0xff]   ;;  %343 = vst [vmem:[#allocation3] sm:$0x1] %v998_v24  ;;  %s1121_s17 = scalar_lea.vmem %s1151_s3, %s863_s13 }
   0xf   : > { %867 = vmatprep.subr.bf16.mxu0 %v948_v2  ;;  %906 = vmatprep.subr.bf16.mxu1 %v948_v2  ;;  %v953_v7 = vld [vmem:[%s1149_s1 + $0x20] sm:$0xff]   ;;  %v955_v9 = vld [vmem:[%s1149_s1 + $0x18] sm:$0xff]   ;;  %v957_v13 = vld [vmem:[%s1149_s1 + $0x10] sm:$0xff]   ;;  %s334_s26 = scalar_lea.vmem %s1153_s5, %s1159_s18 }
  0x10   : > { %v964_v11 = vld [vmem:[%s1082_s22 + $0x4] ss:$8 sps:$4 sm:$0xff]   ;;  %v962_v18 = vld [vmem:[%s1082_s22] ss:$8 sps:$4 sm:$0xff]   ;;  %v968_v20 = vld [vmem:[%s1082_s22 + $0x14] ss:$8 sps:$4 sm:$0xff]  }
  0x11   : > { %v967_v12 = vld [vmem:[%s1082_s22 + $0x24] ss:$8 sps:$4 sm:$0xff]   ;;  %559 = vmatprep.mubr.bf16.mxu0 %v964_v11  ;;  %v965_v19 = vld [vmem:[%s1082_s22 + $0x20] ss:$8 sps:$4 sm:$0xff]   ;;  %v971_v21 = vld [vmem:[%s1082_s22 + $0x34] ss:$8 sps:$4 sm:$0xff]  }
  0x12   : > { %868 = vmatpush3.bf16.msra.mxu0 %v949_v3  ;;  %914 = vmatpush3.bf16.msra.mxu1 %v949_v3  ;;  %v958_v14 = vld [vmem:[%s1149_s1 + $0x48] sm:$0xff]   ;;  %v960_v16 = vld [vmem:[%s1149_s1 + $0x40] sm:$0xff]   ;;  %v970_v22 = vld [vmem:[%s1082_s22 + $0x10] ss:$8 sps:$4 sm:$0xff]  }
  0x13   : > { %869 = vmatprep.subr.bf16.mxu0 %v950_v4  ;;  %907 = vmatprep.subr.bf16.mxu1 %v950_v4  ;;  %v959_v15 = vld [vmem:[%s1149_s1 + $0x8] sm:$0xff]   ;;  %v961_v17 = vld [vmem:[%s1149_s1] sm:$0xff]   ;;  %v973_v23 = vld [vmem:[%s1082_s22 + $0x30] ss:$8 sps:$4 sm:$0xff]  }
  0x14   : > { %575 = vmatprep.mubr.bf16.mxu1 %v967_v12  ;;  %v836_v27 = vld [vmem:[%s1150_s2] ss:$0 sm:$0xff] }
  0x16   : > { %870 = vmatpush3.bf16.msra.mxu0 %v951_v5  ;;  %915 = vmatpush3.bf16.msra.mxu1 %v951_v5 }
  0x17   : > { %871 = vmatprep.subr.bf16.mxu0 %v952_v6  ;;  %908 = vmatprep.subr.bf16.mxu1 %v952_v6 }
  0x1a   : > { %872 = vmatpush3.bf16.msra.mxu0 %v953_v7  ;;  %916 = vmatpush3.bf16.msra.mxu1 %v953_v7 }
  0x1b   : > { %873 = vmatprep.subr.bf16.mxu0 %v954_v8  ;;  %909 = vmatprep.subr.bf16.mxu1 %v954_v8 }
  0x1e   : > { %874 = vmatpush3.bf16.msra.mxu0 %v955_v9  ;;  %917 = vmatpush3.bf16.msra.mxu1 %v955_v9 }
  0x1f   : > { %875 = vmatprep.subr.bf16.mxu0 %v956_v10  ;;  %910 = vmatprep.subr.bf16.mxu1 %v956_v10 }
  0x22   : > { %876 = vmatpush3.bf16.msra.mxu0 %v957_v13  ;;  %918 = vmatpush3.bf16.msra.mxu1 %v957_v13 }
  0x23   : > { %877 = vmatprep.subr.bf16.mxu0 %v958_v14  ;;  %911 = vmatprep.subr.bf16.mxu1 %v958_v14 }
  0x26   : > { %878 = vmatpush3.bf16.msra.mxu0 %v959_v15  ;;  %919 = vmatpush3.bf16.msra.mxu1 %v959_v15 }
  0x27   : > { %879 = vmatprep.subr.bf16.mxu0 %v960_v16  ;;  %912 = vmatprep.subr.bf16.mxu1 %v960_v16 }
  0x2a   : > { %880 = vmatpush3.bf16.msra.mxu0 %v961_v17  ;;  %920 = vmatpush3.bf16.msra.mxu1 %v961_v17 }
  0x2d   : > { %560 = vmatmul.mubr.bf16.vlgmr.msra.gmra.mxu0 %v962_v18  ;;  %576 = vmatmul.mubr.bf16.vlgmr.msra.gmra.mxu1 %v965_v19 }
  0x2e   : > { %567 = vmatprep.mubr.bf16.mxu0 %v968_v20  ;;  %583 = vmatprep.mubr.bf16.mxu1 %v971_v21 }
  0x35   : > { %568 = vmatmul.mubr.bf16.gmra.mxu0 %v970_v22  ;;  %584 = vmatmul.mubr.bf16.gmra.mxu1 %v973_v23 }
  0xed   : > { %v881_v25 = vpop.f32.mrf.mxu0  ;;  %v893_v26 = vpop.f32.mrf.mxu1 }
  0xef   : > { %v882_v28 = vpop.f32.mrf.mxu0  ;;  %v894_v29 = vpop.f32.mrf.mxu1 }
  0xf0   : > { %v883_v30 = vadd.f32 %v882_v28, %v881_v25  ;;  %v895_v31 = vadd.f32 %v894_v29, %v893_v26  ;;  %v592_v25 = vld [vmem:[#allocation2] sm:$0x1]  ;;  %v608_v28 = vld [vmem:[#allocation3] sm:$0x1] }
  0xf1   : > { %v884_v32 = vpop.f32.mrf.mxu0  ;;  %v896_v33 = vpop.f32.mrf.mxu1 }
  0xf2   : > { %v562_v34 = vadd.f32 %v883_v30, %v836_v27  ;;  %v578_v35 = vadd.f32 %v895_v31, %v836_v27 }
  0xf3   : > { %v885_v36 = vpop.f32.mrf.mxu0  ;;  %v897_v37 = vpop.f32.mrf.mxu1 }
  0xf4   : > { %632 = vst [vmem:[%s1121_s17] sm:$0xff] %v562_v34  ;;  %636 = vst [vmem:[%s1121_s17 + $0x20] sm:$0xff] %v578_v35  ;;  %v886_v38 = vadd.f32 %v885_v36, %v884_v32  ;;  %v898_v39 = vadd.f32 %v897_v37, %v896_v33  ;;  %v609_v52 = vmul.f32 %v562_v34, %v562_v34 }
  0xf5   : > { %v887_v40 = vpop.f32.mrf.mxu0  ;;  %v899_v41 = vpop.f32.mrf.mxu1  ;;  %v613_v3 = vmul.f32 %v578_v35, %v578_v35 }
  0xf6   : > { %v565_v42 = vadd.f32 %v886_v38, %v836_v27  ;;  %v581_v43 = vadd.f32 %v898_v39, %v836_v27 }
  0xf7   : > { %v888_v44 = vpop.f32.mrf.mxu0  ;;  %v900_v45 = vpop.f32.mrf.mxu1 }
  0xf8   : > { %633 = vst [vmem:[%s1121_s17 + $0x8] sm:$0xff] %v565_v42  ;;  %637 = vst [vmem:[%s1121_s17 + $0x28] sm:$0xff] %v581_v43  ;;  %v889_v46 = vadd.f32 %v888_v44, %v887_v40  ;;  %v901_v48 = vadd.f32 %v900_v45, %v899_v41  ;;  %v610_v50 = vmul.f32 %v565_v42, %v565_v42 }
  0xf9   : > { %v890_v47 = vpop.f32.mrf.mxu0  ;;  %v902_v49 = vpop.f32.mrf.mxu1  ;;  %v593_v56 = vadd.f32 %v565_v42, %v562_v34  ;;  %v614_v6 = vmul.f32 %v581_v43, %v581_v43 }
  0xfa   : > { %v570_v51 = vadd.f32 %v889_v46, %v836_v27  ;;  %v586_v53 = vadd.f32 %v901_v48, %v836_v27  ;;  %v617_v60 = vadd.f32 %v610_v50, %v609_v52 }
  0xfb   : > { %v891_v54 = vpop.f32.mrf.mxu0  ;;  %v903_v55 = vpop.f32.mrf.mxu1 }
  0xfc   : > { %v611_v57 = vmul.f32 %v570_v51, %v570_v51  ;;  %634 = vst [vmem:[%s1121_s17 + $0x10] sm:$0xff] %v570_v51  ;;  %v892_v58 = vadd.f32 %v891_v54, %v890_v47  ;;  %v904_v59 = vadd.f32 %v903_v55, %v902_v49  ;;  %638 = vst [vmem:[%s1121_s17 + $0x30] sm:$0xff] %v586_v53 }
  0xfd   : > { %v594_v61 = vadd.f32 %v593_v56, %v570_v51  ;;  %v615_v9 = vmul.f32 %v586_v53, %v586_v53 }
  0xfe   : > { %v573_v62 = vadd.f32 %v892_v58, %v836_v27  ;;  %v589_v63 = vadd.f32 %v904_v59, %v836_v27  ;;  %v618_v0 = vadd.f32 %v617_v60, %v611_v57 }
 0x100   : > { %v595_v1 = vadd.f32 %v594_v61, %v573_v62  ;;  %v612_v2 = vmul.f32 %v573_v62, %v573_v62  ;;  %635 = vst [vmem:[%s1121_s17 + $0x18] sm:$0xff] %v573_v62  ;;  %639 = vst [vmem:[%s1121_s17 + $0x38] sm:$0xff] %v589_v63  ;;  %v616_v13 = vmul.f32 %v589_v63, %v589_v63 }
 0x102   : > { %v596_v4 = vadd.f32 %v595_v1, %v578_v35  ;;  %v619_v5 = vadd.f32 %v618_v0, %v612_v2 }
 0x104   : > { %v620_v7 = vadd.f32 %v619_v5, %v613_v3  ;;  %v597_v8 = vadd.f32 %v596_v4, %v581_v43 }
 0x106   : > { %v598_v10 = vadd.f32 %v597_v8, %v586_v53  ;;  %v621_v11 = vadd.f32 %v620_v7, %v614_v6 }
 0x108   : > { %v599_v12 = vadd.f32 %v598_v10, %v589_v63  ;;  %v622_v14 = vadd.f32 %v621_v11, %v615_v9 }
 0x10a   : > { %v600_v15 = vrot.slane %v599_v12, 4  ;;  %v623_v16 = vadd.f32 %v622_v14, %v616_v13 }
 0x10c   : > { %v601_v17 = vadd.f32 %v600_v15, %v599_v12  ;;  %v624_v18 = vrot.slane %v623_v16, 4 }
 0x10e   : > { %v602_v19 = vrot.slane %v601_v17, 2  ;;  %v625_v20 = vadd.f32 %v624_v18, %v623_v16 }
 0x110   : > { %v603_v21 = vadd.f32 %v602_v19, %v601_v17  ;;  %v626_v22 = vrot.slane %v625_v20, 2 }
 0x112   : > { %v604_v23 = vrot.slane %v603_v21, 1  ;;  %v627_v24 = vadd.f32 %v626_v22, %v625_v20 }
 0x114   : > { %v605_v26 = vadd.f32 %v604_v23, %v603_v21  ;;  %v628_v27 = vrot.slane %v627_v24, 1 }
 0x116   : > { %v606_v29 = vadd.f32 %v605_v26, %v592_v25  ;;  %v629_v30 = vadd.f32 %v628_v27, %v627_v24 }
 0x118   : > { %607 = vst [vmem:[#allocation2] sm:$0x1] %v606_v29  ;;  %v630_v31 = vadd.f32 %v629_v30, %v608_v28 }
 0x11a   : > { %631 = vst [vmem:[#allocation3] sm:$0x1] %v630_v31 }
 0x11f   : > { %v642_v32 = vld [vmem:[#allocation2] sm:$0x1] }
 0x120   : > { %643 = vst [vmem:[%s331_s23] sm:$0x1] %v642_v32 }
 0x121   : > { %v644_v33 = vld [vmem:[#allocation3] sm:$0x1] }
 0x122   : > { %645 = vst [vmem:[%s334_s26] sm:$0x1] %v644_v33 }
 0x123 PF: > { %s16_s20 = sadd.s32 1, %s996_s20   ;;  %s1154_s18 = smov %s992_s19 }
 0x124   : > { %p13_p5 = scmp.ge.s32.totalorder %s16_s20, 4   ;;  %s1155_s19 = smov %s1157_s21 }
 0x126   :  { %15 = sbr.rel (!%p13_p5) target bundleno = 2 (0x2), region = 97 }

// kernel: forward.26
= control target key start
LH: loop header
LB: loop body
LE: loop exit
PB: predicated region body
PF: predicated region fallthrough
CT: control target
= control target key end

     0   :  { %s623_s12 = smov 0   ;;  %s625_s13 = smov 0   ;;  %s668_s0 = inlined_call_operand.vmem [shape: f32[2,1,64,128], index: 0, kind: input, shape index: {}]   ;;  %s669_s1 = inlined_call_operand.vmem [shape: f32[2,1,128], index: 1, kind: input, shape index: {}]   ;;  %s670_s2 = inlined_call_operand.vmem [shape: f32[2,1,128], index: 2, kind: input, shape index: {}]   ;;  %s671_s3 = inlined_call_operand.vmem [shape: bf16[2,1,64,128], index: 3, kind: output, shape index: {}]  }
   0x1   :  { %s627_s14 = smov 0  }
   0x2 LB: > { %s32_s15 = sadd.s32 1, %s597_s13  ;;  %p505_p0 = scmp.ge.s32.totalorder %s601_s14, 1  ;;  %s601_s14 = sphi %s627_s14, %s13_s14   ;;  %s597_s13 = sphi %s625_s13, %s673_s13   ;;  %s593_s12 = sphi %s623_s12, %s672_s12  }
   0x3   : > { %p34_p1 = scmp.ge.s32.totalorder %s32_s15, 2  ;;  %p189_p2 = scmp.lt.s32.totalorder %s601_s14, 3 }
   0x5   : > { %s675_s15 = smov (%p34_p1, %s32_s15), 0  ;;  %p190_p3 = pnand %p505_p0, %p189_p2 }
   0x6   : > { %p236_p4 = scmp.lt.s32.totalorder (!%p190_p3), %s593_s12, 1 }
   0x7   : > { %193 = sbr.rel (%p190_p3) target bundleno = 33 (0x21), region = 32 }
   0xc   : > { %s677_s12 = smov (!%p236_p4, %s593_s12), 1 }
   0xd   : > { %s522_s16 = sshll.u32 %s677_s12, 6  ;;  %s251_s19 = scalar_lea.vmem %s669_s1, %s677_s12 }
   0xe   : > { %s247_s22 = scalar_lea.vmem %s668_s0, %s522_s16  ;;  %s254_s25 = scalar_lea.vmem %s670_s2, %s677_s12  ;;  %v510_v0 = vld [vmem:[%s251_s19] ss:$0 sm:$0xff] }
   0xf   : > { %v269_v1 = vld [vmem:[%s247_s22] sm:$0xff]  ;;  %v270_v2 = vld [vmem:[%s247_s22 + $0x8] sm:$0xff]  ;;  %v271_v6 = vld [vmem:[%s247_s22 + $0x10] sm:$0xff]  ;;  %s523_s26 = sshll.u32 %s677_s12, 5 }
  0x10   : > { %v511_v3 = vld [vmem:[%s254_s25] ss:$0 sm:$0xff]  ;;  %v284_v4 = vsub.f32 %v269_v1, %v510_v0  ;;  %v285_v5 = vsub.f32 %v270_v2, %v510_v0  ;;  %v272_v7 = vld [vmem:[%s247_s22 + $0x18] sm:$0xff]  ;;  %v286_v9 = vsub.f32 %v271_v6, %v510_v0  ;;  %v274_v11 = vld [vmem:[%s247_s22 + $0x28] sm:$0xff]  ;;  %s267_s29 = scalar_lea.vmem %s671_s3, %s523_s26 }
  0x11   : > { %v273_v8 = vld [vmem:[%s247_s22 + $0x20] sm:$0xff]  ;;  %v287_v10 = vsub.f32 %v272_v7, %v510_v0  ;;  %v275_v13 = vld [vmem:[%s247_s22 + $0x30] sm:$0xff]  ;;  %v276_v14 = vld [vmem:[%s247_s22 + $0x38] sm:$0xff]  ;;  %v289_v17 = vsub.f32 %v274_v11, %v510_v0 }
  0x12   : > { %v288_v12 = vsub.f32 %v273_v8, %v510_v0  ;;  %v299_v15 = vmul.f32 %v511_v3, %v284_v4  ;;  %v300_v16 = vmul.f32 %v511_v3, %v285_v5  ;;  %v290_v18 = vsub.f32 %v275_v13, %v510_v0 }
  0x13   : > { %v301_v19 = vmul.f32 %v511_v3, %v286_v9  ;;  %v302_v20 = vmul.f32 %v511_v3, %v287_v10  ;;  %v291_v22 = vsub.f32 %v276_v14, %v510_v0  ;;  %v304_v29 = vmul.f32 %v511_v3, %v289_v17 }
  0x14   : > { %v303_v21 = vmul.f32 %v511_v3, %v288_v12  ;;  %vm307_vm0 = vcmp.gt.f32.partialorder %v299_v15, 0.0  ;;  %vm308_vm1 = vcmp.gt.f32.partialorder %v300_v16, 0.0  ;;  %v315_v23 = vmul.f32 0.2, %v299_v15 }
  0x15   : > { %v316_v24 = vmul.f32 0.2, %v300_v16  ;;  %vm309_vm2 = vcmp.gt.f32.partialorder %v301_v19, 0.0  ;;  %vm310_vm3 = vcmp.gt.f32.partialorder %v302_v20, 0.0  ;;  %v317_v25 = vmul.f32 0.2, %v301_v19 }
  0x16   : > { %v318_v26 = vmul.f32 0.2, %v302_v20  ;;  %v323_v27 = vsel %vm307_vm0, %v299_v15, %v315_v23  ;;  %vm311_vm4 = vcmp.gt.f32.partialorder %v303_v21, 0.0  ;;  %v319_v33 = vmul.f32 0.2, %v303_v21 }
  0x17   : > { %v324_v28 = vsel %vm308_vm1, %v300_v16, %v316_v24  ;;  %v325_v31 = vsel %vm309_vm2, %v301_v19, %v317_v25  ;;  %vm312_vm5 = vcmp.gt.f32.partialorder %v304_v29, 0.0  ;;  %v320_v35 = vmul.f32 0.2, %v304_v29 }
  0x18   : > { %v535_v30 = vpack.c.bf16 %v324_v28, %v323_v27  ;;  %v326_v32 = vsel %vm310_vm3, %v302_v20, %v318_v26  ;;  %v305_v36 = vmul.f32 %v511_v3, %v290_v18  ;;  %v327_v37 = vsel %vm311_vm4, %v303_v21, %v319_v33 }
  0x19   : > { %v540_v34 = vpack.c.bf16 %v326_v32, %v325_v31  ;;  %v306_v38 = vmul.f32 %v511_v3, %v291_v22  ;;  %v328_v39 = vsel %vm312_vm5, %v304_v29, %v320_v35 }
  0x1a   : > { %536 = vst [vmem:[%s267_s29] sm:$0xff] %v535_v30   ;;  %vm313_vm6 = vcmp.gt.f32.partialorder %v305_v36, 0.0  ;;  %v321_v40 = vmul.f32 0.2, %v305_v36  ;;  %v545_v41 = vpack.c.bf16 %v328_v39, %v327_v37 }
  0x1b   : > { %552 = vst [vmem:[%s267_s29 + $0x8] sm:$0xff] %v540_v34   ;;  %vm314_vm7 = vcmp.gt.f32.partialorder %v306_v38, 0.0  ;;  %v322_v42 = vmul.f32 0.2, %v306_v38 }
  0x1c   : > { %v329_v43 = vsel %vm313_vm6, %v305_v36, %v321_v40  ;;  %553 = vst [vmem:[%s267_s29 + $0x10] sm:$0xff] %v545_v41  }
  0x1d   : > { %v330_v44 = vsel %vm314_vm7, %v306_v38, %v322_v42 }
  0x1e   : > { %v550_v45 = vpack.c.bf16 %v330_v44, %v329_v43 }
  0x20   : > { %554 = vst [vmem:[%s267_s29 + $0x18] sm:$0xff] %v550_v45  }
  0x21 PF: > { %s13_s14 = sadd.s32 1, %s601_s14   ;;  %s672_s12 = smov %s597_s13 }
  0x22   : > { %p10_p5 = scmp.ge.s32.totalorder %s13_s14, 4   ;;  %s673_s13 = smov %s675_s15 }
  0x24   :  { %12 = sbr.rel (!%p10_p5) target bundleno = 2 (0x2), region = 68 }

// kernel: forward.27
= control target key start
LH: loop header
LB: loop body
LE: loop exit
PB: predicated region body
PF: predicated region fallthrough
CT: control target
= control target key end

     0   :  { %s1136_s18 = smov 0   ;;  %s1138_s19 = smov 0   ;;  %s1284_s0 = inlined_call_operand.vmem [shape: bf16[2,1,16,512], index: 0, kind: input, shape index: {}]   ;;  %s1285_s1 = inlined_call_operand.vmem [shape: bf16[1,512,128], index: 1, kind: input, shape index: {}]   ;;  %s1286_s2 = inlined_call_operand.vmem [shape: f32[1,128], index: 2, kind: input, shape index: {}]   ;;  %s1287_s3 = inlined_call_operand.vmem [shape: f32[2,1,16,128], index: 3, kind: output, shape index: {0}]   ;;  %s1288_s4 = inlined_call_operand.vmem [shape: f32[2,1,128], index: 4, kind: output, shape index: {1}]   ;;  %s1289_s5 = inlined_call_operand.vmem [shape: f32[2,1,128], index: 5, kind: output, shape index: {2}]  }
   0x1   :  { %s1140_s20 = smov 0  }
   0x2 LB: > { %s35_s21 = sadd.s32 1, %s1099_s19  ;;  %p928_p0 = scmp.ge.s32.totalorder %s1103_s20, 1  ;;  %s1103_s20 = sphi %s1140_s20, %s16_s20   ;;  %s1099_s19 = sphi %s1138_s19, %s1291_s19   ;;  %s1095_s18 = sphi %s1136_s18, %s1290_s18  }
   0x3   : > { %p37_p1 = scmp.ge.s32.totalorder %s35_s21, 2  ;;  %p239_p2 = scmp.lt.s32.totalorder %s1103_s20, 3 }
   0x5   : > { %s1293_s21 = smov (%p37_p1, %s35_s21), 0  ;;  %p240_p3 = pnand %p928_p0, %p239_p2 }
   0x6   : > { %p296_p4 = scmp.lt.s32.totalorder (!%p240_p3), %s1095_s18, 1 }
   0x7   : > { %243 = sbr.rel (%p240_p3) target bundleno = 278 (0x116), region = 32 }
   0xc   : > { %v1043_v0 = vld [vmem:[%s1285_s1 + $0x78] sm:$0xff]   ;;  %v1047_v4 = vld [vmem:[%s1285_s1 + $0x70] sm:$0xff]   ;;  %v1051_v8 = vld [vmem:[%s1285_s1 + $0x68] sm:$0xff]   ;;  %s1295_s18 = smov (!%p296_p4, %s1095_s18), 1  ;;  %v1105_v36 = vmov 0.0  }
   0xd   : > { %v1044_v1 = vld [vmem:[%s1285_s1 + $0xf8] sm:$0xff]   ;;  %974 = vmatprep.subr.bf16.mxu0 %v1043_v0  ;;  %v1048_v5 = vld [vmem:[%s1285_s1 + $0xf0] sm:$0xff]   ;;  %v1052_v9 = vld [vmem:[%s1285_s1 + $0xe8] sm:$0xff]   ;;  %s972_s9 = sshll.u32 %s1295_s18, 5  ;;  %342 = vst [vmem:[#allocation2] sm:$0x1] %v1105_v36  ;;  %s331_s10 = scalar_lea.vmem %s1288_s4, %s1295_s18 }
   0xe   : > { %v1045_v2 = vld [vmem:[%s1285_s1 + $0x38] sm:$0xff]   ;;  %996 = vmatprep.subr.bf16.mxu1 %v1044_v1  ;;  %v1049_v6 = vld [vmem:[%s1285_s1 + $0x30] sm:$0xff]   ;;  %v1053_v10 = vld [vmem:[%s1285_s1 + $0x28] sm:$0xff]   ;;  %s308_s22 = scalar_lea.vmem %s1284_s0, %s972_s9  ;;  %343 = vst [vmem:[#allocation3] sm:$0x1] %v1105_v36  ;;  %s973_s29 = sshll.u32 %s1295_s18, 4 }
   0xf   : > { %v1046_v3 = vld [vmem:[%s1285_s1 + $0xb8] sm:$0xff]   ;;  %975 = vmatpush3.bf16.msra.mxu0 %v1045_v2  ;;  %v1050_v7 = vld [vmem:[%s1285_s1 + $0xb0] sm:$0xff]   ;;  %v1054_v11 = vld [vmem:[%s1285_s1 + $0xa8] sm:$0xff]   ;;  %s327_s7 = scalar_lea.vmem %s1287_s3, %s973_s29  ;;  %s334_s13 = scalar_lea.vmem %s1289_s5, %s1295_s18 }
  0x10   : > { %997 = vmatpush3.bf16.msra.mxu1 %v1046_v3  ;;  %976 = vmatprep.subr.bf16.mxu0 %v1047_v4  ;;  %v1055_v12 = vld [vmem:[%s1285_s1 + $0x60] sm:$0xff]   ;;  %v1059_v16 = vld [vmem:[%s1285_s1 + $0x58] sm:$0xff]   ;;  %v1063_v20 = vld [vmem:[%s1285_s1 + $0x50] sm:$0xff]  }
  0x11   : > { %998 = vmatprep.subr.bf16.mxu1 %v1048_v5  ;;  %v1056_v13 = vld [vmem:[%s1285_s1 + $0xe0] sm:$0xff]   ;;  %v1060_v17 = vld [vmem:[%s1285_s1 + $0xd8] sm:$0xff]   ;;  %v1064_v21 = vld [vmem:[%s1285_s1 + $0xd0] sm:$0xff]  }
  0x12   : > { %v1057_v14 = vld [vmem:[%s1285_s1 + $0x20] sm:$0xff]   ;;  %v1061_v18 = vld [vmem:[%s1285_s1 + $0x18] sm:$0xff]   ;;  %v1065_v22 = vld [vmem:[%s1285_s1 + $0x10] sm:$0xff]  }
  0x13   : > { %977 = vmatpush3.bf16.msra.mxu0 %v1049_v6  ;;  %v1058_v15 = vld [vmem:[%s1285_s1 + $0xa0] sm:$0xff]   ;;  %v1062_v19 = vld [vmem:[%s1285_s1 + $0x98] sm:$0xff]   ;;  %v1066_v23 = vld [vmem:[%s1285_s1 + $0x90] sm:$0xff]  }
  0x14   : > { %999 = vmatpush3.bf16.msra.mxu1 %v1050_v7  ;;  %978 = vmatprep.subr.bf16.mxu0 %v1051_v8  ;;  %v1067_v24 = vld [vmem:[%s1285_s1 + $0x48] sm:$0xff]   ;;  %v1071_v28 = vld [vmem:[%s1285_s1 + $0x40] sm:$0xff]  }
  0x15   : > { %1000 = vmatprep.subr.bf16.mxu1 %v1052_v9  ;;  %v1068_v25 = vld [vmem:[%s1285_s1 + $0xc8] sm:$0xff]   ;;  %v1072_v29 = vld [vmem:[%s1285_s1 + $0xc0] sm:$0xff]  }
  0x16   : > { %v1069_v26 = vld [vmem:[%s1285_s1 + $0x8] sm:$0xff]   ;;  %v1073_v30 = vld [vmem:[%s1285_s1] sm:$0xff]  }
  0x17   : > { %979 = vmatpush3.bf16.msra.mxu0 %v1053_v10  ;;  %v1070_v27 = vld [vmem:[%s1285_s1 + $0x88] sm:$0xff]   ;;  %v1074_v31 = vld [vmem:[%s1285_s1 + $0x80] sm:$0xff]  }
  0x18   : > { %1001 = vmatpush3.bf16.msra.mxu1 %v1054_v11  ;;  %980 = vmatprep.subr.bf16.mxu0 %v1055_v12  ;;  %v1075_v32 = vld [vmem:[%s308_s22] ss:$16 sps:$4 sm:$0xff]   ;;  %v1077_v33 = vld [vmem:[%s308_s22 + $0x4] ss:$16 sps:$4 sm:$0xff]   ;;  %v1078_v34 = vld [vmem:[%s308_s22 + $0x8] ss:$16 sps:$4 sm:$0xff]  }
  0x19   : > { %1002 = vmatprep.subr.bf16.mxu1 %v1056_v13  ;;  %v1080_v35 = vld [vmem:[%s308_s22 + $0xc] ss:$16 sps:$4 sm:$0xff]   ;;  %663 = vmatprep.mubr.bf16.mxu0 %v1077_v33  ;;  %v933_v39 = vld [vmem:[%s1286_s2] ss:$0 sm:$0xff]  ;;  %v723_v6 = vld [vmem:[#allocation3] sm:$0x1] }
  0x1a   : > { %704 = vmatprep.mubr.bf16.mxu1 %v1080_v35  ;;  %v713_v3 = vld [vmem:[#allocation2] sm:$0x1] }
  0x1b   : > { %981 = vmatpush3.bf16.msra.mxu0 %v1057_v14 }
  0x1c   : > { %1003 = vmatpush3.bf16.msra.mxu1 %v1058_v15  ;;  %982 = vmatprep.subr.bf16.mxu0 %v1059_v16 }
  0x1d   : > { %1004 = vmatprep.subr.bf16.mxu1 %v1060_v17 }
  0x1f   : > { %983 = vmatpush3.bf16.msra.mxu0 %v1061_v18 }
  0x20   : > { %1005 = vmatpush3.bf16.msra.mxu1 %v1062_v19  ;;  %984 = vmatprep.subr.bf16.mxu0 %v1063_v20 }
  0x21   : > { %1006 = vmatprep.subr.bf16.mxu1 %v1064_v21 }
  0x23   : > { %985 = vmatpush3.bf16.msra.mxu0 %v1065_v22 }
  0x24   : > { %1007 = vmatpush3.bf16.msra.mxu1 %v1066_v23  ;;  %986 = vmatprep.subr.bf16.mxu0 %v1067_v24 }
  0x25   : > { %1008 = vmatprep.subr.bf16.mxu1 %v1068_v25 }
  0x27   : > { %987 = vmatpush3.bf16.msra.mxu0 %v1069_v26 }
  0x28   : > { %1009 = vmatpush3.bf16.msra.mxu1 %v1070_v27  ;;  %988 = vmatprep.subr.bf16.mxu0 %v1071_v28 }
  0x29   : > { %1010 = vmatprep.subr.bf16.mxu1 %v1072_v29 }
  0x2b   : > { %989 = vmatpush3.bf16.msra.mxu0 %v1073_v30 }
  0x2c   : > { %1011 = vmatpush3.bf16.msra.mxu1 %v1074_v31 }
  0x2e   : > { %664 = vmatmul.mubr.bf16.vlgmr.msra.gmra.mxu0 %v1075_v32 }
  0x2f   : > { %705 = vmatmul.mubr.bf16.vlgmr.msra.gmra.mxu1 %v1078_v34 }
  0xee   : > { %v990_v37 = vpop.f32.mrf.mxu0 }
  0xef   : > { %v1012_v38 = vpop.f32.mrf.mxu1 }
  0xf0   : > { %v991_v40 = vpop.f32.mrf.mxu0 }
  0xf1   : > { %v992_v41 = vadd.f32 %v991_v40, %v990_v37  ;;  %v1013_v42 = vpop.f32.mrf.mxu1 }
  0xf2   : > { %v993_v43 = vpop.f32.mrf.mxu0  ;;  %v1014_v45 = vadd.f32 %v1013_v42, %v1012_v38 }
  0xf3   : > { %v666_v44 = vadd.f32 %v992_v41, %v933_v39  ;;  %v1015_v46 = vpop.f32.mrf.mxu1 }
  0xf4   : > { %v994_v47 = vpop.f32.mrf.mxu0 }
  0xf5   : > { %v707_v48 = vadd.f32 %v1014_v45, %v666_v44  ;;  %v995_v49 = vadd.f32 %v994_v47, %v993_v43  ;;  %v1016_v50 = vpop.f32.mrf.mxu1 }
  0xf6   : > { %v1017_v52 = vadd.f32 %v1016_v50, %v1015_v46 }
  0xf7   : > { %735 = vst [vmem:[%s327_s7] sm:$0xff] %v707_v48  ;;  %v669_v51 = vadd.f32 %v995_v49, %v933_v39  ;;  %v724_v54 = vmul.f32 %v707_v48, %v707_v48 }
  0xf9   : > { %v710_v53 = vadd.f32 %v1017_v52, %v669_v51 }
  0xfb   : > { %v714_v55 = vadd.f32 %v710_v53, %v707_v48  ;;  %v725_v56 = vmul.f32 %v710_v53, %v710_v53  ;;  %736 = vst [vmem:[%s327_s7 + $0x8] sm:$0xff] %v710_v53 }
  0xfd   : > { %v715_v57 = vrot.slane %v714_v55, 4  ;;  %v726_v58 = vadd.f32 %v725_v56, %v724_v54 }
  0xff   : > { %v716_v59 = vadd.f32 %v715_v57, %v714_v55  ;;  %v727_v60 = vrot.slane %v726_v58, 4 }
 0x101   : > { %v717_v61 = vrot.slane %v716_v59, 2  ;;  %v728_v62 = vadd.f32 %v727_v60, %v726_v58 }
 0x103   : > { %v718_v63 = vadd.f32 %v717_v61, %v716_v59  ;;  %v729_v0 = vrot.slane %v728_v62, 2 }
 0x105   : > { %v719_v1 = vrot.slane %v718_v63, 1  ;;  %v730_v2 = vadd.f32 %v729_v0, %v728_v62 }
 0x107   : > { %v720_v4 = vadd.f32 %v719_v1, %v718_v63  ;;  %v731_v5 = vrot.slane %v730_v2, 1 }
 0x109   : > { %v721_v7 = vadd.f32 %v720_v4, %v713_v3  ;;  %v732_v8 = vadd.f32 %v731_v5, %v730_v2 }
 0x10b   : > { %722 = vst [vmem:[#allocation2] sm:$0x1] %v721_v7  ;;  %v733_v9 = vadd.f32 %v732_v8, %v723_v6 }
 0x10d   : > { %734 = vst [vmem:[#allocation3] sm:$0x1] %v733_v9 }
 0x112   : > { %v739_v10 = vld [vmem:[#allocation2] sm:$0x1] }
 0x113   : > { %740 = vst [vmem:[%s331_s10] sm:$0x1] %v739_v10 }
 0x114   : > { %v741_v11 = vld [vmem:[#allocation3] sm:$0x1] }
 0x115   : > { %742 = vst [vmem:[%s334_s13] sm:$0x1] %v741_v11 }
 0x116 PF: > { %s16_s20 = sadd.s32 1, %s1103_s20   ;;  %s1290_s18 = smov %s1099_s19 }
 0x117   : > { %p13_p5 = scmp.ge.s32.totalorder %s16_s20, 4   ;;  %s1291_s19 = smov %s1293_s21 }
 0x119   :  { %15 = sbr.rel (!%p13_p5) target bundleno = 2 (0x2), region = 97 }

// kernel: forward.28
= control target key start
LH: loop header
LB: loop body
LE: loop exit
PB: predicated region body
PF: predicated region fallthrough
CT: control target
= control target key end

     0   :  { %s527_s12 = smov 0   ;;  %s529_s13 = smov 0   ;;  %s566_s0 = inlined_call_operand.vmem [shape: f32[2,1,16,128], index: 0, kind: input, shape index: {}]   ;;  %s567_s1 = inlined_call_operand.vmem [shape: f32[2,1,128], index: 1, kind: input, shape index: {}]   ;;  %s568_s2 = inlined_call_operand.vmem [shape: f32[2,1,128], index: 2, kind: input, shape index: {}]   ;;  %s569_s3 = inlined_call_operand.vmem [shape: bf16[2,1,16,128], index: 3, kind: output, shape index: {}]  }
   0x1   :  { %s531_s14 = smov 0  }
   0x2 LB: > { %s32_s15 = sadd.s32 1, %s501_s13  ;;  %p439_p0 = scmp.ge.s32.totalorder %s505_s14, 1  ;;  %s505_s14 = sphi %s531_s14, %s13_s14   ;;  %s501_s13 = sphi %s529_s13, %s571_s13   ;;  %s497_s12 = sphi %s527_s12, %s570_s12  }
   0x3   : > { %p34_p1 = scmp.ge.s32.totalorder %s32_s15, 2  ;;  %p189_p2 = scmp.lt.s32.totalorder %s505_s14, 3 }
   0x5   : > { %s573_s15 = smov (%p34_p1, %s32_s15), 0  ;;  %p190_p3 = pnand %p439_p0, %p189_p2 }
   0x6   : > { %p236_p4 = scmp.lt.s32.totalorder (!%p190_p3), %s497_s12, 1 }
   0x7   : > { %193 = sbr.rel (%p190_p3) target bundleno = 26 (0x1a), region = 32 }
   0xc   : > { %s575_s12 = smov (!%p236_p4, %s497_s12), 1 }
   0xd   : > { %s450_s16 = sshll.u32 %s575_s12, 4  ;;  %s251_s19 = scalar_lea.vmem %s567_s1, %s575_s12 }
   0xe   : > { %s247_s22 = scalar_lea.vmem %s566_s0, %s450_s16  ;;  %s254_s25 = scalar_lea.vmem %s568_s2, %s575_s12  ;;  %v444_v0 = vld [vmem:[%s251_s19] ss:$0 sm:$0xff] }
   0xf   : > { %v269_v1 = vld [vmem:[%s247_s22] sm:$0xff]  ;;  %v270_v2 = vld [vmem:[%s247_s22 + $0x8] sm:$0xff]  ;;  %s451_s26 = sshll.u32 %s575_s12, 3 }
  0x10   : > { %v445_v3 = vld [vmem:[%s254_s25] ss:$0 sm:$0xff]  ;;  %v278_v4 = vsub.f32 %v269_v1, %v444_v0  ;;  %v279_v5 = vsub.f32 %v270_v2, %v444_v0  ;;  %s267_s29 = scalar_lea.vmem %s569_s3, %s451_s26 }
  0x12   : > { %v287_v6 = vmul.f32 %v445_v3, %v278_v4  ;;  %v288_v7 = vmul.f32 %v445_v3, %v279_v5 }
  0x14   : > { %vm289_vm0 = vcmp.gt.f32.partialorder %v287_v6, 0.0  ;;  %vm290_vm1 = vcmp.gt.f32.partialorder %v288_v7, 0.0  ;;  %v291_v8 = vmul.f32 0.2, %v287_v6  ;;  %v292_v9 = vmul.f32 0.2, %v288_v7 }
  0x16   : > { %v293_v10 = vsel %vm289_vm0, %v287_v6, %v291_v8  ;;  %v294_v11 = vsel %vm290_vm1, %v288_v7, %v292_v9 }
  0x17   : > { %v457_v12 = vpack.c.bf16 %v294_v11, %v293_v10 }
  0x19   : > { %458 = vst [vmem:[%s267_s29] sm:$0xff] %v457_v12  }
  0x1a PF: > { %s13_s14 = sadd.s32 1, %s505_s14   ;;  %s570_s12 = smov %s501_s13 }
  0x1b   : > { %p10_p5 = scmp.ge.s32.totalorder %s13_s14, 4   ;;  %s571_s13 = smov %s573_s15 }
  0x1d   :  { %12 = sbr.rel (!%p10_p5) target bundleno = 2 (0x2), region = 68 }

// kernel: forward.30
= control target key start
LH: loop header
LB: loop body
LE: loop exit
PB: predicated region body
PF: predicated region fallthrough
CT: control target
= control target key end

     0   :  { %s460_s12 = smov 0   ;;  %s462_s13 = smov 0   ;;  %s496_s0 = inlined_call_operand.vmem [shape: f32[2,1,4,128], index: 0, kind: input, shape index: {}]   ;;  %s497_s1 = inlined_call_operand.vmem [shape: f32[2,1,128], index: 1, kind: input, shape index: {}]   ;;  %s498_s2 = inlined_call_operand.vmem [shape: f32[2,1,128], index: 2, kind: input, shape index: {}]   ;;  %s499_s3 = inlined_call_operand.vmem [shape: bf16[2,1,4,128], index: 3, kind: output, shape index: {}]  }
   0x1   :  { %s464_s14 = smov 0  }
   0x2 LB: > { %s32_s15 = sadd.s32 1, %s434_s13  ;;  %p385_p0 = scmp.ge.s32.totalorder %s438_s14, 1  ;;  %s438_s14 = sphi %s464_s14, %s13_s14   ;;  %s434_s13 = sphi %s462_s13, %s501_s13   ;;  %s430_s12 = sphi %s460_s12, %s500_s12  }
   0x3   : > { %p34_p1 = scmp.ge.s32.totalorder %s32_s15, 2  ;;  %p185_p2 = scmp.lt.s32.totalorder %s438_s14, 3 }
   0x5   : > { %s503_s15 = smov (%p34_p1, %s32_s15), 0  ;;  %p186_p3 = pnand %p385_p0, %p185_p2 }
   0x6   : > { %p225_p4 = scmp.lt.s32.totalorder (!%p186_p3), %s430_s12, 1 }
   0x7   : > { %189 = sbr.rel (%p186_p3) target bundleno = 26 (0x1a), region = 32 }
   0xc   : > { %s505_s12 = smov (!%p225_p4, %s430_s12), 1 }
   0xd   : > { %s386_s16 = sshll.u32 %s505_s12, 2  ;;  %s237_s19 = scalar_lea.vmem %s497_s1, %s505_s12 }
   0xe   : > { %s234_s22 = scalar_lea.vmem %s496_s0, %s386_s16  ;;  %s240_s25 = scalar_lea.vmem %s498_s2, %s505_s12  ;;  %v388_v0 = vld [vmem:[%s237_s19] ss:$0 sm:$0xff] }
   0xf   : > { %v251_v1 = vld [vmem:[%s234_s22] sm:$0xf]  ;;  %s387_s26 = sshll.u32 %s505_s12, 1 }
  0x10   : > { %v389_v2 = vld [vmem:[%s240_s25] ss:$0 sm:$0xff]  ;;  %v259_v3 = vsub.f32 %v251_v1, %v388_v0  ;;  %s250_s29 = scalar_lea.vmem %s499_s3, %s387_s26 }
  0x12   : > { %v267_v4 = vmul.f32 %v389_v2, %v259_v3 }
  0x14   : > { %vm268_vm0 = vcmp.gt.f32.partialorder %v267_v4, 0.0  ;;  %v269_v5 = vmul.f32 0.2, %v267_v4 }
  0x16   : > { %v270_v6 = vsel %vm268_vm0, %v267_v4, %v269_v5 }
  0x17   : > { %v271_v7 = vpack.c.bf16 %v270_v6, %v270_v6 }
  0x19   : > { %272 = vst [vmem:[%s250_s29] sm:$0x3] %v271_v7 }
  0x1a PF: > { %s13_s14 = sadd.s32 1, %s438_s14   ;;  %s500_s12 = smov %s434_s13 }
  0x1b   : > { %p10_p5 = scmp.ge.s32.totalorder %s13_s14, 4   ;;  %s501_s13 = smov %s503_s15 }
  0x1d   :  { %12 = sbr.rel (!%p10_p5) target bundleno = 2 (0x2), region = 68 }

// kernel: forward.32
= control target key start
LH: loop header
LB: loop body
LE: loop exit
PB: predicated region body
PF: predicated region fallthrough
CT: control target
= control target key end

     0   :  { %s435_s12 = smov 0   ;;  %s437_s13 = smov 0   ;;  %s471_s0 = inlined_call_operand.vmem [shape: f32[2,1,1,128], index: 0, kind: input, shape index: {}]   ;;  %s472_s1 = inlined_call_operand.vmem [shape: f32[2,1,128], index: 1, kind: input, shape index: {}]   ;;  %s473_s2 = inlined_call_operand.vmem [shape: f32[2,1,128], index: 2, kind: input, shape index: {}]   ;;  %s474_s3 = inlined_call_operand.vmem [shape: bf16[2,1,1,128], index: 3, kind: output, shape index: {}]  }
   0x1   :  { %s439_s14 = smov 0  }
   0x2 LB: > { %s32_s15 = sadd.s32 1, %s409_s13  ;;  %p364_p0 = scmp.ge.s32.totalorder %s413_s14, 1  ;;  %s413_s14 = sphi %s439_s14, %s13_s14   ;;  %s409_s13 = sphi %s437_s13, %s476_s13   ;;  %s405_s12 = sphi %s435_s12, %s475_s12  }
   0x3   : > { %p34_p1 = scmp.ge.s32.totalorder %s32_s15, 2  ;;  %p184_p2 = scmp.lt.s32.totalorder %s413_s14, 3 }
   0x5   : > { %s478_s15 = smov (%p34_p1, %s32_s15), 0  ;;  %p185_p3 = pnand %p364_p0, %p184_p2 }
   0x6   : > { %p222_p4 = scmp.lt.s32.totalorder (!%p185_p3), %s405_s12, 1 }
   0x7   : > { %188 = sbr.rel (%p185_p3) target bundleno = 27 (0x1b), region = 32 }
   0xc   : > { %s480_s12 = smov (!%p222_p4, %s405_s12), 1  ;;  %vm255_vm0 = vcmask 1040384   ;;  %vm256_vm1 = vsmask.f32 256 }
   0xd   : > { %s230_s18 = scalar_lea.vmem %s471_s0, %s480_s12  ;;  %s233_s21 = scalar_lea.vmem %s472_s1, %s480_s12  ;;  %vm257_vm3 = vmand %vm255_vm0, %vm256_vm1 }
   0xe   : > { %s236_s24 = scalar_lea.vmem %s473_s2, %s480_s12  ;;  %v246_v0 = vld [vmem:[%s230_s18] sm:$0x1]  ;;  %s245_s27 = scalar_lea.vmem %s474_s3, %s480_s12 }
   0xf   : > { %v247_v1 = vld [vmem:[%s233_s21] sm:$0x1] }
  0x10   : > { %v248_v2 = vsub.f32 %v246_v0, %v247_v1  ;;  %v249_v3 = vld [vmem:[%s236_s24] sm:$0x1] }
  0x11   : > { %v258_v7 = vld [vmem:[%s245_s27] sm:$0x1] }
  0x12   : > { %v250_v4 = vmul.f32 %v249_v3, %v248_v2 }
  0x14   : > { %vm251_vm2 = vcmp.gt.f32.partialorder %v250_v4, 0.0  ;;  %v252_v5 = vmul.f32 0.2, %v250_v4 }
  0x16   : > { %v253_v6 = vsel %vm251_vm2, %v250_v4, %v252_v5 }
  0x17   : > { %v254_v8 = vpack.c.bf16 %v253_v6, %v253_v6 }
  0x19   : > { %v259_v9 = vsel %vm257_vm3, %v254_v8, %v258_v7 }
  0x1a   : > { %260 = vst [vmem:[%s245_s27] sm:$0x1] %v259_v9 }
  0x1b PF: > { %s13_s14 = sadd.s32 1, %s413_s14   ;;  %s475_s12 = smov %s409_s13 }
  0x1c   : > { %p10_p5 = scmp.ge.s32.totalorder %s13_s14, 4   ;;  %s476_s13 = smov %s478_s15 }
  0x1e   :  { %12 = sbr.rel (!%p10_p5) target bundleno = 2 (0x2), region = 68 }

// kernel: forward.34
= control target key start
LH: loop header
LB: loop body
LE: loop exit
PB: predicated region body
PF: predicated region fallthrough
CT: control target
= control target key end

     0   :  { %s484_s12 = smov 0   ;;  %s486_s13 = smov 0   ;;  %s541_s0 = inlined_call_operand.vmem [shape: f32[2,4,1,128], index: 0, kind: input, shape index: {}]   ;;  %s542_s1 = inlined_call_operand.vmem [shape: f32[2,1,128], index: 1, kind: input, shape index: {}]   ;;  %s543_s2 = inlined_call_operand.vmem [shape: f32[2,1,128], index: 2, kind: input, shape index: {}]   ;;  %s544_s3 = inlined_call_operand.vmem [shape: bf16[2,4,1,128], index: 3, kind: output, shape index: {}]  }
   0x1   :  { %s488_s14 = smov 0   ;;  %s490_s15 = smov 0  }
   0x2   :  { %s492_s16 = smov 0  }
   0x3 LB: > { %s28_s17 = sadd.s32 1, %s454_s14  ;;  %s32_s18 = sadd.s32 1, %s458_s15  ;;  %s462_s16 = sphi %s492_s16, %s13_s16   ;;  %s458_s15 = sphi %s490_s15, %s548_s15   ;;  %s454_s14 = sphi %s488_s14, %s547_s14   ;;  %s450_s13 = sphi %s486_s13, %s546_s13   ;;  %s446_s12 = sphi %s484_s12, %s545_s12  }
   0x4   : > { %p30_p0 = scmp.ge.s32.totalorder %s28_s17, 4  ;;  %p379_p1 = scmp.ge.s32.totalorder %s462_s16, 1 }
   0x5   : > { %p185_p2 = scmp.lt.s32.totalorder %s462_s16, 9 }
   0x6   : > { %s550_s17 = smov (%p30_p0, %s28_s17), 0  ;;  %s552_s18 = smov (!%p30_p0, %s32_s18), %s458_s15 }
   0x7   : > { %p186_p3 = pnand %p379_p1, %p185_p2  ;;  %p34_p4 = scmp.ge.s32.totalorder %s552_s18, 2 }
   0x8   : > { %p225_p5 = scmp.lt.s32.totalorder (!%p186_p3), %s450_s13, 1  ;;  %p227_p6 = scmp.lt.s32.totalorder (!%p186_p3), %s446_s12, 3 }
   0x9   : > { %s554_s18 = smov (%p34_p4, %s552_s18), 0  ;;  %189 = sbr.rel (%p186_p3) target bundleno = 29 (0x1d), region = 32 }
   0xe   : > { %s556_s13 = smov (!%p225_p5, %s450_s13), 1  ;;  %s558_s12 = smov (!%p227_p6, %s446_s12), 3  ;;  %vm258_vm0 = vcmask 1040384   ;;  %vm259_vm1 = vsmask.f32 256 }
   0xf   : > { %s380_s19 = sshll.u32 %s556_s13, 2  ;;  %s237_s22 = scalar_lea.vmem %s542_s1, %s556_s13  ;;  %vm260_vm2 = vmand %vm258_vm0, %vm259_vm1 }
  0x10   : > { %s233_s23 = sadd.s32 %s380_s19, %s558_s12  ;;  %s240_s26 = scalar_lea.vmem %s543_s2, %s556_s13  ;;  %v252_v0 = vld [vmem:[%s237_s22] sm:$0x1] }
  0x11   : > { %s234_s29 = scalar_lea.vmem %s541_s0, %s233_s23  ;;  %v254_v2 = vld [vmem:[%s240_s26] sm:$0x1]  ;;  %s250_s5 = scalar_lea.vmem %s544_s3, %s233_s23 }
  0x12   : > { %v251_v1 = vld [vmem:[%s234_s29] sm:$0x1] }
  0x13   : > { %v253_v3 = vsub.f32 %v251_v1, %v252_v0  ;;  %v261_v6 = vld [vmem:[%s250_s5] sm:$0x1] }
  0x15   : > { %v255_v4 = vmul.f32 %v254_v2, %v253_v3 }
  0x17   : > { %v256_v5 = vmax.f32 %v255_v4, 0.0 }
  0x19   : > { %v257_v7 = vpack.c.bf16 %v256_v5, %v256_v5 }
  0x1b   : > { %v262_v8 = vsel %vm260_vm2, %v257_v7, %v261_v6 }
  0x1c   : > { %263 = vst [vmem:[%s250_s5] sm:$0x1] %v262_v8 }
  0x1d PF: > { %s13_s16 = sadd.s32 1, %s462_s16   ;;  %s545_s12 = smov %s454_s14 }
  0x1e   : > { %p10_p7 = scmp.ge.s32.totalorder %s13_s16, 10   ;;  %s546_s13 = smov %s458_s15 }
  0x1f   : > { %s547_s14 = smov %s550_s17  ;;  %s548_s15 = smov %s554_s18 }
  0x20   :  { %12 = sbr.rel (!%p10_p7) target bundleno = 3 (0x3), region = 68 }

// kernel: forward.31
= control target key start
LH: loop header
LB: loop body
LE: loop exit
PB: predicated region body
PF: predicated region fallthrough
CT: control target
= control target key end

     0   :  { %s1539_s18 = smov 0   ;;  %s1541_s19 = smov 0   ;;  %s1796_s0 = inlined_call_operand.vmem [shape: bf16[2,1,1,1024], index: 0, kind: input, shape index: {}]   ;;  %s1797_s1 = inlined_call_operand.vmem [shape: bf16[1,1024,128], index: 1, kind: input, shape index: {}]   ;;  %s1798_s2 = inlined_call_operand.vmem [shape: f32[1,128], index: 2, kind: input, shape index: {}]   ;;  %s1799_s3 = inlined_call_operand.vmem [shape: f32[2,1,1,128], index: 3, kind: output, shape index: {0}]   ;;  %s1800_s4 = inlined_call_operand.vmem [shape: f32[2,1,128], index: 4, kind: output, shape index: {1}]   ;;  %s1801_s5 = inlined_call_operand.vmem [shape: f32[2,1,128], index: 5, kind: output, shape index: {2}]  }
   0x1   :  { %s1543_s20 = smov 0  }
   0x2 LB: > { %s35_s21 = sadd.s32 1, %s1501_s19  ;;  %p1236_p0 = scmp.ge.s32.totalorder %s1505_s20, 1  ;;  %s1505_s20 = sphi %s1543_s20, %s16_s20   ;;  %s1501_s19 = sphi %s1541_s19, %s1803_s19   ;;  %s1497_s18 = sphi %s1539_s18, %s1802_s18  }
   0x3   : > { %p37_p1 = scmp.ge.s32.totalorder %s35_s21, 2  ;;  %p236_p2 = scmp.lt.s32.totalorder %s1505_s20, 3 }
   0x5   : > { %s1805_s21 = smov (%p37_p1, %s35_s21), 0  ;;  %p237_p3 = pnand %p1236_p0, %p236_p2 }
   0x6   : > { %p286_p4 = scmp.lt.s32.totalorder (!%p237_p3), %s1497_s18, 1 }
   0x7   : > { %240 = sbr.rel (%p237_p3) target bundleno = 292 (0x124), region = 32 }
   0xc   : > { %v1418_v0 = vld [vmem:[%s1797_s1 + $0x78] sm:$0xff]   ;;  %v1422_v4 = vld [vmem:[%s1797_s1 + $0x70] sm:$0xff]   ;;  %v1426_v8 = vld [vmem:[%s1797_s1 + $0x68] sm:$0xff]   ;;  %s1807_s18 = smov (!%p286_p4, %s1497_s18), 1  ;;  %v462_v28 = vlaneseq  ;;  %v1507_v36 = vmov 1966171168  }
   0xd   : > { %v1419_v1 = vld [vmem:[%s1797_s1 + $0xf8] sm:$0xff]   ;;  %1304 = vmatprep.subr.bf16.mxu0 %v1418_v0  ;;  %v1423_v5 = vld [vmem:[%s1797_s1 + $0xf0] sm:$0xff]   ;;  %v1427_v9 = vld [vmem:[%s1797_s1 + $0xe8] sm:$0xff]   ;;  %s1237_s9 = sshll.u32 %s1807_s18, 3  ;;  %v460_v37 = vunpack.c.l.s4 %v1507_v36  ;;  %s311_s7 = scalar_lea.vmem %s1799_s3, %s1807_s18 }
   0xe   : > { %v1420_v2 = vld [vmem:[%s1797_s1 + $0x38] sm:$0xff]   ;;  %1326 = vmatprep.subr.bf16.mxu1 %v1419_v1  ;;  %v1424_v6 = vld [vmem:[%s1797_s1 + $0x30] sm:$0xff]   ;;  %v1428_v10 = vld [vmem:[%s1797_s1 + $0x28] sm:$0xff]   ;;  %s297_s22 = scalar_lea.vmem %s1796_s0, %s1237_s9  ;;  %v463_v33 = vshrl.u32 %v462_v28, 7  ;;  %s314_s10 = scalar_lea.vmem %s1800_s4, %s1807_s18 }
   0xf   : > { %v1421_v3 = vld [vmem:[%s1797_s1 + $0xb8] sm:$0xff]   ;;  %1305 = vmatpush3.bf16.msra.mxu0 %v1420_v2  ;;  %v1425_v7 = vld [vmem:[%s1797_s1 + $0xb0] sm:$0xff]   ;;  %v1429_v11 = vld [vmem:[%s1797_s1 + $0xa8] sm:$0xff]   ;;  %v461_v40 = vunpack.c.0.s8 %v460_v37  ;;  %s317_s13 = scalar_lea.vmem %s1801_s5, %s1807_s18 }
  0x10   : > { %1327 = vmatpush3.bf16.msra.mxu1 %v1421_v3  ;;  %1306 = vmatprep.subr.bf16.mxu0 %v1422_v4  ;;  %v1430_v12 = vld [vmem:[%s1797_s1 + $0x60] sm:$0xff]   ;;  %v1434_v16 = vld [vmem:[%s1797_s1 + $0x58] sm:$0xff]   ;;  %v1438_v20 = vld [vmem:[%s1797_s1 + $0x50] sm:$0xff]  }
  0x11   : > { %1328 = vmatprep.subr.bf16.mxu1 %v1423_v5  ;;  %v1431_v13 = vld [vmem:[%s1797_s1 + $0xe0] sm:$0xff]   ;;  %v1435_v17 = vld [vmem:[%s1797_s1 + $0xd8] sm:$0xff]   ;;  %v1439_v21 = vld [vmem:[%s1797_s1 + $0xd0] sm:$0xff]   ;;  %v1669_v41 = vsub.s32 %v461_v40, %v463_v33 }
  0x12   : > { %v1432_v14 = vld [vmem:[%s1797_s1 + $0x20] sm:$0xff]   ;;  %v1436_v18 = vld [vmem:[%s1797_s1 + $0x18] sm:$0xff]   ;;  %v1440_v22 = vld [vmem:[%s1797_s1 + $0x10] sm:$0xff]  }
  0x13   : > { %1307 = vmatpush3.bf16.msra.mxu0 %v1424_v6  ;;  %v1433_v15 = vld [vmem:[%s1797_s1 + $0xa0] sm:$0xff]   ;;  %v1437_v19 = vld [vmem:[%s1797_s1 + $0x98] sm:$0xff]   ;;  %v1441_v23 = vld [vmem:[%s1797_s1 + $0x90] sm:$0xff]  }
  0x14   : > { %1329 = vmatpush3.bf16.msra.mxu1 %v1425_v7  ;;  %1308 = vmatprep.subr.bf16.mxu0 %v1426_v8  ;;  %v1442_v24 = vld [vmem:[%s1797_s1 + $0x48] sm:$0xff]   ;;  %v1446_v29 = vld [vmem:[%s1797_s1 + $0x40] sm:$0xff]   ;;  %v1451_v35 = vld [vmem:[%s1797_s1 + $0x178] sm:$0xff]  }
  0x15   : > { %1330 = vmatprep.subr.bf16.mxu1 %v1427_v9  ;;  %v1443_v25 = vld [vmem:[%s1797_s1 + $0xc8] sm:$0xff]   ;;  %v1447_v30 = vld [vmem:[%s1797_s1 + $0xc0] sm:$0xff]   ;;  %v1452_v38 = vld [vmem:[%s1797_s1 + $0x1f8] sm:$0xff]  }
  0x16   : > { %v1444_v26 = vld [vmem:[%s1797_s1 + $0x8] sm:$0xff]   ;;  %v1448_v31 = vld [vmem:[%s1797_s1] sm:$0xff]   ;;  %v1453_v48 = vld [vmem:[%s1797_s1 + $0x138] sm:$0xff]  }
  0x17   : > { %1309 = vmatpush3.bf16.msra.mxu0 %v1428_v10  ;;  %v1445_v27 = vld [vmem:[%s1797_s1 + $0x88] sm:$0xff]   ;;  %v1449_v32 = vld [vmem:[%s1797_s1 + $0x80] sm:$0xff]   ;;  %v1455_v51 = vld [vmem:[%s1797_s1 + $0x170] sm:$0xff]  }
  0x18   : > { %1331 = vmatpush3.bf16.msra.mxu1 %v1429_v11  ;;  %1310 = vmatprep.subr.bf16.mxu0 %v1430_v12  ;;  %v327_v34 = vld [vmem:[%s297_s22] sm:$0xff]  ;;  %v1454_v53 = vld [vmem:[%s1797_s1 + $0x1b8] sm:$0xff]   ;;  %v1456_v54 = vld [vmem:[%s1797_s1 + $0x1f0] sm:$0xff]  }
  0x19   : > { %1332 = vmatprep.subr.bf16.mxu1 %v1431_v13  ;;  %v458_v39 = vcombine.high %v327_v34, %v327_v34  ;;  %v465_v42 = vrot.slane %v327_v34, %v1669_v41  ;;  %v1457_v56 = vld [vmem:[%s1797_s1 + $0x130] sm:$0xff]   ;;  %v1459_v57 = vld [vmem:[%s1797_s1 + $0x168] sm:$0xff]   ;;  %v1463_v61 = vld [vmem:[%s1797_s1 + $0x160] sm:$0xff]  }
  0x1a   : > { %v1458_v58 = vld [vmem:[%s1797_s1 + $0x1b0] sm:$0xff]   ;;  %v1460_v59 = vld [vmem:[%s1797_s1 + $0x1e8] sm:$0xff]   ;;  %v1464_v63 = vld [vmem:[%s1797_s1 + $0x1e0] sm:$0xff]  }
  0x1b   : > { %1311 = vmatpush3.bf16.msra.mxu0 %v1432_v14  ;;  %v1673_v43 = vrot.slane %v458_v39, %v1669_v41  ;;  %v473_v44 = vcombine.high %v465_v42, %v465_v42  ;;  %v481_v45 = vrot.slane %v465_v42, %v1669_v41  ;;  %v1461_v60 = vld [vmem:[%s1797_s1 + $0x128] sm:$0xff]   ;;  %v1465_v0 = vld [vmem:[%s1797_s1 + $0x120] sm:$0xff]   ;;  %v1467_v1 = vld [vmem:[%s1797_s1 + $0x158] sm:$0xff]  }
  0x1c   : > { %1333 = vmatpush3.bf16.msra.mxu1 %v1433_v15  ;;  %1312 = vmatprep.subr.bf16.mxu0 %v1434_v16  ;;  %v1462_v62 = vld [vmem:[%s1797_s1 + $0x1a8] sm:$0xff]   ;;  %v1466_v2 = vld [vmem:[%s1797_s1 + $0x1a0] sm:$0xff]   ;;  %v1468_v3 = vld [vmem:[%s1797_s1 + $0x1d8] sm:$0xff]  }
  0x1d   : > { %1334 = vmatprep.subr.bf16.mxu1 %v1435_v17  ;;  %v474_v46 = vcombine.high %v1673_v43, %v1673_v43  ;;  %v495_v47 = vrot.slane %v473_v44, %v1669_v41  ;;  %v503_v50 = vcombine.high %v481_v45, %v481_v45  ;;  %v1469_v4 = vld [vmem:[%s1797_s1 + $0x118] sm:$0xff]   ;;  %v1471_v5 = vld [vmem:[%s1797_s1 + $0x150] sm:$0xff]   ;;  %v1475_v9 = vld [vmem:[%s1797_s1 + $0x148] sm:$0xff]   ;;  %v488_v17 = vrot.slane %v1673_v43, %v1669_v41 }
  0x1e   : > { %v1470_v6 = vld [vmem:[%s1797_s1 + $0x198] sm:$0xff]   ;;  %v1472_v7 = vld [vmem:[%s1797_s1 + $0x1d0] sm:$0xff]   ;;  %v1476_v11 = vld [vmem:[%s1797_s1 + $0x1c8] sm:$0xff]  }
  0x1f   : > { %1313 = vmatpush3.bf16.msra.mxu0 %v1436_v18  ;;  %v502_v49 = vrot.slane %v474_v46, %v1669_v41  ;;  %931 = vmatprep.mubr.bf16.mxu0 %v495_v47  ;;  %v505_v52 = vcombine.high %v495_v47, %v495_v47  ;;  %v1473_v8 = vld [vmem:[%s1797_s1 + $0x110] sm:$0xff]   ;;  %v1477_v12 = vld [vmem:[%s1797_s1 + $0x108] sm:$0xff]   ;;  %v1479_v13 = vld [vmem:[%s1797_s1 + $0x140] sm:$0xff]  }
  0x20   : > { %1335 = vmatpush3.bf16.msra.mxu1 %v1437_v19  ;;  %1314 = vmatprep.subr.bf16.mxu0 %v1438_v20  ;;  %v1474_v10 = vld [vmem:[%s1797_s1 + $0x190] sm:$0xff]   ;;  %v1478_v14 = vld [vmem:[%s1797_s1 + $0x188] sm:$0xff]   ;;  %v1480_v15 = vld [vmem:[%s1797_s1 + $0x1c0] sm:$0xff]   ;;  %v504_v19 = vcombine.high %v488_v17, %v488_v17  ;;  %v1508_v20 = vmov 0.0  }
  0x21   : > { %1336 = vmatprep.subr.bf16.mxu1 %v1439_v21  ;;  %v506_v55 = vcombine.high %v502_v49, %v502_v49  ;;  %971 = vmatprep.mubr.bf16.mxu1 %v505_v52  ;;  %v1481_v16 = vld [vmem:[%s1797_s1 + $0x100] sm:$0xff]   ;;  %325 = vst [vmem:[#allocation2] sm:$0x1] %v1508_v20  ;;  %326 = vst [vmem:[#allocation3] sm:$0x1] %v1508_v20 }
  0x22   : > { %v1482_v18 = vld [vmem:[%s1797_s1 + $0x180] sm:$0xff]  }
  0x23   : > { %1315 = vmatpush3.bf16.msra.mxu0 %v1440_v22 }
  0x24   : > { %1337 = vmatpush3.bf16.msra.mxu1 %v1441_v23  ;;  %1316 = vmatprep.subr.bf16.mxu0 %v1442_v24 }
  0x25   : > { %1338 = vmatprep.subr.bf16.mxu1 %v1443_v25 }
  0x27   : > { %1317 = vmatpush3.bf16.msra.mxu0 %v1444_v26 }
  0x28   : > { %1339 = vmatpush3.bf16.msra.mxu1 %v1445_v27  ;;  %1318 = vmatprep.subr.bf16.mxu0 %v1446_v29  ;;  %v1059_v42 = vld [vmem:[#allocation2] sm:$0x1]  ;;  %v1063_v46 = vld [vmem:[#allocation3] sm:$0x1] }
  0x29   : > { %1340 = vmatprep.subr.bf16.mxu1 %v1447_v30  ;;  %v456_v30 = vld [vmem:[%s1798_s2] sm:$0x1] }
  0x2b   : > { %1319 = vmatpush3.bf16.msra.mxu0 %v1448_v31 }
  0x2c   : > { %1341 = vmatpush3.bf16.msra.mxu1 %v1449_v32  ;;  %1348 = vmatprep.subr.bf16.mxu0 %v1451_v35 }
  0x2d   : > { %1370 = vmatprep.subr.bf16.mxu1 %v1452_v38 }
  0x2e   : > { %932 = vmatmul.mubr.bf16.vlgmr.msra.gmra.mxu0 %v481_v45 }
  0x2f   : > { %1349 = vmatpush3.bf16.msra.mxu0 %v1453_v48  ;;  %972 = vmatmul.mubr.bf16.vlgmr.msra.gmra.mxu1 %v503_v50 }
  0x30   : > { %1350 = vmatprep.subr.bf16.mxu0 %v1455_v51  ;;  %1371 = vmatpush3.bf16.msra.mxu1 %v1454_v53 }
  0x31   : > { %1011 = vmatprep.mubr.bf16.mxu0 %v502_v49  ;;  %1372 = vmatprep.subr.bf16.mxu1 %v1456_v54 }
  0x32   : > { %1051 = vmatprep.mubr.bf16.mxu1 %v506_v55 }
  0x33   : > { %1351 = vmatpush3.bf16.msra.mxu0 %v1457_v56 }
  0x34   : > { %1352 = vmatprep.subr.bf16.mxu0 %v1459_v57  ;;  %1373 = vmatpush3.bf16.msra.mxu1 %v1458_v58 }
  0x35   : > { %1374 = vmatprep.subr.bf16.mxu1 %v1460_v59 }
  0x37   : > { %1353 = vmatpush3.bf16.msra.mxu0 %v1461_v60 }
  0x38   : > { %1354 = vmatprep.subr.bf16.mxu0 %v1463_v61  ;;  %1375 = vmatpush3.bf16.msra.mxu1 %v1462_v62 }
  0x39   : > { %1376 = vmatprep.subr.bf16.mxu1 %v1464_v63 }
  0x3b   : > { %1355 = vmatpush3.bf16.msra.mxu0 %v1465_v0 }
  0x3c   : > { %1356 = vmatprep.subr.bf16.mxu0 %v1467_v1  ;;  %1377 = vmatpush3.bf16.msra.mxu1 %v1466_v2 }
  0x3d   : > { %1378 = vmatprep.subr.bf16.mxu1 %v1468_v3 }
  0x3f   : > { %1357 = vmatpush3.bf16.msra.mxu0 %v1469_v4 }
  0x40   : > { %1358 = vmatprep.subr.bf16.mxu0 %v1471_v5  ;;  %1379 = vmatpush3.bf16.msra.mxu1 %v1470_v6 }
  0x41   : > { %1380 = vmatprep.subr.bf16.mxu1 %v1472_v7 }
  0x43   : > { %1359 = vmatpush3.bf16.msra.mxu0 %v1473_v8 }
  0x44   : > { %1360 = vmatprep.subr.bf16.mxu0 %v1475_v9  ;;  %1381 = vmatpush3.bf16.msra.mxu1 %v1474_v10 }
  0x45   : > { %1382 = vmatprep.subr.bf16.mxu1 %v1476_v11 }
  0x47   : > { %1361 = vmatpush3.bf16.msra.mxu0 %v1477_v12 }
  0x48   : > { %1362 = vmatprep.subr.bf16.mxu0 %v1479_v13  ;;  %1383 = vmatpush3.bf16.msra.mxu1 %v1478_v14 }
  0x49   : > { %1384 = vmatprep.subr.bf16.mxu1 %v1480_v15 }
  0x4b   : > { %1363 = vmatpush3.bf16.msra.mxu0 %v1481_v16 }
  0x4c   : > { %1385 = vmatpush3.bf16.msra.mxu1 %v1482_v18 }
  0x4e   : > { %1012 = vmatmul.mubr.bf16.vlgmr.msra.gmra.mxu0 %v488_v17 }
  0x4f   : > { %1052 = vmatmul.mubr.bf16.vlgmr.msra.gmra.mxu1 %v504_v19 }
  0xee   : > { %v1320_v21 = vpop.f32.mrf.mxu0 }
  0xef   : > { %v1342_v22 = vpop.f32.mrf.mxu1 }
  0xf0   : > { %v1321_v23 = vpop.f32.mrf.mxu0 }
  0xf1   : > { %v1343_v24 = vpop.f32.mrf.mxu1  ;;  %v1322_v29 = vadd.f32 %v1321_v23, %v1320_v21 }
  0xf2   : > { %v1323_v25 = vpop.f32.mrf.mxu0  ;;  %v1344_v32 = vadd.f32 %v1343_v24, %v1342_v22 }
  0xf3   : > { %v1345_v26 = vpop.f32.mrf.mxu1  ;;  %v934_v31 = vadd.f32 %v1322_v29, %v456_v30 }
  0xf4   : > { %v1324_v27 = vpop.f32.mrf.mxu0 }
  0xf5   : > { %v1346_v28 = vpop.f32.mrf.mxu1  ;;  %v974_v36 = vadd.f32 %v1344_v32, %v934_v31 }
 0x10e   : > { %v1364_v33 = vpop.f32.mrf.mxu0 }
 0x10f   : > { %v1386_v34 = vpop.f32.mrf.mxu1 }
 0x110   : > { %v1365_v35 = vpop.f32.mrf.mxu0 }
 0x111   : > { %v1366_v37 = vadd.f32 %v1365_v35, %v1364_v33  ;;  %v1387_v38 = vpop.f32.mrf.mxu1 }
 0x112   : > { %v1367_v39 = vpop.f32.mrf.mxu0  ;;  %v1388_v41 = vadd.f32 %v1387_v38, %v1386_v34 }
 0x113   : > { %v1014_v40 = vadd.f32 %v1366_v37, %v974_v36  ;;  %v1389_v43 = vpop.f32.mrf.mxu1 }
 0x114   : > { %v1368_v44 = vpop.f32.mrf.mxu0 }
 0x115   : > { %v1054_v45 = vadd.f32 %v1388_v41, %v1014_v40  ;;  %v1390_v47 = vpop.f32.mrf.mxu1 }
 0x117   : > { %v1061_v48 = vadd.f32 %v1059_v42, %v1054_v45  ;;  %v1064_v49 = vmul.f32 %v1054_v45, %v1054_v45  ;;  %1068 = vst [vmem:[%s311_s7] sm:$0x1] %v1054_v45 }
 0x119   : > { %1062 = vst [vmem:[#allocation2] sm:$0x1] %v1061_v48  ;;  %v1066_v50 = vadd.f32 %v1064_v49, %v1063_v46 }
 0x11b   : > { %1067 = vst [vmem:[#allocation3] sm:$0x1] %v1066_v50 }
 0x120   : > { %v1071_v51 = vld [vmem:[#allocation2] sm:$0x1] }
 0x121   : > { %1072 = vst [vmem:[%s314_s10] sm:$0x1] %v1071_v51 }
 0x122   : > { %v1073_v52 = vld [vmem:[#allocation3] sm:$0x1] }
 0x123   : > { %1074 = vst [vmem:[%s317_s13] sm:$0x1] %v1073_v52 }
 0x124 PF: > { %s16_s20 = sadd.s32 1, %s1505_s20   ;;  %s1802_s18 = smov %s1501_s19 }
 0x125   : > { %p13_p5 = scmp.ge.s32.totalorder %s16_s20, 4   ;;  %s1803_s19 = smov %s1805_s21 }
 0x127   :  { %15 = sbr.rel (!%p13_p5) target bundleno = 2 (0x2), region = 97 }

// kernel: forward.29
= control target key start
LH: loop header
LB: loop body
LE: loop exit
PB: predicated region body
PF: predicated region fallthrough
CT: control target
= control target key end

     0   :  { %s1564_s18 = smov 0   ;;  %s1566_s19 = smov 0   ;;  %s1818_s0 = inlined_call_operand.vmem [shape: bf16[2,1,4,1024], index: 0, kind: input, shape index: {}]   ;;  %s1819_s1 = inlined_call_operand.vmem [shape: bf16[1,1024,128], index: 1, kind: input, shape index: {}]   ;;  %s1820_s2 = inlined_call_operand.vmem [shape: f32[1,128], index: 2, kind: input, shape index: {}]   ;;  %s1821_s3 = inlined_call_operand.vmem [shape: f32[2,1,4,128], index: 3, kind: output, shape index: {0}]   ;;  %s1822_s4 = inlined_call_operand.vmem [shape: f32[2,1,128], index: 4, kind: output, shape index: {1}]   ;;  %s1823_s5 = inlined_call_operand.vmem [shape: f32[2,1,128], index: 5, kind: output, shape index: {2}]  }
   0x1   :  { %s1568_s20 = smov 0  }
   0x2 LB: > { %s35_s21 = sadd.s32 1, %s1526_s19  ;;  %p1256_p0 = scmp.ge.s32.totalorder %s1530_s20, 1  ;;  %s1530_s20 = sphi %s1568_s20, %s16_s20   ;;  %s1526_s19 = sphi %s1566_s19, %s1825_s19   ;;  %s1522_s18 = sphi %s1564_s18, %s1824_s18  }
   0x3   : > { %p37_p1 = scmp.ge.s32.totalorder %s35_s21, 2  ;;  %p237_p2 = scmp.lt.s32.totalorder %s1530_s20, 3 }
   0x5   : > { %s1827_s21 = smov (%p37_p1, %s35_s21), 0  ;;  %p238_p3 = pnand %p1256_p0, %p237_p2 }
   0x6   : > { %p289_p4 = scmp.lt.s32.totalorder (!%p238_p3), %s1522_s18, 1 }
   0x7   : > { %241 = sbr.rel (%p238_p3) target bundleno = 305 (0x131), region = 32 }
   0xc   : > { %v1442_v0 = vld [vmem:[%s1819_s1 + $0x78] sm:$0xff]   ;;  %v1446_v4 = vld [vmem:[%s1819_s1 + $0x70] sm:$0xff]   ;;  %v1450_v8 = vld [vmem:[%s1819_s1 + $0x68] sm:$0xff]   ;;  %s1829_s18 = smov (!%p289_p4, %s1522_s18), 1  ;;  %v475_v30 = vlaneseq  ;;  %v1532_v35 = vmov 1983009808  }
   0xd   : > { %v1443_v1 = vld [vmem:[%s1819_s1 + $0xf8] sm:$0xff]   ;;  %1328 = vmatprep.subr.bf16.mxu0 %v1442_v0  ;;  %v1447_v5 = vld [vmem:[%s1819_s1 + $0xf0] sm:$0xff]   ;;  %v1451_v9 = vld [vmem:[%s1819_s1 + $0xe8] sm:$0xff]   ;;  %s1327_s9 = sshll.u32 %s1829_s18, 4  ;;  %v473_v36 = vunpack.c.l.s4 %v1532_v35  ;;  %s1259_s30 = sshll.u32 %s1829_s18, 2  ;;  %vm1058_vm0 = vcmask 1043456  }
   0xe   : > { %v1444_v2 = vld [vmem:[%s1819_s1 + $0x38] sm:$0xff]   ;;  %1350 = vmatprep.subr.bf16.mxu1 %v1443_v1  ;;  %v1448_v6 = vld [vmem:[%s1819_s1 + $0x30] sm:$0xff]   ;;  %v1452_v10 = vld [vmem:[%s1819_s1 + $0x28] sm:$0xff]   ;;  %s301_s22 = scalar_lea.vmem %s1818_s0, %s1327_s9  ;;  %v476_v37 = vshrl.u32 %v475_v30, 7  ;;  %s316_s8 = scalar_lea.vmem %s1821_s3, %s1259_s30 }
   0xf   : > { %v1445_v3 = vld [vmem:[%s1819_s1 + $0xb8] sm:$0xff]   ;;  %1329 = vmatpush3.bf16.msra.mxu0 %v1444_v2  ;;  %v1449_v7 = vld [vmem:[%s1819_s1 + $0xb0] sm:$0xff]   ;;  %v1453_v11 = vld [vmem:[%s1819_s1 + $0xa8] sm:$0xff]   ;;  %v474_v40 = vunpack.c.0.s8 %v473_v36  ;;  %s319_s11 = scalar_lea.vmem %s1822_s4, %s1829_s18  ;;  %s322_s14 = scalar_lea.vmem %s1823_s5, %s1829_s18 }
  0x10   : > { %1351 = vmatpush3.bf16.msra.mxu1 %v1445_v3  ;;  %1330 = vmatprep.subr.bf16.mxu0 %v1446_v4  ;;  %v1454_v12 = vld [vmem:[%s1819_s1 + $0x60] sm:$0xff]   ;;  %v1458_v16 = vld [vmem:[%s1819_s1 + $0x58] sm:$0xff]   ;;  %v1462_v20 = vld [vmem:[%s1819_s1 + $0x50] sm:$0xff]  }
  0x11   : > { %1352 = vmatprep.subr.bf16.mxu1 %v1447_v5  ;;  %v1455_v13 = vld [vmem:[%s1819_s1 + $0xe0] sm:$0xff]   ;;  %v1459_v17 = vld [vmem:[%s1819_s1 + $0xd8] sm:$0xff]   ;;  %v1463_v21 = vld [vmem:[%s1819_s1 + $0xd0] sm:$0xff]   ;;  %v477_v43 = vsub.s32 %v474_v40, %v476_v37 }
  0x12   : > { %v1456_v14 = vld [vmem:[%s1819_s1 + $0x20] sm:$0xff]   ;;  %v1460_v18 = vld [vmem:[%s1819_s1 + $0x18] sm:$0xff]   ;;  %v1464_v22 = vld [vmem:[%s1819_s1 + $0x10] sm:$0xff]  }
  0x13   : > { %1331 = vmatpush3.bf16.msra.mxu0 %v1448_v6  ;;  %v1457_v15 = vld [vmem:[%s1819_s1 + $0xa0] sm:$0xff]   ;;  %v1461_v19 = vld [vmem:[%s1819_s1 + $0x98] sm:$0xff]   ;;  %v1465_v23 = vld [vmem:[%s1819_s1 + $0x90] sm:$0xff]  }
  0x14   : > { %1353 = vmatpush3.bf16.msra.mxu1 %v1449_v7  ;;  %1332 = vmatprep.subr.bf16.mxu0 %v1450_v8  ;;  %v1466_v24 = vld [vmem:[%s1819_s1 + $0x48] sm:$0xff]   ;;  %v1470_v28 = vld [vmem:[%s1819_s1 + $0x40] sm:$0xff]   ;;  %v1476_v38 = vld [vmem:[%s1819_s1 + $0x178] sm:$0xff]  }
  0x15   : > { %1354 = vmatprep.subr.bf16.mxu1 %v1451_v9  ;;  %v1467_v25 = vld [vmem:[%s1819_s1 + $0xc8] sm:$0xff]   ;;  %v1471_v29 = vld [vmem:[%s1819_s1 + $0xc0] sm:$0xff]   ;;  %v1477_v39 = vld [vmem:[%s1819_s1 + $0x1f8] sm:$0xff]  }
  0x16   : > { %v1468_v26 = vld [vmem:[%s1819_s1 + $0x8] sm:$0xff]   ;;  %v1472_v31 = vld [vmem:[%s1819_s1] sm:$0xff]   ;;  %v1478_v46 = vld [vmem:[%s1819_s1 + $0x138] sm:$0xff]  }
  0x17   : > { %1333 = vmatpush3.bf16.msra.mxu0 %v1452_v10  ;;  %v1469_v27 = vld [vmem:[%s1819_s1 + $0x88] sm:$0xff]   ;;  %v1473_v32 = vld [vmem:[%s1819_s1 + $0x80] sm:$0xff]   ;;  %v1479_v49 = vld [vmem:[%s1819_s1 + $0x1b8] sm:$0xff]  }
  0x18   : > { %1355 = vmatpush3.bf16.msra.mxu1 %v1453_v11  ;;  %1334 = vmatprep.subr.bf16.mxu0 %v1454_v12  ;;  %v332_v33 = vld [vmem:[%s301_s22] sm:$0xff]  ;;  %v333_v34 = vld [vmem:[%s301_s22 + $0x8] sm:$0xff]  ;;  %v1480_v52 = vld [vmem:[%s1819_s1 + $0x170] sm:$0xff]  }
  0x19   : > { %1356 = vmatprep.subr.bf16.mxu1 %v1455_v13  ;;  %v488_v41 = vcombine.high %v333_v34, %v333_v34  ;;  %v471_v42 = vcombine.high %v332_v33, %v332_v33  ;;  %v478_v44 = vrot.slane %v332_v33, %v477_v43  ;;  %v1697_v47 = vrot.slane %v333_v34, %v477_v43  ;;  %v1481_v53 = vld [vmem:[%s1819_s1 + $0x1f0] sm:$0xff]   ;;  %v1484_v58 = vld [vmem:[%s1819_s1 + $0x168] sm:$0xff]   ;;  %v1488_v62 = vld [vmem:[%s1819_s1 + $0x160] sm:$0xff]  }
  0x1a   : > { %v1482_v54 = vld [vmem:[%s1819_s1 + $0x130] sm:$0xff]   ;;  %v1485_v59 = vld [vmem:[%s1819_s1 + $0x1e8] sm:$0xff]   ;;  %v1489_v63 = vld [vmem:[%s1819_s1 + $0x1e0] sm:$0xff]  }
  0x1b   : > { %1335 = vmatpush3.bf16.msra.mxu0 %v1456_v14  ;;  %v485_v45 = vrot.slane %v471_v42, %v477_v43  ;;  %v1699_v48 = vrot.slane %v488_v41, %v477_v43  ;;  %v486_v50 = vcombine.high %v478_v44, %v478_v44  ;;  %v503_v55 = vcombine.high %v1697_v47, %v1697_v47  ;;  %v1483_v57 = vld [vmem:[%s1819_s1 + $0x1b0] sm:$0xff]   ;;  %v1486_v60 = vld [vmem:[%s1819_s1 + $0x128] sm:$0xff]   ;;  %v1490_v0 = vld [vmem:[%s1819_s1 + $0x120] sm:$0xff]  }
  0x1c   : > { %1357 = vmatpush3.bf16.msra.mxu1 %v1457_v15  ;;  %1336 = vmatprep.subr.bf16.mxu0 %v1458_v16  ;;  %v1487_v61 = vld [vmem:[%s1819_s1 + $0x1a8] sm:$0xff]   ;;  %v1491_v1 = vld [vmem:[%s1819_s1 + $0x1a0] sm:$0xff]   ;;  %v1492_v2 = vld [vmem:[%s1819_s1 + $0x158] sm:$0xff]  }
  0x1d   : > { %1358 = vmatprep.subr.bf16.mxu1 %v1459_v17  ;;  %v487_v51 = vcombine.high %v485_v45, %v485_v45  ;;  %929 = vmatprep.mubr.bf16.mxu0 %v486_v50  ;;  %v504_v56 = vcombine.high %v1699_v48, %v1699_v48  ;;  %v1493_v3 = vld [vmem:[%s1819_s1 + $0x1d8] sm:$0xff]   ;;  %v1496_v6 = vld [vmem:[%s1819_s1 + $0x150] sm:$0xff]   ;;  %v1500_v10 = vld [vmem:[%s1819_s1 + $0x148] sm:$0xff]  }
  0x1e   : > { %v1494_v4 = vld [vmem:[%s1819_s1 + $0x118] sm:$0xff]   ;;  %v1497_v7 = vld [vmem:[%s1819_s1 + $0x1d0] sm:$0xff]   ;;  %v1501_v11 = vld [vmem:[%s1819_s1 + $0x1c8] sm:$0xff]  }
  0x1f   : > { %1337 = vmatpush3.bf16.msra.mxu0 %v1460_v18  ;;  %969 = vmatprep.mubr.bf16.mxu1 %v487_v51  ;;  %v1495_v5 = vld [vmem:[%s1819_s1 + $0x198] sm:$0xff]   ;;  %v1498_v8 = vld [vmem:[%s1819_s1 + $0x110] sm:$0xff]   ;;  %v1502_v12 = vld [vmem:[%s1819_s1 + $0x108] sm:$0xff]   ;;  %v1533_v18 = vmov 0.0  }
  0x20   : > { %1359 = vmatpush3.bf16.msra.mxu1 %v1461_v19  ;;  %1338 = vmatprep.subr.bf16.mxu0 %v1462_v20  ;;  %v1499_v9 = vld [vmem:[%s1819_s1 + $0x190] sm:$0xff]   ;;  %v1503_v13 = vld [vmem:[%s1819_s1 + $0x188] sm:$0xff]   ;;  %v1504_v14 = vld [vmem:[%s1819_s1 + $0x140] sm:$0xff]   ;;  %330 = vst [vmem:[#allocation2] sm:$0x1] %v1533_v18 }
  0x21   : > { %1360 = vmatprep.subr.bf16.mxu1 %v1463_v21  ;;  %v1505_v15 = vld [vmem:[%s1819_s1 + $0x1c0] sm:$0xff]   ;;  %331 = vst [vmem:[#allocation3] sm:$0x1] %v1533_v18 }
  0x22   : > { %v1506_v16 = vld [vmem:[%s1819_s1 + $0x100] sm:$0xff]  }
  0x23   : > { %1339 = vmatpush3.bf16.msra.mxu0 %v1464_v22  ;;  %v1507_v17 = vld [vmem:[%s1819_s1 + $0x180] sm:$0xff]  }
  0x24   : > { %1361 = vmatpush3.bf16.msra.mxu1 %v1465_v23  ;;  %1340 = vmatprep.subr.bf16.mxu0 %v1466_v24 }
  0x25   : > { %1362 = vmatprep.subr.bf16.mxu1 %v1467_v25 }
  0x27   : > { %1341 = vmatpush3.bf16.msra.mxu0 %v1468_v26 }
  0x28   : > { %1363 = vmatpush3.bf16.msra.mxu1 %v1469_v27  ;;  %1342 = vmatprep.subr.bf16.mxu0 %v1470_v28  ;;  %v1260_v28 = vld [vmem:[%s1820_s2] ss:$0 sm:$0xff] }
  0x29   : > { %1364 = vmatprep.subr.bf16.mxu1 %v1471_v29 }
  0x2b   : > { %1343 = vmatpush3.bf16.msra.mxu0 %v1472_v31 }
  0x2c   : > { %1365 = vmatpush3.bf16.msra.mxu1 %v1473_v32  ;;  %1372 = vmatprep.subr.bf16.mxu0 %v1476_v38 }
  0x2d   : > { %1394 = vmatprep.subr.bf16.mxu1 %v1477_v39 }
  0x2e   : > { %930 = vmatmul.mubr.bf16.vlgmr.msra.gmra.mxu0 %v478_v44 }
  0x2f   : > { %970 = vmatmul.mubr.bf16.vlgmr.msra.gmra.mxu1 %v485_v45  ;;  %1373 = vmatpush3.bf16.msra.mxu0 %v1478_v46 }
  0x30   : > { %1395 = vmatpush3.bf16.msra.mxu1 %v1479_v49  ;;  %1374 = vmatprep.subr.bf16.mxu0 %v1480_v52 }
  0x31   : > { %1396 = vmatprep.subr.bf16.mxu1 %v1481_v53  ;;  %1009 = vmatprep.mubr.bf16.mxu0 %v503_v55 }
  0x32   : > { %1049 = vmatprep.mubr.bf16.mxu1 %v504_v56  ;;  %v1057_v56 = vld [vmem:[#allocation2] sm:$0x1] }
  0x33   : > { %1375 = vmatpush3.bf16.msra.mxu0 %v1482_v54 }
  0x34   : > { %1397 = vmatpush3.bf16.msra.mxu1 %v1483_v57  ;;  %1376 = vmatprep.subr.bf16.mxu0 %v1484_v58 }
  0x35   : > { %1398 = vmatprep.subr.bf16.mxu1 %v1485_v59  ;;  %v1068_v59 = vld [vmem:[#allocation3] sm:$0x1] }
  0x37   : > { %1377 = vmatpush3.bf16.msra.mxu0 %v1486_v60 }
  0x38   : > { %1399 = vmatpush3.bf16.msra.mxu1 %v1487_v61  ;;  %1378 = vmatprep.subr.bf16.mxu0 %v1488_v62 }
  0x39   : > { %1400 = vmatprep.subr.bf16.mxu1 %v1489_v63 }
  0x3b   : > { %1379 = vmatpush3.bf16.msra.mxu0 %v1490_v0 }
  0x3c   : > { %1401 = vmatpush3.bf16.msra.mxu1 %v1491_v1  ;;  %1380 = vmatprep.subr.bf16.mxu0 %v1492_v2 }
  0x3d   : > { %1402 = vmatprep.subr.bf16.mxu1 %v1493_v3 }
  0x3f   : > { %1381 = vmatpush3.bf16.msra.mxu0 %v1494_v4 }
  0x40   : > { %1403 = vmatpush3.bf16.msra.mxu1 %v1495_v5  ;;  %1382 = vmatprep.subr.bf16.mxu0 %v1496_v6 }
  0x41   : > { %1404 = vmatprep.subr.bf16.mxu1 %v1497_v7 }
  0x43   : > { %1383 = vmatpush3.bf16.msra.mxu0 %v1498_v8 }
  0x44   : > { %1405 = vmatpush3.bf16.msra.mxu1 %v1499_v9  ;;  %1384 = vmatprep.subr.bf16.mxu0 %v1500_v10 }
  0x45   : > { %1406 = vmatprep.subr.bf16.mxu1 %v1501_v11 }
  0x47   : > { %1385 = vmatpush3.bf16.msra.mxu0 %v1502_v12 }
  0x48   : > { %1407 = vmatpush3.bf16.msra.mxu1 %v1503_v13  ;;  %1386 = vmatprep.subr.bf16.mxu0 %v1504_v14 }
  0x49   : > { %1408 = vmatprep.subr.bf16.mxu1 %v1505_v15 }
  0x4b   : > { %1387 = vmatpush3.bf16.msra.mxu0 %v1506_v16 }
  0x4c   : > { %1409 = vmatpush3.bf16.msra.mxu1 %v1507_v17 }
  0x4e   : > { %1010 = vmatmul.mubr.bf16.vlgmr.msra.gmra.mxu0 %v1697_v47 }
  0x4f   : > { %1050 = vmatmul.mubr.bf16.vlgmr.msra.gmra.mxu1 %v1699_v48 }
  0xee   : > { %v1344_v19 = vpop.f32.mrf.mxu0 }
  0xef   : > { %v1366_v20 = vpop.f32.mrf.mxu1 }
  0xf0   : > { %v1345_v21 = vpop.f32.mrf.mxu0 }
  0xf1   : > { %v1367_v22 = vpop.f32.mrf.mxu1  ;;  %v1346_v27 = vadd.f32 %v1345_v21, %v1344_v19 }
  0xf2   : > { %v1347_v23 = vpop.f32.mrf.mxu0  ;;  %v1368_v30 = vadd.f32 %v1367_v22, %v1366_v20 }
  0xf3   : > { %v1369_v24 = vpop.f32.mrf.mxu1  ;;  %v932_v29 = vadd.f32 %v1346_v27, %v1260_v28 }
  0xf4   : > { %v1348_v25 = vpop.f32.mrf.mxu0 }
  0xf5   : > { %v1370_v26 = vpop.f32.mrf.mxu1  ;;  %v972_v35 = vadd.f32 %v1368_v30, %v932_v29 }
 0x10e   : > { %v1388_v31 = vpop.f32.mrf.mxu0 }
 0x10f   : > { %v1410_v32 = vpop.f32.mrf.mxu1 }
 0x110   : > { %v1389_v33 = vpop.f32.mrf.mxu0 }
 0x111   : > { %v1411_v34 = vpop.f32.mrf.mxu1  ;;  %v1390_v36 = vadd.f32 %v1389_v33, %v1388_v31 }
 0x112   : > { %v1391_v37 = vpop.f32.mrf.mxu0  ;;  %v1412_v40 = vadd.f32 %v1411_v34, %v1410_v32 }
 0x113   : > { %v1413_v38 = vpop.f32.mrf.mxu1  ;;  %v1012_v39 = vadd.f32 %v1390_v36, %v972_v35 }
 0x114   : > { %v1392_v41 = vpop.f32.mrf.mxu0 }
 0x115   : > { %v1414_v42 = vpop.f32.mrf.mxu1  ;;  %v1052_v43 = vadd.f32 %v1412_v40, %v1012_v39 }
 0x117   : > { %v1059_v44 = vsel %vm1058_vm0, %v1052_v43, 0.0  ;;  %v1069_v45 = vmul.f32 %v1052_v43, %v1052_v43  ;;  %1079 = vst [vmem:[%s316_s8] sm:$0xf] %v1052_v43 }
 0x118   : > { %v1060_v46 = vrot.slane %v1059_v44, 4 }
 0x119   : > { %v1070_v47 = vsel %vm1058_vm0, %v1069_v45, 0.0 }
 0x11a   : > { %v1061_v48 = vadd.f32 %v1060_v46, %v1059_v44  ;;  %v1071_v49 = vrot.slane %v1070_v47, 4 }
 0x11c   : > { %v1062_v50 = vrot.slane %v1061_v48, 2  ;;  %v1072_v51 = vadd.f32 %v1071_v49, %v1070_v47 }
 0x11e   : > { %v1063_v52 = vadd.f32 %v1062_v50, %v1061_v48  ;;  %v1073_v53 = vrot.slane %v1072_v51, 2 }
 0x120   : > { %v1064_v54 = vrot.slane %v1063_v52, 1  ;;  %v1074_v55 = vadd.f32 %v1073_v53, %v1072_v51 }
 0x122   : > { %v1065_v57 = vadd.f32 %v1064_v54, %v1063_v52  ;;  %v1075_v58 = vrot.slane %v1074_v55, 1 }
 0x124   : > { %v1066_v60 = vadd.f32 %v1065_v57, %v1057_v56  ;;  %v1076_v61 = vadd.f32 %v1075_v58, %v1074_v55 }
 0x126   : > { %1067 = vst [vmem:[#allocation2] sm:$0x1] %v1066_v60  ;;  %v1077_v62 = vadd.f32 %v1076_v61, %v1068_v59 }
 0x128   : > { %1078 = vst [vmem:[#allocation3] sm:$0x1] %v1077_v62 }
 0x12d   : > { %v1082_v63 = vld [vmem:[#allocation2] sm:$0x1] }
 0x12e   : > { %1083 = vst [vmem:[%s319_s11] sm:$0x1] %v1082_v63 }
 0x12f   : > { %v1084_v0 = vld [vmem:[#allocation3] sm:$0x1] }
 0x130   : > { %1085 = vst [vmem:[%s322_s14] sm:$0x1] %v1084_v0 }
 0x131 PF: > { %s16_s20 = sadd.s32 1, %s1530_s20   ;;  %s1824_s18 = smov %s1526_s19 }
 0x132   : > { %p13_p5 = scmp.ge.s32.totalorder %s16_s20, 4   ;;  %s1825_s19 = smov %s1827_s21 }
 0x134   :  { %15 = sbr.rel (!%p13_p5) target bundleno = 2 (0x2), region = 97 }

// kernel: forward.33
= control target key start
LH: loop header
LB: loop body
LE: loop exit
PB: predicated region body
PF: predicated region fallthrough
CT: control target
= control target key end

     0   :  { %s890_s18 = smov 0   ;;  %s892_s19 = smov 0   ;;  %s1013_s0 = inlined_call_operand.vmem [shape: bf16[2,4,1,256], index: 0, kind: input, shape index: {}]   ;;  %s1014_s1 = inlined_call_operand.vmem [shape: bf16[4,256,128], index: 1, kind: input, shape index: {}]   ;;  %s1015_s2 = inlined_call_operand.vmem [shape: f32[1,128], index: 2, kind: input, shape index: {}]   ;;  %s1016_s3 = inlined_call_operand.vmem [shape: f32[2,4,1,128], index: 3, kind: output, shape index: {0}]   ;;  %s1017_s4 = inlined_call_operand.vmem [shape: f32[2,1,128], index: 4, kind: output, shape index: {1}]   ;;  %s1018_s5 = inlined_call_operand.vmem [shape: f32[2,1,128], index: 5, kind: output, shape index: {2}]  }
   0x1   :  { %s894_s20 = smov 0   ;;  %s896_s21 = smov 0  }
   0x2   :  { %s898_s22 = smov 0  }
   0x3 LB: > { %s31_s23 = sadd.s32 1, %s848_s20  ;;  %s35_s24 = sadd.s32 1, %s852_s21  ;;  %s856_s22 = sphi %s898_s22, %s16_s22   ;;  %s852_s21 = sphi %s896_s21, %s1022_s21   ;;  %s848_s20 = sphi %s894_s20, %s1021_s20   ;;  %s844_s19 = sphi %s892_s19, %s1020_s19   ;;  %s840_s18 = sphi %s890_s18, %s1019_s18  }
   0x4   : > { %p33_p0 = scmp.ge.s32.totalorder %s31_s23, 4  ;;  %p708_p1 = scmp.ge.s32.totalorder %s856_s22, 1 }
   0x5   : > { %p236_p2 = scmp.lt.s32.totalorder %s856_s22, 9 }
   0x6   : > { %s1024_s23 = smov (%p33_p0, %s31_s23), 0  ;;  %s1026_s24 = smov (!%p33_p0, %s35_s24), %s852_s21 }
   0x7   : > { %p237_p3 = pnand %p708_p1, %p236_p2  ;;  %p37_p4 = scmp.ge.s32.totalorder %s1026_s24, 2 }
   0x8   : > { %p287_p5 = scmp.lt.s32.totalorder (!%p237_p3), %s844_s19, 1  ;;  %p289_p6 = scmp.lt.s32.totalorder (!%p237_p3), %s840_s18, 3 }
   0x9   : > { %s1028_s24 = smov (%p37_p4, %s1026_s24), 0  ;;  %240 = sbr.rel (%p237_p3) target bundleno = 271 (0x10f), region = 32 }
   0xa   : > { %p321_p7 = scmp.eq.s32.totalorder (!%p237_p3), %s840_s18, 0 }
   0xe   : > { %s1030_s19 = smov (!%p287_p5, %s844_s19), 1  ;;  %v858_v0 = vmov (%p321_p7), 0.0  }
   0xf   : > { %s290_s25 = scalar_select %p289_p6, %s840_s18, 3  ;;  %327 = vst [vmem:[#allocation2] sm:$0x1] (%p321_p7), %v858_v0  ;;  %328 = vst [vmem:[#allocation3] sm:$0x1] (%p321_p7), %v858_v0 }
  0x10   : > { %s710_s26 = sshll.u32 %s1030_s19, 3  ;;  %s713_s27 = sshll.u32 %s1030_s19, 2 }
  0x11   : > { %s709_s28 = sshll.u32 %s290_s25, 1  ;;  %s735_s29 = sshll.u32 %s290_s25, 7 }
  0x12   : > { %s929_s30 = sadd.s32 %s710_s26, %s709_s28  ;;  %s934_s8 = scalar_lea.vmem %s1014_s1, %s735_s29 }
  0x13   : > { %s298_s11 = scalar_lea.vmem %s1013_s0, %s929_s30  ;;  %s940_s12 = sadd.s32 %s713_s27, %s290_s25 }
  0x14   : > { %s313_s15 = scalar_lea.vmem %s1016_s3, %s940_s12  ;;  %s316_s26 = scalar_lea.vmem %s1017_s4, %s1030_s19 }
  0x15   : > { %s319_s29 = scalar_lea.vmem %s1018_s5, %s1030_s19  ;;  %326 = sbr.rel (!%p321_p7) target bundleno = 26 (0x1a), region = 36 }
  0x1a PF: > { %v802_v1 = vld [vmem:[%s934_s8 + $0x78] sm:$0xff]   ;;  %v804_v3 = vld [vmem:[%s934_s8 + $0x70] sm:$0xff]   ;;  %v806_v5 = vld [vmem:[%s934_s8 + $0x68] sm:$0xff]   ;;  %v375_v10 = vlaneseq  ;;  %v859_v14 = vmov 1966171168   ;;  %p534_p8 = scmp.eq.s32.totalorder %s840_s18, 3 }
  0x1b   : > { %v803_v2 = vld [vmem:[%s934_s8 + $0x38] sm:$0xff]   ;;  %738 = vmatprep.subr.bf16.mxu0 %v802_v1  ;;  %v805_v4 = vld [vmem:[%s934_s8 + $0x30] sm:$0xff]   ;;  %v807_v6 = vld [vmem:[%s934_s8 + $0x28] sm:$0xff]   ;;  %v373_v15 = vunpack.c.l.s4 %v859_v14 }
  0x1c   : > { %739 = vmatpush3.bf16.msra.mxu0 %v803_v2  ;;  %v808_v7 = vld [vmem:[%s934_s8 + $0x60] sm:$0xff]   ;;  %v810_v9 = vld [vmem:[%s934_s8 + $0x58] sm:$0xff]   ;;  %v812_v12 = vld [vmem:[%s934_s8 + $0x50] sm:$0xff]   ;;  %v376_v16 = vshrl.u32 %v375_v10, 7 }
  0x1d   : > { %740 = vmatprep.subr.bf16.mxu0 %v804_v3  ;;  %v809_v8 = vld [vmem:[%s934_s8 + $0x20] sm:$0xff]   ;;  %v811_v11 = vld [vmem:[%s934_s8 + $0x18] sm:$0xff]   ;;  %v813_v17 = vld [vmem:[%s934_s8 + $0x10] sm:$0xff]   ;;  %v374_v19 = vunpack.c.0.s8 %v373_v15 }
  0x1e   : > { %v715_v13 = vld.sshfl [vmem:[%s298_s11] sm:$0x11 pattern:$0x75316420]  ;;  %v814_v20 = vld [vmem:[%s934_s8 + $0x48] sm:$0xff]  }
  0x1f   : > { %v371_v18 = vcombine.high %v715_v13, %v715_v13  ;;  %v377_v21 = vsub.s32 %v374_v19, %v376_v16  ;;  %v815_v22 = vld [vmem:[%s934_s8 + $0x8] sm:$0xff]   ;;  %v816_v24 = vld [vmem:[%s934_s8 + $0x40] sm:$0xff]  }
  0x20   : > { %741 = vmatpush3.bf16.msra.mxu0 %v805_v4  ;;  %v817_v25 = vld [vmem:[%s934_s8] sm:$0xff]  }
  0x21   : > { %742 = vmatprep.subr.bf16.mxu0 %v806_v5  ;;  %v385_v23 = vrot.slane %v371_v18, %v377_v21  ;;  %v378_v26 = vrot.slane %v715_v13, %v377_v21  ;;  %v362_v28 = vld [vmem:[%s1015_s2] sm:$0x1]  ;;  %v528_v34 = vld [vmem:[#allocation3] sm:$0x1] }
  0x22   : > { %v524_v31 = vld [vmem:[#allocation2] sm:$0x1] }
  0x23   : > { %516 = vmatprep.mubr.bf16.mxu0 %v385_v23 }
  0x24   : > { %743 = vmatpush3.bf16.msra.mxu0 %v807_v6 }
  0x25   : > { %744 = vmatprep.subr.bf16.mxu0 %v808_v7 }
  0x28   : > { %745 = vmatpush3.bf16.msra.mxu0 %v809_v8 }
  0x29   : > { %746 = vmatprep.subr.bf16.mxu0 %v810_v9 }
  0x2c   : > { %747 = vmatpush3.bf16.msra.mxu0 %v811_v11 }
  0x2d   : > { %748 = vmatprep.subr.bf16.mxu0 %v812_v12 }
  0x30   : > { %749 = vmatpush3.bf16.msra.mxu0 %v813_v17 }
  0x31   : > { %750 = vmatprep.subr.bf16.mxu0 %v814_v20 }
  0x34   : > { %751 = vmatpush3.bf16.msra.mxu0 %v815_v22 }
  0x35   : > { %752 = vmatprep.subr.bf16.mxu0 %v816_v24 }
  0x38   : > { %753 = vmatpush3.bf16.msra.mxu0 %v817_v25 }
  0x3b   : > { %517 = vmatmul.mubr.bf16.vlgmr.msra.gmra.mxu0 %v378_v26 }
  0xfb   : > { %v754_v27 = vpop.f32.mrf.mxu0 }
  0xfd   : > { %v755_v29 = vpop.f32.mrf.mxu0 }
  0xfe   : > { %v756_v30 = vadd.f32 %v755_v29, %v754_v27 }
  0xff   : > { %v757_v32 = vpop.f32.mrf.mxu0 }
 0x100   : > { %v519_v33 = vadd.f32 %v756_v30, %v362_v28 }
 0x101   : > { %v758_v35 = vpop.f32.mrf.mxu0 }
 0x102   : > { %v526_v36 = vadd.f32 %v524_v31, %v519_v33  ;;  %v529_v37 = vmul.f32 %v519_v33, %v519_v33  ;;  %533 = vst [vmem:[%s313_s15] sm:$0x1] %v519_v33  ;;  %538 = sbr.rel (!%p534_p8) target bundleno = 271 (0x10f), region = 40 }
 0x104   : > { %527 = vst [vmem:[#allocation2] sm:$0x1] %v526_v36  ;;  %v531_v38 = vadd.f32 %v529_v37, %v528_v34 }
 0x106   : > { %532 = vst [vmem:[#allocation3] sm:$0x1] %v531_v38 }
 0x10b   : > { %v539_v39 = vld [vmem:[#allocation2] sm:$0x1] }
 0x10c   : > { %540 = vst [vmem:[%s316_s26] sm:$0x1] %v539_v39 }
 0x10d   : > { %v541_v40 = vld [vmem:[#allocation3] sm:$0x1] }
 0x10e   : > { %542 = vst [vmem:[%s319_s29] sm:$0x1] %v541_v40 }
 0x10f PF: > { %s16_s22 = sadd.s32 1, %s856_s22   ;;  %s1019_s18 = smov %s848_s20 }
 0x110   : > { %p13_p9 = scmp.ge.s32.totalorder %s16_s22, 10   ;;  %s1020_s19 = smov %s852_s21 }
 0x111   : > { %s1021_s20 = smov %s1024_s23  ;;  %s1022_s21 = smov %s1028_s24 }
 0x112   :  { %15 = sbr.rel (!%p13_p9) target bundleno = 3 (0x3), region = 97 }

// kernel: forward.36
= control target key start
LH: loop header
LB: loop body
LE: loop exit
PB: predicated region body
PF: predicated region fallthrough
CT: control target
= control target key end

     0   :  { %s509_s12 = smov 0   ;;  %s511_s13 = smov 0   ;;  %s563_s0 = inlined_call_operand.vmem [shape: f32[2,4,4,128], index: 0, kind: input, shape index: {}]   ;;  %s564_s1 = inlined_call_operand.vmem [shape: f32[2,1,128], index: 1, kind: input, shape index: {}]   ;;  %s565_s2 = inlined_call_operand.vmem [shape: f32[2,1,128], index: 2, kind: input, shape index: {}]   ;;  %s566_s3 = inlined_call_operand.vmem [shape: bf16[2,4,4,128], index: 3, kind: output, shape index: {}]  }
   0x1   :  { %s513_s14 = smov 0   ;;  %s515_s15 = smov 0  }
   0x2   :  { %s517_s16 = smov 0  }
   0x3 LB: > { %s28_s17 = sadd.s32 1, %s479_s14  ;;  %s32_s18 = sadd.s32 1, %s483_s15  ;;  %s487_s16 = sphi %s517_s16, %s13_s16   ;;  %s483_s15 = sphi %s515_s15, %s570_s15   ;;  %s479_s14 = sphi %s513_s14, %s569_s14   ;;  %s475_s13 = sphi %s511_s13, %s568_s13   ;;  %s471_s12 = sphi %s509_s12, %s567_s12  }
   0x4   : > { %p30_p0 = scmp.ge.s32.totalorder %s28_s17, 4  ;;  %p400_p1 = scmp.ge.s32.totalorder %s487_s16, 1 }
   0x5   : > { %p186_p2 = scmp.lt.s32.totalorder %s487_s16, 9 }
   0x6   : > { %s572_s17 = smov (%p30_p0, %s28_s17), 0  ;;  %s574_s18 = smov (!%p30_p0, %s32_s18), %s483_s15 }
   0x7   : > { %p187_p3 = pnand %p400_p1, %p186_p2  ;;  %p34_p4 = scmp.ge.s32.totalorder %s574_s18, 2 }
   0x8   : > { %p228_p5 = scmp.lt.s32.totalorder (!%p187_p3), %s475_s13, 1  ;;  %p230_p6 = scmp.lt.s32.totalorder (!%p187_p3), %s471_s12, 3 }
   0x9   : > { %s576_s18 = smov (%p34_p4, %s574_s18), 0  ;;  %190 = sbr.rel (%p187_p3) target bundleno = 29 (0x1d), region = 32 }
   0xe   : > { %s578_s13 = smov (!%p228_p5, %s475_s13), 1  ;;  %s580_s12 = smov (!%p230_p6, %s471_s12), 3 }
   0xf   : > { %s401_s19 = sshll.u32 %s578_s13, 2  ;;  %s241_s22 = scalar_lea.vmem %s564_s1, %s578_s13 }
  0x10   : > { %s236_s23 = sadd.s32 %s401_s19, %s580_s12  ;;  %s244_s26 = scalar_lea.vmem %s565_s2, %s578_s13  ;;  %v405_v0 = vld [vmem:[%s241_s22] ss:$0 sm:$0xff] }
  0x11   : > { %s402_s27 = sshll.u32 %s236_s23, 2  ;;  %v406_v2 = vld [vmem:[%s244_s26] ss:$0 sm:$0xff]  ;;  %s404_s4 = sshll.u32 %s236_s23, 1 }
  0x12   : > { %s238_s30 = scalar_lea.vmem %s563_s0, %s402_s27  ;;  %s255_s7 = scalar_lea.vmem %s566_s3, %s404_s4 }
  0x13   : > { %v256_v1 = vld [vmem:[%s238_s30] sm:$0xf] }
  0x14   : > { %v264_v3 = vsub.f32 %v256_v1, %v405_v0 }
  0x16   : > { %v272_v4 = vmul.f32 %v406_v2, %v264_v3 }
  0x18   : > { %v273_v5 = vmax.f32 %v272_v4, 0.0 }
  0x1a   : > { %v274_v6 = vpack.c.bf16 %v273_v5, %v273_v5 }
  0x1c   : > { %275 = vst [vmem:[%s255_s7] sm:$0x3] %v274_v6 }
  0x1d PF: > { %s13_s16 = sadd.s32 1, %s487_s16   ;;  %s567_s12 = smov %s479_s14 }
  0x1e   : > { %p10_p7 = scmp.ge.s32.totalorder %s13_s16, 10   ;;  %s568_s13 = smov %s483_s15 }
  0x1f   : > { %s569_s14 = smov %s572_s17  ;;  %s570_s15 = smov %s576_s18 }
  0x20   :  { %12 = sbr.rel (!%p10_p7) target bundleno = 3 (0x3), region = 68 }

// kernel: forward.35
= control target key start
LH: loop header
LB: loop body
LE: loop exit
PB: predicated region body
PF: predicated region fallthrough
CT: control target
= control target key end

     0   :  { %s1145_s18 = smov 0   ;;  %s1147_s19 = smov 0   ;;  %s1274_s0 = inlined_call_operand.vmem [shape: bf16[2,4,4,512], index: 0, kind: input, shape index: {}]   ;;  %s1275_s1 = inlined_call_operand.vmem [shape: bf16[4,512,128], index: 1, kind: input, shape index: {}]   ;;  %s1276_s2 = inlined_call_operand.vmem [shape: f32[1,128], index: 2, kind: input, shape index: {}]   ;;  %s1277_s3 = inlined_call_operand.vmem [shape: f32[2,4,4,128], index: 3, kind: output, shape index: {0}]   ;;  %s1278_s4 = inlined_call_operand.vmem [shape: f32[2,1,128], index: 4, kind: output, shape index: {1}]   ;;  %s1279_s5 = inlined_call_operand.vmem [shape: f32[2,1,128], index: 5, kind: output, shape index: {2}]  }
   0x1   :  { %s1149_s20 = smov 0   ;;  %s1151_s21 = smov 0  }
   0x2   :  { %s1153_s22 = smov 0  }
   0x3 LB: > { %s31_s23 = sadd.s32 1, %s1103_s20  ;;  %s35_s24 = sadd.s32 1, %s1107_s21  ;;  %s1111_s22 = sphi %s1153_s22, %s16_s22   ;;  %s1107_s21 = sphi %s1151_s21, %s1285_s21   ;;  %s1103_s20 = sphi %s1149_s20, %s1284_s20   ;;  %s1099_s19 = sphi %s1147_s19, %s1283_s19   ;;  %s1095_s18 = sphi %s1145_s18, %s1282_s18  }
   0x4   : > { %p33_p0 = scmp.ge.s32.totalorder %s31_s23, 4  ;;  %p906_p1 = scmp.ge.s32.totalorder %s1111_s22, 1 }
   0x5   : > { %p237_p2 = scmp.lt.s32.totalorder %s1111_s22, 9 }
   0x6   : > { %s1287_s23 = smov (%p33_p0, %s31_s23), 0  ;;  %s1289_s24 = smov (!%p33_p0, %s35_s24), %s1107_s21 }
   0x7   : > { %p238_p3 = pnand %p906_p1, %p237_p2  ;;  %p37_p4 = scmp.ge.s32.totalorder %s1289_s24, 2 }
   0x8   : > { %p290_p5 = scmp.lt.s32.totalorder (!%p238_p3), %s1099_s19, 1  ;;  %p292_p6 = scmp.lt.s32.totalorder (!%p238_p3), %s1095_s18, 3 }
   0x9   : > { %s1291_s24 = smov (%p37_p4, %s1289_s24), 0  ;;  %241 = sbr.rel (%p238_p3) target bundleno = 288 (0x120), region = 32 }
   0xa   : > { %1280 = sst [smem:[#allocation4_spill]] %s1291_s24  ;;  %p326_p7 = scmp.eq.s32.totalorder (!%p238_p3), %s1095_s18, 0 }
   0xe   : > { %s1293_s19 = smov (!%p290_p5, %s1099_s19), 1  ;;  %v1113_v0 = vmov (%p326_p7), 0.0  }
   0xf   : > { %s293_s25 = scalar_select %p292_p6, %s1095_s18, 3  ;;  %332 = vst [vmem:[#allocation2] sm:$0x1] (%p326_p7), %v1113_v0  ;;  %333 = vst [vmem:[#allocation3] sm:$0x1] (%p326_p7), %v1113_v0 }
  0x10   : > { %s908_s26 = sshll.u32 %s1293_s19, 4  ;;  %s912_s27 = sshll.u32 %s1293_s19, 2 }
  0x11   : > { %s907_s28 = sshll.u32 %s293_s25, 2  ;;  %s951_s29 = sshll.u32 %s293_s25, 8 }
  0x12   : > { %s300_s30 = sadd.s32 %s908_s26, %s907_s28  ;;  %s1187_s8 = scalar_lea.vmem %s1275_s1, %s951_s29 }
  0x13   : > { %s909_s9 = sshll.u32 %s300_s30, 1  ;;  %s316_s10 = sadd.s32 %s912_s27, %s293_s25 }
  0x14   : > { %s1192_s13 = scalar_lea.vmem %s1274_s0, %s909_s9  ;;  %s913_s14 = sshll.u32 %s316_s10, 2 }
  0x15   : > { %s1197_s17 = scalar_lea.vmem %s1277_s3, %s913_s14  ;;  %s321_s28 = scalar_lea.vmem %s1278_s4, %s1293_s19 }
  0x16   : > { %s324_s30 = scalar_lea.vmem %s1279_s5, %s1293_s19  ;;  %331 = sbr.rel (!%p326_p7) target bundleno = 27 (0x1b), region = 36 }
  0x1b PF: > { %v1040_v1 = vld [vmem:[%s1187_s8 + $0x78] sm:$0xff]   ;;  %v1044_v5 = vld [vmem:[%s1187_s8 + $0x70] sm:$0xff]   ;;  %v1048_v9 = vld [vmem:[%s1187_s8 + $0x68] sm:$0xff]   ;;  %v411_v31 = vlaneseq  ;;  %v1114_v35 = vmov 1983009808   ;;  %p723_p8 = scmp.eq.s32.totalorder %s1095_s18, 3 }
  0x1c   : > { %v1041_v2 = vld [vmem:[%s1187_s8 + $0xf8] sm:$0xff]   ;;  %954 = vmatprep.subr.bf16.mxu0 %v1040_v1  ;;  %v1045_v6 = vld [vmem:[%s1187_s8 + $0xf0] sm:$0xff]   ;;  %v1049_v10 = vld [vmem:[%s1187_s8 + $0xe8] sm:$0xff]   ;;  %v409_v36 = vunpack.c.l.s4 %v1114_v35  ;;  %vm701_vm0 = vcmask 1043456  }
  0x1d   : > { %v1042_v3 = vld [vmem:[%s1187_s8 + $0x38] sm:$0xff]   ;;  %976 = vmatprep.subr.bf16.mxu1 %v1041_v2  ;;  %v1046_v7 = vld [vmem:[%s1187_s8 + $0x30] sm:$0xff]   ;;  %v1050_v11 = vld [vmem:[%s1187_s8 + $0x28] sm:$0xff]   ;;  %v412_v37 = vshrl.u32 %v411_v31, 7 }
  0x1e   : > { %v1043_v4 = vld [vmem:[%s1187_s8 + $0xb8] sm:$0xff]   ;;  %955 = vmatpush3.bf16.msra.mxu0 %v1042_v3  ;;  %v1047_v8 = vld [vmem:[%s1187_s8 + $0xb0] sm:$0xff]   ;;  %v1051_v12 = vld [vmem:[%s1187_s8 + $0xa8] sm:$0xff]   ;;  %v410_v38 = vunpack.c.0.s8 %v409_v36 }
  0x1f   : > { %977 = vmatpush3.bf16.msra.mxu1 %v1043_v4  ;;  %956 = vmatprep.subr.bf16.mxu0 %v1044_v5  ;;  %v1052_v13 = vld [vmem:[%s1187_s8 + $0x60] sm:$0xff]   ;;  %v1056_v17 = vld [vmem:[%s1187_s8 + $0x58] sm:$0xff]   ;;  %v1060_v21 = vld [vmem:[%s1187_s8 + $0x50] sm:$0xff]  }
  0x20   : > { %978 = vmatprep.subr.bf16.mxu1 %v1045_v6  ;;  %v1053_v14 = vld [vmem:[%s1187_s8 + $0xe0] sm:$0xff]   ;;  %v1057_v18 = vld [vmem:[%s1187_s8 + $0xd8] sm:$0xff]   ;;  %v1061_v22 = vld [vmem:[%s1187_s8 + $0xd0] sm:$0xff]   ;;  %v413_v40 = vsub.s32 %v410_v38, %v412_v37 }
  0x21   : > { %v1054_v15 = vld [vmem:[%s1187_s8 + $0x20] sm:$0xff]   ;;  %v1058_v19 = vld [vmem:[%s1187_s8 + $0x18] sm:$0xff]   ;;  %v1062_v23 = vld [vmem:[%s1187_s8 + $0x10] sm:$0xff]  }
  0x22   : > { %957 = vmatpush3.bf16.msra.mxu0 %v1046_v7  ;;  %v1055_v16 = vld [vmem:[%s1187_s8 + $0xa0] sm:$0xff]   ;;  %v1059_v20 = vld [vmem:[%s1187_s8 + $0x98] sm:$0xff]   ;;  %v1063_v24 = vld [vmem:[%s1187_s8 + $0x90] sm:$0xff]  }
  0x23   : > { %979 = vmatpush3.bf16.msra.mxu1 %v1047_v8  ;;  %958 = vmatprep.subr.bf16.mxu0 %v1048_v9  ;;  %v1064_v25 = vld [vmem:[%s1187_s8 + $0x48] sm:$0xff]   ;;  %v1068_v29 = vld [vmem:[%s1187_s8 + $0x40] sm:$0xff]  }
  0x24   : > { %980 = vmatprep.subr.bf16.mxu1 %v1049_v10  ;;  %v1065_v26 = vld [vmem:[%s1187_s8 + $0xc8] sm:$0xff]   ;;  %v1069_v30 = vld [vmem:[%s1187_s8 + $0xc0] sm:$0xff]  }
  0x25   : > { %v1066_v27 = vld [vmem:[%s1187_s8 + $0x8] sm:$0xff]   ;;  %v1070_v32 = vld [vmem:[%s1187_s8] sm:$0xff]  }
  0x26   : > { %959 = vmatpush3.bf16.msra.mxu0 %v1050_v11  ;;  %v1067_v28 = vld [vmem:[%s1187_s8 + $0x88] sm:$0xff]   ;;  %v1071_v33 = vld [vmem:[%s1187_s8 + $0x80] sm:$0xff]  }
  0x27   : > { %981 = vmatpush3.bf16.msra.mxu1 %v1051_v12  ;;  %960 = vmatprep.subr.bf16.mxu0 %v1052_v13  ;;  %v334_v34 = vld [vmem:[%s1192_s13] sm:$0xff] }
  0x28   : > { %982 = vmatprep.subr.bf16.mxu1 %v1053_v14  ;;  %v407_v39 = vcombine.high %v334_v34, %v334_v34  ;;  %v414_v41 = vrot.slane %v334_v34, %v413_v40  ;;  %v915_v47 = vld [vmem:[%s1276_s2] ss:$0 sm:$0xff]  ;;  %v711_v9 = vld [vmem:[#allocation3] sm:$0x1] }
  0x29   : > { %v700_v6 = vld [vmem:[#allocation2] sm:$0x1] }
  0x2a   : > { %961 = vmatpush3.bf16.msra.mxu0 %v1054_v15  ;;  %v421_v42 = vrot.slane %v407_v39, %v413_v40  ;;  %v422_v43 = vcombine.high %v414_v41, %v414_v41 }
  0x2b   : > { %983 = vmatpush3.bf16.msra.mxu1 %v1055_v16  ;;  %962 = vmatprep.subr.bf16.mxu0 %v1056_v17 }
  0x2c   : > { %984 = vmatprep.subr.bf16.mxu1 %v1057_v18  ;;  %v423_v44 = vcombine.high %v421_v42, %v421_v42  ;;  %652 = vmatprep.mubr.bf16.mxu0 %v422_v43 }
  0x2e   : > { %963 = vmatpush3.bf16.msra.mxu0 %v1058_v19  ;;  %692 = vmatprep.mubr.bf16.mxu1 %v423_v44 }
  0x2f   : > { %985 = vmatpush3.bf16.msra.mxu1 %v1059_v20  ;;  %964 = vmatprep.subr.bf16.mxu0 %v1060_v21 }
  0x30   : > { %986 = vmatprep.subr.bf16.mxu1 %v1061_v22 }
  0x32   : > { %965 = vmatpush3.bf16.msra.mxu0 %v1062_v23 }
  0x33   : > { %987 = vmatpush3.bf16.msra.mxu1 %v1063_v24  ;;  %966 = vmatprep.subr.bf16.mxu0 %v1064_v25 }
  0x34   : > { %988 = vmatprep.subr.bf16.mxu1 %v1065_v26 }
  0x36   : > { %967 = vmatpush3.bf16.msra.mxu0 %v1066_v27 }
  0x37   : > { %989 = vmatpush3.bf16.msra.mxu1 %v1067_v28  ;;  %968 = vmatprep.subr.bf16.mxu0 %v1068_v29 }
  0x38   : > { %990 = vmatprep.subr.bf16.mxu1 %v1069_v30 }
  0x3a   : > { %969 = vmatpush3.bf16.msra.mxu0 %v1070_v32 }
  0x3b   : > { %991 = vmatpush3.bf16.msra.mxu1 %v1071_v33 }
  0x3d   : > { %653 = vmatmul.mubr.bf16.vlgmr.msra.gmra.mxu0 %v414_v41 }
  0x3e   : > { %693 = vmatmul.mubr.bf16.vlgmr.msra.gmra.mxu1 %v421_v42 }
  0xfd   : > { %v970_v45 = vpop.f32.mrf.mxu0 }
  0xfe   : > { %v992_v46 = vpop.f32.mrf.mxu1 }
  0xff   : > { %v971_v48 = vpop.f32.mrf.mxu0 }
 0x100   : > { %v993_v49 = vpop.f32.mrf.mxu1  ;;  %v972_v50 = vadd.f32 %v971_v48, %v970_v45 }
 0x101   : > { %v973_v51 = vpop.f32.mrf.mxu0  ;;  %v994_v54 = vadd.f32 %v993_v49, %v992_v46 }
 0x102   : > { %v995_v52 = vpop.f32.mrf.mxu1  ;;  %v655_v53 = vadd.f32 %v972_v50, %v915_v47 }
 0x103   : > { %v974_v55 = vpop.f32.mrf.mxu0 }
 0x104   : > { %v996_v56 = vpop.f32.mrf.mxu1  ;;  %v695_v57 = vadd.f32 %v994_v54, %v655_v53 }
 0x106   : > { %v702_v58 = vsel %vm701_vm0, %v695_v57, 0.0  ;;  %v712_v59 = vmul.f32 %v695_v57, %v695_v57  ;;  %722 = vst [vmem:[%s1197_s17] sm:$0xf] %v695_v57 }
 0x107   : > { %v703_v60 = vrot.slane %v702_v58, 4 }
 0x108   : > { %v713_v61 = vsel %vm701_vm0, %v712_v59, 0.0 }
 0x109   : > { %v704_v62 = vadd.f32 %v703_v60, %v702_v58  ;;  %v714_v63 = vrot.slane %v713_v61, 4 }
 0x10b   : > { %v705_v0 = vrot.slane %v704_v62, 2  ;;  %v715_v1 = vadd.f32 %v714_v63, %v713_v61 }
 0x10d   : > { %v706_v2 = vadd.f32 %v705_v0, %v704_v62  ;;  %v716_v3 = vrot.slane %v715_v1, 2 }
 0x10f   : > { %v707_v4 = vrot.slane %v706_v2, 1  ;;  %v717_v5 = vadd.f32 %v716_v3, %v715_v1 }
 0x111   : > { %v708_v7 = vadd.f32 %v707_v4, %v706_v2  ;;  %v718_v8 = vrot.slane %v717_v5, 1 }
 0x113   : > { %v709_v10 = vadd.f32 %v708_v7, %v700_v6  ;;  %v719_v11 = vadd.f32 %v718_v8, %v717_v5  ;;  %727 = sbr.rel (!%p723_p8) target bundleno = 288 (0x120), region = 40 }
 0x115   : > { %710 = vst [vmem:[#allocation2] sm:$0x1] %v709_v10  ;;  %v720_v12 = vadd.f32 %v719_v11, %v711_v9 }
 0x117   : > { %721 = vst [vmem:[#allocation3] sm:$0x1] %v720_v12 }
 0x11c   : > { %v728_v13 = vld [vmem:[#allocation2] sm:$0x1] }
 0x11d   : > { %729 = vst [vmem:[%s321_s28] sm:$0x1] %v728_v13 }
 0x11e   : > { %v730_v14 = vld [vmem:[#allocation3] sm:$0x1] }
 0x11f   : > { %731 = vst [vmem:[%s324_s30] sm:$0x1] %v730_v14 }
 0x120 PF: > { %s16_s22 = sadd.s32 1, %s1111_s22   ;;  %s1281_s10 = sld [smem:[#allocation4_spill]] }
 0x121   : > { %p13_p9 = scmp.ge.s32.totalorder %s16_s22, 10   ;;  %s1282_s18 = smov %s1103_s20 }
 0x122   : > { %s1283_s19 = smov %s1107_s21  ;;  %s1284_s20 = smov %s1287_s23 }
 0x123   :  { %15 = sbr.rel (!%p13_p9) target bundleno = 3 (0x3), region = 97 }
 0x126   : > { %s1285_s21 = smov %s1281_s10 }

// kernel: forward.38
= control target key start
LH: loop header
LB: loop body
LE: loop exit
PB: predicated region body
PF: predicated region fallthrough
CT: control target
= control target key end

     0   :  { %s558_s12 = smov 0   ;;  %s560_s13 = smov 0   ;;  %s615_s0 = inlined_call_operand.vmem [shape: f32[2,4,16,128], index: 0, kind: input, shape index: {}]   ;;  %s616_s1 = inlined_call_operand.vmem [shape: f32[2,1,128], index: 1, kind: input, shape index: {}]   ;;  %s617_s2 = inlined_call_operand.vmem [shape: f32[2,1,128], index: 2, kind: input, shape index: {}]   ;;  %s618_s3 = inlined_call_operand.vmem [shape: bf16[2,4,16,128], index: 3, kind: output, shape index: {}]  }
   0x1   :  { %s562_s14 = smov 0   ;;  %s564_s15 = smov 0  }
   0x2   :  { %s566_s16 = smov 0  }
   0x3 LB: > { %s28_s17 = sadd.s32 1, %s528_s14  ;;  %s32_s18 = sadd.s32 1, %s532_s15  ;;  %s536_s16 = sphi %s566_s16, %s13_s16   ;;  %s532_s15 = sphi %s564_s15, %s622_s15   ;;  %s528_s14 = sphi %s562_s14, %s621_s14   ;;  %s524_s13 = sphi %s560_s13, %s620_s13   ;;  %s520_s12 = sphi %s558_s12, %s619_s12  }
   0x4   : > { %p30_p0 = scmp.ge.s32.totalorder %s28_s17, 4  ;;  %p438_p1 = scmp.ge.s32.totalorder %s536_s16, 1 }
   0x5   : > { %p189_p2 = scmp.lt.s32.totalorder %s536_s16, 9 }
   0x6   : > { %s624_s17 = smov (%p30_p0, %s28_s17), 0  ;;  %s626_s18 = smov (!%p30_p0, %s32_s18), %s532_s15 }
   0x7   : > { %p190_p3 = pnand %p438_p1, %p189_p2  ;;  %p34_p4 = scmp.ge.s32.totalorder %s626_s18, 2 }
   0x8   : > { %p236_p5 = scmp.lt.s32.totalorder (!%p190_p3), %s524_s13, 1  ;;  %p238_p6 = scmp.lt.s32.totalorder (!%p190_p3), %s520_s12, 3 }
   0x9   : > { %s628_s18 = smov (%p34_p4, %s626_s18), 0  ;;  %193 = sbr.rel (%p190_p3) target bundleno = 30 (0x1e), region = 32 }
   0xe   : > { %s630_s13 = smov (!%p236_p5, %s524_s13), 1  ;;  %s632_s12 = smov (!%p238_p6, %s520_s12), 3 }
   0xf   : > { %s440_s19 = sshll.u32 %s630_s13, 3  ;;  %s251_s22 = scalar_lea.vmem %s616_s1, %s630_s13 }
  0x10   : > { %s439_s23 = sshll.u32 %s632_s12, 1  ;;  %s254_s27 = scalar_lea.vmem %s617_s2, %s630_s13  ;;  %v445_v0 = vld [vmem:[%s251_s22] ss:$0 sm:$0xff] }
  0x11   : > { %s245_s24 = sadd.s32 %s440_s19, %s439_s23  ;;  %v446_v3 = vld [vmem:[%s254_s27] ss:$0 sm:$0xff] }
  0x12   : > { %s441_s28 = sshll.u32 %s245_s24, 3  ;;  %s444_s5 = sshll.u32 %s245_s24, 2 }
  0x13   : > { %s247_s4 = scalar_lea.vmem %s615_s0, %s441_s28  ;;  %s267_s8 = scalar_lea.vmem %s618_s3, %s444_s5 }
  0x14   : > { %v269_v1 = vld [vmem:[%s247_s4] sm:$0xff]  ;;  %v270_v2 = vld [vmem:[%s247_s4 + $0x8] sm:$0xff] }
  0x15   : > { %v278_v4 = vsub.f32 %v269_v1, %v445_v0  ;;  %v279_v5 = vsub.f32 %v270_v2, %v445_v0 }
  0x17   : > { %v287_v6 = vmul.f32 %v446_v3, %v278_v4  ;;  %v288_v7 = vmul.f32 %v446_v3, %v279_v5 }
  0x19   : > { %v289_v8 = vmax.f32 %v287_v6, 0.0  ;;  %v290_v9 = vmax.f32 %v288_v7, 0.0 }
  0x1b   : > { %v456_v10 = vpack.c.bf16 %v290_v9, %v289_v8 }
  0x1d   : > { %457 = vst [vmem:[%s267_s8] sm:$0xff] %v456_v10  }
  0x1e PF: > { %s13_s16 = sadd.s32 1, %s536_s16   ;;  %s619_s12 = smov %s528_s14 }
  0x1f   : > { %p10_p7 = scmp.ge.s32.totalorder %s13_s16, 10   ;;  %s620_s13 = smov %s532_s15 }
  0x20   : > { %s621_s14 = smov %s624_s17  ;;  %s622_s15 = smov %s628_s18 }
  0x21   :  { %12 = sbr.rel (!%p10_p7) target bundleno = 3 (0x3), region = 68 }

// kernel: forward.37
= control target key start
LH: loop header
LB: loop body
LE: loop exit
PB: predicated region body
PF: predicated region fallthrough
CT: control target
= control target key end

     0   :  { %s1177_s18 = smov 0   ;;  %s1179_s19 = smov 0   ;;  %s1310_s0 = inlined_call_operand.vmem [shape: bf16[2,4,16,512], index: 0, kind: input, shape index: {}]   ;;  %s1311_s1 = inlined_call_operand.vmem [shape: bf16[4,512,128], index: 1, kind: input, shape index: {}]   ;;  %s1312_s2 = inlined_call_operand.vmem [shape: f32[1,128], index: 2, kind: input, shape index: {}]   ;;  %s1313_s3 = inlined_call_operand.vmem [shape: f32[2,4,16,128], index: 3, kind: output, shape index: {0}]   ;;  %s1314_s4 = inlined_call_operand.vmem [shape: f32[2,1,128], index: 4, kind: output, shape index: {1}]   ;;  %s1315_s5 = inlined_call_operand.vmem [shape: f32[2,1,128], index: 5, kind: output, shape index: {2}]  }
   0x1   :  { %s1181_s20 = smov 0   ;;  %s1183_s21 = smov 0  }
   0x2   :  { %s1185_s22 = smov 0  }
   0x3 LB: > { %s31_s23 = sadd.s32 1, %s1136_s20  ;;  %s35_s24 = sadd.s32 1, %s1140_s21  ;;  %s1144_s22 = sphi %s1185_s22, %s16_s22   ;;  %s1140_s21 = sphi %s1183_s21, %s1323_s21   ;;  %s1136_s20 = sphi %s1181_s20, %s1322_s20   ;;  %s1132_s19 = sphi %s1179_s19, %s1321_s19   ;;  %s1128_s18 = sphi %s1177_s18, %s1320_s18  }
   0x4   : > { %p33_p0 = scmp.ge.s32.totalorder %s31_s23, 4  ;;  %p930_p1 = scmp.ge.s32.totalorder %s1144_s22, 1 }
   0x5   : > { %p239_p2 = scmp.lt.s32.totalorder %s1144_s22, 9 }
   0x6   : > { %s1325_s23 = smov (%p33_p0, %s31_s23), 0  ;;  %s1327_s24 = smov (!%p33_p0, %s35_s24), %s1140_s21 }
   0x7   : > { %1316 = sst [smem:[#allocation4_spill]] %s1325_s23  ;;  %p240_p3 = pnand %p930_p1, %p239_p2 }
   0x8   : > { %p37_p4 = scmp.ge.s32.totalorder %s1327_s24, 2  ;;  %p296_p5 = scmp.lt.s32.totalorder (!%p240_p3), %s1132_s19, 1 }
   0x9   : > { %243 = sbr.rel (%p240_p3) target bundleno = 294 (0x126), region = 32  ;;  %p298_p6 = scmp.lt.s32.totalorder (!%p240_p3), %s1128_s18, 3 }
   0xa   : > { %s1329_s24 = smov (%p37_p4, %s1327_s24), 0  ;;  %p336_p7 = scmp.eq.s32.totalorder (!%p240_p3), %s1128_s18, 0 }
   0xb   : > { %1317 = sst [smem:[#allocation5_spill]] %s1329_s24 }
   0xe   : > { %s1331_s19 = smov (!%p296_p5, %s1132_s19), 1  ;;  %v1146_v0 = vmov (%p336_p7), 0.0  }
   0xf   : > { %s299_s25 = scalar_select %p298_p6, %s1128_s18, 3  ;;  %342 = vst [vmem:[#allocation2] sm:$0x1] (%p336_p7), %v1146_v0  ;;  %343 = vst [vmem:[#allocation3] sm:$0x1] (%p336_p7), %v1146_v0 }
  0x10   : > { %s932_s26 = sshll.u32 %s1331_s19, 5  ;;  %s937_s27 = sshll.u32 %s1331_s19, 3 }
  0x11   : > { %s931_s28 = sshll.u32 %s299_s25, 3  ;;  %s980_s29 = sshll.u32 %s299_s25, 8 }
  0x12   : > { %s306_s30 = sadd.s32 %s932_s26, %s931_s28  ;;  %s1219_s8 = scalar_lea.vmem %s1311_s1, %s980_s29 }
  0x13   : > { %s933_s9 = sshll.u32 %s306_s30, 2  ;;  %s936_s10 = sshll.u32 %s299_s25, 1 }
  0x14   : > { %s1224_s13 = scalar_lea.vmem %s1310_s0, %s933_s9  ;;  %s325_s14 = sadd.s32 %s937_s27, %s936_s10 }
  0x15   : > { %s938_s15 = sshll.u32 %s325_s14, 3  ;;  %s331_s24 = scalar_lea.vmem %s1314_s4, %s1331_s19 }
  0x16   : > { %s1233_s28 = scalar_lea.vmem %s1313_s3, %s938_s15  ;;  %s334_s25 = scalar_lea.vmem %s1315_s5, %s1331_s19 }
  0x17   : > { %341 = sbr.rel (!%p336_p7) target bundleno = 28 (0x1c), region = 36 }
  0x1c PF: > { %v1068_v1 = vld [vmem:[%s1219_s8 + $0x78] sm:$0xff]   ;;  %v1072_v5 = vld [vmem:[%s1219_s8 + $0x70] sm:$0xff]   ;;  %v1076_v9 = vld [vmem:[%s1219_s8 + $0x68] sm:$0xff]   ;;  %p737_p8 = scmp.eq.s32.totalorder %s1128_s18, 3 }
  0x1d   : > { %v1069_v2 = vld [vmem:[%s1219_s8 + $0xf8] sm:$0xff]   ;;  %983 = vmatprep.subr.bf16.mxu0 %v1068_v1  ;;  %v1073_v6 = vld [vmem:[%s1219_s8 + $0xf0] sm:$0xff]   ;;  %v1077_v10 = vld [vmem:[%s1219_s8 + $0xe8] sm:$0xff]  }
  0x1e   : > { %v1070_v3 = vld [vmem:[%s1219_s8 + $0x38] sm:$0xff]   ;;  %1005 = vmatprep.subr.bf16.mxu1 %v1069_v2  ;;  %v1074_v7 = vld [vmem:[%s1219_s8 + $0x30] sm:$0xff]   ;;  %v1078_v11 = vld [vmem:[%s1219_s8 + $0x28] sm:$0xff]  }
  0x1f   : > { %v1071_v4 = vld [vmem:[%s1219_s8 + $0xb8] sm:$0xff]   ;;  %984 = vmatpush3.bf16.msra.mxu0 %v1070_v3  ;;  %v1075_v8 = vld [vmem:[%s1219_s8 + $0xb0] sm:$0xff]   ;;  %v1079_v12 = vld [vmem:[%s1219_s8 + $0xa8] sm:$0xff]  }
  0x20   : > { %1006 = vmatpush3.bf16.msra.mxu1 %v1071_v4  ;;  %985 = vmatprep.subr.bf16.mxu0 %v1072_v5  ;;  %v1080_v13 = vld [vmem:[%s1219_s8 + $0x60] sm:$0xff]   ;;  %v1084_v17 = vld [vmem:[%s1219_s8 + $0x58] sm:$0xff]   ;;  %v1088_v21 = vld [vmem:[%s1219_s8 + $0x50] sm:$0xff]  }
  0x21   : > { %1007 = vmatprep.subr.bf16.mxu1 %v1073_v6  ;;  %v1081_v14 = vld [vmem:[%s1219_s8 + $0xe0] sm:$0xff]   ;;  %v1085_v18 = vld [vmem:[%s1219_s8 + $0xd8] sm:$0xff]   ;;  %v1089_v22 = vld [vmem:[%s1219_s8 + $0xd0] sm:$0xff]  }
  0x22   : > { %v1082_v15 = vld [vmem:[%s1219_s8 + $0x20] sm:$0xff]   ;;  %v1086_v19 = vld [vmem:[%s1219_s8 + $0x18] sm:$0xff]   ;;  %v1090_v23 = vld [vmem:[%s1219_s8 + $0x10] sm:$0xff]  }
  0x23   : > { %986 = vmatpush3.bf16.msra.mxu0 %v1074_v7  ;;  %v1083_v16 = vld [vmem:[%s1219_s8 + $0xa0] sm:$0xff]   ;;  %v1087_v20 = vld [vmem:[%s1219_s8 + $0x98] sm:$0xff]   ;;  %v1091_v24 = vld [vmem:[%s1219_s8 + $0x90] sm:$0xff]  }
  0x24   : > { %1008 = vmatpush3.bf16.msra.mxu1 %v1075_v8  ;;  %987 = vmatprep.subr.bf16.mxu0 %v1076_v9  ;;  %v1092_v25 = vld [vmem:[%s1219_s8 + $0x48] sm:$0xff]   ;;  %v1096_v29 = vld [vmem:[%s1219_s8 + $0x40] sm:$0xff]  }
  0x25   : > { %1009 = vmatprep.subr.bf16.mxu1 %v1077_v10  ;;  %v1093_v26 = vld [vmem:[%s1219_s8 + $0xc8] sm:$0xff]   ;;  %v1097_v30 = vld [vmem:[%s1219_s8 + $0xc0] sm:$0xff]  }
  0x26   : > { %v1094_v27 = vld [vmem:[%s1219_s8 + $0x8] sm:$0xff]   ;;  %v1098_v31 = vld [vmem:[%s1219_s8] sm:$0xff]  }
  0x27   : > { %988 = vmatpush3.bf16.msra.mxu0 %v1078_v11  ;;  %v1095_v28 = vld [vmem:[%s1219_s8 + $0x88] sm:$0xff]   ;;  %v1099_v32 = vld [vmem:[%s1219_s8 + $0x80] sm:$0xff]  }
  0x28   : > { %1010 = vmatpush3.bf16.msra.mxu1 %v1079_v12  ;;  %989 = vmatprep.subr.bf16.mxu0 %v1080_v13  ;;  %v1100_v33 = vld [vmem:[%s1224_s13] ss:$16 sps:$4 sm:$0xff]   ;;  %v1102_v34 = vld [vmem:[%s1224_s13 + $0x4] ss:$16 sps:$4 sm:$0xff]   ;;  %v1103_v35 = vld [vmem:[%s1224_s13 + $0x8] ss:$16 sps:$4 sm:$0xff]  }
  0x29   : > { %1011 = vmatprep.subr.bf16.mxu1 %v1081_v14  ;;  %v1105_v36 = vld [vmem:[%s1224_s13 + $0xc] ss:$16 sps:$4 sm:$0xff]   ;;  %663 = vmatprep.mubr.bf16.mxu0 %v1102_v34  ;;  %v940_v39 = vld [vmem:[%s1312_s2] ss:$0 sm:$0xff]  ;;  %v723_v6 = vld [vmem:[#allocation3] sm:$0x1] }
  0x2a   : > { %704 = vmatprep.mubr.bf16.mxu1 %v1105_v36  ;;  %v713_v3 = vld [vmem:[#allocation2] sm:$0x1] }
  0x2b   : > { %990 = vmatpush3.bf16.msra.mxu0 %v1082_v15 }
  0x2c   : > { %1012 = vmatpush3.bf16.msra.mxu1 %v1083_v16  ;;  %991 = vmatprep.subr.bf16.mxu0 %v1084_v17 }
  0x2d   : > { %1013 = vmatprep.subr.bf16.mxu1 %v1085_v18 }
  0x2f   : > { %992 = vmatpush3.bf16.msra.mxu0 %v1086_v19 }
  0x30   : > { %1014 = vmatpush3.bf16.msra.mxu1 %v1087_v20  ;;  %993 = vmatprep.subr.bf16.mxu0 %v1088_v21 }
  0x31   : > { %1015 = vmatprep.subr.bf16.mxu1 %v1089_v22 }
  0x33   : > { %994 = vmatpush3.bf16.msra.mxu0 %v1090_v23 }
  0x34   : > { %1016 = vmatpush3.bf16.msra.mxu1 %v1091_v24  ;;  %995 = vmatprep.subr.bf16.mxu0 %v1092_v25 }
  0x35   : > { %1017 = vmatprep.subr.bf16.mxu1 %v1093_v26 }
  0x37   : > { %996 = vmatpush3.bf16.msra.mxu0 %v1094_v27 }
  0x38   : > { %1018 = vmatpush3.bf16.msra.mxu1 %v1095_v28  ;;  %997 = vmatprep.subr.bf16.mxu0 %v1096_v29 }
  0x39   : > { %1019 = vmatprep.subr.bf16.mxu1 %v1097_v30 }
  0x3b   : > { %998 = vmatpush3.bf16.msra.mxu0 %v1098_v31 }
  0x3c   : > { %1020 = vmatpush3.bf16.msra.mxu1 %v1099_v32 }
  0x3e   : > { %664 = vmatmul.mubr.bf16.vlgmr.msra.gmra.mxu0 %v1100_v33 }
  0x3f   : > { %705 = vmatmul.mubr.bf16.vlgmr.msra.gmra.mxu1 %v1103_v35 }
  0xfe   : > { %v999_v37 = vpop.f32.mrf.mxu0 }
  0xff   : > { %v1021_v38 = vpop.f32.mrf.mxu1 }
 0x100   : > { %v1000_v40 = vpop.f32.mrf.mxu0 }
 0x101   : > { %v1001_v41 = vadd.f32 %v1000_v40, %v999_v37  ;;  %v1022_v42 = vpop.f32.mrf.mxu1 }
 0x102   : > { %v1002_v43 = vpop.f32.mrf.mxu0  ;;  %v1023_v45 = vadd.f32 %v1022_v42, %v1021_v38 }
 0x103   : > { %v666_v44 = vadd.f32 %v1001_v41, %v940_v39  ;;  %v1024_v46 = vpop.f32.mrf.mxu1 }
 0x104   : > { %v1003_v47 = vpop.f32.mrf.mxu0 }
 0x105   : > { %v707_v48 = vadd.f32 %v1023_v45, %v666_v44  ;;  %v1004_v49 = vadd.f32 %v1003_v47, %v1002_v43  ;;  %v1025_v50 = vpop.f32.mrf.mxu1 }
 0x106   : > { %v1026_v52 = vadd.f32 %v1025_v50, %v1024_v46 }
 0x107   : > { %735 = vst [vmem:[%s1233_s28] sm:$0xff] %v707_v48  ;;  %v669_v51 = vadd.f32 %v1004_v49, %v940_v39  ;;  %v724_v54 = vmul.f32 %v707_v48, %v707_v48 }
 0x109   : > { %v710_v53 = vadd.f32 %v1026_v52, %v669_v51 }
 0x10b   : > { %v714_v55 = vadd.f32 %v710_v53, %v707_v48  ;;  %v725_v56 = vmul.f32 %v710_v53, %v710_v53  ;;  %736 = vst [vmem:[%s1233_s28 + $0x8] sm:$0xff] %v710_v53 }
 0x10d   : > { %v715_v57 = vrot.slane %v714_v55, 4  ;;  %v726_v58 = vadd.f32 %v725_v56, %v724_v54 }
 0x10f   : > { %v716_v59 = vadd.f32 %v715_v57, %v714_v55  ;;  %v727_v60 = vrot.slane %v726_v58, 4 }
 0x111   : > { %v717_v61 = vrot.slane %v716_v59, 2  ;;  %v728_v62 = vadd.f32 %v727_v60, %v726_v58 }
 0x113   : > { %v718_v63 = vadd.f32 %v717_v61, %v716_v59  ;;  %v729_v0 = vrot.slane %v728_v62, 2 }
 0x115   : > { %v719_v1 = vrot.slane %v718_v63, 1  ;;  %v730_v2 = vadd.f32 %v729_v0, %v728_v62 }
 0x117   : > { %v720_v4 = vadd.f32 %v719_v1, %v718_v63  ;;  %v731_v5 = vrot.slane %v730_v2, 1 }
 0x119   : > { %v721_v7 = vadd.f32 %v720_v4, %v713_v3  ;;  %v732_v8 = vadd.f32 %v731_v5, %v730_v2  ;;  %741 = sbr.rel (!%p737_p8) target bundleno = 294 (0x126), region = 40 }
 0x11b   : > { %722 = vst [vmem:[#allocation2] sm:$0x1] %v721_v7  ;;  %v733_v9 = vadd.f32 %v732_v8, %v723_v6 }
 0x11d   : > { %734 = vst [vmem:[#allocation3] sm:$0x1] %v733_v9 }
 0x122   : > { %v742_v10 = vld [vmem:[#allocation2] sm:$0x1] }
 0x123   : > { %743 = vst [vmem:[%s331_s24] sm:$0x1] %v742_v10 }
 0x124   : > { %v744_v11 = vld [vmem:[#allocation3] sm:$0x1] }
 0x125   : > { %745 = vst [vmem:[%s334_s25] sm:$0x1] %v744_v11 }
 0x126 PF: > { %s16_s22 = sadd.s32 1, %s1144_s22   ;;  %s1318_s10 = sld [smem:[#allocation4_spill]] }
 0x127   : > { %p13_p9 = scmp.ge.s32.totalorder %s16_s22, 10   ;;  %s1319_s11 = sld [smem:[#allocation5_spill]] }
 0x128   : > { %s1320_s18 = smov %s1136_s20  ;;  %s1321_s19 = smov %s1140_s21 }
 0x129   :  { %15 = sbr.rel (!%p13_p9) target bundleno = 3 (0x3), region = 97 }
 0x12c   : > { %s1322_s20 = smov %s1318_s10 }
 0x12d   : > { %s1323_s21 = smov %s1319_s11 }

// kernel: forward.40
= control target key start
LH: loop header
LB: loop body
LE: loop exit
PB: predicated region body
PF: predicated region fallthrough
CT: control target
= control target key end

     0   :  { %s642_s12 = smov 0   ;;  %s644_s13 = smov 0   ;;  %s703_s0 = inlined_call_operand.vmem [shape: f32[2,4,64,128], index: 0, kind: input, shape index: {}]   ;;  %s704_s1 = inlined_call_operand.vmem [shape: f32[2,1,128], index: 1, kind: input, shape index: {}]   ;;  %s705_s2 = inlined_call_operand.vmem [shape: f32[2,1,128], index: 2, kind: input, shape index: {}]   ;;  %s706_s3 = inlined_call_operand.vmem [shape: bf16[2,4,64,128], index: 3, kind: output, shape index: {}]  }
   0x1   :  { %s646_s14 = smov 0   ;;  %s648_s15 = smov 0  }
   0x2   :  { %s650_s16 = smov 0  }
   0x3 LB: > { %s28_s17 = sadd.s32 1, %s612_s14  ;;  %s32_s18 = sadd.s32 1, %s616_s15  ;;  %s620_s16 = sphi %s650_s16, %s13_s16   ;;  %s616_s15 = sphi %s648_s15, %s710_s15   ;;  %s612_s14 = sphi %s646_s14, %s709_s14   ;;  %s608_s13 = sphi %s644_s13, %s708_s13   ;;  %s604_s12 = sphi %s642_s12, %s707_s12  }
   0x4   : > { %p30_p0 = scmp.ge.s32.totalorder %s28_s17, 4  ;;  %p492_p1 = scmp.ge.s32.totalorder %s620_s16, 1 }
   0x5   : > { %p189_p2 = scmp.lt.s32.totalorder %s620_s16, 9 }
   0x6   : > { %s712_s17 = smov (%p30_p0, %s28_s17), 0  ;;  %s714_s18 = smov (!%p30_p0, %s32_s18), %s616_s15 }
   0x7   : > { %p190_p3 = pnand %p492_p1, %p189_p2  ;;  %p34_p4 = scmp.ge.s32.totalorder %s714_s18, 2 }
   0x8   : > { %p236_p5 = scmp.lt.s32.totalorder (!%p190_p3), %s608_s13, 1  ;;  %p238_p6 = scmp.lt.s32.totalorder (!%p190_p3), %s604_s12, 3 }
   0x9   : > { %s716_s18 = smov (%p34_p4, %s714_s18), 0  ;;  %193 = sbr.rel (%p190_p3) target bundleno = 33 (0x21), region = 32 }
   0xe   : > { %s718_s13 = smov (!%p236_p5, %s608_s13), 1  ;;  %s720_s12 = smov (!%p238_p6, %s604_s12), 3 }
   0xf   : > { %s494_s19 = sshll.u32 %s718_s13, 5  ;;  %s251_s22 = scalar_lea.vmem %s704_s1, %s718_s13 }
  0x10   : > { %s493_s23 = sshll.u32 %s720_s12, 3  ;;  %s254_s26 = scalar_lea.vmem %s705_s2, %s718_s13  ;;  %v499_v0 = vld [vmem:[%s251_s22] ss:$0 sm:$0xff] }
  0x11   : > { %s678_s27 = sadd.s32 %s494_s19, %s493_s23  ;;  %v500_v1 = vld [vmem:[%s254_s26] ss:$0 sm:$0xff] }
  0x12   : > { %s495_s28 = sshll.u32 %s678_s27, 3  ;;  %s498_s5 = sshll.u32 %s678_s27, 2 }
  0x13   : > { %s247_s4 = scalar_lea.vmem %s703_s0, %s495_s28  ;;  %s267_s8 = scalar_lea.vmem %s706_s3, %s498_s5 }
  0x14   : > { %v269_v2 = vld [vmem:[%s247_s4] sm:$0xff]  ;;  %v270_v3 = vld [vmem:[%s247_s4 + $0x8] sm:$0xff]  ;;  %v271_v4 = vld [vmem:[%s247_s4 + $0x10] sm:$0xff] }
  0x15   : > { %v284_v5 = vsub.f32 %v269_v2, %v499_v0  ;;  %v285_v6 = vsub.f32 %v270_v3, %v499_v0  ;;  %v272_v7 = vld [vmem:[%s247_s4 + $0x18] sm:$0xff]  ;;  %v286_v8 = vsub.f32 %v271_v4, %v499_v0  ;;  %v273_v9 = vld [vmem:[%s247_s4 + $0x20] sm:$0xff]  ;;  %v274_v10 = vld [vmem:[%s247_s4 + $0x28] sm:$0xff] }
  0x16   : > { %v287_v11 = vsub.f32 %v272_v7, %v499_v0  ;;  %v288_v12 = vsub.f32 %v273_v9, %v499_v0  ;;  %v289_v13 = vsub.f32 %v274_v10, %v499_v0  ;;  %v275_v14 = vld [vmem:[%s247_s4 + $0x30] sm:$0xff]  ;;  %v276_v15 = vld [vmem:[%s247_s4 + $0x38] sm:$0xff] }
  0x17   : > { %v299_v16 = vmul.f32 %v500_v1, %v284_v5  ;;  %v300_v17 = vmul.f32 %v500_v1, %v285_v6  ;;  %v301_v18 = vmul.f32 %v500_v1, %v286_v8  ;;  %v290_v19 = vsub.f32 %v275_v14, %v499_v0 }
  0x18   : > { %v302_v20 = vmul.f32 %v500_v1, %v287_v11  ;;  %v303_v21 = vmul.f32 %v500_v1, %v288_v12  ;;  %v304_v22 = vmul.f32 %v500_v1, %v289_v13  ;;  %v291_v23 = vsub.f32 %v276_v15, %v499_v0 }
  0x19   : > { %v307_v24 = vmax.f32 %v299_v16, 0.0  ;;  %v308_v25 = vmax.f32 %v300_v17, 0.0  ;;  %v309_v26 = vmax.f32 %v301_v18, 0.0  ;;  %v305_v27 = vmul.f32 %v500_v1, %v290_v19 }
  0x1a   : > { %v310_v28 = vmax.f32 %v302_v20, 0.0  ;;  %v311_v29 = vmax.f32 %v303_v21, 0.0  ;;  %v312_v30 = vmax.f32 %v304_v22, 0.0  ;;  %v306_v31 = vmul.f32 %v500_v1, %v291_v23 }
  0x1b   : > { %v522_v32 = vpack.c.bf16 %v308_v25, %v307_v24  ;;  %v313_v33 = vmax.f32 %v305_v27, 0.0 }
  0x1c   : > { %v527_v34 = vpack.c.bf16 %v310_v28, %v309_v26  ;;  %v532_v35 = vpack.c.bf16 %v312_v30, %v311_v29  ;;  %v314_v36 = vmax.f32 %v306_v31, 0.0 }
  0x1d   : > { %523 = vst [vmem:[%s267_s8] sm:$0xff] %v522_v32  }
  0x1e   : > { %539 = vst [vmem:[%s267_s8 + $0x8] sm:$0xff] %v527_v34   ;;  %540 = vst [vmem:[%s267_s8 + $0x10] sm:$0xff] %v532_v35   ;;  %v537_v37 = vpack.c.bf16 %v314_v36, %v313_v33 }
  0x20   : > { %541 = vst [vmem:[%s267_s8 + $0x18] sm:$0xff] %v537_v37  }
  0x21 PF: > { %s13_s16 = sadd.s32 1, %s620_s16   ;;  %s707_s12 = smov %s612_s14 }
  0x22   : > { %p10_p7 = scmp.ge.s32.totalorder %s13_s16, 10   ;;  %s708_s13 = smov %s616_s15 }
  0x23   : > { %s709_s14 = smov %s712_s17  ;;  %s710_s15 = smov %s716_s18 }
  0x24   :  { %12 = sbr.rel (!%p10_p7) target bundleno = 3 (0x3), region = 68 }

// kernel: forward.39
= control target key start
LH: loop header
LB: loop body
LE: loop exit
PB: predicated region body
PF: predicated region fallthrough
CT: control target
= control target key end

     0   :  { %s1070_s18 = smov 0   ;;  %s1072_s19 = smov 0   ;;  %s1197_s0 = inlined_call_operand.vmem [shape: bf16[2,4,64,256], index: 0, kind: input, shape index: {}]   ;;  %s1198_s1 = inlined_call_operand.vmem [shape: bf16[4,256,128], index: 1, kind: input, shape index: {}]   ;;  %s1199_s2 = inlined_call_operand.vmem [shape: f32[1,128], index: 2, kind: input, shape index: {}]   ;;  %s1200_s3 = inlined_call_operand.vmem [shape: f32[2,4,64,128], index: 3, kind: output, shape index: {0}]   ;;  %s1201_s4 = inlined_call_operand.vmem [shape: f32[2,1,128], index: 4, kind: output, shape index: {1}]   ;;  %s1202_s5 = inlined_call_operand.vmem [shape: f32[2,1,128], index: 5, kind: output, shape index: {2}]  }
   0x1   :  { %s1074_s20 = smov 0   ;;  %s1076_s21 = smov 0  }
   0x2   :  { %s1078_s22 = smov 0  }
   0x3 LB: > { %s31_s23 = sadd.s32 1, %s1029_s20  ;;  %s35_s24 = sadd.s32 1, %s1033_s21  ;;  %s1037_s22 = sphi %s1078_s22, %s16_s22   ;;  %s1033_s21 = sphi %s1076_s21, %s1210_s21   ;;  %s1029_s20 = sphi %s1074_s20, %s1209_s20   ;;  %s1025_s19 = sphi %s1072_s19, %s1208_s19   ;;  %s1021_s18 = sphi %s1070_s18, %s1207_s18  }
   0x4   : > { %p33_p0 = scmp.ge.s32.totalorder %s31_s23, 4  ;;  %p833_p1 = scmp.ge.s32.totalorder %s1037_s22, 1 }
   0x5   : > { %p239_p2 = scmp.lt.s32.totalorder %s1037_s22, 9 }
   0x6   : > { %s1212_s23 = smov (%p33_p0, %s31_s23), 0  ;;  %s1214_s24 = smov (!%p33_p0, %s35_s24), %s1033_s21 }
   0x7   : > { %1203 = sst [smem:[#allocation4_spill]] %s1212_s23  ;;  %p240_p3 = pnand %p833_p1, %p239_p2 }
   0x8   : > { %p37_p4 = scmp.ge.s32.totalorder %s1214_s24, 2  ;;  %p296_p5 = scmp.lt.s32.totalorder (!%p240_p3), %s1025_s19, 1 }
   0x9   : > { %243 = sbr.rel (%p240_p3) target bundleno = 307 (0x133), region = 32  ;;  %p298_p6 = scmp.lt.s32.totalorder (!%p240_p3), %s1021_s18, 3 }
   0xa   : > { %s1216_s24 = smov (%p37_p4, %s1214_s24), 0  ;;  %p336_p7 = scmp.eq.s32.totalorder (!%p240_p3), %s1021_s18, 0 }
   0xb   : > { %1204 = sst [smem:[#allocation5_spill]] %s1216_s24 }
   0xe   : > { %s1218_s19 = smov (!%p296_p5, %s1025_s19), 1  ;;  %v1039_v0 = vmov (%p336_p7), 0.0  }
   0xf   : > { %s299_s25 = scalar_select %p298_p6, %s1021_s18, 3  ;;  %342 = vst [vmem:[#allocation2] sm:$0x1] (%p336_p7), %v1039_v0  ;;  %343 = vst [vmem:[#allocation3] sm:$0x1] (%p336_p7), %v1039_v0 }
  0x10   : > { %s835_s26 = sshll.u32 %s1218_s19, 6  ;;  %s840_s27 = sshll.u32 %s1218_s19, 5 }
  0x11   : > { %s834_s28 = sshll.u32 %s299_s25, 4  ;;  %s871_s29 = sshll.u32 %s299_s25, 7 }
  0x12   : > { %s306_s30 = sadd.s32 %s835_s26, %s834_s28  ;;  %s1112_s8 = scalar_lea.vmem %s1198_s1, %s871_s29 }
  0x13   : > { %s836_s9 = sshll.u32 %s306_s30, 2  ;;  %s839_s10 = sshll.u32 %s299_s25, 3 }
  0x14   : > { %s1117_s13 = scalar_lea.vmem %s1197_s0, %s836_s9  ;;  %s325_s14 = sadd.s32 %s840_s27, %s839_s10 }
  0x15   : > { %s841_s15 = sshll.u32 %s325_s14, 3  ;;  %s331_s24 = scalar_lea.vmem %s1201_s4, %s1218_s19 }
  0x16   : > { %s1126_s28 = scalar_lea.vmem %s1200_s3, %s841_s15  ;;  %s334_s25 = scalar_lea.vmem %s1202_s5, %s1218_s19 }
  0x17   : > { %341 = sbr.rel (!%p336_p7) target bundleno = 28 (0x1c), region = 36 }
  0x1c PF: > { %v971_v1 = vld [vmem:[%s1112_s8 + $0x78] sm:$0xff]   ;;  %v973_v3 = vld [vmem:[%s1112_s8 + $0x70] sm:$0xff]   ;;  %v975_v5 = vld [vmem:[%s1112_s8 + $0x68] sm:$0xff]   ;;  %p640_p8 = scmp.eq.s32.totalorder %s1021_s18, 3 }
  0x1d   : > { %v972_v2 = vld [vmem:[%s1112_s8 + $0x38] sm:$0xff]   ;;  %874 = vmatprep.subr.bf16.mxu0 %v971_v1  ;;  %914 = vmatprep.subr.bf16.mxu1 %v971_v1  ;;  %v974_v4 = vld [vmem:[%s1112_s8 + $0x30] sm:$0xff]   ;;  %v976_v6 = vld [vmem:[%s1112_s8 + $0x28] sm:$0xff]  }
  0x1e   : > { %875 = vmatpush3.bf16.msra.mxu0 %v972_v2  ;;  %922 = vmatpush3.bf16.msra.mxu1 %v972_v2  ;;  %v977_v7 = vld [vmem:[%s1112_s8 + $0x60] sm:$0xff]   ;;  %v979_v9 = vld [vmem:[%s1112_s8 + $0x58] sm:$0xff]   ;;  %v981_v11 = vld [vmem:[%s1112_s8 + $0x50] sm:$0xff]  }
  0x1f   : > { %876 = vmatprep.subr.bf16.mxu0 %v973_v3  ;;  %915 = vmatprep.subr.bf16.mxu1 %v973_v3  ;;  %v978_v8 = vld [vmem:[%s1112_s8 + $0x20] sm:$0xff]   ;;  %v980_v10 = vld [vmem:[%s1112_s8 + $0x18] sm:$0xff]   ;;  %v982_v14 = vld [vmem:[%s1112_s8 + $0x10] sm:$0xff]  }
  0x20   : > { %v989_v12 = vld [vmem:[%s1117_s13 + $0x4] ss:$8 sps:$4 sm:$0xff]   ;;  %v987_v19 = vld [vmem:[%s1117_s13] ss:$8 sps:$4 sm:$0xff]   ;;  %v993_v21 = vld [vmem:[%s1117_s13 + $0x14] ss:$8 sps:$4 sm:$0xff]  }
  0x21   : > { %v992_v13 = vld [vmem:[%s1117_s13 + $0x24] ss:$8 sps:$4 sm:$0xff]   ;;  %559 = vmatprep.mubr.bf16.mxu0 %v989_v12  ;;  %v990_v20 = vld [vmem:[%s1117_s13 + $0x20] ss:$8 sps:$4 sm:$0xff]   ;;  %v996_v22 = vld [vmem:[%s1117_s13 + $0x34] ss:$8 sps:$4 sm:$0xff]  }
  0x22   : > { %877 = vmatpush3.bf16.msra.mxu0 %v974_v4  ;;  %923 = vmatpush3.bf16.msra.mxu1 %v974_v4  ;;  %v983_v15 = vld [vmem:[%s1112_s8 + $0x48] sm:$0xff]   ;;  %v985_v17 = vld [vmem:[%s1112_s8 + $0x40] sm:$0xff]   ;;  %v995_v23 = vld [vmem:[%s1117_s13 + $0x10] ss:$8 sps:$4 sm:$0xff]  }
  0x23   : > { %878 = vmatprep.subr.bf16.mxu0 %v975_v5  ;;  %916 = vmatprep.subr.bf16.mxu1 %v975_v5  ;;  %v984_v16 = vld [vmem:[%s1112_s8 + $0x8] sm:$0xff]   ;;  %v986_v18 = vld [vmem:[%s1112_s8] sm:$0xff]   ;;  %v998_v24 = vld [vmem:[%s1117_s13 + $0x30] ss:$8 sps:$4 sm:$0xff]  }
  0x24   : > { %575 = vmatprep.mubr.bf16.mxu1 %v992_v13  ;;  %v843_v27 = vld [vmem:[%s1199_s2] ss:$0 sm:$0xff] }
  0x26   : > { %879 = vmatpush3.bf16.msra.mxu0 %v976_v6  ;;  %924 = vmatpush3.bf16.msra.mxu1 %v976_v6 }
  0x27   : > { %880 = vmatprep.subr.bf16.mxu0 %v977_v7  ;;  %917 = vmatprep.subr.bf16.mxu1 %v977_v7 }
  0x2a   : > { %881 = vmatpush3.bf16.msra.mxu0 %v978_v8  ;;  %925 = vmatpush3.bf16.msra.mxu1 %v978_v8 }
  0x2b   : > { %882 = vmatprep.subr.bf16.mxu0 %v979_v9  ;;  %918 = vmatprep.subr.bf16.mxu1 %v979_v9 }
  0x2e   : > { %883 = vmatpush3.bf16.msra.mxu0 %v980_v10  ;;  %926 = vmatpush3.bf16.msra.mxu1 %v980_v10 }
  0x2f   : > { %884 = vmatprep.subr.bf16.mxu0 %v981_v11  ;;  %919 = vmatprep.subr.bf16.mxu1 %v981_v11 }
  0x32   : > { %885 = vmatpush3.bf16.msra.mxu0 %v982_v14  ;;  %927 = vmatpush3.bf16.msra.mxu1 %v982_v14 }
  0x33   : > { %886 = vmatprep.subr.bf16.mxu0 %v983_v15  ;;  %920 = vmatprep.subr.bf16.mxu1 %v983_v15 }
  0x36   : > { %887 = vmatpush3.bf16.msra.mxu0 %v984_v16  ;;  %928 = vmatpush3.bf16.msra.mxu1 %v984_v16 }
  0x37   : > { %888 = vmatprep.subr.bf16.mxu0 %v985_v17  ;;  %921 = vmatprep.subr.bf16.mxu1 %v985_v17 }
  0x3a   : > { %889 = vmatpush3.bf16.msra.mxu0 %v986_v18  ;;  %929 = vmatpush3.bf16.msra.mxu1 %v986_v18 }
  0x3d   : > { %560 = vmatmul.mubr.bf16.vlgmr.msra.gmra.mxu0 %v987_v19  ;;  %576 = vmatmul.mubr.bf16.vlgmr.msra.gmra.mxu1 %v990_v20 }
  0x3e   : > { %567 = vmatprep.mubr.bf16.mxu0 %v993_v21  ;;  %583 = vmatprep.mubr.bf16.mxu1 %v996_v22 }
  0x45   : > { %568 = vmatmul.mubr.bf16.gmra.mxu0 %v995_v23  ;;  %584 = vmatmul.mubr.bf16.gmra.mxu1 %v998_v24 }
  0xfd   : > { %v890_v25 = vpop.f32.mrf.mxu0  ;;  %v902_v26 = vpop.f32.mrf.mxu1 }
  0xff   : > { %v891_v28 = vpop.f32.mrf.mxu0  ;;  %v903_v29 = vpop.f32.mrf.mxu1 }
 0x100   : > { %v892_v30 = vadd.f32 %v891_v28, %v890_v25  ;;  %v904_v31 = vadd.f32 %v903_v29, %v902_v26  ;;  %v592_v25 = vld [vmem:[#allocation2] sm:$0x1]  ;;  %v608_v28 = vld [vmem:[#allocation3] sm:$0x1] }
 0x101   : > { %v893_v32 = vpop.f32.mrf.mxu0  ;;  %v905_v33 = vpop.f32.mrf.mxu1 }
 0x102   : > { %v562_v34 = vadd.f32 %v892_v30, %v843_v27  ;;  %v578_v35 = vadd.f32 %v904_v31, %v843_v27 }
 0x103   : > { %v894_v36 = vpop.f32.mrf.mxu0  ;;  %v906_v37 = vpop.f32.mrf.mxu1 }
 0x104   : > { %632 = vst [vmem:[%s1126_s28] sm:$0xff] %v562_v34  ;;  %636 = vst [vmem:[%s1126_s28 + $0x20] sm:$0xff] %v578_v35  ;;  %v895_v38 = vadd.f32 %v894_v36, %v893_v32  ;;  %v907_v39 = vadd.f32 %v906_v37, %v905_v33  ;;  %v609_v52 = vmul.f32 %v562_v34, %v562_v34 }
 0x105   : > { %v896_v40 = vpop.f32.mrf.mxu0  ;;  %v908_v41 = vpop.f32.mrf.mxu1  ;;  %v613_v3 = vmul.f32 %v578_v35, %v578_v35 }
 0x106   : > { %v565_v42 = vadd.f32 %v895_v38, %v843_v27  ;;  %v581_v43 = vadd.f32 %v907_v39, %v843_v27 }
 0x107   : > { %v897_v44 = vpop.f32.mrf.mxu0  ;;  %v909_v45 = vpop.f32.mrf.mxu1 }
 0x108   : > { %633 = vst [vmem:[%s1126_s28 + $0x8] sm:$0xff] %v565_v42  ;;  %637 = vst [vmem:[%s1126_s28 + $0x28] sm:$0xff] %v581_v43  ;;  %v898_v46 = vadd.f32 %v897_v44, %v896_v40  ;;  %v910_v48 = vadd.f32 %v909_v45, %v908_v41  ;;  %v610_v50 = vmul.f32 %v565_v42, %v565_v42 }
 0x109   : > { %v899_v47 = vpop.f32.mrf.mxu0  ;;  %v911_v49 = vpop.f32.mrf.mxu1  ;;  %v593_v56 = vadd.f32 %v565_v42, %v562_v34  ;;  %v614_v6 = vmul.f32 %v581_v43, %v581_v43 }
 0x10a   : > { %v570_v51 = vadd.f32 %v898_v46, %v843_v27  ;;  %v586_v53 = vadd.f32 %v910_v48, %v843_v27  ;;  %v617_v60 = vadd.f32 %v610_v50, %v609_v52 }
 0x10b   : > { %v900_v54 = vpop.f32.mrf.mxu0  ;;  %v912_v55 = vpop.f32.mrf.mxu1 }
 0x10c   : > { %v611_v57 = vmul.f32 %v570_v51, %v570_v51  ;;  %634 = vst [vmem:[%s1126_s28 + $0x10] sm:$0xff] %v570_v51  ;;  %v901_v58 = vadd.f32 %v900_v54, %v899_v47  ;;  %v913_v59 = vadd.f32 %v912_v55, %v911_v49  ;;  %638 = vst [vmem:[%s1126_s28 + $0x30] sm:$0xff] %v586_v53 }
 0x10d   : > { %v594_v61 = vadd.f32 %v593_v56, %v570_v51  ;;  %v615_v9 = vmul.f32 %v586_v53, %v586_v53 }
 0x10e   : > { %v573_v62 = vadd.f32 %v901_v58, %v843_v27  ;;  %v589_v63 = vadd.f32 %v913_v59, %v843_v27  ;;  %v618_v0 = vadd.f32 %v617_v60, %v611_v57 }
 0x110   : > { %v595_v1 = vadd.f32 %v594_v61, %v573_v62  ;;  %v612_v2 = vmul.f32 %v573_v62, %v573_v62  ;;  %635 = vst [vmem:[%s1126_s28 + $0x18] sm:$0xff] %v573_v62  ;;  %639 = vst [vmem:[%s1126_s28 + $0x38] sm:$0xff] %v589_v63  ;;  %v616_v13 = vmul.f32 %v589_v63, %v589_v63 }
 0x112   : > { %v596_v4 = vadd.f32 %v595_v1, %v578_v35  ;;  %v619_v5 = vadd.f32 %v618_v0, %v612_v2 }
 0x114   : > { %v620_v7 = vadd.f32 %v619_v5, %v613_v3  ;;  %v597_v8 = vadd.f32 %v596_v4, %v581_v43 }
 0x116   : > { %v598_v10 = vadd.f32 %v597_v8, %v586_v53  ;;  %v621_v11 = vadd.f32 %v620_v7, %v614_v6 }
 0x118   : > { %v599_v12 = vadd.f32 %v598_v10, %v589_v63  ;;  %v622_v14 = vadd.f32 %v621_v11, %v615_v9 }
 0x11a   : > { %v600_v15 = vrot.slane %v599_v12, 4  ;;  %v623_v16 = vadd.f32 %v622_v14, %v616_v13 }
 0x11c   : > { %v601_v17 = vadd.f32 %v600_v15, %v599_v12  ;;  %v624_v18 = vrot.slane %v623_v16, 4 }
 0x11e   : > { %v602_v19 = vrot.slane %v601_v17, 2  ;;  %v625_v20 = vadd.f32 %v624_v18, %v623_v16 }
 0x120   : > { %v603_v21 = vadd.f32 %v602_v19, %v601_v17  ;;  %v626_v22 = vrot.slane %v625_v20, 2 }
 0x122   : > { %v604_v23 = vrot.slane %v603_v21, 1  ;;  %v627_v24 = vadd.f32 %v626_v22, %v625_v20 }
 0x124   : > { %v605_v26 = vadd.f32 %v604_v23, %v603_v21  ;;  %v628_v27 = vrot.slane %v627_v24, 1 }
 0x126   : > { %v606_v29 = vadd.f32 %v605_v26, %v592_v25  ;;  %v629_v30 = vadd.f32 %v628_v27, %v627_v24  ;;  %644 = sbr.rel (!%p640_p8) target bundleno = 307 (0x133), region = 40 }
 0x128   : > { %607 = vst [vmem:[#allocation2] sm:$0x1] %v606_v29  ;;  %v630_v31 = vadd.f32 %v629_v30, %v608_v28 }
 0x12a   : > { %631 = vst [vmem:[#allocation3] sm:$0x1] %v630_v31 }
 0x12f   : > { %v645_v32 = vld [vmem:[#allocation2] sm:$0x1] }
 0x130   : > { %646 = vst [vmem:[%s331_s24] sm:$0x1] %v645_v32 }
 0x131   : > { %v647_v33 = vld [vmem:[#allocation3] sm:$0x1] }
 0x132   : > { %648 = vst [vmem:[%s334_s25] sm:$0x1] %v647_v33 }
 0x133 PF: > { %s16_s22 = sadd.s32 1, %s1037_s22   ;;  %s1205_s10 = sld [smem:[#allocation4_spill]] }
 0x134   : > { %p13_p9 = scmp.ge.s32.totalorder %s16_s22, 10   ;;  %s1206_s11 = sld [smem:[#allocation5_spill]] }
 0x135   : > { %s1207_s18 = smov %s1029_s20  ;;  %s1208_s19 = smov %s1033_s21 }
 0x136   :  { %15 = sbr.rel (!%p13_p9) target bundleno = 3 (0x3), region = 97 }
 0x139   : > { %s1209_s20 = smov %s1205_s10 }
 0x13a   : > { %s1210_s21 = smov %s1206_s11 }

// kernel: forward.41
= control target key start
LH: loop header
LB: loop body
LE: loop exit
PB: predicated region body
PF: predicated region fallthrough
CT: control target
= control target key end

     0   :  { %s1300_s18 = smov 0   ;;  %s1302_s19 = smov 0   ;;  %s1574_s0 = inlined_call_operand.vmem [shape: bf16[2,4,256,128], index: 0, kind: input, shape index: {}]   ;;  %s1575_s1 = inlined_call_operand.vmem [shape: bf16[4,128,128], index: 1, kind: input, shape index: {}]   ;;  %s1576_s2 = inlined_call_operand.vmem [shape: f32[1,128], index: 2, kind: input, shape index: {}]   ;;  %s1577_s3 = inlined_call_operand.vmem [shape: f32[2,4,256,128], index: 3, kind: output, shape index: {0}]   ;;  %s1578_s4 = inlined_call_operand.vmem [shape: f32[2,1,128], index: 4, kind: output, shape index: {1}]   ;;  %s1579_s5 = inlined_call_operand.vmem [shape: f32[2,1,128], index: 5, kind: output, shape index: {2}]  }
   0x1   :  { %s1304_s20 = smov 0   ;;  %s1306_s21 = smov 0  }
   0x2   :  { %s1308_s22 = smov 0  }
   0x3 LB: > { %s31_s23 = sadd.s32 1, %s1259_s20  ;;  %s35_s24 = sadd.s32 1, %s1263_s21  ;;  %s1267_s22 = sphi %s1308_s22, %s16_s22   ;;  %s1263_s21 = sphi %s1306_s21, %s1583_s21   ;;  %s1259_s20 = sphi %s1304_s20, %s1582_s20   ;;  %s1255_s19 = sphi %s1302_s19, %s1581_s19   ;;  %s1251_s18 = sphi %s1300_s18, %s1580_s18  }
   0x4   : > { %p33_p0 = scmp.ge.s32.totalorder %s31_s23, 4  ;;  %p1035_p1 = scmp.ge.s32.totalorder %s1267_s22, 1 }
   0x5   : > { %p238_p2 = scmp.lt.s32.totalorder %s1267_s22, 9 }
   0x6   : > { %s1585_s23 = smov (%p33_p0, %s31_s23), 0  ;;  %s1587_s24 = smov (!%p33_p0, %s35_s24), %s1263_s21 }
   0x7   : > { %p239_p3 = pnand %p1035_p1, %p238_p2  ;;  %p37_p4 = scmp.ge.s32.totalorder %s1587_s24, 2 }
   0x8   : > { %p294_p5 = scmp.lt.s32.totalorder (!%p239_p3), %s1255_s19, 1  ;;  %p296_p6 = scmp.lt.s32.totalorder (!%p239_p3), %s1251_s18, 3 }
   0x9   : > { %s1589_s24 = smov (%p37_p4, %s1587_s24), 0  ;;  %242 = sbr.rel (%p239_p3) target bundleno = 347 (0x15b), region = 32 }
   0xa   : > { %p333_p7 = scmp.eq.s32.totalorder (!%p239_p3), %s1251_s18, 0 }
   0xe   : > { %s1591_s19 = smov (!%p294_p5, %s1255_s19), 1  ;;  %v1269_v0 = vmov (%p333_p7), 0.0  }
   0xf   : > { %s297_s25 = scalar_select %p296_p6, %s1251_s18, 3  ;;  %339 = vst [vmem:[#allocation2] sm:$0x1] (%p333_p7), %v1269_v0  ;;  %340 = vst [vmem:[#allocation3] sm:$0x1] (%p333_p7), %v1269_v0 }
  0x10   : > { %s1037_s26 = sshll.u32 %s1591_s19, 7  ;;  %s328_s29 = scalar_lea.vmem %s1578_s4, %s1591_s19 }
  0x11   : > { %s1036_s30 = sshll.u32 %s297_s25, 5  ;;  %s1073_s6 = sshll.u32 %s297_s25, 6 }
  0x12   : > { %s303_s7 = sadd.s32 %s1037_s26, %s1036_s30  ;;  %s1345_s10 = scalar_lea.vmem %s1575_s1, %s1073_s6 }
  0x13   : > { %s1038_s11 = sshll.u32 %s303_s7, 2  ;;  %s1043_s12 = sshll.u32 %s303_s7, 3 }
  0x14   : > { %s1350_s15 = scalar_lea.vmem %s1574_s0, %s1038_s11  ;;  %s1355_s27 = scalar_lea.vmem %s1577_s3, %s1043_s12 }
  0x15   : > { %s331_s26 = scalar_lea.vmem %s1579_s5, %s1591_s19  ;;  %338 = sbr.rel (!%p333_p7) target bundleno = 26 (0x1a), region = 36 }
  0x1a PF: > { %v1205_v1 = vld [vmem:[%s1345_s10 + $0x38] sm:$0xff]   ;;  %v1206_v2 = vld [vmem:[%s1345_s10 + $0x30] sm:$0xff]   ;;  %v1207_v3 = vld [vmem:[%s1345_s10 + $0x28] sm:$0xff]   ;;  %p845_p8 = scmp.eq.s32.totalorder %s1251_s18, 3 }
  0x1b   : > { %1100 = vmatprep.subr.bf16.mxu0 %v1205_v1  ;;  %1148 = vmatprep.subr.bf16.mxu1 %v1205_v1  ;;  %v1208_v4 = vld [vmem:[%s1345_s10 + $0x20] sm:$0xff]   ;;  %v1209_v6 = vld [vmem:[%s1345_s10 + $0x18] sm:$0xff]   ;;  %v1210_v7 = vld [vmem:[%s1345_s10 + $0x10] sm:$0xff]  }
  0x1c   : > { %1101 = vmatpush3.bf16.msra.mxu0 %v1205_v1  ;;  %1156 = vmatpush3.bf16.msra.mxu1 %v1205_v1  ;;  %v1213_v5 = vld [vmem:[%s1350_s15] sm:$0xff]   ;;  %v1211_v9 = vld [vmem:[%s1345_s10 + $0x8] sm:$0xff]   ;;  %v1215_v13 = vld [vmem:[%s1350_s15 + $0x10] sm:$0xff]  }
  0x1d   : > { %1102 = vmatprep.subr.bf16.mxu0 %v1206_v2  ;;  %1149 = vmatprep.subr.bf16.mxu1 %v1206_v2  ;;  %v1221_v8 = vld [vmem:[%s1350_s15 + $0x40] sm:$0xff]   ;;  %v1214_v11 = vld [vmem:[%s1350_s15 + $0x8] sm:$0xff]   ;;  %v1223_v14 = vld [vmem:[%s1350_s15 + $0x50] sm:$0xff]  }
  0x1e   : > { %1116 = vmatprep.mubr.bf16.mxu0 %v1213_v5  ;;  %1132 = vmatprep.mubr.bf16.mxu1 %v1221_v8  ;;  %v1212_v10 = vld [vmem:[%s1345_s10] sm:$0xff]   ;;  %v1222_v12 = vld [vmem:[%s1350_s15 + $0x48] sm:$0xff]   ;;  %v1216_v15 = vld [vmem:[%s1350_s15 + $0x18] sm:$0xff]  }
  0x1f   : > { %v1224_v16 = vld [vmem:[%s1350_s15 + $0x58] sm:$0xff]   ;;  %v1217_v17 = vld [vmem:[%s1350_s15 + $0x20] sm:$0xff]   ;;  %v1218_v19 = vld [vmem:[%s1350_s15 + $0x28] sm:$0xff]  }
  0x20   : > { %1103 = vmatpush3.bf16.msra.mxu0 %v1206_v2  ;;  %1157 = vmatpush3.bf16.msra.mxu1 %v1206_v2  ;;  %v1225_v18 = vld [vmem:[%s1350_s15 + $0x60] sm:$0xff]   ;;  %v1226_v20 = vld [vmem:[%s1350_s15 + $0x68] sm:$0xff]   ;;  %v1219_v21 = vld [vmem:[%s1350_s15 + $0x30] sm:$0xff]  }
  0x21   : > { %1104 = vmatprep.subr.bf16.mxu0 %v1207_v3  ;;  %1150 = vmatprep.subr.bf16.mxu1 %v1207_v3  ;;  %v1227_v22 = vld [vmem:[%s1350_s15 + $0x70] sm:$0xff]   ;;  %v1220_v23 = vld [vmem:[%s1350_s15 + $0x38] sm:$0xff]   ;;  %v1391_v25 = vld [vmem:[%s1576_s2] ss:$0 sm:$0xff] }
  0x22   : > { %v1228_v24 = vld [vmem:[%s1350_s15 + $0x78] sm:$0xff]  }
  0x24   : > { %1105 = vmatpush3.bf16.msra.mxu0 %v1207_v3  ;;  %1158 = vmatpush3.bf16.msra.mxu1 %v1207_v3 }
  0x25   : > { %1106 = vmatprep.subr.bf16.mxu0 %v1208_v4  ;;  %1151 = vmatprep.subr.bf16.mxu1 %v1208_v4 }
  0x28   : > { %1107 = vmatpush3.bf16.msra.mxu0 %v1208_v4  ;;  %1159 = vmatpush3.bf16.msra.mxu1 %v1208_v4 }
  0x29   : > { %1108 = vmatprep.subr.bf16.mxu0 %v1209_v6  ;;  %1152 = vmatprep.subr.bf16.mxu1 %v1209_v6 }
  0x2c   : > { %1109 = vmatpush3.bf16.msra.mxu0 %v1209_v6  ;;  %1160 = vmatpush3.bf16.msra.mxu1 %v1209_v6 }
  0x2d   : > { %1110 = vmatprep.subr.bf16.mxu0 %v1210_v7  ;;  %1153 = vmatprep.subr.bf16.mxu1 %v1210_v7 }
  0x30   : > { %1111 = vmatpush3.bf16.msra.mxu0 %v1210_v7  ;;  %1161 = vmatpush3.bf16.msra.mxu1 %v1210_v7 }
  0x31   : > { %1112 = vmatprep.subr.bf16.mxu0 %v1211_v9  ;;  %1154 = vmatprep.subr.bf16.mxu1 %v1211_v9 }
  0x34   : > { %1113 = vmatpush3.bf16.msra.mxu0 %v1211_v9  ;;  %1162 = vmatpush3.bf16.msra.mxu1 %v1211_v9 }
  0x35   : > { %1114 = vmatprep.subr.bf16.mxu0 %v1212_v10  ;;  %1155 = vmatprep.subr.bf16.mxu1 %v1212_v10 }
  0x38   : > { %1115 = vmatpush3.bf16.msra.mxu0 %v1212_v10  ;;  %1163 = vmatpush3.bf16.msra.mxu1 %v1212_v10 }
  0x3b   : > { %1117 = vmatmul.mubr.bf16.vlgmr.msra.gmra.mxu0 %v1214_v11  ;;  %1133 = vmatmul.mubr.bf16.vlgmr.msra.gmra.mxu1 %v1222_v12 }
  0x3c   : > { %1120 = vmatprep.mubr.bf16.mxu0 %v1215_v13  ;;  %1136 = vmatprep.mubr.bf16.mxu1 %v1223_v14 }
  0x43   : > { %1121 = vmatmul.mubr.bf16.gmra.mxu0 %v1216_v15  ;;  %1137 = vmatmul.mubr.bf16.gmra.mxu1 %v1224_v16 }
  0x44   : > { %1124 = vmatprep.mubr.bf16.mxu0 %v1217_v17  ;;  %1140 = vmatprep.mubr.bf16.mxu1 %v1225_v18 }
  0x4b   : > { %1125 = vmatmul.mubr.bf16.gmra.mxu0 %v1218_v19  ;;  %1141 = vmatmul.mubr.bf16.gmra.mxu1 %v1226_v20 }
  0x4c   : > { %1128 = vmatprep.mubr.bf16.mxu0 %v1219_v21  ;;  %1144 = vmatprep.mubr.bf16.mxu1 %v1227_v22 }
  0x53   : > { %1129 = vmatmul.mubr.bf16.gmra.mxu0 %v1220_v23  ;;  %1145 = vmatmul.mubr.bf16.gmra.mxu1 %v1228_v24 }
  0xfb   : > { %v1118_v26 = vpop.f32.mrf.mxu0  ;;  %v1134_v27 = vpop.f32.mrf.mxu1 }
  0xfc   : > { %v583_v28 = vadd.f32 %v1118_v26, %v1391_v25  ;;  %v1395_v29 = vadd.f32 %v1134_v27, %v1391_v25 }
  0xfd   : > { %v574_v30 = vpop.f32.mrf.mxu0  ;;  %v638_v31 = vpop.f32.mrf.mxu1 }
  0xfe   : > { %815 = vst [vmem:[%s1355_s27 + $0x10] sm:$0xff] %v583_v28  ;;  %v575_v32 = vadd.f32 %v1391_v25, %v574_v30  ;;  %831 = vst [vmem:[%s1355_s27 + $0x90] sm:$0xff] %v1395_v29  ;;  %v1402_v33 = vadd.f32 %v1391_v25, %v638_v31  ;;  %v744_v51 = vmul.f32 %v583_v28, %v583_v28 }
  0xff   : > { %v1119_v34 = vpop.f32.mrf.mxu0  ;;  %v1135_v35 = vpop.f32.mrf.mxu1 }
 0x100   : > { %813 = vst [vmem:[%s1355_s27] sm:$0xff] %v575_v32  ;;  %v586_v36 = vadd.f32 %v1119_v34, %v1391_v25  ;;  %829 = vst [vmem:[%s1355_s27 + $0x80] sm:$0xff] %v1402_v33  ;;  %v1409_v37 = vadd.f32 %v1135_v35, %v1391_v25  ;;  %v742_v44 = vmul.f32 %v575_v32, %v575_v32 }
 0x101   : > { %v577_v38 = vpop.f32.mrf.mxu0  ;;  %v641_v39 = vpop.f32.mrf.mxu1 }
 0x102   : > { %816 = vst [vmem:[%s1355_s27 + $0x18] sm:$0xff] %v586_v36  ;;  %v578_v40 = vadd.f32 %v1391_v25, %v577_v38  ;;  %832 = vst [vmem:[%s1355_s27 + $0x98] sm:$0xff] %v1409_v37  ;;  %v1416_v41 = vadd.f32 %v1391_v25, %v641_v39  ;;  %v745_v58 = vmul.f32 %v586_v36, %v586_v36 }
 0x103   : > { %v1122_v42 = vpop.f32.mrf.mxu0  ;;  %v1138_v43 = vpop.f32.mrf.mxu1 }
 0x104   : > { %v702_v45 = vadd.f32 %v578_v40, %v575_v32  ;;  %v743_v46 = vmul.f32 %v578_v40, %v578_v40  ;;  %814 = vst [vmem:[%s1355_s27 + $0x8] sm:$0xff] %v578_v40  ;;  %v599_v47 = vadd.f32 %v1122_v42, %v1391_v25  ;;  %830 = vst [vmem:[%s1355_s27 + $0x88] sm:$0xff] %v1416_v41 }
 0x105   : > { %v590_v48 = vpop.f32.mrf.mxu0  ;;  %v1423_v49 = vadd.f32 %v1138_v43, %v1391_v25  ;;  %v654_v50 = vpop.f32.mrf.mxu1 }
 0x106   : > { %v703_v52 = vadd.f32 %v702_v45, %v583_v28  ;;  %v774_v53 = vadd.f32 %v743_v46, %v742_v44  ;;  %819 = vst [vmem:[%s1355_s27 + $0x30] sm:$0xff] %v599_v47  ;;  %v591_v54 = vadd.f32 %v1391_v25, %v590_v48  ;;  %v1430_v56 = vadd.f32 %v1391_v25, %v654_v50 }
 0x107   : > { %v1123_v55 = vpop.f32.mrf.mxu0  ;;  %835 = vst [vmem:[%s1355_s27 + $0xb0] sm:$0xff] %v1423_v49  ;;  %v1139_v57 = vpop.f32.mrf.mxu1  ;;  %v748_v15 = vmul.f32 %v599_v47, %v599_v47 }
 0x108   : > { %v775_v59 = vadd.f32 %v774_v53, %v744_v51  ;;  %v704_v60 = vadd.f32 %v703_v52, %v586_v36  ;;  %817 = vst [vmem:[%s1355_s27 + $0x20] sm:$0xff] %v591_v54  ;;  %v602_v61 = vadd.f32 %v1123_v55, %v1391_v25  ;;  %833 = vst [vmem:[%s1355_s27 + $0xa0] sm:$0xff] %v1430_v56 }
 0x109   : > { %v593_v62 = vpop.f32.mrf.mxu0  ;;  %v1437_v63 = vadd.f32 %v1139_v57, %v1391_v25  ;;  %v657_v0 = vpop.f32.mrf.mxu1  ;;  %v746_v2 = vmul.f32 %v591_v54, %v591_v54 }
 0x10a   : > { %v705_v1 = vadd.f32 %v704_v60, %v591_v54  ;;  %v776_v3 = vadd.f32 %v775_v59, %v745_v58  ;;  %820 = vst [vmem:[%s1355_s27 + $0x38] sm:$0xff] %v602_v61  ;;  %v594_v4 = vadd.f32 %v1391_v25, %v593_v62  ;;  %v1444_v6 = vadd.f32 %v1391_v25, %v657_v0 }
 0x10b   : > { %v1126_v5 = vpop.f32.mrf.mxu0  ;;  %836 = vst [vmem:[%s1355_s27 + $0xb8] sm:$0xff] %v1437_v63  ;;  %v1142_v7 = vpop.f32.mrf.mxu1  ;;  %v749_v22 = vmul.f32 %v602_v61, %v602_v61 }
 0x10c   : > { %v777_v8 = vadd.f32 %v776_v3, %v746_v2  ;;  %v706_v9 = vadd.f32 %v705_v1, %v594_v4  ;;  %v747_v10 = vmul.f32 %v594_v4, %v594_v4  ;;  %818 = vst [vmem:[%s1355_s27 + $0x28] sm:$0xff] %v594_v4  ;;  %v615_v11 = vadd.f32 %v1126_v5, %v1391_v25 }
 0x10d   : > { %v606_v12 = vpop.f32.mrf.mxu0  ;;  %834 = vst [vmem:[%s1355_s27 + $0xa8] sm:$0xff] %v1444_v6  ;;  %v1451_v13 = vadd.f32 %v1142_v7, %v1391_v25  ;;  %v670_v14 = vpop.f32.mrf.mxu1 }
 0x10e   : > { %v707_v16 = vadd.f32 %v706_v9, %v599_v47  ;;  %v778_v17 = vadd.f32 %v777_v8, %v747_v10  ;;  %823 = vst [vmem:[%s1355_s27 + $0x50] sm:$0xff] %v615_v11  ;;  %v607_v18 = vadd.f32 %v1391_v25, %v606_v12  ;;  %v1458_v20 = vadd.f32 %v1391_v25, %v670_v14 }
 0x10f   : > { %v1127_v19 = vpop.f32.mrf.mxu0  ;;  %839 = vst [vmem:[%s1355_s27 + $0xd0] sm:$0xff] %v1451_v13  ;;  %v1143_v21 = vpop.f32.mrf.mxu1  ;;  %v752_v48 = vmul.f32 %v615_v11, %v615_v11 }
 0x110   : > { %v779_v23 = vadd.f32 %v778_v17, %v748_v15  ;;  %v708_v24 = vadd.f32 %v707_v16, %v602_v61  ;;  %821 = vst [vmem:[%s1355_s27 + $0x40] sm:$0xff] %v607_v18  ;;  %v618_v26 = vadd.f32 %v1127_v19, %v1391_v25  ;;  %837 = vst [vmem:[%s1355_s27 + $0xc0] sm:$0xff] %v1458_v20 }
 0x111   : > { %v609_v27 = vpop.f32.mrf.mxu0  ;;  %v1465_v28 = vadd.f32 %v1143_v21, %v1391_v25  ;;  %v673_v30 = vpop.f32.mrf.mxu1  ;;  %v750_v32 = vmul.f32 %v607_v18, %v607_v18  ;;  %v758_v17 = vmul.f32 %v1402_v33, %v1402_v33 }
 0x112   : > { %v709_v31 = vadd.f32 %v708_v24, %v607_v18  ;;  %v780_v34 = vadd.f32 %v779_v23, %v749_v22  ;;  %824 = vst [vmem:[%s1355_s27 + $0x58] sm:$0xff] %v618_v26  ;;  %v610_v35 = vadd.f32 %v1391_v25, %v609_v27  ;;  %v1472_v38 = vadd.f32 %v1391_v25, %v673_v30 }
 0x113   : > { %v1130_v36 = vpop.f32.mrf.mxu0  ;;  %840 = vst [vmem:[%s1355_s27 + $0xd8] sm:$0xff] %v1465_v28  ;;  %v1146_v39 = vpop.f32.mrf.mxu1  ;;  %v753_v57 = vmul.f32 %v618_v26, %v618_v26  ;;  %v760_v23 = vmul.f32 %v1395_v29, %v1395_v29  ;;  %v761_v27 = vmul.f32 %v1409_v37, %v1409_v37 }
 0x114   : > { %v781_v40 = vadd.f32 %v780_v34, %v750_v32  ;;  %v710_v42 = vadd.f32 %v709_v31, %v610_v35  ;;  %v751_v43 = vmul.f32 %v610_v35, %v610_v35  ;;  %822 = vst [vmem:[%s1355_s27 + $0x48] sm:$0xff] %v610_v35  ;;  %v631_v44 = vadd.f32 %v1130_v36, %v1391_v25 }
 0x115   : > { %v622_v45 = vpop.f32.mrf.mxu0  ;;  %838 = vst [vmem:[%s1355_s27 + $0xc8] sm:$0xff] %v1472_v38  ;;  %v1479_v46 = vadd.f32 %v1146_v39, %v1391_v25  ;;  %v686_v47 = vpop.f32.mrf.mxu1  ;;  %v762_v32 = vmul.f32 %v1430_v56, %v1430_v56  ;;  %v763_v36 = vmul.f32 %v1444_v6, %v1444_v6 }
 0x116   : > { %v711_v50 = vadd.f32 %v710_v42, %v615_v11  ;;  %v782_v51 = vadd.f32 %v781_v40, %v751_v43  ;;  %827 = vst [vmem:[%s1355_s27 + $0x70] sm:$0xff] %v631_v44  ;;  %v623_v52 = vadd.f32 %v1391_v25, %v622_v45  ;;  %v1486_v54 = vadd.f32 %v1391_v25, %v686_v47 }
 0x117   : > { %v1131_v53 = vpop.f32.mrf.mxu0  ;;  %843 = vst [vmem:[%s1355_s27 + $0xf0] sm:$0xff] %v1479_v46  ;;  %v1147_v55 = vpop.f32.mrf.mxu1  ;;  %v756_v10 = vmul.f32 %v631_v44, %v631_v44 }
 0x118   : > { %v783_v58 = vadd.f32 %v782_v51, %v752_v48  ;;  %v712_v59 = vadd.f32 %v711_v50, %v618_v26  ;;  %825 = vst [vmem:[%s1355_s27 + $0x60] sm:$0xff] %v623_v52  ;;  %v634_v60 = vadd.f32 %v1131_v53, %v1391_v25  ;;  %841 = vst [vmem:[%s1355_s27 + $0xe0] sm:$0xff] %v1486_v54 }
 0x119   : > { %v625_v61 = vpop.f32.mrf.mxu0  ;;  %v1493_v62 = vadd.f32 %v1147_v55, %v1391_v25  ;;  %v689_v0 = vpop.f32.mrf.mxu1  ;;  %v754_v2 = vmul.f32 %v623_v52, %v623_v52  ;;  %v767_v48 = vmul.f32 %v1472_v38, %v1472_v38  ;;  %v770_v55 = vmul.f32 %v1486_v54, %v1486_v54 }
 0x11a   : > { %v713_v1 = vadd.f32 %v712_v59, %v623_v52  ;;  %v784_v3 = vadd.f32 %v783_v58, %v753_v57  ;;  %828 = vst [vmem:[%s1355_s27 + $0x78] sm:$0xff] %v634_v60  ;;  %v626_v4 = vadd.f32 %v1391_v25, %v625_v61  ;;  %v690_v5 = vadd.f32 %v1391_v25, %v689_v0 }
 0x11b   : > { %844 = vst [vmem:[%s1355_s27 + $0xf8] sm:$0xff] %v1493_v62  ;;  %v757_v14 = vmul.f32 %v634_v60, %v634_v60  ;;  %v759_v25 = vmul.f32 %v1416_v41, %v1416_v41  ;;  %v773_v0 = vmul.f32 %v1493_v62, %v1493_v62 }
 0x11c   : > { %v785_v7 = vadd.f32 %v784_v3, %v754_v2  ;;  %v714_v8 = vadd.f32 %v713_v1, %v626_v4  ;;  %v755_v9 = vmul.f32 %v626_v4, %v626_v4  ;;  %826 = vst [vmem:[%s1355_s27 + $0x68] sm:$0xff] %v626_v4  ;;  %842 = vst [vmem:[%s1355_s27 + $0xe8] sm:$0xff] %v690_v5 }
 0x11d   : > { %v771_v59 = vmul.f32 %v690_v5, %v690_v5 }
 0x11e   : > { %v715_v11 = vadd.f32 %v714_v8, %v631_v44  ;;  %v786_v12 = vadd.f32 %v785_v7, %v755_v9  ;;  %v766_v44 = vmul.f32 %v1458_v20, %v1458_v20 }
 0x120   : > { %v787_v15 = vadd.f32 %v786_v12, %v756_v10  ;;  %v716_v16 = vadd.f32 %v715_v11, %v634_v60  ;;  %v772_v60 = vmul.f32 %v1479_v46, %v1479_v46  ;;  %v701_v12 = vld [vmem:[#allocation2] sm:$0x1] }
 0x122   : > { %v717_v18 = vadd.f32 %v716_v16, %v1402_v33  ;;  %v788_v19 = vadd.f32 %v787_v15, %v757_v14  ;;  %v741_v15 = vld [vmem:[#allocation3] sm:$0x1] }
 0x124   : > { %v718_v21 = vadd.f32 %v717_v18, %v1416_v41  ;;  %v789_v22 = vadd.f32 %v788_v19, %v758_v17 }
 0x126   : > { %v719_v24 = vadd.f32 %v718_v21, %v1395_v29  ;;  %v790_v26 = vadd.f32 %v789_v22, %v759_v25  ;;  %v764_v29 = vmul.f32 %v1423_v49, %v1423_v49 }
 0x128   : > { %v791_v30 = vadd.f32 %v790_v26, %v760_v23  ;;  %v720_v31 = vadd.f32 %v719_v24, %v1409_v37  ;;  %v765_v37 = vmul.f32 %v1437_v63, %v1437_v63 }
 0x12a   : > { %v721_v33 = vadd.f32 %v720_v31, %v1430_v56  ;;  %v792_v34 = vadd.f32 %v791_v30, %v761_v27 }
 0x12c   : > { %v793_v41 = vadd.f32 %v792_v34, %v762_v32  ;;  %v722_v35 = vadd.f32 %v721_v33, %v1444_v6 }
 0x12e   : > { %v723_v39 = vadd.f32 %v722_v35, %v1423_v49  ;;  %v794_v40 = vadd.f32 %v793_v41, %v763_v36  ;;  %v768_v49 = vmul.f32 %v1451_v13, %v1451_v13 }
 0x130   : > { %v795_v42 = vadd.f32 %v794_v40, %v764_v29  ;;  %v724_v43 = vadd.f32 %v723_v39, %v1437_v63  ;;  %v769_v63 = vmul.f32 %v1465_v28, %v1465_v28 }
 0x132   : > { %v725_v56 = vadd.f32 %v724_v43, %v1458_v20  ;;  %v796_v45 = vadd.f32 %v795_v42, %v765_v37 }
 0x134   : > { %v797_v47 = vadd.f32 %v796_v45, %v766_v44  ;;  %v726_v6 = vadd.f32 %v725_v56, %v1472_v38 }
 0x136   : > { %v727_v50 = vadd.f32 %v726_v6, %v1451_v13  ;;  %v798_v51 = vadd.f32 %v797_v47, %v767_v48 }
 0x138   : > { %v799_v52 = vadd.f32 %v798_v51, %v768_v49  ;;  %v728_v53 = vadd.f32 %v727_v50, %v1465_v28 }
 0x13a   : > { %v729_v20 = vadd.f32 %v728_v53, %v1486_v54  ;;  %v800_v57 = vadd.f32 %v799_v52, %v769_v63 }
 0x13c   : > { %v801_v58 = vadd.f32 %v800_v57, %v770_v55  ;;  %v730_v38 = vadd.f32 %v729_v20, %v690_v5 }
 0x13e   : > { %v731_v13 = vadd.f32 %v730_v38, %v1479_v46  ;;  %v802_v61 = vadd.f32 %v801_v58, %v771_v59 }
 0x140   : > { %v732_v28 = vadd.f32 %v731_v13, %v1493_v62  ;;  %v803_v1 = vadd.f32 %v802_v61, %v772_v60 }
 0x142   : > { %v733_v2 = vrot.slane %v732_v28, 4  ;;  %v804_v3 = vadd.f32 %v803_v1, %v773_v0 }
 0x144   : > { %v734_v4 = vadd.f32 %v733_v2, %v732_v28  ;;  %v805_v54 = vrot.slane %v804_v3, 4 }
 0x146   : > { %v735_v7 = vrot.slane %v734_v4, 2  ;;  %v806_v8 = vadd.f32 %v805_v54, %v804_v3 }
 0x148   : > { %v736_v9 = vadd.f32 %v735_v7, %v734_v4  ;;  %v807_v5 = vrot.slane %v806_v8, 2 }
 0x14a   : > { %v737_v10 = vrot.slane %v736_v9, 1  ;;  %v808_v11 = vadd.f32 %v807_v5, %v806_v8 }
 0x14c   : > { %v738_v14 = vadd.f32 %v737_v10, %v736_v9  ;;  %v809_v46 = vrot.slane %v808_v11, 1 }
 0x14e   : > { %v739_v16 = vadd.f32 %v738_v14, %v701_v12  ;;  %v810_v17 = vadd.f32 %v809_v46, %v808_v11  ;;  %849 = sbr.rel (!%p845_p8) target bundleno = 347 (0x15b), region = 40 }
 0x150   : > { %740 = vst [vmem:[#allocation2] sm:$0x1] %v739_v16  ;;  %v811_v18 = vadd.f32 %v810_v17, %v741_v15 }
 0x152   : > { %812 = vst [vmem:[#allocation3] sm:$0x1] %v811_v18 }
 0x157   : > { %v850_v62 = vld [vmem:[#allocation2] sm:$0x1] }
 0x158   : > { %851 = vst [vmem:[%s328_s29] sm:$0x1] %v850_v62 }
 0x159   : > { %v852_v19 = vld [vmem:[#allocation3] sm:$0x1] }
 0x15a   : > { %853 = vst [vmem:[%s331_s26] sm:$0x1] %v852_v19 }
 0x15b PF: > { %s16_s22 = sadd.s32 1, %s1267_s22   ;;  %s1580_s18 = smov %s1259_s20 }
 0x15c   : > { %p13_p9 = scmp.ge.s32.totalorder %s16_s22, 10   ;;  %s1581_s19 = smov %s1263_s21 }
 0x15d   : > { %s1582_s20 = smov %s1585_s23  ;;  %s1583_s21 = smov %s1589_s24 }
 0x15e   :  { %15 = sbr.rel (!%p13_p9) target bundleno = 3 (0x3), region = 97 }

// kernel: forward.42
= control target key start
LH: loop header
LB: loop body
LE: loop exit
PB: predicated region body
PF: predicated region fallthrough
CT: control target
= control target key end

     0   :  { %s978_s12 = smov 0   ;;  %s980_s13 = smov 0   ;;  %s1159_s0 = inlined_call_operand.vmem [shape: f32[2,4,256,128], index: 0, kind: input, shape index: {}]   ;;  %s1160_s1 = inlined_call_operand.vmem [shape: f32[2,1,128], index: 1, kind: input, shape index: {}]   ;;  %s1161_s2 = inlined_call_operand.vmem [shape: f32[2,1,128], index: 2, kind: input, shape index: {}]   ;;  %s1162_s3 = inlined_call_operand.vmem [shape: bf16[2,4,256,128], index: 3, kind: output, shape index: {}]  }
   0x1   :  { %s982_s14 = smov 0   ;;  %s984_s15 = smov 0  }
   0x2   :  { %s986_s16 = smov 0  }
   0x3 LB: > { %s28_s17 = sadd.s32 1, %s948_s14  ;;  %s32_s18 = sadd.s32 1, %s952_s15  ;;  %s956_s16 = sphi %s986_s16, %s13_s16   ;;  %s952_s15 = sphi %s984_s15, %s1166_s15   ;;  %s948_s14 = sphi %s982_s14, %s1165_s14   ;;  %s944_s13 = sphi %s980_s13, %s1164_s13   ;;  %s940_s12 = sphi %s978_s12, %s1163_s12  }
   0x4   : > { %p30_p0 = scmp.ge.s32.totalorder %s28_s17, 4  ;;  %p708_p1 = scmp.ge.s32.totalorder %s956_s16, 1 }
   0x5   : > { %p189_p2 = scmp.lt.s32.totalorder %s956_s16, 9 }
   0x6   : > { %s1168_s17 = smov (%p30_p0, %s28_s17), 0  ;;  %s1170_s18 = smov (!%p30_p0, %s32_s18), %s952_s15 }
   0x7   : > { %p190_p3 = pnand %p708_p1, %p189_p2  ;;  %p34_p4 = scmp.ge.s32.totalorder %s1170_s18, 2 }
   0x8   : > { %p236_p5 = scmp.lt.s32.totalorder (!%p190_p3), %s944_s13, 1  ;;  %p238_p6 = scmp.lt.s32.totalorder (!%p190_p3), %s940_s12, 3 }
   0x9   : > { %s1172_s18 = smov (%p34_p4, %s1170_s18), 0  ;;  %193 = sbr.rel (%p190_p3) target bundleno = 55 (0x37), region = 32 }
   0xe   : > { %s1174_s13 = smov (!%p236_p5, %s944_s13), 1  ;;  %s1176_s12 = smov (!%p238_p6, %s940_s12), 3 }
   0xf   : > { %s710_s19 = sshll.u32 %s1174_s13, 7  ;;  %s251_s22 = scalar_lea.vmem %s1160_s1, %s1174_s13 }
  0x10   : > { %s709_s23 = sshll.u32 %s1176_s12, 5  ;;  %s254_s26 = scalar_lea.vmem %s1161_s2, %s1174_s13  ;;  %v1017_v0 = vld [vmem:[%s251_s22] ss:$0 sm:$0xff] }
  0x11   : > { %s1014_s27 = sadd.s32 %s710_s19, %s709_s23  ;;  %v1024_v1 = vld [vmem:[%s254_s26] ss:$0 sm:$0xff] }
  0x12   : > { %s711_s28 = sshll.u32 %s1014_s27, 3  ;;  %s714_s5 = sshll.u32 %s1014_s27, 2 }
  0x13   : > { %s1022_s4 = scalar_lea.vmem %s1159_s0, %s711_s28  ;;  %s1056_s8 = scalar_lea.vmem %s1162_s3, %s714_s5 }
  0x14   : > { %v269_v2 = vld [vmem:[%s1022_s4] sm:$0xff]  ;;  %v270_v3 = vld [vmem:[%s1022_s4 + $0x8] sm:$0xff]  ;;  %v271_v4 = vld [vmem:[%s1022_s4 + $0x10] sm:$0xff] }
  0x15   : > { %v308_v5 = vsub.f32 %v269_v2, %v1017_v0  ;;  %v309_v6 = vsub.f32 %v270_v3, %v1017_v0  ;;  %v272_v7 = vld [vmem:[%s1022_s4 + $0x18] sm:$0xff]  ;;  %v310_v8 = vsub.f32 %v271_v4, %v1017_v0  ;;  %v273_v9 = vld [vmem:[%s1022_s4 + $0x20] sm:$0xff]  ;;  %v274_v10 = vld [vmem:[%s1022_s4 + $0x28] sm:$0xff] }
  0x16   : > { %v311_v11 = vsub.f32 %v272_v7, %v1017_v0  ;;  %v312_v12 = vsub.f32 %v273_v9, %v1017_v0  ;;  %v313_v13 = vsub.f32 %v274_v10, %v1017_v0  ;;  %v275_v14 = vld [vmem:[%s1022_s4 + $0x30] sm:$0xff]  ;;  %v276_v15 = vld [vmem:[%s1022_s4 + $0x38] sm:$0xff]  ;;  %v277_v24 = vld [vmem:[%s1022_s4 + $0x40] sm:$0xff] }
  0x17   : > { %v347_v16 = vmul.f32 %v1024_v1, %v308_v5  ;;  %v348_v17 = vmul.f32 %v1024_v1, %v309_v6  ;;  %v349_v18 = vmul.f32 %v1024_v1, %v310_v8  ;;  %v314_v19 = vsub.f32 %v275_v14, %v1017_v0  ;;  %v278_v25 = vld [vmem:[%s1022_s4 + $0x48] sm:$0xff]  ;;  %v279_v30 = vld [vmem:[%s1022_s4 + $0x50] sm:$0xff]  ;;  %v280_v35 = vld [vmem:[%s1022_s4 + $0x58] sm:$0xff] }
  0x18   : > { %v350_v20 = vmul.f32 %v1024_v1, %v311_v11  ;;  %v351_v21 = vmul.f32 %v1024_v1, %v312_v12  ;;  %v352_v22 = vmul.f32 %v1024_v1, %v313_v13  ;;  %v315_v23 = vsub.f32 %v276_v15, %v1017_v0  ;;  %v281_v36 = vld [vmem:[%s1022_s4 + $0x60] sm:$0xff]  ;;  %v282_v41 = vld [vmem:[%s1022_s4 + $0x68] sm:$0xff]  ;;  %v283_v42 = vld [vmem:[%s1022_s4 + $0x70] sm:$0xff] }
  0x19   : > { %v379_v26 = vmax.f32 %v347_v16, 0.0  ;;  %v380_v27 = vmax.f32 %v348_v17, 0.0  ;;  %v381_v28 = vmax.f32 %v349_v18, 0.0  ;;  %v353_v29 = vmul.f32 %v1024_v1, %v314_v19  ;;  %v284_v51 = vld [vmem:[%s1022_s4 + $0x78] sm:$0xff]  ;;  %v285_v56 = vld [vmem:[%s1022_s4 + $0x80] sm:$0xff]  ;;  %v286_v61 = vld [vmem:[%s1022_s4 + $0x88] sm:$0xff] }
  0x1a   : > { %v382_v31 = vmax.f32 %v350_v20, 0.0  ;;  %v383_v32 = vmax.f32 %v351_v21, 0.0  ;;  %v384_v33 = vmax.f32 %v352_v22, 0.0  ;;  %v354_v34 = vmul.f32 %v1024_v1, %v315_v23  ;;  %v287_v4 = vld [vmem:[%s1022_s4 + $0x90] sm:$0xff]  ;;  %v288_v5 = vld [vmem:[%s1022_s4 + $0x98] sm:$0xff]  ;;  %v289_v10 = vld [vmem:[%s1022_s4 + $0xa0] sm:$0xff] }
  0x1b   : > { %v786_v37 = vpack.c.bf16 %v380_v27, %v379_v26  ;;  %v385_v38 = vmax.f32 %v353_v29, 0.0  ;;  %v316_v39 = vsub.f32 %v277_v24, %v1017_v0  ;;  %v317_v40 = vsub.f32 %v278_v25, %v1017_v0  ;;  %v290_v15 = vld [vmem:[%s1022_s4 + $0xa8] sm:$0xff]  ;;  %v291_v20 = vld [vmem:[%s1022_s4 + $0xb0] sm:$0xff]  ;;  %v292_v25 = vld [vmem:[%s1022_s4 + $0xb8] sm:$0xff] }
  0x1c   : > { %v791_v43 = vpack.c.bf16 %v382_v31, %v381_v28  ;;  %v796_v44 = vpack.c.bf16 %v384_v33, %v383_v32  ;;  %v386_v45 = vmax.f32 %v354_v34, 0.0  ;;  %v318_v46 = vsub.f32 %v279_v30, %v1017_v0  ;;  %v293_v30 = vld [vmem:[%s1022_s4 + $0xc0] sm:$0xff] }
  0x1d   : > { %787 = vst [vmem:[%s1056_s8] sm:$0xff] %v786_v37   ;;  %v355_v47 = vmul.f32 %v1024_v1, %v316_v39  ;;  %v356_v48 = vmul.f32 %v1024_v1, %v317_v40  ;;  %v319_v49 = vsub.f32 %v280_v35, %v1017_v0  ;;  %v320_v50 = vsub.f32 %v281_v36, %v1017_v0  ;;  %v294_v35 = vld [vmem:[%s1022_s4 + $0xc8] sm:$0xff]  ;;  %v295_v40 = vld [vmem:[%s1022_s4 + $0xd0] sm:$0xff] }
  0x1e   : > { %863 = vst [vmem:[%s1056_s8 + $0x8] sm:$0xff] %v791_v43   ;;  %864 = vst [vmem:[%s1056_s8 + $0x10] sm:$0xff] %v796_v44   ;;  %v801_v52 = vpack.c.bf16 %v386_v45, %v385_v38  ;;  %v357_v53 = vmul.f32 %v1024_v1, %v318_v46  ;;  %v321_v54 = vsub.f32 %v282_v41, %v1017_v0  ;;  %v296_v41 = vld [vmem:[%s1022_s4 + $0xd8] sm:$0xff]  ;;  %v297_v46 = vld [vmem:[%s1022_s4 + $0xe0] sm:$0xff] }
  0x1f   : > { %v322_v55 = vsub.f32 %v283_v42, %v1017_v0  ;;  %v387_v57 = vmax.f32 %v355_v47, 0.0  ;;  %v388_v58 = vmax.f32 %v356_v48, 0.0  ;;  %v358_v59 = vmul.f32 %v1024_v1, %v319_v49 }
  0x20   : > { %v359_v60 = vmul.f32 %v1024_v1, %v320_v50  ;;  %865 = vst [vmem:[%s1056_s8 + $0x18] sm:$0xff] %v801_v52   ;;  %v389_v62 = vmax.f32 %v357_v53, 0.0  ;;  %v360_v63 = vmul.f32 %v1024_v1, %v321_v54  ;;  %v323_v2 = vsub.f32 %v284_v51, %v1017_v0  ;;  %v298_v51 = vld [vmem:[%s1022_s4 + $0xe8] sm:$0xff] }
  0x21   : > { %v361_v3 = vmul.f32 %v1024_v1, %v322_v55  ;;  %v806_v6 = vpack.c.bf16 %v388_v58, %v387_v57  ;;  %v390_v7 = vmax.f32 %v358_v59, 0.0  ;;  %v324_v9 = vsub.f32 %v285_v56, %v1017_v0  ;;  %v299_v56 = vld [vmem:[%s1022_s4 + $0xf0] sm:$0xff] }
  0x22   : > { %v391_v8 = vmax.f32 %v359_v60, 0.0  ;;  %v392_v11 = vmax.f32 %v360_v63, 0.0  ;;  %v362_v12 = vmul.f32 %v1024_v1, %v323_v2  ;;  %v325_v14 = vsub.f32 %v286_v61, %v1017_v0  ;;  %v300_v61 = vld [vmem:[%s1022_s4 + $0xf8] sm:$0xff] }
  0x23   : > { %v393_v13 = vmax.f32 %v361_v3, 0.0  ;;  %866 = vst [vmem:[%s1056_s8 + $0x20] sm:$0xff] %v806_v6   ;;  %v811_v16 = vpack.c.bf16 %v390_v7, %v389_v62  ;;  %v363_v17 = vmul.f32 %v1024_v1, %v324_v9  ;;  %v326_v18 = vsub.f32 %v287_v4, %v1017_v0 }
  0x24   : > { %v327_v19 = vsub.f32 %v288_v5, %v1017_v0  ;;  %v816_v21 = vpack.c.bf16 %v392_v11, %v391_v8  ;;  %v394_v22 = vmax.f32 %v362_v12, 0.0  ;;  %v364_v23 = vmul.f32 %v1024_v1, %v325_v14 }
  0x25   : > { %v328_v24 = vsub.f32 %v289_v10, %v1017_v0  ;;  %867 = vst [vmem:[%s1056_s8 + $0x28] sm:$0xff] %v811_v16   ;;  %v395_v26 = vmax.f32 %v363_v17, 0.0  ;;  %v365_v27 = vmul.f32 %v1024_v1, %v326_v18  ;;  %v329_v29 = vsub.f32 %v290_v15, %v1017_v0 }
  0x26   : > { %v366_v28 = vmul.f32 %v1024_v1, %v327_v19  ;;  %868 = vst [vmem:[%s1056_s8 + $0x30] sm:$0xff] %v816_v21   ;;  %v821_v31 = vpack.c.bf16 %v394_v22, %v393_v13  ;;  %v396_v32 = vmax.f32 %v364_v23, 0.0  ;;  %v330_v34 = vsub.f32 %v291_v20, %v1017_v0 }
  0x27   : > { %v367_v33 = vmul.f32 %v1024_v1, %v328_v24  ;;  %v397_v36 = vmax.f32 %v365_v27, 0.0  ;;  %v368_v38 = vmul.f32 %v1024_v1, %v329_v29  ;;  %v331_v39 = vsub.f32 %v292_v25, %v1017_v0 }
  0x28   : > { %v398_v37 = vmax.f32 %v366_v28, 0.0  ;;  %869 = vst [vmem:[%s1056_s8 + $0x38] sm:$0xff] %v821_v31   ;;  %v826_v42 = vpack.c.bf16 %v396_v32, %v395_v26  ;;  %v369_v44 = vmul.f32 %v1024_v1, %v330_v34  ;;  %v332_v45 = vsub.f32 %v293_v30, %v1017_v0 }
  0x29   : > { %v399_v43 = vmax.f32 %v367_v33, 0.0  ;;  %v400_v48 = vmax.f32 %v368_v38, 0.0  ;;  %v370_v49 = vmul.f32 %v1024_v1, %v331_v39  ;;  %v333_v50 = vsub.f32 %v294_v35, %v1017_v0 }
  0x2a   : > { %v831_v47 = vpack.c.bf16 %v398_v37, %v397_v36  ;;  %870 = vst [vmem:[%s1056_s8 + $0x40] sm:$0xff] %v826_v42   ;;  %v401_v52 = vmax.f32 %v369_v44, 0.0  ;;  %v371_v53 = vmul.f32 %v1024_v1, %v332_v45  ;;  %v334_v54 = vsub.f32 %v295_v40, %v1017_v0 }
  0x2b   : > { %v335_v55 = vsub.f32 %v296_v41, %v1017_v0  ;;  %v836_v57 = vpack.c.bf16 %v400_v48, %v399_v43  ;;  %v402_v58 = vmax.f32 %v370_v49, 0.0  ;;  %v372_v59 = vmul.f32 %v1024_v1, %v333_v50 }
  0x2c   : > { %871 = vst [vmem:[%s1056_s8 + $0x48] sm:$0xff] %v831_v47   ;;  %v336_v60 = vsub.f32 %v297_v46, %v1017_v0  ;;  %v403_v62 = vmax.f32 %v371_v53, 0.0  ;;  %v373_v63 = vmul.f32 %v1024_v1, %v334_v54  ;;  %v337_v3 = vsub.f32 %v298_v51, %v1017_v0 }
  0x2d   : > { %v374_v2 = vmul.f32 %v1024_v1, %v335_v55  ;;  %872 = vst [vmem:[%s1056_s8 + $0x50] sm:$0xff] %v836_v57   ;;  %v841_v4 = vpack.c.bf16 %v402_v58, %v401_v52  ;;  %v404_v5 = vmax.f32 %v372_v59, 0.0  ;;  %v338_v7 = vsub.f32 %v299_v56, %v1017_v0 }
  0x2e   : > { %v375_v6 = vmul.f32 %v1024_v1, %v336_v60  ;;  %v405_v8 = vmax.f32 %v373_v63, 0.0  ;;  %v376_v10 = vmul.f32 %v1024_v1, %v337_v3  ;;  %v339_v11 = vsub.f32 %v300_v61, %v1017_v0 }
  0x2f   : > { %v406_v9 = vmax.f32 %v374_v2, 0.0  ;;  %873 = vst [vmem:[%s1056_s8 + $0x58] sm:$0xff] %v841_v4   ;;  %v846_v12 = vpack.c.bf16 %v404_v5, %v403_v62  ;;  %v377_v14 = vmul.f32 %v1024_v1, %v338_v7 }
  0x30   : > { %v407_v13 = vmax.f32 %v375_v6, 0.0  ;;  %v408_v16 = vmax.f32 %v376_v10, 0.0  ;;  %v378_v17 = vmul.f32 %v1024_v1, %v339_v11 }
  0x31   : > { %v851_v15 = vpack.c.bf16 %v406_v9, %v405_v8  ;;  %874 = vst [vmem:[%s1056_s8 + $0x60] sm:$0xff] %v846_v12   ;;  %v409_v18 = vmax.f32 %v377_v14, 0.0 }
  0x32   : > { %v856_v19 = vpack.c.bf16 %v408_v16, %v407_v13  ;;  %v410_v20 = vmax.f32 %v378_v17, 0.0 }
  0x33   : > { %875 = vst [vmem:[%s1056_s8 + $0x68] sm:$0xff] %v851_v15  }
  0x34   : > { %876 = vst [vmem:[%s1056_s8 + $0x70] sm:$0xff] %v856_v19   ;;  %v861_v21 = vpack.c.bf16 %v410_v20, %v409_v18 }
  0x36   : > { %877 = vst [vmem:[%s1056_s8 + $0x78] sm:$0xff] %v861_v21  }
  0x37 PF: > { %s13_s16 = sadd.s32 1, %s956_s16   ;;  %s1163_s12 = smov %s948_s14 }
  0x38   : > { %p10_p7 = scmp.ge.s32.totalorder %s13_s16, 10   ;;  %s1164_s13 = smov %s952_s15 }
  0x39   : > { %s1165_s14 = smov %s1168_s17  ;;  %s1166_s15 = smov %s1172_s18 }
  0x3a   :  { %12 = sbr.rel (!%p10_p7) target bundleno = 3 (0x3), region = 68 }

// kernel: forward.43
= control target key start
LH: loop header
LB: loop body
LE: loop exit
PB: predicated region body
PF: predicated region fallthrough
CT: control target
= control target key end

     0   :  { %s2523_s12 = smov 0   ;;  %s2525_s13 = smov 0   ;;  %s2925_s0 = inlined_call_operand.vmem [shape: bf16[2,4,1024,128], index: 0, kind: input, shape index: {}]   ;;  %s2926_s1 = inlined_call_operand.vmem [shape: bf16[4,128,128], index: 1, kind: input, shape index: {}]   ;;  %s2927_s2 = inlined_call_operand.vmem [shape: f32[1,128], index: 2, kind: input, shape index: {}]   ;;  %s2928_s3 = inlined_call_operand.vmem [shape: f32[2,4,1024,128], index: 3, kind: output, shape index: {}]  }
   0x1   :  { %s2527_s14 = smov 0   ;;  %s2529_s15 = smov 0  }
   0x2   :  { %s2531_s16 = smov 0  }
   0x3 LB: > { %s28_s17 = sadd.s32 1, %s2493_s14  ;;  %s32_s18 = sadd.s32 1, %s2497_s15  ;;  %s2501_s16 = sphi %s2531_s16, %s13_s16   ;;  %s2497_s15 = sphi %s2529_s15, %s2932_s15   ;;  %s2493_s14 = sphi %s2527_s14, %s2931_s14   ;;  %s2489_s13 = sphi %s2525_s13, %s2930_s13   ;;  %s2485_s12 = sphi %s2523_s12, %s2929_s12  }
   0x4   : > { %p30_p0 = scmp.ge.s32.totalorder %s28_s17, 4  ;;  %p1777_p1 = scmp.ge.s32.totalorder %s2501_s16, 1 }
   0x5   : > { %p183_p2 = scmp.lt.s32.totalorder %s2501_s16, 9 }
   0x6   : > { %s2934_s17 = smov (%p30_p0, %s28_s17), 0  ;;  %s2936_s18 = smov (!%p30_p0, %s32_s18), %s2497_s15 }
   0x7   : > { %p184_p3 = pnand %p1777_p1, %p183_p2  ;;  %p34_p4 = scmp.ge.s32.totalorder %s2936_s18, 2 }
   0x8   : > { %p229_p5 = scmp.lt.s32.totalorder (!%p184_p3), %s2489_s13, 1  ;;  %p231_p6 = scmp.lt.s32.totalorder (!%p184_p3), %s2485_s12, 3 }
   0x9   : > { %s2938_s18 = smov (%p34_p4, %s2936_s18), 0  ;;  %187 = sbr.rel (%p184_p3) target bundleno = 388 (0x184), region = 32 }
   0xe   : > { %s2940_s13 = smov (!%p229_p5, %s2489_s13), 1  ;;  %s2942_s12 = smov (!%p231_p6, %s2485_s12), 3 }
   0xf   : > { %s1779_s19 = sshll.u32 %s2940_s13, 9  ;;  %s1778_s20 = sshll.u32 %s2942_s12, 7 }
  0x10   : > { %s1861_s21 = sshll.u32 %s2942_s12, 6  ;;  %s2558_s25 = sadd.s32 %s1779_s19, %s1778_s20 }
  0x11   : > { %s2556_s24 = scalar_lea.vmem %s2926_s1, %s1861_s21  ;;  %s1780_s26 = sshll.u32 %s2558_s25, 2 }
  0x12   : > { %v2134_v0 = vld [vmem:[%s2556_s24 + $0x38] sm:$0xff]   ;;  %v2135_v1 = vld [vmem:[%s2556_s24 + $0x30] sm:$0xff]   ;;  %v2136_v2 = vld [vmem:[%s2556_s24 + $0x28] sm:$0xff]   ;;  %s2567_s29 = scalar_lea.vmem %s2925_s0, %s1780_s26  ;;  %s1785_s5 = sshll.u32 %s2558_s25, 3 }
  0x13   : > { %1934 = vmatprep.subr.bf16.mxu0 %v2134_v0  ;;  %2078 = vmatprep.subr.bf16.mxu1 %v2134_v0  ;;  %v2137_v3 = vld [vmem:[%s2556_s24 + $0x20] sm:$0xff]   ;;  %v2138_v6 = vld [vmem:[%s2556_s24 + $0x18] sm:$0xff]   ;;  %v2139_v7 = vld [vmem:[%s2556_s24 + $0x10] sm:$0xff]   ;;  %s2661_s8 = scalar_lea.vmem %s2928_s3, %s1785_s5 }
  0x14   : > { %1935 = vmatpush3.bf16.msra.mxu0 %v2134_v0  ;;  %2086 = vmatpush3.bf16.msra.mxu1 %v2134_v0  ;;  %v2142_v4 = vld [vmem:[%s2567_s29] sm:$0xff]   ;;  %v2140_v8 = vld [vmem:[%s2556_s24 + $0x8] sm:$0xff]   ;;  %v2146_v12 = vld [vmem:[%s2567_s29 + $0x10] sm:$0xff]  }
  0x15   : > { %1936 = vmatprep.subr.bf16.mxu0 %v2135_v1  ;;  %2079 = vmatprep.subr.bf16.mxu1 %v2135_v1  ;;  %v2143_v5 = vld [vmem:[%s2567_s29 + $0x100] sm:$0xff]   ;;  %v2144_v10 = vld [vmem:[%s2567_s29 + $0x8] sm:$0xff]   ;;  %v2147_v13 = vld [vmem:[%s2567_s29 + $0x110] sm:$0xff]  }
  0x16   : > { %1950 = vmatprep.mubr.bf16.mxu0 %v2142_v4  ;;  %2014 = vmatprep.mubr.bf16.mxu1 %v2143_v5  ;;  %v2141_v9 = vld [vmem:[%s2556_s24] sm:$0xff]   ;;  %v2145_v11 = vld [vmem:[%s2567_s29 + $0x108] sm:$0xff]   ;;  %v2148_v14 = vld [vmem:[%s2567_s29 + $0x18] sm:$0xff]  }
  0x17   : > { %v2149_v15 = vld [vmem:[%s2567_s29 + $0x118] sm:$0xff]   ;;  %v2150_v16 = vld [vmem:[%s2567_s29 + $0x20] sm:$0xff]   ;;  %v2152_v18 = vld [vmem:[%s2567_s29 + $0x28] sm:$0xff]  }
  0x18   : > { %1937 = vmatpush3.bf16.msra.mxu0 %v2135_v1  ;;  %2087 = vmatpush3.bf16.msra.mxu1 %v2135_v1  ;;  %v2151_v17 = vld [vmem:[%s2567_s29 + $0x120] sm:$0xff]   ;;  %v2153_v19 = vld [vmem:[%s2567_s29 + $0x128] sm:$0xff]   ;;  %v2154_v20 = vld [vmem:[%s2567_s29 + $0x30] sm:$0xff]  }
  0x19   : > { %1938 = vmatprep.subr.bf16.mxu0 %v2136_v2  ;;  %2080 = vmatprep.subr.bf16.mxu1 %v2136_v2  ;;  %v2155_v21 = vld [vmem:[%s2567_s29 + $0x130] sm:$0xff]   ;;  %v2156_v22 = vld [vmem:[%s2567_s29 + $0x38] sm:$0xff]   ;;  %v2158_v24 = vld [vmem:[%s2567_s29 + $0x40] sm:$0xff]  }
  0x1a   : > { %v2157_v23 = vld [vmem:[%s2567_s29 + $0x138] sm:$0xff]   ;;  %v2159_v25 = vld [vmem:[%s2567_s29 + $0x140] sm:$0xff]   ;;  %v2160_v26 = vld [vmem:[%s2567_s29 + $0x48] sm:$0xff]  }
  0x1b   : > { %v2161_v27 = vld [vmem:[%s2567_s29 + $0x148] sm:$0xff]   ;;  %v2162_v28 = vld [vmem:[%s2567_s29 + $0x50] sm:$0xff]   ;;  %v2164_v30 = vld [vmem:[%s2567_s29 + $0x58] sm:$0xff]  }
  0x1c   : > { %1939 = vmatpush3.bf16.msra.mxu0 %v2136_v2  ;;  %2088 = vmatpush3.bf16.msra.mxu1 %v2136_v2  ;;  %v2163_v29 = vld [vmem:[%s2567_s29 + $0x150] sm:$0xff]   ;;  %v2165_v31 = vld [vmem:[%s2567_s29 + $0x158] sm:$0xff]   ;;  %v2166_v32 = vld [vmem:[%s2567_s29 + $0x60] sm:$0xff]  }
  0x1d   : > { %1940 = vmatprep.subr.bf16.mxu0 %v2137_v3  ;;  %2081 = vmatprep.subr.bf16.mxu1 %v2137_v3  ;;  %v2167_v33 = vld [vmem:[%s2567_s29 + $0x160] sm:$0xff]   ;;  %v2168_v34 = vld [vmem:[%s2567_s29 + $0x68] sm:$0xff]   ;;  %v2170_v36 = vld [vmem:[%s2567_s29 + $0x70] sm:$0xff]  }
  0x1e   : > { %v2169_v35 = vld [vmem:[%s2567_s29 + $0x168] sm:$0xff]   ;;  %v2171_v37 = vld [vmem:[%s2567_s29 + $0x170] sm:$0xff]   ;;  %v2172_v38 = vld [vmem:[%s2567_s29 + $0x78] sm:$0xff]  }
  0x1f   : > { %v2173_v39 = vld [vmem:[%s2567_s29 + $0x178] sm:$0xff]   ;;  %v2174_v40 = vld [vmem:[%s2567_s29 + $0x80] sm:$0xff]   ;;  %v2176_v42 = vld [vmem:[%s2567_s29 + $0x88] sm:$0xff]  }
  0x20   : > { %1941 = vmatpush3.bf16.msra.mxu0 %v2137_v3  ;;  %2089 = vmatpush3.bf16.msra.mxu1 %v2137_v3  ;;  %v2175_v41 = vld [vmem:[%s2567_s29 + $0x180] sm:$0xff]   ;;  %v2177_v43 = vld [vmem:[%s2567_s29 + $0x188] sm:$0xff]   ;;  %v2178_v44 = vld [vmem:[%s2567_s29 + $0x90] sm:$0xff]  }
  0x21   : > { %1942 = vmatprep.subr.bf16.mxu0 %v2138_v6  ;;  %2082 = vmatprep.subr.bf16.mxu1 %v2138_v6  ;;  %v2179_v45 = vld [vmem:[%s2567_s29 + $0x190] sm:$0xff]   ;;  %v2180_v46 = vld [vmem:[%s2567_s29 + $0x98] sm:$0xff]   ;;  %v2182_v48 = vld [vmem:[%s2567_s29 + $0xa0] sm:$0xff]  }
  0x22   : > { %v2181_v47 = vld [vmem:[%s2567_s29 + $0x198] sm:$0xff]   ;;  %v2183_v49 = vld [vmem:[%s2567_s29 + $0x1a0] sm:$0xff]   ;;  %v2184_v50 = vld [vmem:[%s2567_s29 + $0xa8] sm:$0xff]  }
  0x23   : > { %v2185_v51 = vld [vmem:[%s2567_s29 + $0x1a8] sm:$0xff]   ;;  %v2186_v52 = vld [vmem:[%s2567_s29 + $0xb0] sm:$0xff]   ;;  %v2188_v54 = vld [vmem:[%s2567_s29 + $0xb8] sm:$0xff]  }
  0x24   : > { %1943 = vmatpush3.bf16.msra.mxu0 %v2138_v6  ;;  %2090 = vmatpush3.bf16.msra.mxu1 %v2138_v6  ;;  %v2187_v53 = vld [vmem:[%s2567_s29 + $0x1b0] sm:$0xff]   ;;  %v2189_v55 = vld [vmem:[%s2567_s29 + $0x1b8] sm:$0xff]   ;;  %v2190_v56 = vld [vmem:[%s2567_s29 + $0xc0] sm:$0xff]  }
  0x25   : > { %1944 = vmatprep.subr.bf16.mxu0 %v2139_v7  ;;  %2083 = vmatprep.subr.bf16.mxu1 %v2139_v7  ;;  %v2191_v57 = vld [vmem:[%s2567_s29 + $0x1c0] sm:$0xff]   ;;  %v2192_v58 = vld [vmem:[%s2567_s29 + $0xc8] sm:$0xff]   ;;  %v2194_v60 = vld [vmem:[%s2567_s29 + $0xd0] sm:$0xff]  }
  0x26   : > { %v2193_v59 = vld [vmem:[%s2567_s29 + $0x1c8] sm:$0xff]   ;;  %v2195_v61 = vld [vmem:[%s2567_s29 + $0x1d0] sm:$0xff]   ;;  %v2196_v62 = vld [vmem:[%s2567_s29 + $0xd8] sm:$0xff]  }
  0x27   : > { %v2197_v63 = vld [vmem:[%s2567_s29 + $0x1d8] sm:$0xff]   ;;  %v2198_v0 = vld [vmem:[%s2567_s29 + $0xe0] sm:$0xff]   ;;  %v2200_v2 = vld [vmem:[%s2567_s29 + $0xe8] sm:$0xff]  }
  0x28   : > { %1945 = vmatpush3.bf16.msra.mxu0 %v2139_v7  ;;  %2091 = vmatpush3.bf16.msra.mxu1 %v2139_v7  ;;  %v2199_v1 = vld [vmem:[%s2567_s29 + $0x1e0] sm:$0xff]   ;;  %v2201_v3 = vld [vmem:[%s2567_s29 + $0x1e8] sm:$0xff]   ;;  %v2202_v4 = vld [vmem:[%s2567_s29 + $0xf0] sm:$0xff]  }
  0x29   : > { %1946 = vmatprep.subr.bf16.mxu0 %v2140_v8  ;;  %2084 = vmatprep.subr.bf16.mxu1 %v2140_v8  ;;  %v2203_v5 = vld [vmem:[%s2567_s29 + $0x1f0] sm:$0xff]   ;;  %v2204_v6 = vld [vmem:[%s2567_s29 + $0xf8] sm:$0xff]  }
  0x2a   : > { %v2205_v7 = vld [vmem:[%s2567_s29 + $0x1f8] sm:$0xff]  }
  0x2c   : > { %1947 = vmatpush3.bf16.msra.mxu0 %v2140_v8  ;;  %2092 = vmatpush3.bf16.msra.mxu1 %v2140_v8  ;;  %v2641_v8 = vld [vmem:[%s2927_s2] ss:$0 sm:$0xff] }
  0x2d   : > { %1948 = vmatprep.subr.bf16.mxu0 %v2141_v9  ;;  %2085 = vmatprep.subr.bf16.mxu1 %v2141_v9 }
  0x30   : > { %1949 = vmatpush3.bf16.msra.mxu0 %v2141_v9  ;;  %2093 = vmatpush3.bf16.msra.mxu1 %v2141_v9 }
  0x33   : > { %1951 = vmatmul.mubr.bf16.vlgmr.msra.gmra.mxu0 %v2144_v10  ;;  %2015 = vmatmul.mubr.bf16.vlgmr.msra.gmra.mxu1 %v2145_v11 }
  0x34   : > { %1954 = vmatprep.mubr.bf16.mxu0 %v2146_v12  ;;  %2018 = vmatprep.mubr.bf16.mxu1 %v2147_v13 }
  0x3b   : > { %1955 = vmatmul.mubr.bf16.gmra.mxu0 %v2148_v14  ;;  %2019 = vmatmul.mubr.bf16.gmra.mxu1 %v2149_v15 }
  0x3c   : > { %1958 = vmatprep.mubr.bf16.mxu0 %v2150_v16  ;;  %2022 = vmatprep.mubr.bf16.mxu1 %v2151_v17 }
  0x43   : > { %1959 = vmatmul.mubr.bf16.gmra.mxu0 %v2152_v18  ;;  %2023 = vmatmul.mubr.bf16.gmra.mxu1 %v2153_v19 }
  0x44   : > { %1962 = vmatprep.mubr.bf16.mxu0 %v2154_v20  ;;  %2026 = vmatprep.mubr.bf16.mxu1 %v2155_v21 }
  0x4b   : > { %1963 = vmatmul.mubr.bf16.gmra.mxu0 %v2156_v22  ;;  %2027 = vmatmul.mubr.bf16.gmra.mxu1 %v2157_v23 }
  0x4c   : > { %1966 = vmatprep.mubr.bf16.mxu0 %v2158_v24  ;;  %2030 = vmatprep.mubr.bf16.mxu1 %v2159_v25 }
  0x53   : > { %1967 = vmatmul.mubr.bf16.gmra.mxu0 %v2160_v26  ;;  %2031 = vmatmul.mubr.bf16.gmra.mxu1 %v2161_v27 }
  0x54   : > { %1970 = vmatprep.mubr.bf16.mxu0 %v2162_v28  ;;  %2034 = vmatprep.mubr.bf16.mxu1 %v2163_v29 }
  0x5b   : > { %1971 = vmatmul.mubr.bf16.gmra.mxu0 %v2164_v30  ;;  %2035 = vmatmul.mubr.bf16.gmra.mxu1 %v2165_v31 }
  0x5c   : > { %1974 = vmatprep.mubr.bf16.mxu0 %v2166_v32  ;;  %2038 = vmatprep.mubr.bf16.mxu1 %v2167_v33 }
  0x63   : > { %1975 = vmatmul.mubr.bf16.gmra.mxu0 %v2168_v34  ;;  %2039 = vmatmul.mubr.bf16.gmra.mxu1 %v2169_v35 }
  0x64   : > { %1978 = vmatprep.mubr.bf16.mxu0 %v2170_v36  ;;  %2042 = vmatprep.mubr.bf16.mxu1 %v2171_v37 }
  0x6b   : > { %1979 = vmatmul.mubr.bf16.gmra.mxu0 %v2172_v38  ;;  %2043 = vmatmul.mubr.bf16.gmra.mxu1 %v2173_v39 }
  0x6c   : > { %1982 = vmatprep.mubr.bf16.mxu0 %v2174_v40  ;;  %2046 = vmatprep.mubr.bf16.mxu1 %v2175_v41 }
  0x73   : > { %1983 = vmatmul.mubr.bf16.gmra.mxu0 %v2176_v42  ;;  %2047 = vmatmul.mubr.bf16.gmra.mxu1 %v2177_v43 }
  0x74   : > { %1986 = vmatprep.mubr.bf16.mxu0 %v2178_v44  ;;  %2050 = vmatprep.mubr.bf16.mxu1 %v2179_v45 }
  0x7b   : > { %1987 = vmatmul.mubr.bf16.gmra.mxu0 %v2180_v46  ;;  %2051 = vmatmul.mubr.bf16.gmra.mxu1 %v2181_v47 }
  0x7c   : > { %1990 = vmatprep.mubr.bf16.mxu0 %v2182_v48  ;;  %2054 = vmatprep.mubr.bf16.mxu1 %v2183_v49 }
  0x83   : > { %1991 = vmatmul.mubr.bf16.gmra.mxu0 %v2184_v50  ;;  %2055 = vmatmul.mubr.bf16.gmra.mxu1 %v2185_v51 }
  0x84   : > { %1994 = vmatprep.mubr.bf16.mxu0 %v2186_v52  ;;  %2058 = vmatprep.mubr.bf16.mxu1 %v2187_v53 }
  0x8b   : > { %1995 = vmatmul.mubr.bf16.gmra.mxu0 %v2188_v54  ;;  %2059 = vmatmul.mubr.bf16.gmra.mxu1 %v2189_v55 }
  0x8c   : > { %1998 = vmatprep.mubr.bf16.mxu0 %v2190_v56  ;;  %2062 = vmatprep.mubr.bf16.mxu1 %v2191_v57 }
  0x93   : > { %1999 = vmatmul.mubr.bf16.gmra.mxu0 %v2192_v58  ;;  %2063 = vmatmul.mubr.bf16.gmra.mxu1 %v2193_v59 }
  0x94   : > { %2002 = vmatprep.mubr.bf16.mxu0 %v2194_v60  ;;  %2066 = vmatprep.mubr.bf16.mxu1 %v2195_v61 }
  0x9b   : > { %2003 = vmatmul.mubr.bf16.gmra.mxu0 %v2196_v62  ;;  %2067 = vmatmul.mubr.bf16.gmra.mxu1 %v2197_v63 }
  0x9c   : > { %2006 = vmatprep.mubr.bf16.mxu0 %v2198_v0  ;;  %2070 = vmatprep.mubr.bf16.mxu1 %v2199_v1 }
  0xa3   : > { %2007 = vmatmul.mubr.bf16.gmra.mxu0 %v2200_v2  ;;  %2071 = vmatmul.mubr.bf16.gmra.mxu1 %v2201_v3 }
  0xa4   : > { %2010 = vmatprep.mubr.bf16.mxu0 %v2202_v4  ;;  %2074 = vmatprep.mubr.bf16.mxu1 %v2203_v5 }
  0xab   : > { %2011 = vmatmul.mubr.bf16.gmra.mxu0 %v2204_v6  ;;  %2075 = vmatmul.mubr.bf16.gmra.mxu1 %v2205_v7 }
  0xf3   : > { %v1952_v9 = vpop.f32.mrf.mxu0  ;;  %v2016_v10 = vpop.f32.mrf.mxu1 }
  0xf4   : > { %v888_v11 = vadd.f32 %v1952_v9, %v2641_v8  ;;  %v1144_v12 = vadd.f32 %v2016_v10, %v2641_v8 }
  0xf5   : > { %v879_v13 = vpop.f32.mrf.mxu0  ;;  %v1135_v14 = vpop.f32.mrf.mxu1 }
  0xf6   : > { %2206 = vtanh.f32 %v888_v11  ;;  %v880_v15 = vadd.f32 %v2641_v8, %v879_v13  ;;  %v1136_v16 = vadd.f32 %v2641_v8, %v1135_v14 }
  0xf7   : > { %2208 = vtanh.f32 %v1144_v12  ;;  %v1953_v17 = vpop.f32.mrf.mxu0  ;;  %v2017_v18 = vpop.f32.mrf.mxu1 }
  0xf8   : > { %2210 = vtanh.f32 %v880_v15  ;;  %v891_v19 = vadd.f32 %v1953_v17, %v2641_v8  ;;  %v1147_v20 = vadd.f32 %v2017_v18, %v2641_v8 }
  0xf9   : > { %2212 = vtanh.f32 %v1136_v16  ;;  %v882_v21 = vpop.f32.mrf.mxu0  ;;  %v1138_v22 = vpop.f32.mrf.mxu1 }
  0xfa   : > { %2214 = vtanh.f32 %v891_v19  ;;  %v883_v23 = vadd.f32 %v2641_v8, %v882_v21  ;;  %v1139_v24 = vadd.f32 %v2641_v8, %v1138_v22 }
  0xfb   : > { %2216 = vtanh.f32 %v1147_v20  ;;  %v1956_v25 = vpop.f32.mrf.mxu0  ;;  %v2020_v26 = vpop.f32.mrf.mxu1 }
  0xfc   : > { %2218 = vtanh.f32 %v883_v23  ;;  %v904_v27 = vadd.f32 %v1956_v25, %v2641_v8  ;;  %v1160_v28 = vadd.f32 %v2020_v26, %v2641_v8 }
  0xfd   : > { %2220 = vtanh.f32 %v1139_v24  ;;  %v895_v29 = vpop.f32.mrf.mxu0  ;;  %v1151_v30 = vpop.f32.mrf.mxu1 }
  0xfe   : > { %2222 = vtanh.f32 %v904_v27  ;;  %v896_v31 = vadd.f32 %v2641_v8, %v895_v29  ;;  %v1152_v32 = vadd.f32 %v2641_v8, %v1151_v30 }
  0xff   : > { %2224 = vtanh.f32 %v1160_v28  ;;  %v1957_v33 = vpop.f32.mrf.mxu0  ;;  %v2021_v34 = vpop.f32.mrf.mxu1 }
 0x100   : > { %2226 = vtanh.f32 %v896_v31  ;;  %v907_v35 = vadd.f32 %v1957_v33, %v2641_v8  ;;  %v1163_v36 = vadd.f32 %v2021_v34, %v2641_v8 }
 0x101   : > { %2228 = vtanh.f32 %v1152_v32  ;;  %v898_v37 = vpop.f32.mrf.mxu0  ;;  %v1154_v38 = vpop.f32.mrf.mxu1 }
 0x102   : > { %2230 = vtanh.f32 %v907_v35  ;;  %v899_v39 = vadd.f32 %v2641_v8, %v898_v37  ;;  %v1155_v40 = vadd.f32 %v2641_v8, %v1154_v38 }
 0x103   : > { %v2207_v41 = vpop.eup %2206  ;;  %2232 = vtanh.f32 %v1163_v36  ;;  %v1960_v42 = vpop.f32.mrf.mxu0 }
 0x104   : > { %v2024_v43 = vpop.f32.mrf.mxu1  ;;  %v2209_v44 = vpop.eup %2208  ;;  %1520 = vst [vmem:[%s2661_s8 + $0x10] sm:$0xff] %v2207_v41  ;;  %2234 = vtanh.f32 %v899_v39  ;;  %v920_v45 = vadd.f32 %v1960_v42, %v2641_v8 }
 0x105   : > { %v1176_v46 = vadd.f32 %v2024_v43, %v2641_v8  ;;  %v2211_v47 = vpop.eup %2210  ;;  %1584 = vst [vmem:[%s2661_s8 + $0x210] sm:$0xff] %v2209_v44  ;;  %2236 = vtanh.f32 %v1155_v40  ;;  %v911_v48 = vpop.f32.mrf.mxu0 }
 0x106   : > { %v1167_v49 = vpop.f32.mrf.mxu1  ;;  %v2213_v50 = vpop.eup %2212  ;;  %1518 = vst [vmem:[%s2661_s8] sm:$0xff] %v2211_v47  ;;  %2238 = vtanh.f32 %v920_v45  ;;  %v912_v51 = vadd.f32 %v2641_v8, %v911_v48 }
 0x107   : > { %v1168_v52 = vadd.f32 %v2641_v8, %v1167_v49  ;;  %v2215_v53 = vpop.eup %2214  ;;  %1582 = vst [vmem:[%s2661_s8 + $0x200] sm:$0xff] %v2213_v50  ;;  %2240 = vtanh.f32 %v1176_v46  ;;  %v1961_v54 = vpop.f32.mrf.mxu0 }
 0x108   : > { %v2025_v55 = vpop.f32.mrf.mxu1  ;;  %v2217_v56 = vpop.eup %2216  ;;  %1521 = vst [vmem:[%s2661_s8 + $0x18] sm:$0xff] %v2215_v53  ;;  %2242 = vtanh.f32 %v912_v51  ;;  %v923_v57 = vadd.f32 %v1961_v54, %v2641_v8 }
 0x109   : > { %v1179_v58 = vadd.f32 %v2025_v55, %v2641_v8  ;;  %v2219_v59 = vpop.eup %2218  ;;  %1585 = vst [vmem:[%s2661_s8 + $0x218] sm:$0xff] %v2217_v56  ;;  %2244 = vtanh.f32 %v1168_v52  ;;  %v914_v60 = vpop.f32.mrf.mxu0 }
 0x10a   : > { %v1170_v61 = vpop.f32.mrf.mxu1  ;;  %v2221_v62 = vpop.eup %2220  ;;  %1519 = vst [vmem:[%s2661_s8 + $0x8] sm:$0xff] %v2219_v59  ;;  %2246 = vtanh.f32 %v923_v57  ;;  %v915_v63 = vadd.f32 %v2641_v8, %v914_v60 }
 0x10b   : > { %v1171_v0 = vadd.f32 %v2641_v8, %v1170_v61  ;;  %v2223_v1 = vpop.eup %2222  ;;  %1583 = vst [vmem:[%s2661_s8 + $0x208] sm:$0xff] %v2221_v62  ;;  %2248 = vtanh.f32 %v1179_v58  ;;  %v1964_v2 = vpop.f32.mrf.mxu0 }
 0x10c   : > { %v2028_v3 = vpop.f32.mrf.mxu1  ;;  %v2225_v4 = vpop.eup %2224  ;;  %1524 = vst [vmem:[%s2661_s8 + $0x30] sm:$0xff] %v2223_v1  ;;  %2250 = vtanh.f32 %v915_v63  ;;  %v936_v5 = vadd.f32 %v1964_v2, %v2641_v8 }
 0x10d   : > { %v1192_v6 = vadd.f32 %v2028_v3, %v2641_v8  ;;  %v2227_v7 = vpop.eup %2226  ;;  %1588 = vst [vmem:[%s2661_s8 + $0x230] sm:$0xff] %v2225_v4  ;;  %2252 = vtanh.f32 %v1171_v0  ;;  %v927_v9 = vpop.f32.mrf.mxu0 }
 0x10e   : > { %v1183_v10 = vpop.f32.mrf.mxu1  ;;  %v2229_v11 = vpop.eup %2228  ;;  %1522 = vst [vmem:[%s2661_s8 + $0x20] sm:$0xff] %v2227_v7  ;;  %2254 = vtanh.f32 %v936_v5  ;;  %v928_v12 = vadd.f32 %v2641_v8, %v927_v9 }
 0x10f   : > { %v1184_v13 = vadd.f32 %v2641_v8, %v1183_v10  ;;  %v2231_v14 = vpop.eup %2230  ;;  %1586 = vst [vmem:[%s2661_s8 + $0x220] sm:$0xff] %v2229_v11  ;;  %2256 = vtanh.f32 %v1192_v6  ;;  %v1965_v15 = vpop.f32.mrf.mxu0 }
 0x110   : > { %v2029_v16 = vpop.f32.mrf.mxu1  ;;  %v2233_v17 = vpop.eup %2232  ;;  %1525 = vst [vmem:[%s2661_s8 + $0x38] sm:$0xff] %v2231_v14  ;;  %2258 = vtanh.f32 %v928_v12  ;;  %v939_v18 = vadd.f32 %v1965_v15, %v2641_v8 }
 0x111   : > { %v1195_v19 = vadd.f32 %v2029_v16, %v2641_v8  ;;  %v2235_v20 = vpop.eup %2234  ;;  %1589 = vst [vmem:[%s2661_s8 + $0x238] sm:$0xff] %v2233_v17  ;;  %2260 = vtanh.f32 %v1184_v13  ;;  %v930_v21 = vpop.f32.mrf.mxu0 }
 0x112   : > { %v1186_v22 = vpop.f32.mrf.mxu1  ;;  %v2237_v23 = vpop.eup %2236  ;;  %1523 = vst [vmem:[%s2661_s8 + $0x28] sm:$0xff] %v2235_v20  ;;  %2262 = vtanh.f32 %v939_v18  ;;  %v931_v24 = vadd.f32 %v2641_v8, %v930_v21 }
 0x113   : > { %v1187_v25 = vadd.f32 %v2641_v8, %v1186_v22  ;;  %v2239_v26 = vpop.eup %2238  ;;  %1587 = vst [vmem:[%s2661_s8 + $0x228] sm:$0xff] %v2237_v23  ;;  %2264 = vtanh.f32 %v1195_v19  ;;  %v1968_v27 = vpop.f32.mrf.mxu0 }
 0x114   : > { %v2032_v28 = vpop.f32.mrf.mxu1  ;;  %v2241_v29 = vpop.eup %2240  ;;  %1528 = vst [vmem:[%s2661_s8 + $0x50] sm:$0xff] %v2239_v26  ;;  %2266 = vtanh.f32 %v931_v24  ;;  %v952_v30 = vadd.f32 %v1968_v27, %v2641_v8 }
 0x115   : > { %v1208_v31 = vadd.f32 %v2032_v28, %v2641_v8  ;;  %v2243_v32 = vpop.eup %2242  ;;  %1592 = vst [vmem:[%s2661_s8 + $0x250] sm:$0xff] %v2241_v29  ;;  %2268 = vtanh.f32 %v1187_v25  ;;  %v943_v33 = vpop.f32.mrf.mxu0 }
 0x116   : > { %v1199_v34 = vpop.f32.mrf.mxu1  ;;  %v2245_v35 = vpop.eup %2244  ;;  %1526 = vst [vmem:[%s2661_s8 + $0x40] sm:$0xff] %v2243_v32  ;;  %2270 = vtanh.f32 %v952_v30  ;;  %v944_v36 = vadd.f32 %v2641_v8, %v943_v33 }
 0x117   : > { %v1200_v37 = vadd.f32 %v2641_v8, %v1199_v34  ;;  %v2247_v38 = vpop.eup %2246  ;;  %1590 = vst [vmem:[%s2661_s8 + $0x240] sm:$0xff] %v2245_v35  ;;  %2272 = vtanh.f32 %v1208_v31  ;;  %v1969_v39 = vpop.f32.mrf.mxu0 }
 0x118   : > { %v2033_v40 = vpop.f32.mrf.mxu1  ;;  %v2249_v41 = vpop.eup %2248  ;;  %1529 = vst [vmem:[%s2661_s8 + $0x58] sm:$0xff] %v2247_v38  ;;  %2274 = vtanh.f32 %v944_v36  ;;  %v955_v42 = vadd.f32 %v1969_v39, %v2641_v8 }
 0x119   : > { %v1211_v43 = vadd.f32 %v2033_v40, %v2641_v8  ;;  %v2251_v44 = vpop.eup %2250  ;;  %1593 = vst [vmem:[%s2661_s8 + $0x258] sm:$0xff] %v2249_v41  ;;  %2276 = vtanh.f32 %v1200_v37  ;;  %v946_v45 = vpop.f32.mrf.mxu0 }
 0x11a   : > { %v1202_v46 = vpop.f32.mrf.mxu1  ;;  %v2253_v47 = vpop.eup %2252  ;;  %1527 = vst [vmem:[%s2661_s8 + $0x48] sm:$0xff] %v2251_v44  ;;  %2278 = vtanh.f32 %v955_v42  ;;  %v947_v48 = vadd.f32 %v2641_v8, %v946_v45 }
 0x11b   : > { %v1203_v49 = vadd.f32 %v2641_v8, %v1202_v46  ;;  %v2255_v50 = vpop.eup %2254  ;;  %1591 = vst [vmem:[%s2661_s8 + $0x248] sm:$0xff] %v2253_v47  ;;  %2280 = vtanh.f32 %v1211_v43  ;;  %v1972_v51 = vpop.f32.mrf.mxu0 }
 0x11c   : > { %v2036_v52 = vpop.f32.mrf.mxu1  ;;  %v2257_v53 = vpop.eup %2256  ;;  %1532 = vst [vmem:[%s2661_s8 + $0x70] sm:$0xff] %v2255_v50  ;;  %2282 = vtanh.f32 %v947_v48  ;;  %v968_v54 = vadd.f32 %v1972_v51, %v2641_v8 }
 0x11d   : > { %v1224_v55 = vadd.f32 %v2036_v52, %v2641_v8  ;;  %v2259_v56 = vpop.eup %2258  ;;  %1596 = vst [vmem:[%s2661_s8 + $0x270] sm:$0xff] %v2257_v53  ;;  %2284 = vtanh.f32 %v1203_v49  ;;  %v959_v57 = vpop.f32.mrf.mxu0 }
 0x11e   : > { %v1215_v58 = vpop.f32.mrf.mxu1  ;;  %v2261_v59 = vpop.eup %2260  ;;  %1530 = vst [vmem:[%s2661_s8 + $0x60] sm:$0xff] %v2259_v56  ;;  %2286 = vtanh.f32 %v968_v54  ;;  %v960_v60 = vadd.f32 %v2641_v8, %v959_v57 }
 0x11f   : > { %v1216_v61 = vadd.f32 %v2641_v8, %v1215_v58  ;;  %v2263_v62 = vpop.eup %2262  ;;  %1594 = vst [vmem:[%s2661_s8 + $0x260] sm:$0xff] %v2261_v59  ;;  %2288 = vtanh.f32 %v1224_v55  ;;  %v1973_v63 = vpop.f32.mrf.mxu0 }
 0x120   : > { %v2037_v0 = vpop.f32.mrf.mxu1  ;;  %v2265_v1 = vpop.eup %2264  ;;  %1533 = vst [vmem:[%s2661_s8 + $0x78] sm:$0xff] %v2263_v62  ;;  %2290 = vtanh.f32 %v960_v60  ;;  %v971_v2 = vadd.f32 %v1973_v63, %v2641_v8 }
 0x121   : > { %v1227_v3 = vadd.f32 %v2037_v0, %v2641_v8  ;;  %v2267_v4 = vpop.eup %2266  ;;  %1597 = vst [vmem:[%s2661_s8 + $0x278] sm:$0xff] %v2265_v1  ;;  %2292 = vtanh.f32 %v1216_v61  ;;  %v962_v5 = vpop.f32.mrf.mxu0 }
 0x122   : > { %v1218_v6 = vpop.f32.mrf.mxu1  ;;  %v2269_v7 = vpop.eup %2268  ;;  %1531 = vst [vmem:[%s2661_s8 + $0x68] sm:$0xff] %v2267_v4  ;;  %2294 = vtanh.f32 %v971_v2  ;;  %v963_v9 = vadd.f32 %v2641_v8, %v962_v5 }
 0x123   : > { %v1219_v10 = vadd.f32 %v2641_v8, %v1218_v6  ;;  %v2271_v11 = vpop.eup %2270  ;;  %1595 = vst [vmem:[%s2661_s8 + $0x268] sm:$0xff] %v2269_v7  ;;  %2296 = vtanh.f32 %v1227_v3  ;;  %v1976_v12 = vpop.f32.mrf.mxu0 }
 0x124   : > { %v2040_v13 = vpop.f32.mrf.mxu1  ;;  %v2273_v14 = vpop.eup %2272  ;;  %1536 = vst [vmem:[%s2661_s8 + $0x90] sm:$0xff] %v2271_v11  ;;  %2298 = vtanh.f32 %v963_v9  ;;  %v984_v15 = vadd.f32 %v1976_v12, %v2641_v8 }
 0x125   : > { %v1240_v16 = vadd.f32 %v2040_v13, %v2641_v8  ;;  %v2275_v17 = vpop.eup %2274  ;;  %1600 = vst [vmem:[%s2661_s8 + $0x290] sm:$0xff] %v2273_v14  ;;  %2300 = vtanh.f32 %v1219_v10  ;;  %v975_v18 = vpop.f32.mrf.mxu0 }
 0x126   : > { %v1231_v19 = vpop.f32.mrf.mxu1  ;;  %v2277_v20 = vpop.eup %2276  ;;  %1534 = vst [vmem:[%s2661_s8 + $0x80] sm:$0xff] %v2275_v17  ;;  %2302 = vtanh.f32 %v984_v15  ;;  %v976_v21 = vadd.f32 %v2641_v8, %v975_v18 }
 0x127   : > { %v1232_v22 = vadd.f32 %v2641_v8, %v1231_v19  ;;  %v2279_v23 = vpop.eup %2278  ;;  %1598 = vst [vmem:[%s2661_s8 + $0x280] sm:$0xff] %v2277_v20  ;;  %2304 = vtanh.f32 %v1240_v16  ;;  %v1977_v24 = vpop.f32.mrf.mxu0 }
 0x128   : > { %v2041_v25 = vpop.f32.mrf.mxu1  ;;  %v2281_v26 = vpop.eup %2280  ;;  %1537 = vst [vmem:[%s2661_s8 + $0x98] sm:$0xff] %v2279_v23  ;;  %2306 = vtanh.f32 %v976_v21  ;;  %v987_v27 = vadd.f32 %v1977_v24, %v2641_v8 }
 0x129   : > { %v1243_v28 = vadd.f32 %v2041_v25, %v2641_v8  ;;  %v2283_v29 = vpop.eup %2282  ;;  %1601 = vst [vmem:[%s2661_s8 + $0x298] sm:$0xff] %v2281_v26  ;;  %2308 = vtanh.f32 %v1232_v22  ;;  %v978_v30 = vpop.f32.mrf.mxu0 }
 0x12a   : > { %v1234_v31 = vpop.f32.mrf.mxu1  ;;  %v2285_v32 = vpop.eup %2284  ;;  %1535 = vst [vmem:[%s2661_s8 + $0x88] sm:$0xff] %v2283_v29  ;;  %2310 = vtanh.f32 %v987_v27  ;;  %v979_v33 = vadd.f32 %v2641_v8, %v978_v30 }
 0x12b   : > { %v1235_v34 = vadd.f32 %v2641_v8, %v1234_v31  ;;  %v2287_v35 = vpop.eup %2286  ;;  %1599 = vst [vmem:[%s2661_s8 + $0x288] sm:$0xff] %v2285_v32  ;;  %2312 = vtanh.f32 %v1243_v28  ;;  %v1980_v36 = vpop.f32.mrf.mxu0 }
 0x12c   : > { %v2044_v37 = vpop.f32.mrf.mxu1  ;;  %v2289_v38 = vpop.eup %2288  ;;  %1540 = vst [vmem:[%s2661_s8 + $0xb0] sm:$0xff] %v2287_v35  ;;  %2314 = vtanh.f32 %v979_v33  ;;  %v1000_v39 = vadd.f32 %v1980_v36, %v2641_v8 }
 0x12d   : > { %v1256_v40 = vadd.f32 %v2044_v37, %v2641_v8  ;;  %v2291_v41 = vpop.eup %2290  ;;  %1604 = vst [vmem:[%s2661_s8 + $0x2b0] sm:$0xff] %v2289_v38  ;;  %2316 = vtanh.f32 %v1235_v34  ;;  %v991_v42 = vpop.f32.mrf.mxu0 }
 0x12e   : > { %v1247_v43 = vpop.f32.mrf.mxu1  ;;  %v2293_v44 = vpop.eup %2292  ;;  %1538 = vst [vmem:[%s2661_s8 + $0xa0] sm:$0xff] %v2291_v41  ;;  %2318 = vtanh.f32 %v1000_v39  ;;  %v992_v45 = vadd.f32 %v2641_v8, %v991_v42 }
 0x12f   : > { %v1248_v46 = vadd.f32 %v2641_v8, %v1247_v43  ;;  %v2295_v47 = vpop.eup %2294  ;;  %1602 = vst [vmem:[%s2661_s8 + $0x2a0] sm:$0xff] %v2293_v44  ;;  %2320 = vtanh.f32 %v1256_v40  ;;  %v1981_v48 = vpop.f32.mrf.mxu0 }
 0x130   : > { %v2045_v49 = vpop.f32.mrf.mxu1  ;;  %v2297_v50 = vpop.eup %2296  ;;  %1541 = vst [vmem:[%s2661_s8 + $0xb8] sm:$0xff] %v2295_v47  ;;  %2322 = vtanh.f32 %v992_v45  ;;  %v1003_v51 = vadd.f32 %v1981_v48, %v2641_v8 }
 0x131   : > { %v1259_v52 = vadd.f32 %v2045_v49, %v2641_v8  ;;  %v2299_v53 = vpop.eup %2298  ;;  %1605 = vst [vmem:[%s2661_s8 + $0x2b8] sm:$0xff] %v2297_v50  ;;  %2324 = vtanh.f32 %v1248_v46  ;;  %v994_v54 = vpop.f32.mrf.mxu0 }
 0x132   : > { %v1250_v55 = vpop.f32.mrf.mxu1  ;;  %v2301_v56 = vpop.eup %2300  ;;  %1539 = vst [vmem:[%s2661_s8 + $0xa8] sm:$0xff] %v2299_v53  ;;  %2326 = vtanh.f32 %v1003_v51  ;;  %v995_v57 = vadd.f32 %v2641_v8, %v994_v54 }
 0x133   : > { %v1251_v58 = vadd.f32 %v2641_v8, %v1250_v55  ;;  %v2303_v59 = vpop.eup %2302  ;;  %1603 = vst [vmem:[%s2661_s8 + $0x2a8] sm:$0xff] %v2301_v56  ;;  %2328 = vtanh.f32 %v1259_v52  ;;  %v1984_v60 = vpop.f32.mrf.mxu0 }
 0x134   : > { %v2048_v61 = vpop.f32.mrf.mxu1  ;;  %v2305_v62 = vpop.eup %2304  ;;  %1544 = vst [vmem:[%s2661_s8 + $0xd0] sm:$0xff] %v2303_v59  ;;  %2330 = vtanh.f32 %v995_v57  ;;  %v1016_v63 = vadd.f32 %v1984_v60, %v2641_v8 }
 0x135   : > { %v1272_v0 = vadd.f32 %v2048_v61, %v2641_v8  ;;  %v2307_v1 = vpop.eup %2306  ;;  %1608 = vst [vmem:[%s2661_s8 + $0x2d0] sm:$0xff] %v2305_v62  ;;  %2332 = vtanh.f32 %v1251_v58  ;;  %v1007_v2 = vpop.f32.mrf.mxu0 }
 0x136   : > { %v1263_v3 = vpop.f32.mrf.mxu1  ;;  %v2309_v4 = vpop.eup %2308  ;;  %1542 = vst [vmem:[%s2661_s8 + $0xc0] sm:$0xff] %v2307_v1  ;;  %2334 = vtanh.f32 %v1016_v63  ;;  %v1008_v5 = vadd.f32 %v2641_v8, %v1007_v2 }
 0x137   : > { %v1264_v6 = vadd.f32 %v2641_v8, %v1263_v3  ;;  %v2311_v7 = vpop.eup %2310  ;;  %1606 = vst [vmem:[%s2661_s8 + $0x2c0] sm:$0xff] %v2309_v4  ;;  %2336 = vtanh.f32 %v1272_v0  ;;  %v1985_v9 = vpop.f32.mrf.mxu0 }
 0x138   : > { %v2049_v10 = vpop.f32.mrf.mxu1  ;;  %v2313_v11 = vpop.eup %2312  ;;  %1545 = vst [vmem:[%s2661_s8 + $0xd8] sm:$0xff] %v2311_v7  ;;  %2338 = vtanh.f32 %v1008_v5  ;;  %v1019_v12 = vadd.f32 %v1985_v9, %v2641_v8 }
 0x139   : > { %v1275_v13 = vadd.f32 %v2049_v10, %v2641_v8  ;;  %v2315_v14 = vpop.eup %2314  ;;  %1609 = vst [vmem:[%s2661_s8 + $0x2d8] sm:$0xff] %v2313_v11  ;;  %2340 = vtanh.f32 %v1264_v6  ;;  %v1010_v15 = vpop.f32.mrf.mxu0 }
 0x13a   : > { %v1266_v16 = vpop.f32.mrf.mxu1  ;;  %v2317_v17 = vpop.eup %2316  ;;  %1543 = vst [vmem:[%s2661_s8 + $0xc8] sm:$0xff] %v2315_v14  ;;  %2342 = vtanh.f32 %v1019_v12  ;;  %v1011_v18 = vadd.f32 %v2641_v8, %v1010_v15 }
 0x13b   : > { %v1267_v19 = vadd.f32 %v2641_v8, %v1266_v16  ;;  %v2319_v20 = vpop.eup %2318  ;;  %1607 = vst [vmem:[%s2661_s8 + $0x2c8] sm:$0xff] %v2317_v17  ;;  %2344 = vtanh.f32 %v1275_v13  ;;  %v1988_v21 = vpop.f32.mrf.mxu0 }
 0x13c   : > { %v2052_v22 = vpop.f32.mrf.mxu1  ;;  %v2321_v23 = vpop.eup %2320  ;;  %1548 = vst [vmem:[%s2661_s8 + $0xf0] sm:$0xff] %v2319_v20  ;;  %2346 = vtanh.f32 %v1011_v18  ;;  %v1032_v24 = vadd.f32 %v1988_v21, %v2641_v8 }
 0x13d   : > { %v1288_v25 = vadd.f32 %v2052_v22, %v2641_v8  ;;  %v2323_v26 = vpop.eup %2322  ;;  %1612 = vst [vmem:[%s2661_s8 + $0x2f0] sm:$0xff] %v2321_v23  ;;  %2348 = vtanh.f32 %v1267_v19  ;;  %v1023_v27 = vpop.f32.mrf.mxu0 }
 0x13e   : > { %v1279_v28 = vpop.f32.mrf.mxu1  ;;  %v2325_v29 = vpop.eup %2324  ;;  %1546 = vst [vmem:[%s2661_s8 + $0xe0] sm:$0xff] %v2323_v26  ;;  %2350 = vtanh.f32 %v1032_v24  ;;  %v1024_v30 = vadd.f32 %v2641_v8, %v1023_v27 }
 0x13f   : > { %v1280_v31 = vadd.f32 %v2641_v8, %v1279_v28  ;;  %v2327_v32 = vpop.eup %2326  ;;  %1610 = vst [vmem:[%s2661_s8 + $0x2e0] sm:$0xff] %v2325_v29  ;;  %2352 = vtanh.f32 %v1288_v25  ;;  %v1989_v33 = vpop.f32.mrf.mxu0 }
 0x140   : > { %v2053_v34 = vpop.f32.mrf.mxu1  ;;  %v2329_v35 = vpop.eup %2328  ;;  %1549 = vst [vmem:[%s2661_s8 + $0xf8] sm:$0xff] %v2327_v32  ;;  %2354 = vtanh.f32 %v1024_v30  ;;  %v1035_v36 = vadd.f32 %v1989_v33, %v2641_v8 }
 0x141   : > { %v1291_v37 = vadd.f32 %v2053_v34, %v2641_v8  ;;  %v2331_v38 = vpop.eup %2330  ;;  %1613 = vst [vmem:[%s2661_s8 + $0x2f8] sm:$0xff] %v2329_v35  ;;  %2356 = vtanh.f32 %v1280_v31  ;;  %v1026_v39 = vpop.f32.mrf.mxu0 }
 0x142   : > { %v1282_v40 = vpop.f32.mrf.mxu1  ;;  %v2333_v41 = vpop.eup %2332  ;;  %1547 = vst [vmem:[%s2661_s8 + $0xe8] sm:$0xff] %v2331_v38  ;;  %2358 = vtanh.f32 %v1035_v36  ;;  %v1027_v42 = vadd.f32 %v2641_v8, %v1026_v39 }
 0x143   : > { %v1283_v43 = vadd.f32 %v2641_v8, %v1282_v40  ;;  %v2335_v44 = vpop.eup %2334  ;;  %1611 = vst [vmem:[%s2661_s8 + $0x2e8] sm:$0xff] %v2333_v41  ;;  %2360 = vtanh.f32 %v1291_v37  ;;  %v1992_v45 = vpop.f32.mrf.mxu0 }
 0x144   : > { %v2056_v46 = vpop.f32.mrf.mxu1  ;;  %v2337_v47 = vpop.eup %2336  ;;  %1552 = vst [vmem:[%s2661_s8 + $0x110] sm:$0xff] %v2335_v44  ;;  %2362 = vtanh.f32 %v1027_v42  ;;  %v1048_v48 = vadd.f32 %v1992_v45, %v2641_v8 }
 0x145   : > { %v1304_v49 = vadd.f32 %v2056_v46, %v2641_v8  ;;  %v2339_v50 = vpop.eup %2338  ;;  %1616 = vst [vmem:[%s2661_s8 + $0x310] sm:$0xff] %v2337_v47  ;;  %2364 = vtanh.f32 %v1283_v43  ;;  %v1039_v51 = vpop.f32.mrf.mxu0 }
 0x146   : > { %v1295_v52 = vpop.f32.mrf.mxu1  ;;  %v2341_v53 = vpop.eup %2340  ;;  %1550 = vst [vmem:[%s2661_s8 + $0x100] sm:$0xff] %v2339_v50  ;;  %2366 = vtanh.f32 %v1048_v48  ;;  %v1040_v54 = vadd.f32 %v2641_v8, %v1039_v51 }
 0x147   : > { %v1296_v55 = vadd.f32 %v2641_v8, %v1295_v52  ;;  %v2343_v56 = vpop.eup %2342  ;;  %1614 = vst [vmem:[%s2661_s8 + $0x300] sm:$0xff] %v2341_v53  ;;  %2368 = vtanh.f32 %v1304_v49  ;;  %v1993_v57 = vpop.f32.mrf.mxu0 }
 0x148   : > { %v2057_v58 = vpop.f32.mrf.mxu1  ;;  %v2345_v59 = vpop.eup %2344  ;;  %1553 = vst [vmem:[%s2661_s8 + $0x118] sm:$0xff] %v2343_v56  ;;  %2370 = vtanh.f32 %v1040_v54  ;;  %v1051_v60 = vadd.f32 %v1993_v57, %v2641_v8 }
 0x149   : > { %v1307_v61 = vadd.f32 %v2057_v58, %v2641_v8  ;;  %v2347_v62 = vpop.eup %2346  ;;  %1617 = vst [vmem:[%s2661_s8 + $0x318] sm:$0xff] %v2345_v59  ;;  %2372 = vtanh.f32 %v1296_v55  ;;  %v1042_v63 = vpop.f32.mrf.mxu0 }
 0x14a   : > { %v1298_v0 = vpop.f32.mrf.mxu1  ;;  %v2349_v1 = vpop.eup %2348  ;;  %1551 = vst [vmem:[%s2661_s8 + $0x108] sm:$0xff] %v2347_v62  ;;  %2374 = vtanh.f32 %v1051_v60  ;;  %v1043_v2 = vadd.f32 %v2641_v8, %v1042_v63 }
 0x14b   : > { %v1299_v3 = vadd.f32 %v2641_v8, %v1298_v0  ;;  %v2351_v4 = vpop.eup %2350  ;;  %1615 = vst [vmem:[%s2661_s8 + $0x308] sm:$0xff] %v2349_v1  ;;  %2376 = vtanh.f32 %v1307_v61  ;;  %v1996_v5 = vpop.f32.mrf.mxu0 }
 0x14c   : > { %v2060_v6 = vpop.f32.mrf.mxu1  ;;  %v2353_v7 = vpop.eup %2352  ;;  %1556 = vst [vmem:[%s2661_s8 + $0x130] sm:$0xff] %v2351_v4  ;;  %2378 = vtanh.f32 %v1043_v2  ;;  %v1064_v9 = vadd.f32 %v1996_v5, %v2641_v8  ;;  %v2853_v5 = vld [vmem:[%s2927_s2] ss:$0 sm:$0xff] }
 0x14d   : > { %v1320_v10 = vadd.f32 %v2060_v6, %v2641_v8  ;;  %v2355_v11 = vpop.eup %2354  ;;  %1620 = vst [vmem:[%s2661_s8 + $0x330] sm:$0xff] %v2353_v7  ;;  %2380 = vtanh.f32 %v1299_v3  ;;  %v1055_v12 = vpop.f32.mrf.mxu0 }
 0x14e   : > { %v1311_v13 = vpop.f32.mrf.mxu1  ;;  %v2357_v14 = vpop.eup %2356  ;;  %1554 = vst [vmem:[%s2661_s8 + $0x120] sm:$0xff] %v2355_v11  ;;  %2382 = vtanh.f32 %v1064_v9  ;;  %v1056_v15 = vadd.f32 %v2641_v8, %v1055_v12 }
 0x14f   : > { %v1312_v16 = vadd.f32 %v2641_v8, %v1311_v13  ;;  %v2359_v17 = vpop.eup %2358  ;;  %1618 = vst [vmem:[%s2661_s8 + $0x320] sm:$0xff] %v2357_v14  ;;  %2384 = vtanh.f32 %v1320_v10  ;;  %v1997_v18 = vpop.f32.mrf.mxu0 }
 0x150   : > { %v2061_v19 = vpop.f32.mrf.mxu1  ;;  %v2361_v20 = vpop.eup %2360  ;;  %1557 = vst [vmem:[%s2661_s8 + $0x138] sm:$0xff] %v2359_v17  ;;  %2386 = vtanh.f32 %v1056_v15  ;;  %v1067_v21 = vadd.f32 %v1997_v18, %v2641_v8 }
 0x151   : > { %v1323_v22 = vadd.f32 %v2061_v19, %v2641_v8  ;;  %v2363_v23 = vpop.eup %2362  ;;  %1621 = vst [vmem:[%s2661_s8 + $0x338] sm:$0xff] %v2361_v20  ;;  %2388 = vtanh.f32 %v1312_v16  ;;  %v1058_v24 = vpop.f32.mrf.mxu0 }
 0x152   : > { %v1314_v25 = vpop.f32.mrf.mxu1  ;;  %v2365_v26 = vpop.eup %2364  ;;  %1555 = vst [vmem:[%s2661_s8 + $0x128] sm:$0xff] %v2363_v23  ;;  %2390 = vtanh.f32 %v1067_v21  ;;  %v1059_v27 = vadd.f32 %v2641_v8, %v1058_v24 }
 0x153   : > { %v1315_v28 = vadd.f32 %v2641_v8, %v1314_v25  ;;  %v2367_v29 = vpop.eup %2366  ;;  %1619 = vst [vmem:[%s2661_s8 + $0x328] sm:$0xff] %v2365_v26  ;;  %2392 = vtanh.f32 %v1323_v22  ;;  %v2000_v30 = vpop.f32.mrf.mxu0 }
 0x154   : > { %v2064_v31 = vpop.f32.mrf.mxu1  ;;  %v2369_v32 = vpop.eup %2368  ;;  %1560 = vst [vmem:[%s2661_s8 + $0x150] sm:$0xff] %v2367_v29  ;;  %2394 = vtanh.f32 %v1059_v27  ;;  %v1080_v33 = vadd.f32 %v2000_v30, %v2641_v8 }
 0x155   : > { %v1336_v34 = vadd.f32 %v2064_v31, %v2641_v8  ;;  %v2371_v35 = vpop.eup %2370  ;;  %1624 = vst [vmem:[%s2661_s8 + $0x350] sm:$0xff] %v2369_v32  ;;  %2396 = vtanh.f32 %v1315_v28  ;;  %v1071_v36 = vpop.f32.mrf.mxu0 }
 0x156   : > { %v1327_v37 = vpop.f32.mrf.mxu1  ;;  %v2373_v38 = vpop.eup %2372  ;;  %1558 = vst [vmem:[%s2661_s8 + $0x140] sm:$0xff] %v2371_v35  ;;  %2398 = vtanh.f32 %v1080_v33  ;;  %v1072_v39 = vadd.f32 %v2641_v8, %v1071_v36 }
 0x157   : > { %v1328_v40 = vadd.f32 %v2641_v8, %v1327_v37  ;;  %v2375_v41 = vpop.eup %2374  ;;  %1622 = vst [vmem:[%s2661_s8 + $0x340] sm:$0xff] %v2373_v38  ;;  %2400 = vtanh.f32 %v1336_v34  ;;  %v2001_v42 = vpop.f32.mrf.mxu0 }
 0x158   : > { %v2065_v43 = vpop.f32.mrf.mxu1  ;;  %v2377_v44 = vpop.eup %2376  ;;  %1561 = vst [vmem:[%s2661_s8 + $0x158] sm:$0xff] %v2375_v41  ;;  %2402 = vtanh.f32 %v1072_v39  ;;  %v1083_v45 = vadd.f32 %v2001_v42, %v2641_v8 }
 0x159   : > { %v1339_v46 = vadd.f32 %v2065_v43, %v2641_v8  ;;  %v2379_v47 = vpop.eup %2378  ;;  %1625 = vst [vmem:[%s2661_s8 + $0x358] sm:$0xff] %v2377_v44  ;;  %2404 = vtanh.f32 %v1328_v40  ;;  %v1074_v48 = vpop.f32.mrf.mxu0 }
 0x15a   : > { %v1330_v49 = vpop.f32.mrf.mxu1  ;;  %v2381_v50 = vpop.eup %2380  ;;  %1559 = vst [vmem:[%s2661_s8 + $0x148] sm:$0xff] %v2379_v47  ;;  %2406 = vtanh.f32 %v1083_v45  ;;  %v1075_v51 = vadd.f32 %v2641_v8, %v1074_v48 }
 0x15b   : > { %v1331_v52 = vadd.f32 %v2641_v8, %v1330_v49  ;;  %v2383_v53 = vpop.eup %2382  ;;  %1623 = vst [vmem:[%s2661_s8 + $0x348] sm:$0xff] %v2381_v50  ;;  %2408 = vtanh.f32 %v1339_v46  ;;  %v2004_v54 = vpop.f32.mrf.mxu0 }
 0x15c   : > { %v2068_v55 = vpop.f32.mrf.mxu1  ;;  %v2385_v56 = vpop.eup %2384  ;;  %1564 = vst [vmem:[%s2661_s8 + $0x170] sm:$0xff] %v2383_v53  ;;  %2410 = vtanh.f32 %v1075_v51  ;;  %v1096_v57 = vadd.f32 %v2004_v54, %v2641_v8 }
 0x15d   : > { %v1352_v58 = vadd.f32 %v2068_v55, %v2641_v8  ;;  %v2387_v59 = vpop.eup %2386  ;;  %1628 = vst [vmem:[%s2661_s8 + $0x370] sm:$0xff] %v2385_v56  ;;  %2412 = vtanh.f32 %v1331_v52  ;;  %v1087_v60 = vpop.f32.mrf.mxu0 }
 0x15e   : > { %v1343_v61 = vpop.f32.mrf.mxu1  ;;  %v2389_v62 = vpop.eup %2388  ;;  %1562 = vst [vmem:[%s2661_s8 + $0x160] sm:$0xff] %v2387_v59  ;;  %2414 = vtanh.f32 %v1096_v57  ;;  %v1088_v63 = vadd.f32 %v2641_v8, %v1087_v60 }
 0x15f   : > { %v1344_v0 = vadd.f32 %v2641_v8, %v1343_v61  ;;  %v2391_v1 = vpop.eup %2390  ;;  %1626 = vst [vmem:[%s2661_s8 + $0x360] sm:$0xff] %v2389_v62  ;;  %2416 = vtanh.f32 %v1352_v58  ;;  %v2005_v2 = vpop.f32.mrf.mxu0 }
 0x160   : > { %v2069_v3 = vpop.f32.mrf.mxu1  ;;  %v2393_v4 = vpop.eup %2392  ;;  %1565 = vst [vmem:[%s2661_s8 + $0x178] sm:$0xff] %v2391_v1  ;;  %2418 = vtanh.f32 %v1088_v63  ;;  %v1099_v6 = vadd.f32 %v2853_v5, %v2005_v2 }
 0x161   : > { %v1355_v7 = vadd.f32 %v2853_v5, %v2069_v3  ;;  %v2395_v8 = vpop.eup %2394  ;;  %1629 = vst [vmem:[%s2661_s8 + $0x378] sm:$0xff] %v2393_v4  ;;  %2420 = vtanh.f32 %v1344_v0  ;;  %v1090_v9 = vpop.f32.mrf.mxu0 }
 0x162   : > { %v1346_v10 = vpop.f32.mrf.mxu1  ;;  %v2397_v11 = vpop.eup %2396  ;;  %1563 = vst [vmem:[%s2661_s8 + $0x168] sm:$0xff] %v2395_v8  ;;  %2422 = vtanh.f32 %v1099_v6  ;;  %v1091_v12 = vadd.f32 %v2853_v5, %v1090_v9 }
 0x163   : > { %v1347_v13 = vadd.f32 %v2853_v5, %v1346_v10  ;;  %v2399_v14 = vpop.eup %2398  ;;  %1627 = vst [vmem:[%s2661_s8 + $0x368] sm:$0xff] %v2397_v11  ;;  %2424 = vtanh.f32 %v1355_v7  ;;  %v2008_v15 = vpop.f32.mrf.mxu0 }
 0x164   : > { %v2072_v16 = vpop.f32.mrf.mxu1  ;;  %v2401_v17 = vpop.eup %2400  ;;  %1568 = vst [vmem:[%s2661_s8 + $0x190] sm:$0xff] %v2399_v14  ;;  %2426 = vtanh.f32 %v1091_v12  ;;  %v1112_v18 = vadd.f32 %v2853_v5, %v2008_v15 }
 0x165   : > { %v1368_v19 = vadd.f32 %v2853_v5, %v2072_v16  ;;  %v2403_v20 = vpop.eup %2402  ;;  %1632 = vst [vmem:[%s2661_s8 + $0x390] sm:$0xff] %v2401_v17  ;;  %2428 = vtanh.f32 %v1347_v13  ;;  %v1103_v21 = vpop.f32.mrf.mxu0 }
 0x166   : > { %v1359_v22 = vpop.f32.mrf.mxu1  ;;  %v2405_v23 = vpop.eup %2404  ;;  %1566 = vst [vmem:[%s2661_s8 + $0x180] sm:$0xff] %v2403_v20  ;;  %2430 = vtanh.f32 %v1112_v18  ;;  %v1104_v24 = vadd.f32 %v2853_v5, %v1103_v21 }
 0x167   : > { %v1360_v25 = vadd.f32 %v2853_v5, %v1359_v22  ;;  %v2407_v26 = vpop.eup %2406  ;;  %1630 = vst [vmem:[%s2661_s8 + $0x380] sm:$0xff] %v2405_v23  ;;  %2432 = vtanh.f32 %v1368_v19  ;;  %v2009_v27 = vpop.f32.mrf.mxu0 }
 0x168   : > { %v2073_v28 = vpop.f32.mrf.mxu1  ;;  %v2409_v29 = vpop.eup %2408  ;;  %1569 = vst [vmem:[%s2661_s8 + $0x198] sm:$0xff] %v2407_v26  ;;  %2434 = vtanh.f32 %v1104_v24  ;;  %v1115_v30 = vadd.f32 %v2853_v5, %v2009_v27 }
 0x169   : > { %v1371_v31 = vadd.f32 %v2853_v5, %v2073_v28  ;;  %v2411_v32 = vpop.eup %2410  ;;  %1633 = vst [vmem:[%s2661_s8 + $0x398] sm:$0xff] %v2409_v29  ;;  %2436 = vtanh.f32 %v1360_v25  ;;  %v1106_v33 = vpop.f32.mrf.mxu0 }
 0x16a   : > { %v1362_v34 = vpop.f32.mrf.mxu1  ;;  %v2413_v35 = vpop.eup %2412  ;;  %1567 = vst [vmem:[%s2661_s8 + $0x188] sm:$0xff] %v2411_v32  ;;  %2438 = vtanh.f32 %v1115_v30  ;;  %v1107_v36 = vadd.f32 %v2853_v5, %v1106_v33 }
 0x16b   : > { %v1363_v37 = vadd.f32 %v2853_v5, %v1362_v34  ;;  %v2415_v38 = vpop.eup %2414  ;;  %1631 = vst [vmem:[%s2661_s8 + $0x388] sm:$0xff] %v2413_v35  ;;  %2440 = vtanh.f32 %v1371_v31  ;;  %v2012_v39 = vpop.f32.mrf.mxu0 }
 0x16c   : > { %v2076_v40 = vpop.f32.mrf.mxu1  ;;  %v2417_v41 = vpop.eup %2416  ;;  %1572 = vst [vmem:[%s2661_s8 + $0x1b0] sm:$0xff] %v2415_v38  ;;  %2442 = vtanh.f32 %v1107_v36  ;;  %v1128_v42 = vadd.f32 %v2853_v5, %v2012_v39 }
 0x16d   : > { %v1384_v43 = vadd.f32 %v2853_v5, %v2076_v40  ;;  %v2419_v44 = vpop.eup %2418  ;;  %1636 = vst [vmem:[%s2661_s8 + $0x3b0] sm:$0xff] %v2417_v41  ;;  %2444 = vtanh.f32 %v1363_v37  ;;  %v1119_v45 = vpop.f32.mrf.mxu0 }
 0x16e   : > { %v1375_v46 = vpop.f32.mrf.mxu1  ;;  %v2421_v47 = vpop.eup %2420  ;;  %1570 = vst [vmem:[%s2661_s8 + $0x1a0] sm:$0xff] %v2419_v44  ;;  %2446 = vtanh.f32 %v1128_v42  ;;  %v1120_v48 = vadd.f32 %v2853_v5, %v1119_v45 }
 0x16f   : > { %v1376_v49 = vadd.f32 %v2853_v5, %v1375_v46  ;;  %v2423_v50 = vpop.eup %2422  ;;  %1634 = vst [vmem:[%s2661_s8 + $0x3a0] sm:$0xff] %v2421_v47  ;;  %2448 = vtanh.f32 %v1384_v43  ;;  %v2013_v51 = vpop.f32.mrf.mxu0 }
 0x170   : > { %v2077_v52 = vpop.f32.mrf.mxu1  ;;  %v2425_v53 = vpop.eup %2424  ;;  %1573 = vst [vmem:[%s2661_s8 + $0x1b8] sm:$0xff] %v2423_v50  ;;  %2450 = vtanh.f32 %v1120_v48  ;;  %v1131_v54 = vadd.f32 %v2853_v5, %v2013_v51 }
 0x171   : > { %v1387_v55 = vadd.f32 %v2853_v5, %v2077_v52  ;;  %v2427_v56 = vpop.eup %2426  ;;  %1637 = vst [vmem:[%s2661_s8 + $0x3b8] sm:$0xff] %v2425_v53  ;;  %2452 = vtanh.f32 %v1376_v49  ;;  %v1122_v57 = vpop.f32.mrf.mxu0 }
 0x172   : > { %v1378_v58 = vpop.f32.mrf.mxu1  ;;  %v2429_v59 = vpop.eup %2428  ;;  %1571 = vst [vmem:[%s2661_s8 + $0x1a8] sm:$0xff] %v2427_v56  ;;  %2454 = vtanh.f32 %v1131_v54  ;;  %v1123_v60 = vadd.f32 %v2853_v5, %v1122_v57 }
 0x173   : > { %v1379_v61 = vadd.f32 %v2853_v5, %v1378_v58  ;;  %v2431_v62 = vpop.eup %2430  ;;  %1635 = vst [vmem:[%s2661_s8 + $0x3a8] sm:$0xff] %v2429_v59  ;;  %2456 = vtanh.f32 %v1387_v55 }
 0x174   : > { %v2433_v63 = vpop.eup %2432  ;;  %1576 = vst [vmem:[%s2661_s8 + $0x1d0] sm:$0xff] %v2431_v62  ;;  %2458 = vtanh.f32 %v1123_v60 }
 0x175   : > { %v2435_v0 = vpop.eup %2434  ;;  %1640 = vst [vmem:[%s2661_s8 + $0x3d0] sm:$0xff] %v2433_v63  ;;  %2460 = vtanh.f32 %v1379_v61 }
 0x176   : > { %v2437_v1 = vpop.eup %2436  ;;  %1574 = vst [vmem:[%s2661_s8 + $0x1c0] sm:$0xff] %v2435_v0 }
 0x177   : > { %v2439_v2 = vpop.eup %2438  ;;  %1638 = vst [vmem:[%s2661_s8 + $0x3c0] sm:$0xff] %v2437_v1 }
 0x178   : > { %v2441_v3 = vpop.eup %2440  ;;  %1577 = vst [vmem:[%s2661_s8 + $0x1d8] sm:$0xff] %v2439_v2 }
 0x179   : > { %v2443_v4 = vpop.eup %2442  ;;  %1641 = vst [vmem:[%s2661_s8 + $0x3d8] sm:$0xff] %v2441_v3 }
 0x17a   : > { %v2445_v5 = vpop.eup %2444  ;;  %1575 = vst [vmem:[%s2661_s8 + $0x1c8] sm:$0xff] %v2443_v4 }
 0x17b   : > { %v2447_v6 = vpop.eup %2446  ;;  %1639 = vst [vmem:[%s2661_s8 + $0x3c8] sm:$0xff] %v2445_v5 }
 0x17c   : > { %v2449_v7 = vpop.eup %2448  ;;  %1580 = vst [vmem:[%s2661_s8 + $0x1f0] sm:$0xff] %v2447_v6 }
 0x17d   : > { %v2451_v8 = vpop.eup %2450  ;;  %1644 = vst [vmem:[%s2661_s8 + $0x3f0] sm:$0xff] %v2449_v7 }
 0x17e   : > { %v2453_v9 = vpop.eup %2452  ;;  %1578 = vst [vmem:[%s2661_s8 + $0x1e0] sm:$0xff] %v2451_v8 }
 0x17f   : > { %v2455_v10 = vpop.eup %2454  ;;  %1642 = vst [vmem:[%s2661_s8 + $0x3e0] sm:$0xff] %v2453_v9 }
 0x180   : > { %v2457_v11 = vpop.eup %2456  ;;  %1581 = vst [vmem:[%s2661_s8 + $0x1f8] sm:$0xff] %v2455_v10 }
 0x181   : > { %v2459_v12 = vpop.eup %2458  ;;  %1645 = vst [vmem:[%s2661_s8 + $0x3f8] sm:$0xff] %v2457_v11 }
 0x182   : > { %v2461_v13 = vpop.eup %2460  ;;  %1579 = vst [vmem:[%s2661_s8 + $0x1e8] sm:$0xff] %v2459_v12 }
 0x183   : > { %1643 = vst [vmem:[%s2661_s8 + $0x3e8] sm:$0xff] %v2461_v13 }
 0x184 PF: > { %s13_s16 = sadd.s32 1, %s2501_s16   ;;  %s2929_s12 = smov %s2493_s14 }
 0x185   : > { %p10_p7 = scmp.ge.s32.totalorder %s13_s16, 10   ;;  %s2930_s13 = smov %s2497_s15 }
 0x186   : > { %s2931_s14 = smov %s2934_s17  ;;  %s2932_s15 = smov %s2938_s18 }
 0x187   :  { %12 = sbr.rel (!%p10_p7) target bundleno = 3 (0x3), region = 65 }

</bundles_post_ra>
